<compile_context>
chip_gen: v7x
topology: tpu7x:2x2x1
jax: 0.10.0
libtpu: 0.0.40
codegen_flags: <defaults>
</compile_context>

<pallas_src>
import math

import jax
import jax.numpy as jnp
import numpy as np
from jax import lax
from jax.experimental import pallas as pl
from jax.experimental.pallas import tpu as pltpu

LAYER_CONFIG = [0, -1, 1]
OUT_SIZE = (16, 16)
IN_PLANES = 64

H = W = 16
HW = H * W                  # 256
C = IN_PLANES               # 64
K0 = 16                     # layer-0 im2col contraction dim (9 taps zero-padded to 16)
K64 = 9 * C                 # 576


# ----------------------------------------------------------------------------
# Fused Pallas kernel: one batch element end-to-end, activations VMEM-resident
# ----------------------------------------------------------------------------
def _encoder_kernel(col0_ref, w0_ref, w1_ref, w2_ref, w3_ref, w4_ref, b4_ref,
                    scale_ref, bias_ref, gather_ref, out_ref, pad_ref, col_ref):
    def affine_relu(y, li):
        # folded-BN per-channel affine + ReLU, in f32 on the f32 accumulator
        return jnp.maximum(y * scale_ref[li:li + 1, :] + bias_ref[li:li + 1, :], 0.0)

    def fill_patches(act):
        # act: (HW, C) f32 -> interior of the shared zero-bordered pad buffer
        pad_ref[1:H + 1, 1:W + 1, :] = act.reshape(H, W, C)

    def conv64(act, li, w_ref_):
        # 3x3 / stride-1 / pad-1 conv (C->C) as ONE im2col matmul:
        #   build (HW, 9C) bf16 im2col into VMEM scratch, then a single K=576
        #   MXU matmul with f32 accumulation; epilogue = folded BN + ReLU.
        fill_patches(act)
        for dy in range(3):
            for dx in range(3):
                t = dy * 3 + dx
                patch = pad_ref[dy:dy + H, dx:dx + W, :].reshape(HW, C)
                col_ref[:, t * C:(t + 1) * C] = patch.astype(jnp.bfloat16)
        y = jnp.dot(col_ref[...], w_ref_[...], preferred_element_type=jnp.float32)
        return affine_relu(y, li)

    # Zero the padded buffer once; only its 16x16 interior is rewritten per
    # layer, so the 1-pixel zero border is established a single time.
    pad_ref[...] = jnp.zeros_like(pad_ref)

    # ---- in_layer: Conv(1->64, k3 s1 p1) + BN + ReLU (pre-built K=16 im2col) ----
    a = jnp.dot(col0_ref[0], w0_ref[...], preferred_element_type=jnp.float32)
    a = affine_relu(a, 0)

    # ---- block 0 (identity): Conv(64->64, s1) + BN + ReLU ----
    a = conv64(a, 1, w1_ref)

    # ---- block 1 (downsample): Conv(64->64, s2) + BN + ReLU ----
    # Computed as the stride-1 conv; the stride-2 result is its even rows/cols
    # (BN/ReLU commute with subsampling).  The subsample never leaves VMEM.
    # TODO(synk): build the im2col only for even output positions to skip ~75%
    #             of this layer's (tiny) FLOPs.
    z = conv64(a, 2, w2_ref)

    # ---- block 2 (upsample): Upsample(x2 nearest) + Conv(64->64, s1) + BN + ReLU ----
    # (take even rows/cols) o (nearest 2x upsample) == gather z[2*(y//2), 2*(x//2)];
    # done as one 0/1 gather matmul so it stays on the MXU and in VMEM.
    u = jnp.dot(gather_ref[...], z.astype(jnp.bfloat16),
                preferred_element_type=jnp.float32)
    a = conv64(u, 3, w3_ref)

    # ---- out_layer: Upsample(size=(16,16)) is the identity at 16x16;
    #      Conv(64->1, k3 s1 p1) + bias, then tanh.  Cout=1 runs on the VPU
    #      (per-tap weighted partials + one lane reduce) instead of an N=1 matmul.
    fill_patches(a)
    acc = jnp.zeros((HW, C), jnp.float32)
    for dy in range(3):
        for dx in range(3):
            t = dy * 3 + dx
            patch = pad_ref[dy:dy + H, dx:dx + W, :].reshape(HW, C)
            patch = patch.astype(jnp.bfloat16).astype(jnp.float32)  # match MXU bf16 rounding
            acc = acc + patch * w4_ref[t:t + 1, :]
    s = jnp.sum(acc, axis=-1, keepdims=True) + b4_ref[...]
    out_ref[...] = jnp.tanh(s).reshape(1, HW, 1)


# ----------------------------------------------------------------------------
# Wrapper: parameter packing + the single pallas_call
# ----------------------------------------------------------------------------
def encoder_forward(params, x_nchw):
    N, Cin, Hx, Wx = x_nchw.shape
    assert (Cin, Hx, Wx) == (1, H, W), "this Encoder config expects (N, 1, 16, 16)"

    # Tiny input layout prep (~16 KiB total): im2col for the Cin=1 first conv,
    # contraction dim zero-padded 9 -> 16.
    xi = x_nchw.reshape(N, H, W).astype(jnp.float32)
    xp = jnp.pad(xi, ((0, 0), (1, 1), (1, 1)))
    col0 = jnp.stack([xp[:, dy:dy + H, dx:dx + W].reshape(N, HW)
                      for dy in range(3) for dx in range(3)], axis=-1)       # (N, 256, 9)
    col0 = jnp.concatenate(
        [col0, jnp.zeros((N, HW, K0 - 9), col0.dtype)], axis=-1).astype(jnp.bfloat16)

    # Weights packed for the in-kernel im2col ordering (tap-major, then cin).
    w0 = jnp.zeros((K0, C), jnp.float32).at[:9, :].set(
        params['in_w'].reshape(9, C)).astype(jnp.bfloat16)
    w1, w2, w3 = (params['blocks'][i]['w'].reshape(K64, C).astype(jnp.bfloat16)
                  for i in range(3))
    # Final 64->1 conv runs on the VPU in f32; pre-round to bf16 to match the
    # bf16-MXU precision used everywhere else (and in the reference).
    w4 = params['out_w'].reshape(9, C).astype(jnp.bfloat16).astype(jnp.float32)
    b4 = params['out_b'].reshape(1, 1).astype(jnp.float32)
    scales = jnp.stack([params['in_scale']] +
                       [params['blocks'][i]['scale'] for i in range(3)])     # (4, 64)
    biases = jnp.stack([params['in_bias']] +
                       [params['blocks'][i]['bias'] for i in range(3)])      # (4, 64)

    # 0/1 gather matrix fusing (stride-2 subsample) o (nearest 2x upsample):
    # output pixel r=(y,x) selects source pixel (2*(y//2), 2*(x//2)).
    r = np.arange(HW)
    src = ((r // W) // 2) * (2 * W) + ((r % W) // 2) * 2
    gather = jnp.asarray(
        (np.arange(HW)[None, :] == src[:, None]).astype(np.float32)).astype(jnp.bfloat16)

    out = pl.pallas_call(
        _encoder_kernel,
        out_shape=jax.ShapeDtypeStruct((N, HW, 1), jnp.float32),
        grid_spec=pltpu.PrefetchScalarGridSpec(
            num_scalar_prefetch=0,
            grid=(N,),
            in_specs=[
                pl.BlockSpec((1, HW, K0), lambda n: (n, 0, 0)),   # layer-0 im2col
                pl.BlockSpec((K0, C), lambda n: (0, 0)),          # w0
                pl.BlockSpec((K64, C), lambda n: (0, 0)),         # w1 (identity block)
                pl.BlockSpec((K64, C), lambda n: (0, 0)),         # w2 (downsample block)
                pl.BlockSpec((K64, C), lambda n: (0, 0)),         # w3 (upsample block)
                pl.BlockSpec((9, C), lambda n: (0, 0)),           # w4 (out conv, VPU)
                pl.BlockSpec((1, 1), lambda n: (0, 0)),           # out conv bias
                pl.BlockSpec((4, C), lambda n: (0, 0)),           # folded-BN scales
                pl.BlockSpec((4, C), lambda n: (0, 0)),           # folded-BN biases
                pl.BlockSpec((HW, HW), lambda n: (0, 0)),         # down+up gather matrix
            ],
            out_specs=pl.BlockSpec((1, HW, 1), lambda n: (n, 0, 0)),
            scratch_shapes=[
                pltpu.VMEM((H + 2, W + 2, C), jnp.float32),       # shared zero-padded activation
                pltpu.VMEM((HW, K64), jnp.bfloat16),              # shared im2col buffer
            ],
        ),
        compiler_params=pltpu.CompilerParams(
            dimension_semantics=("parallel",)),    # one image per TensorCore on v7x
    )(col0, w0, w1, w2, w3, w4, b4, scales, biases, gather)

    return out.reshape(N, 1, H, W)


# ----------------------------------------------------------------------------
# Pure-JAX reference (bf16 operands + f32 accumulation == MXU-native precision)
# ----------------------------------------------------------------------------
def upsample_nearest(x, out_hw):
    """nn.Upsample(mode='nearest') semantics: src = floor(dst * in/out)."""
    _, Hi, Wi, _ = x.shape
    Ho, Wo = out_hw
    ri = (jnp.arange(Ho) * Hi) // Ho
    ci = (jnp.arange(Wo) * Wi) // Wo
    return x[:, ri][:, :, ci]


def _ref_conv(x, w, stride):
    return lax.conv_general_dilated(
        x.astype(jnp.bfloat16), w.astype(jnp.bfloat16),
        window_strides=(stride, stride), padding=[(1, 1), (1, 1)],
        dimension_numbers=('NHWC', 'HWIO', 'NHWC'),
        preferred_element_type=jnp.float32)


def ref_forward(params, x_nchw):
    x = jnp.transpose(x_nchw, (0, 2, 3, 1)).astype(jnp.float32)

    def block(y, w, scale, bias, stride):
        y = _ref_conv(y, w, stride)
        y = y * scale.reshape(1, 1, 1, -1) + bias.reshape(1, 1, 1, -1)
        return jnp.maximum(y, 0.0)

    y = block(x, params['in_w'], params['in_scale'], params['in_bias'], 1)
    for p, factor in zip(params['blocks'], LAYER_CONFIG):
        if factor > 0:
            y = upsample_nearest(y, (2 * y.shape[1], 2 * y.shape[2]))
            y = block(y, p['w'], p['scale'], p['bias'], 1)
        elif factor < 0:
            y = block(y, p['w'], p['scale'], p['bias'], 2)
        else:
            y = block(y, p['w'], p['scale'], p['bias'], 1)
    y = upsample_nearest(y, OUT_SIZE)
    y = _ref_conv(y, params['out_w'], 1) + params['out_b'].reshape(1, 1, 1, -1)
    y = jnp.tanh(y)
    return jnp.transpose(y, (0, 3, 1, 2))


# ----------------------------------------------------------------------------
# Deterministic parameter init (eval-mode BatchNorm folded to scale/bias)
# ----------------------------------------------------------------------------
def init_params(key):
    keys = iter(jax.random.split(key, 16))

    def conv_w(k, cin, cout):
        return jax.random.normal(k, (3, 3, cin, cout), jnp.float32) * (
            1.0 / math.sqrt(9 * cin))

    def bn_fold(k, c):
        k1, k2, k3, k4 = jax.random.split(k, 4)
        gamma = 1.0 + 0.1 * jax.random.normal(k1, (c,), jnp.float32)
        beta = 0.1 * jax.random.normal(k2, (c,), jnp.float32)
        mean = 0.1 * jax.random.normal(k3, (c,), jnp.float32)
        var = 0.5 + jax.random.uniform(k4, (c,), jnp.float32)
        eps = 1e-5
        scale = gamma / jnp.sqrt(var + eps)
        bias = beta - mean * scale
        return scale, bias

    params = {}
    params['in_w'] = conv_w(next(keys), 1, IN_PLANES)
    params['in_scale'], params['in_bias'] = bn_fold(next(keys), IN_PLANES)
    blocks = []
    for _ in LAYER_CONFIG:
        w = conv_w(next(keys), IN_PLANES, IN_PLANES)
        s, b = bn_fold(next(keys), IN_PLANES)
        blocks.append({'w': w, 'scale': s, 'bias': b})
    params['blocks'] = blocks
    params['out_w'] = conv_w(next(keys), IN_PLANES, 1)
    params['out_b'] = 0.1 * jax.random.normal(next(keys), (1,), jnp.float32)
    return params


if __name__ == "__main__":
    key = jax.random.PRNGKey(0)
    kx, kp = jax.random.split(key)
    # PyTorch-style NCHW input: batch=2, channels=1 (Conv2d(1, 64, ...)), 16x16
    x = jax.random.normal(kx, (2, 1, 16, 16), jnp.float32)
    params = init_params(kp)

    out = jax.block_until_ready(jax.jit(encoder_forward)(params, x))
    ref = jax.block_until_ready(ref_forward(params, x))

    assert out.shape == (2, 1, OUT_SIZE[0], OUT_SIZE[1]), out.shape
    np.testing.assert_allclose(np.asarray(out), np.asarray(ref),
                               rtol=5e-3, atol=5e-3)
    print("KERNEL_OK")
</pallas_src>

<mosaic_0001>
module attributes {stable_mosaic.version = 11 : i64} {
  func.func @_encoder_kernel(%arg0: i32, %arg1: memref<1x256x16xbf16, #tpu.memory_space<vmem>>, %arg2: memref<16x64xbf16, #tpu.memory_space<vmem>>, %arg3: memref<576x64xbf16, #tpu.memory_space<vmem>>, %arg4: memref<576x64xbf16, #tpu.memory_space<vmem>>, %arg5: memref<576x64xbf16, #tpu.memory_space<vmem>>, %arg6: memref<9x64xf32, #tpu.memory_space<vmem>>, %arg7: memref<1x1xf32, #tpu.memory_space<vmem>>, %arg8: memref<4x64xf32, #tpu.memory_space<vmem>>, %arg9: memref<4x64xf32, #tpu.memory_space<vmem>>, %arg10: memref<256x256xbf16, #tpu.memory_space<vmem>>, %arg11: memref<1x256x1xf32, #tpu.memory_space<vmem>>, %arg12: memref<18x18x64xf32, #tpu.memory_space<vmem>>, %arg13: memref<256x576xbf16, #tpu.memory_space<vmem>>) attributes {dimension_semantics = [#tpu.dimension_semantics<parallel>], iteration_bounds = array<i64: 2>, scalar_prefetch = 0 : i64, scratch_operands = 2 : i64, tpu.core_type = #tpu.core_type<tc>, window_params = [{transform_indices = @transform_0, window_bounds = array<i64: 1, 256, 16>}, {pipeline_mode = #tpu.pipeline_mode<synchronous>, transform_indices = @transform_1, window_bounds = array<i64: 16, 64>}, {pipeline_mode = #tpu.pipeline_mode<synchronous>, transform_indices = @transform_2, window_bounds = array<i64: 576, 64>}, {pipeline_mode = #tpu.pipeline_mode<synchronous>, transform_indices = @transform_3, window_bounds = array<i64: 576, 64>}, {pipeline_mode = #tpu.pipeline_mode<synchronous>, transform_indices = @transform_4, window_bounds = array<i64: 576, 64>}, {pipeline_mode = #tpu.pipeline_mode<synchronous>, transform_indices = @transform_5, window_bounds = array<i64: 9, 64>}, {pipeline_mode = #tpu.pipeline_mode<synchronous>, transform_indices = @transform_6, window_bounds = array<i64: 1, 1>}, {pipeline_mode = #tpu.pipeline_mode<synchronous>, transform_indices = @transform_7, window_bounds = array<i64: 4, 64>}, {pipeline_mode = #tpu.pipeline_mode<synchronous>, transform_indices = @transform_8, window_bounds = array<i64: 4, 64>}, {pipeline_mode = #tpu.pipeline_mode<synchronous>, transform_indices = @transform_9, window_bounds = array<i64: 256, 256>}, {transform_indices = @transform_10, window_bounds = array<i64: 1, 256, 1>}]} {
    %cst = arith.constant 0.000000e+00 : f32
    %0 = vector.broadcast %cst : f32 to vector<18x18x64xf32>
    %c0 = arith.constant 0 : index
    %c0_0 = arith.constant 0 : index
    %c0_1 = arith.constant 0 : index
    %1 = vector.load %arg12[%c0, %c0_0, %c0_1] : memref<18x18x64xf32, #tpu.memory_space<vmem>>, vector<18x18x64xf32>
    tpu.vector_store %arg12[%c0, %c0_0, %c0_1], %0 {strides = array<i32>} : memref<18x18x64xf32, #tpu.memory_space<vmem>>, vector<18x18x64xf32>,
    %c0_2 = arith.constant 0 : index
    %c0_3 = arith.constant 0 : index
    %c0_4 = arith.constant 0 : index
    %2 = vector.load %arg1[%c0_2, %c0_3, %c0_4] : memref<1x256x16xbf16, #tpu.memory_space<vmem>>, vector<1x256x16xbf16>
    %3 = vector.shape_cast %2 : vector<1x256x16xbf16> to vector<256x16xbf16>
    %c0_5 = arith.constant 0 : index
    %c0_6 = arith.constant 0 : index
    %4 = vector.load %arg2[%c0_5, %c0_6] : memref<16x64xbf16, #tpu.memory_space<vmem>>, vector<16x64xbf16>
    %cst_7 = arith.constant dense<0.000000e+00> : vector<256x64xf32>
    %5 = tpu.matmul %3, %4, %cst_7 {dimension_numbers = #tpu.dot_dimension_numbers<[1], [0], [0], [1], [0, 0, 1, 1], [], []>} : vector<256x16xbf16>, vector<16x64xbf16>, vector<256x64xf32> -> vector<256x64xf32>
    %c0_8 = arith.constant 0 : index
    %c0_9 = arith.constant 0 : index
    %6 = vector.load %arg8[%c0_8, %c0_9] : memref<4x64xf32, #tpu.memory_space<vmem>>, vector<1x64xf32>
    %7 = vector.broadcast %6 : vector<1x64xf32> to vector<256x64xf32>
    %8 = arith.mulf %5, %7 : vector<256x64xf32>
    %c0_10 = arith.constant 0 : index
    %c0_11 = arith.constant 0 : index
    %9 = vector.load %arg9[%c0_10, %c0_11] : memref<4x64xf32, #tpu.memory_space<vmem>>, vector<1x64xf32>
    %10 = vector.broadcast %9 : vector<1x64xf32> to vector<256x64xf32>
    %11 = arith.addf %8, %10 : vector<256x64xf32>
    %cst_12 = arith.constant 0.000000e+00 : f32
    %12 = vector.broadcast %cst_12 : f32 to vector<256x64xf32>
    %13 = arith.maximumf %11, %12 : vector<256x64xf32>
    %14 = vector.shape_cast %13 : vector<256x64xf32> to vector<16x16x64xf32>
    %c1 = arith.constant 1 : index
    %c1_13 = arith.constant 1 : index
    %c0_14 = arith.constant 0 : index
    %15 = vector.load %arg12[%c1, %c1_13, %c0_14] : memref<18x18x64xf32, #tpu.memory_space<vmem>>, vector<16x16x64xf32>
    tpu.vector_store %arg12[%c1, %c1_13, %c0_14], %14 {strides = array<i32>} : memref<18x18x64xf32, #tpu.memory_space<vmem>>, vector<16x16x64xf32>,
    %c0_15 = arith.constant 0 : index
    %c0_16 = arith.constant 0 : index
    %c0_17 = arith.constant 0 : index
    %16 = vector.load %arg12[%c0_15, %c0_16, %c0_17] : memref<18x18x64xf32, #tpu.memory_space<vmem>>, vector<16x16x64xf32>
    %17 = vector.shape_cast %16 : vector<16x16x64xf32> to vector<256x64xf32>
    %18 = arith.truncf %17 : vector<256x64xf32> to vector<256x64xbf16>
    %c0_18 = arith.constant 0 : index
    %c0_19 = arith.constant 0 : index
    %19 = vector.load %arg13[%c0_18, %c0_19] : memref<256x576xbf16, #tpu.memory_space<vmem>>, vector<256x64xbf16>
    tpu.vector_store %arg13[%c0_18, %c0_19], %18 {strides = array<i32>} : memref<256x576xbf16, #tpu.memory_space<vmem>>, vector<256x64xbf16>,
    %c0_20 = arith.constant 0 : index
    %c1_21 = arith.constant 1 : index
    %c0_22 = arith.constant 0 : index
    %20 = vector.load %arg12[%c0_20, %c1_21, %c0_22] : memref<18x18x64xf32, #tpu.memory_space<vmem>>, vector<16x16x64xf32>
    %21 = vector.shape_cast %20 : vector<16x16x64xf32> to vector<256x64xf32>
    %22 = arith.truncf %21 : vector<256x64xf32> to vector<256x64xbf16>
    %c0_23 = arith.constant 0 : index
    %c64 = arith.constant 64 : index
    %23 = vector.load %arg13[%c0_23, %c64] : memref<256x576xbf16, #tpu.memory_space<vmem>>, vector<256x64xbf16>
    tpu.vector_store %arg13[%c0_23, %c64], %22 {strides = array<i32>} : memref<256x576xbf16, #tpu.memory_space<vmem>>, vector<256x64xbf16>,
    %c0_24 = arith.constant 0 : index
    %c2 = arith.constant 2 : index
    %c0_25 = arith.constant 0 : index
    %24 = vector.load %arg12[%c0_24, %c2, %c0_25] : memref<18x18x64xf32, #tpu.memory_space<vmem>>, vector<16x16x64xf32>
    %25 = vector.shape_cast %24 : vector<16x16x64xf32> to vector<256x64xf32>
    %26 = arith.truncf %25 : vector<256x64xf32> to vector<256x64xbf16>
    %c0_26 = arith.constant 0 : index
    %c128 = arith.constant 128 : index
    %27 = vector.load %arg13[%c0_26, %c128] : memref<256x576xbf16, #tpu.memory_space<vmem>>, vector<256x64xbf16>
    tpu.vector_store %arg13[%c0_26, %c128], %26 {strides = array<i32>} : memref<256x576xbf16, #tpu.memory_space<vmem>>, vector<256x64xbf16>,
    %c1_27 = arith.constant 1 : index
    %c0_28 = arith.constant 0 : index
    %c0_29 = arith.constant 0 : index
    %28 = vector.load %arg12[%c1_27, %c0_28, %c0_29] : memref<18x18x64xf32, #tpu.memory_space<vmem>>, vector<16x16x64xf32>
    %29 = vector.shape_cast %28 : vector<16x16x64xf32> to vector<256x64xf32>
    %30 = arith.truncf %29 : vector<256x64xf32> to vector<256x64xbf16>
    %c0_30 = arith.constant 0 : index
    %c192 = arith.constant 192 : index
    %31 = vector.load %arg13[%c0_30, %c192] : memref<256x576xbf16, #tpu.memory_space<vmem>>, vector<256x64xbf16>
    tpu.vector_store %arg13[%c0_30, %c192], %30 {strides = array<i32>} : memref<256x576xbf16, #tpu.memory_space<vmem>>, vector<256x64xbf16>,
    %c1_31 = arith.constant 1 : index
    %c1_32 = arith.constant 1 : index
    %c0_33 = arith.constant 0 : index
    %32 = vector.load %arg12[%c1_31, %c1_32, %c0_33] : memref<18x18x64xf32, #tpu.memory_space<vmem>>, vector<16x16x64xf32>
    %33 = vector.shape_cast %32 : vector<16x16x64xf32> to vector<256x64xf32>
    %34 = arith.truncf %33 : vector<256x64xf32> to vector<256x64xbf16>
    %c0_34 = arith.constant 0 : index
    %c256 = arith.constant 256 : index
    %35 = vector.load %arg13[%c0_34, %c256] : memref<256x576xbf16, #tpu.memory_space<vmem>>, vector<256x64xbf16>
    tpu.vector_store %arg13[%c0_34, %c256], %34 {strides = array<i32>} : memref<256x576xbf16, #tpu.memory_space<vmem>>, vector<256x64xbf16>,
    %c1_35 = arith.constant 1 : index
    %c2_36 = arith.constant 2 : index
    %c0_37 = arith.constant 0 : index
    %36 = vector.load %arg12[%c1_35, %c2_36, %c0_37] : memref<18x18x64xf32, #tpu.memory_space<vmem>>, vector<16x16x64xf32>
    %37 = vector.shape_cast %36 : vector<16x16x64xf32> to vector<256x64xf32>
    %38 = arith.truncf %37 : vector<256x64xf32> to vector<256x64xbf16>
    %c0_38 = arith.constant 0 : index
    %c320 = arith.constant 320 : index
    %39 = vector.load %arg13[%c0_38, %c320] : memref<256x576xbf16, #tpu.memory_space<vmem>>, vector<256x64xbf16>
    tpu.vector_store %arg13[%c0_38, %c320], %38 {strides = array<i32>} : memref<256x576xbf16, #tpu.memory_space<vmem>>, vector<256x64xbf16>,
    %c2_39 = arith.constant 2 : index
    %c0_40 = arith.constant 0 : index
    %c0_41 = arith.constant 0 : index
    %40 = vector.load %arg12[%c2_39, %c0_40, %c0_41] : memref<18x18x64xf32, #tpu.memory_space<vmem>>, vector<16x16x64xf32>
    %41 = vector.shape_cast %40 : vector<16x16x64xf32> to vector<256x64xf32>
    %42 = arith.truncf %41 : vector<256x64xf32> to vector<256x64xbf16>
    %c0_42 = arith.constant 0 : index
    %c384 = arith.constant 384 : index
    %43 = vector.load %arg13[%c0_42, %c384] : memref<256x576xbf16, #tpu.memory_space<vmem>>, vector<256x64xbf16>
    tpu.vector_store %arg13[%c0_42, %c384], %42 {strides = array<i32>} : memref<256x576xbf16, #tpu.memory_space<vmem>>, vector<256x64xbf16>,
    %c2_43 = arith.constant 2 : index
    %c1_44 = arith.constant 1 : index
    %c0_45 = arith.constant 0 : index
    %44 = vector.load %arg12[%c2_43, %c1_44, %c0_45] : memref<18x18x64xf32, #tpu.memory_space<vmem>>, vector<16x16x64xf32>
    %45 = vector.shape_cast %44 : vector<16x16x64xf32> to vector<256x64xf32>
    %46 = arith.truncf %45 : vector<256x64xf32> to vector<256x64xbf16>
    %c0_46 = arith.constant 0 : index
    %c448 = arith.constant 448 : index
    %47 = vector.load %arg13[%c0_46, %c448] : memref<256x576xbf16, #tpu.memory_space<vmem>>, vector<256x64xbf16>
    tpu.vector_store %arg13[%c0_46, %c448], %46 {strides = array<i32>} : memref<256x576xbf16, #tpu.memory_space<vmem>>, vector<256x64xbf16>,
    %c2_47 = arith.constant 2 : index
    %c2_48 = arith.constant 2 : index
    %c0_49 = arith.constant 0 : index
    %48 = vector.load %arg12[%c2_47, %c2_48, %c0_49] : memref<18x18x64xf32, #tpu.memory_space<vmem>>, vector<16x16x64xf32>
    %49 = vector.shape_cast %48 : vector<16x16x64xf32> to vector<256x64xf32>
    %50 = arith.truncf %49 : vector<256x64xf32> to vector<256x64xbf16>
    %c0_50 = arith.constant 0 : index
    %c512 = arith.constant 512 : index
    %51 = vector.load %arg13[%c0_50, %c512] : memref<256x576xbf16, #tpu.memory_space<vmem>>, vector<256x64xbf16>
    tpu.vector_store %arg13[%c0_50, %c512], %50 {strides = array<i32>} : memref<256x576xbf16, #tpu.memory_space<vmem>>, vector<256x64xbf16>,
    %c0_51 = arith.constant 0 : index
    %c0_52 = arith.constant 0 : index
    %52 = vector.load %arg13[%c0_51, %c0_52] : memref<256x576xbf16, #tpu.memory_space<vmem>>, vector<256x576xbf16>
    %c0_53 = arith.constant 0 : index
    %c0_54 = arith.constant 0 : index
    %53 = vector.load %arg3[%c0_53, %c0_54] : memref<576x64xbf16, #tpu.memory_space<vmem>>, vector<576x64xbf16>
    %cst_55 = arith.constant dense<0.000000e+00> : vector<256x64xf32>
    %54 = tpu.matmul %52, %53, %cst_55 {dimension_numbers = #tpu.dot_dimension_numbers<[1], [0], [0], [1], [0, 0, 1, 1], [], []>} : vector<256x576xbf16>, vector<576x64xbf16>, vector<256x64xf32> -> vector<256x64xf32>
    %c1_56 = arith.constant 1 : index
    %c0_57 = arith.constant 0 : index
    %55 = vector.load %arg8[%c1_56, %c0_57] : memref<4x64xf32, #tpu.memory_space<vmem>>, vector<1x64xf32>
    %56 = vector.broadcast %55 : vector<1x64xf32> to vector<256x64xf32>
    %57 = arith.mulf %54, %56 : vector<256x64xf32>
    %c1_58 = arith.constant 1 : index
    %c0_59 = arith.constant 0 : index
    %58 = vector.load %arg9[%c1_58, %c0_59] : memref<4x64xf32, #tpu.memory_space<vmem>>, vector<1x64xf32>
    %59 = vector.broadcast %58 : vector<1x64xf32> to vector<256x64xf32>
    %60 = arith.addf %57, %59 : vector<256x64xf32>
    %cst_60 = arith.constant 0.000000e+00 : f32
    %61 = vector.broadcast %cst_60 : f32 to vector<256x64xf32>
    %62 = arith.maximumf %60, %61 : vector<256x64xf32>
    %63 = vector.shape_cast %62 : vector<256x64xf32> to vector<16x16x64xf32>
    %c1_61 = arith.constant 1 : index
    %c1_62 = arith.constant 1 : index
    %c0_63 = arith.constant 0 : index
    %64 = vector.load %arg12[%c1_61, %c1_62, %c0_63] : memref<18x18x64xf32, #tpu.memory_space<vmem>>, vector<16x16x64xf32>
    tpu.vector_store %arg12[%c1_61, %c1_62, %c0_63], %63 {strides = array<i32>} : memref<18x18x64xf32, #tpu.memory_space<vmem>>, vector<16x16x64xf32>,
    %c0_64 = arith.constant 0 : index
    %c0_65 = arith.constant 0 : index
    %c0_66 = arith.constant 0 : index
    %65 = vector.load %arg12[%c0_64, %c0_65, %c0_66] : memref<18x18x64xf32, #tpu.memory_space<vmem>>, vector<16x16x64xf32>
    %66 = vector.shape_cast %65 : vector<16x16x64xf32> to vector<256x64xf32>
    %67 = arith.truncf %66 : vector<256x64xf32> to vector<256x64xbf16>
    %c0_67 = arith.constant 0 : index
    %c0_68 = arith.constant 0 : index
    %68 = vector.load %arg13[%c0_67, %c0_68] : memref<256x576xbf16, #tpu.memory_space<vmem>>, vector<256x64xbf16>
    tpu.vector_store %arg13[%c0_67, %c0_68], %67 {strides = array<i32>} : memref<256x576xbf16, #tpu.memory_space<vmem>>, vector<256x64xbf16>,
    %c0_69 = arith.constant 0 : index
    %c1_70 = arith.constant 1 : index
    %c0_71 = arith.constant 0 : index
    %69 = vector.load %arg12[%c0_69, %c1_70, %c0_71] : memref<18x18x64xf32, #tpu.memory_space<vmem>>, vector<16x16x64xf32>
    %70 = vector.shape_cast %69 : vector<16x16x64xf32> to vector<256x64xf32>
    %71 = arith.truncf %70 : vector<256x64xf32> to vector<256x64xbf16>
    %c0_72 = arith.constant 0 : index
    %c64_73 = arith.constant 64 : index
    %72 = vector.load %arg13[%c0_72, %c64_73] : memref<256x576xbf16, #tpu.memory_space<vmem>>, vector<256x64xbf16>
    tpu.vector_store %arg13[%c0_72, %c64_73], %71 {strides = array<i32>} : memref<256x576xbf16, #tpu.memory_space<vmem>>, vector<256x64xbf16>,
    %c0_74 = arith.constant 0 : index
    %c2_75 = arith.constant 2 : index
    %c0_76 = arith.constant 0 : index
    %73 = vector.load %arg12[%c0_74, %c2_75, %c0_76] : memref<18x18x64xf32, #tpu.memory_space<vmem>>, vector<16x16x64xf32>
    %74 = vector.shape_cast %73 : vector<16x16x64xf32> to vector<256x64xf32>
    %75 = arith.truncf %74 : vector<256x64xf32> to vector<256x64xbf16>
    %c0_77 = arith.constant 0 : index
    %c128_78 = arith.constant 128 : index
    %76 = vector.load %arg13[%c0_77, %c128_78] : memref<256x576xbf16, #tpu.memory_space<vmem>>, vector<256x64xbf16>
    tpu.vector_store %arg13[%c0_77, %c128_78], %75 {strides = array<i32>} : memref<256x576xbf16, #tpu.memory_space<vmem>>, vector<256x64xbf16>,
    %c1_79 = arith.constant 1 : index
    %c0_80 = arith.constant 0 : index
    %c0_81 = arith.constant 0 : index
    %77 = vector.load %arg12[%c1_79, %c0_80, %c0_81] : memref<18x18x64xf32, #tpu.memory_space<vmem>>, vector<16x16x64xf32>
    %78 = vector.shape_cast %77 : vector<16x16x64xf32> to vector<256x64xf32>
    %79 = arith.truncf %78 : vector<256x64xf32> to vector<256x64xbf16>
    %c0_82 = arith.constant 0 : index
    %c192_83 = arith.constant 192 : index
    %80 = vector.load %arg13[%c0_82, %c192_83] : memref<256x576xbf16, #tpu.memory_space<vmem>>, vector<256x64xbf16>
    tpu.vector_store %arg13[%c0_82, %c192_83], %79 {strides = array<i32>} : memref<256x576xbf16, #tpu.memory_space<vmem>>, vector<256x64xbf16>,
    %c1_84 = arith.constant 1 : index
    %c1_85 = arith.constant 1 : index
    %c0_86 = arith.constant 0 : index
    %81 = vector.load %arg12[%c1_84, %c1_85, %c0_86] : memref<18x18x64xf32, #tpu.memory_space<vmem>>, vector<16x16x64xf32>
    %82 = vector.shape_cast %81 : vector<16x16x64xf32> to vector<256x64xf32>
    %83 = arith.truncf %82 : vector<256x64xf32> to vector<256x64xbf16>
    %c0_87 = arith.constant 0 : index
    %c256_88 = arith.constant 256 : index
    %84 = vector.load %arg13[%c0_87, %c256_88] : memref<256x576xbf16, #tpu.memory_space<vmem>>, vector<256x64xbf16>
    tpu.vector_store %arg13[%c0_87, %c256_88], %83 {strides = array<i32>} : memref<256x576xbf16, #tpu.memory_space<vmem>>, vector<256x64xbf16>,
    %c1_89 = arith.constant 1 : index
    %c2_90 = arith.constant 2 : index
    %c0_91 = arith.constant 0 : index
    %85 = vector.load %arg12[%c1_89, %c2_90, %c0_91] : memref<18x18x64xf32, #tpu.memory_space<vmem>>, vector<16x16x64xf32>
    %86 = vector.shape_cast %85 : vector<16x16x64xf32> to vector<256x64xf32>
    %87 = arith.truncf %86 : vector<256x64xf32> to vector<256x64xbf16>
    %c0_92 = arith.constant 0 : index
    %c320_93 = arith.constant 320 : index
    %88 = vector.load %arg13[%c0_92, %c320_93] : memref<256x576xbf16, #tpu.memory_space<vmem>>, vector<256x64xbf16>
    tpu.vector_store %arg13[%c0_92, %c320_93], %87 {strides = array<i32>} : memref<256x576xbf16, #tpu.memory_space<vmem>>, vector<256x64xbf16>,
    %c2_94 = arith.constant 2 : index
    %c0_95 = arith.constant 0 : index
    %c0_96 = arith.constant 0 : index
    %89 = vector.load %arg12[%c2_94, %c0_95, %c0_96] : memref<18x18x64xf32, #tpu.memory_space<vmem>>, vector<16x16x64xf32>
    %90 = vector.shape_cast %89 : vector<16x16x64xf32> to vector<256x64xf32>
    %91 = arith.truncf %90 : vector<256x64xf32> to vector<256x64xbf16>
    %c0_97 = arith.constant 0 : index
    %c384_98 = arith.constant 384 : index
    %92 = vector.load %arg13[%c0_97, %c384_98] : memref<256x576xbf16, #tpu.memory_space<vmem>>, vector<256x64xbf16>
    tpu.vector_store %arg13[%c0_97, %c384_98], %91 {strides = array<i32>} : memref<256x576xbf16, #tpu.memory_space<vmem>>, vector<256x64xbf16>,
    %c2_99 = arith.constant 2 : index
    %c1_100 = arith.constant 1 : index
    %c0_101 = arith.constant 0 : index
    %93 = vector.load %arg12[%c2_99, %c1_100, %c0_101] : memref<18x18x64xf32, #tpu.memory_space<vmem>>, vector<16x16x64xf32>
    %94 = vector.shape_cast %93 : vector<16x16x64xf32> to vector<256x64xf32>
    %95 = arith.truncf %94 : vector<256x64xf32> to vector<256x64xbf16>
    %c0_102 = arith.constant 0 : index
    %c448_103 = arith.constant 448 : index
    %96 = vector.load %arg13[%c0_102, %c448_103] : memref<256x576xbf16, #tpu.memory_space<vmem>>, vector<256x64xbf16>
    tpu.vector_store %arg13[%c0_102, %c448_103], %95 {strides = array<i32>} : memref<256x576xbf16, #tpu.memory_space<vmem>>, vector<256x64xbf16>,
    %c2_104 = arith.constant 2 : index
    %c2_105 = arith.constant 2 : index
    %c0_106 = arith.constant 0 : index
    %97 = vector.load %arg12[%c2_104, %c2_105, %c0_106] : memref<18x18x64xf32, #tpu.memory_space<vmem>>, vector<16x16x64xf32>
    %98 = vector.shape_cast %97 : vector<16x16x64xf32> to vector<256x64xf32>
    %99 = arith.truncf %98 : vector<256x64xf32> to vector<256x64xbf16>
    %c0_107 = arith.constant 0 : index
    %c512_108 = arith.constant 512 : index
    %100 = vector.load %arg13[%c0_107, %c512_108] : memref<256x576xbf16, #tpu.memory_space<vmem>>, vector<256x64xbf16>
    tpu.vector_store %arg13[%c0_107, %c512_108], %99 {strides = array<i32>} : memref<256x576xbf16, #tpu.memory_space<vmem>>, vector<256x64xbf16>,
    %c0_109 = arith.constant 0 : index
    %c0_110 = arith.constant 0 : index
    %101 = vector.load %arg13[%c0_109, %c0_110] : memref<256x576xbf16, #tpu.memory_space<vmem>>, vector<256x576xbf16>
    %c0_111 = arith.constant 0 : index
    %c0_112 = arith.constant 0 : index
    %102 = vector.load %arg4[%c0_111, %c0_112] : memref<576x64xbf16, #tpu.memory_space<vmem>>, vector<576x64xbf16>
    %cst_113 = arith.constant dense<0.000000e+00> : vector<256x64xf32>
    %103 = tpu.matmul %101, %102, %cst_113 {dimension_numbers = #tpu.dot_dimension_numbers<[1], [0], [0], [1], [0, 0, 1, 1], [], []>} : vector<256x576xbf16>, vector<576x64xbf16>, vector<256x64xf32> -> vector<256x64xf32>
    %c2_114 = arith.constant 2 : index
    %c0_115 = arith.constant 0 : index
    %104 = vector.load %arg8[%c2_114, %c0_115] : memref<4x64xf32, #tpu.memory_space<vmem>>, vector<1x64xf32>
    %105 = vector.broadcast %104 : vector<1x64xf32> to vector<256x64xf32>
    %106 = arith.mulf %103, %105 : vector<256x64xf32>
    %c2_116 = arith.constant 2 : index
    %c0_117 = arith.constant 0 : index
    %107 = vector.load %arg9[%c2_116, %c0_117] : memref<4x64xf32, #tpu.memory_space<vmem>>, vector<1x64xf32>
    %108 = vector.broadcast %107 : vector<1x64xf32> to vector<256x64xf32>
    %109 = arith.addf %106, %108 : vector<256x64xf32>
    %cst_118 = arith.constant 0.000000e+00 : f32
    %110 = vector.broadcast %cst_118 : f32 to vector<256x64xf32>
    %111 = arith.maximumf %109, %110 : vector<256x64xf32>
    %c0_119 = arith.constant 0 : index
    %c0_120 = arith.constant 0 : index
    %112 = vector.load %arg10[%c0_119, %c0_120] : memref<256x256xbf16, #tpu.memory_space<vmem>>, vector<256x256xbf16>
    %113 = arith.truncf %111 : vector<256x64xf32> to vector<256x64xbf16>
    %cst_121 = arith.constant dense<0.000000e+00> : vector<256x64xf32>
    %114 = tpu.matmul %112, %113, %cst_121 {dimension_numbers = #tpu.dot_dimension_numbers<[1], [0], [0], [1], [0, 0, 1, 1], [], []>} : vector<256x256xbf16>, vector<256x64xbf16>, vector<256x64xf32> -> vector<256x64xf32>
    %115 = vector.shape_cast %114 : vector<256x64xf32> to vector<16x16x64xf32>
    %c1_122 = arith.constant 1 : index
    %c1_123 = arith.constant 1 : index
    %c0_124 = arith.constant 0 : index
    %116 = vector.load %arg12[%c1_122, %c1_123, %c0_124] : memref<18x18x64xf32, #tpu.memory_space<vmem>>, vector<16x16x64xf32>
    tpu.vector_store %arg12[%c1_122, %c1_123, %c0_124], %115 {strides = array<i32>} : memref<18x18x64xf32, #tpu.memory_space<vmem>>, vector<16x16x64xf32>,
    %c0_125 = arith.constant 0 : index
    %c0_126 = arith.constant 0 : index
    %c0_127 = arith.constant 0 : index
    %117 = vector.load %arg12[%c0_125, %c0_126, %c0_127] : memref<18x18x64xf32, #tpu.memory_space<vmem>>, vector<16x16x64xf32>
    %118 = vector.shape_cast %117 : vector<16x16x64xf32> to vector<256x64xf32>
    %119 = arith.truncf %118 : vector<256x64xf32> to vector<256x64xbf16>
    %c0_128 = arith.constant 0 : index
    %c0_129 = arith.constant 0 : index
    %120 = vector.load %arg13[%c0_128, %c0_129] : memref<256x576xbf16, #tpu.memory_space<vmem>>, vector<256x64xbf16>
    tpu.vector_store %arg13[%c0_128, %c0_129], %119 {strides = array<i32>} : memref<256x576xbf16, #tpu.memory_space<vmem>>, vector<256x64xbf16>,
    %c0_130 = arith.constant 0 : index
    %c1_131 = arith.constant 1 : index
    %c0_132 = arith.constant 0 : index
    %121 = vector.load %arg12[%c0_130, %c1_131, %c0_132] : memref<18x18x64xf32, #tpu.memory_space<vmem>>, vector<16x16x64xf32>
    %122 = vector.shape_cast %121 : vector<16x16x64xf32> to vector<256x64xf32>
    %123 = arith.truncf %122 : vector<256x64xf32> to vector<256x64xbf16>
    %c0_133 = arith.constant 0 : index
    %c64_134 = arith.constant 64 : index
    %124 = vector.load %arg13[%c0_133, %c64_134] : memref<256x576xbf16, #tpu.memory_space<vmem>>, vector<256x64xbf16>
    tpu.vector_store %arg13[%c0_133, %c64_134], %123 {strides = array<i32>} : memref<256x576xbf16, #tpu.memory_space<vmem>>, vector<256x64xbf16>,
    %c0_135 = arith.constant 0 : index
    %c2_136 = arith.constant 2 : index
    %c0_137 = arith.constant 0 : index
    %125 = vector.load %arg12[%c0_135, %c2_136, %c0_137] : memref<18x18x64xf32, #tpu.memory_space<vmem>>, vector<16x16x64xf32>
    %126 = vector.shape_cast %125 : vector<16x16x64xf32> to vector<256x64xf32>
    %127 = arith.truncf %126 : vector<256x64xf32> to vector<256x64xbf16>
    %c0_138 = arith.constant 0 : index
    %c128_139 = arith.constant 128 : index
    %128 = vector.load %arg13[%c0_138, %c128_139] : memref<256x576xbf16, #tpu.memory_space<vmem>>, vector<256x64xbf16>
    tpu.vector_store %arg13[%c0_138, %c128_139], %127 {strides = array<i32>} : memref<256x576xbf16, #tpu.memory_space<vmem>>, vector<256x64xbf16>,
    %c1_140 = arith.constant 1 : index
    %c0_141 = arith.constant 0 : index
    %c0_142 = arith.constant 0 : index
    %129 = vector.load %arg12[%c1_140, %c0_141, %c0_142] : memref<18x18x64xf32, #tpu.memory_space<vmem>>, vector<16x16x64xf32>
    %130 = vector.shape_cast %129 : vector<16x16x64xf32> to vector<256x64xf32>
    %131 = arith.truncf %130 : vector<256x64xf32> to vector<256x64xbf16>
    %c0_143 = arith.constant 0 : index
    %c192_144 = arith.constant 192 : index
    %132 = vector.load %arg13[%c0_143, %c192_144] : memref<256x576xbf16, #tpu.memory_space<vmem>>, vector<256x64xbf16>
    tpu.vector_store %arg13[%c0_143, %c192_144], %131 {strides = array<i32>} : memref<256x576xbf16, #tpu.memory_space<vmem>>, vector<256x64xbf16>,
    %c1_145 = arith.constant 1 : index
    %c1_146 = arith.constant 1 : index
    %c0_147 = arith.constant 0 : index
    %133 = vector.load %arg12[%c1_145, %c1_146, %c0_147] : memref<18x18x64xf32, #tpu.memory_space<vmem>>, vector<16x16x64xf32>
    %134 = vector.shape_cast %133 : vector<16x16x64xf32> to vector<256x64xf32>
    %135 = arith.truncf %134 : vector<256x64xf32> to vector<256x64xbf16>
    %c0_148 = arith.constant 0 : index
    %c256_149 = arith.constant 256 : index
    %136 = vector.load %arg13[%c0_148, %c256_149] : memref<256x576xbf16, #tpu.memory_space<vmem>>, vector<256x64xbf16>
    tpu.vector_store %arg13[%c0_148, %c256_149], %135 {strides = array<i32>} : memref<256x576xbf16, #tpu.memory_space<vmem>>, vector<256x64xbf16>,
    %c1_150 = arith.constant 1 : index
    %c2_151 = arith.constant 2 : index
    %c0_152 = arith.constant 0 : index
    %137 = vector.load %arg12[%c1_150, %c2_151, %c0_152] : memref<18x18x64xf32, #tpu.memory_space<vmem>>, vector<16x16x64xf32>
    %138 = vector.shape_cast %137 : vector<16x16x64xf32> to vector<256x64xf32>
    %139 = arith.truncf %138 : vector<256x64xf32> to vector<256x64xbf16>
    %c0_153 = arith.constant 0 : index
    %c320_154 = arith.constant 320 : index
    %140 = vector.load %arg13[%c0_153, %c320_154] : memref<256x576xbf16, #tpu.memory_space<vmem>>, vector<256x64xbf16>
    tpu.vector_store %arg13[%c0_153, %c320_154], %139 {strides = array<i32>} : memref<256x576xbf16, #tpu.memory_space<vmem>>, vector<256x64xbf16>,
    %c2_155 = arith.constant 2 : index
    %c0_156 = arith.constant 0 : index
    %c0_157 = arith.constant 0 : index
    %141 = vector.load %arg12[%c2_155, %c0_156, %c0_157] : memref<18x18x64xf32, #tpu.memory_space<vmem>>, vector<16x16x64xf32>
    %142 = vector.shape_cast %141 : vector<16x16x64xf32> to vector<256x64xf32>
    %143 = arith.truncf %142 : vector<256x64xf32> to vector<256x64xbf16>
    %c0_158 = arith.constant 0 : index
    %c384_159 = arith.constant 384 : index
    %144 = vector.load %arg13[%c0_158, %c384_159] : memref<256x576xbf16, #tpu.memory_space<vmem>>, vector<256x64xbf16>
    tpu.vector_store %arg13[%c0_158, %c384_159], %143 {strides = array<i32>} : memref<256x576xbf16, #tpu.memory_space<vmem>>, vector<256x64xbf16>,
    %c2_160 = arith.constant 2 : index
    %c1_161 = arith.constant 1 : index
    %c0_162 = arith.constant 0 : index
    %145 = vector.load %arg12[%c2_160, %c1_161, %c0_162] : memref<18x18x64xf32, #tpu.memory_space<vmem>>, vector<16x16x64xf32>
    %146 = vector.shape_cast %145 : vector<16x16x64xf32> to vector<256x64xf32>
    %147 = arith.truncf %146 : vector<256x64xf32> to vector<256x64xbf16>
    %c0_163 = arith.constant 0 : index
    %c448_164 = arith.constant 448 : index
    %148 = vector.load %arg13[%c0_163, %c448_164] : memref<256x576xbf16, #tpu.memory_space<vmem>>, vector<256x64xbf16>
    tpu.vector_store %arg13[%c0_163, %c448_164], %147 {strides = array<i32>} : memref<256x576xbf16, #tpu.memory_space<vmem>>, vector<256x64xbf16>,
    %c2_165 = arith.constant 2 : index
    %c2_166 = arith.constant 2 : index
    %c0_167 = arith.constant 0 : index
    %149 = vector.load %arg12[%c2_165, %c2_166, %c0_167] : memref<18x18x64xf32, #tpu.memory_space<vmem>>, vector<16x16x64xf32>
    %150 = vector.shape_cast %149 : vector<16x16x64xf32> to vector<256x64xf32>
    %151 = arith.truncf %150 : vector<256x64xf32> to vector<256x64xbf16>
    %c0_168 = arith.constant 0 : index
    %c512_169 = arith.constant 512 : index
    %152 = vector.load %arg13[%c0_168, %c512_169] : memref<256x576xbf16, #tpu.memory_space<vmem>>, vector<256x64xbf16>
    tpu.vector_store %arg13[%c0_168, %c512_169], %151 {strides = array<i32>} : memref<256x576xbf16, #tpu.memory_space<vmem>>, vector<256x64xbf16>,
    %c0_170 = arith.constant 0 : index
    %c0_171 = arith.constant 0 : index
    %153 = vector.load %arg13[%c0_170, %c0_171] : memref<256x576xbf16, #tpu.memory_space<vmem>>, vector<256x576xbf16>
    %c0_172 = arith.constant 0 : index
    %c0_173 = arith.constant 0 : index
    %154 = vector.load %arg5[%c0_172, %c0_173] : memref<576x64xbf16, #tpu.memory_space<vmem>>, vector<576x64xbf16>
    %cst_174 = arith.constant dense<0.000000e+00> : vector<256x64xf32>
    %155 = tpu.matmul %153, %154, %cst_174 {dimension_numbers = #tpu.dot_dimension_numbers<[1], [0], [0], [1], [0, 0, 1, 1], [], []>} : vector<256x576xbf16>, vector<576x64xbf16>, vector<256x64xf32> -> vector<256x64xf32>
    %c3 = arith.constant 3 : index
    %c0_175 = arith.constant 0 : index
    %156 = vector.load %arg8[%c3, %c0_175] : memref<4x64xf32, #tpu.memory_space<vmem>>, vector<1x64xf32>
    %157 = vector.broadcast %156 : vector<1x64xf32> to vector<256x64xf32>
    %158 = arith.mulf %155, %157 : vector<256x64xf32>
    %c3_176 = arith.constant 3 : index
    %c0_177 = arith.constant 0 : index
    %159 = vector.load %arg9[%c3_176, %c0_177] : memref<4x64xf32, #tpu.memory_space<vmem>>, vector<1x64xf32>
    %160 = vector.broadcast %159 : vector<1x64xf32> to vector<256x64xf32>
    %161 = arith.addf %158, %160 : vector<256x64xf32>
    %cst_178 = arith.constant 0.000000e+00 : f32
    %162 = vector.broadcast %cst_178 : f32 to vector<256x64xf32>
    %163 = arith.maximumf %161, %162 : vector<256x64xf32>
    %164 = vector.shape_cast %163 : vector<256x64xf32> to vector<16x16x64xf32>
    %c1_179 = arith.constant 1 : index
    %c1_180 = arith.constant 1 : index
    %c0_181 = arith.constant 0 : index
    %165 = vector.load %arg12[%c1_179, %c1_180, %c0_181] : memref<18x18x64xf32, #tpu.memory_space<vmem>>, vector<16x16x64xf32>
    tpu.vector_store %arg12[%c1_179, %c1_180, %c0_181], %164 {strides = array<i32>} : memref<18x18x64xf32, #tpu.memory_space<vmem>>, vector<16x16x64xf32>,
    %cst_182 = arith.constant 0.000000e+00 : f32
    %166 = vector.broadcast %cst_182 : f32 to vector<256x64xf32>
    %c0_183 = arith.constant 0 : index
    %c0_184 = arith.constant 0 : index
    %c0_185 = arith.constant 0 : index
    %167 = vector.load %arg12[%c0_183, %c0_184, %c0_185] : memref<18x18x64xf32, #tpu.memory_space<vmem>>, vector<16x16x64xf32>
    %168 = vector.shape_cast %167 : vector<16x16x64xf32> to vector<256x64xf32>
    %169 = arith.truncf %168 : vector<256x64xf32> to vector<256x64xbf16>
    %170 = arith.extf %169 : vector<256x64xbf16> to vector<256x64xf32>
    %c0_186 = arith.constant 0 : index
    %c0_187 = arith.constant 0 : index
    %171 = vector.load %arg6[%c0_186, %c0_187] : memref<9x64xf32, #tpu.memory_space<vmem>>, vector<1x64xf32>
    %172 = vector.broadcast %171 : vector<1x64xf32> to vector<256x64xf32>
    %173 = arith.mulf %170, %172 : vector<256x64xf32>
    %174 = arith.addf %166, %173 : vector<256x64xf32>
    %c0_188 = arith.constant 0 : index
    %c1_189 = arith.constant 1 : index
    %c0_190 = arith.constant 0 : index
    %175 = vector.load %arg12[%c0_188, %c1_189, %c0_190] : memref<18x18x64xf32, #tpu.memory_space<vmem>>, vector<16x16x64xf32>
    %176 = vector.shape_cast %175 : vector<16x16x64xf32> to vector<256x64xf32>
    %177 = arith.truncf %176 : vector<256x64xf32> to vector<256x64xbf16>
    %178 = arith.extf %177 : vector<256x64xbf16> to vector<256x64xf32>
    %c1_191 = arith.constant 1 : index
    %c0_192 = arith.constant 0 : index
    %179 = vector.load %arg6[%c1_191, %c0_192] : memref<9x64xf32, #tpu.memory_space<vmem>>, vector<1x64xf32>
    %180 = vector.broadcast %179 : vector<1x64xf32> to vector<256x64xf32>
    %181 = arith.mulf %178, %180 : vector<256x64xf32>
    %182 = arith.addf %174, %181 : vector<256x64xf32>
    %c0_193 = arith.constant 0 : index
    %c2_194 = arith.constant 2 : index
    %c0_195 = arith.constant 0 : index
    %183 = vector.load %arg12[%c0_193, %c2_194, %c0_195] : memref<18x18x64xf32, #tpu.memory_space<vmem>>, vector<16x16x64xf32>
    %184 = vector.shape_cast %183 : vector<16x16x64xf32> to vector<256x64xf32>
    %185 = arith.truncf %184 : vector<256x64xf32> to vector<256x64xbf16>
    %186 = arith.extf %185 : vector<256x64xbf16> to vector<256x64xf32>
    %c2_196 = arith.constant 2 : index
    %c0_197 = arith.constant 0 : index
    %187 = vector.load %arg6[%c2_196, %c0_197] : memref<9x64xf32, #tpu.memory_space<vmem>>, vector<1x64xf32>
    %188 = vector.broadcast %187 : vector<1x64xf32> to vector<256x64xf32>
    %189 = arith.mulf %186, %188 : vector<256x64xf32>
    %190 = arith.addf %182, %189 : vector<256x64xf32>
    %c1_198 = arith.constant 1 : index
    %c0_199 = arith.constant 0 : index
    %c0_200 = arith.constant 0 : index
    %191 = vector.load %arg12[%c1_198, %c0_199, %c0_200] : memref<18x18x64xf32, #tpu.memory_space<vmem>>, vector<16x16x64xf32>
    %192 = vector.shape_cast %191 : vector<16x16x64xf32> to vector<256x64xf32>
    %193 = arith.truncf %192 : vector<256x64xf32> to vector<256x64xbf16>
    %194 = arith.extf %193 : vector<256x64xbf16> to vector<256x64xf32>
    %c3_201 = arith.constant 3 : index
    %c0_202 = arith.constant 0 : index
    %195 = vector.load %arg6[%c3_201, %c0_202] : memref<9x64xf32, #tpu.memory_space<vmem>>, vector<1x64xf32>
    %196 = vector.broadcast %195 : vector<1x64xf32> to vector<256x64xf32>
    %197 = arith.mulf %194, %196 : vector<256x64xf32>
    %198 = arith.addf %190, %197 : vector<256x64xf32>
    %c1_203 = arith.constant 1 : index
    %c1_204 = arith.constant 1 : index
    %c0_205 = arith.constant 0 : index
    %199 = vector.load %arg12[%c1_203, %c1_204, %c0_205] : memref<18x18x64xf32, #tpu.memory_space<vmem>>, vector<16x16x64xf32>
    %200 = vector.shape_cast %199 : vector<16x16x64xf32> to vector<256x64xf32>
    %201 = arith.truncf %200 : vector<256x64xf32> to vector<256x64xbf16>
    %202 = arith.extf %201 : vector<256x64xbf16> to vector<256x64xf32>
    %c4 = arith.constant 4 : index
    %c0_206 = arith.constant 0 : index
    %203 = vector.load %arg6[%c4, %c0_206] : memref<9x64xf32, #tpu.memory_space<vmem>>, vector<1x64xf32>
    %204 = vector.broadcast %203 : vector<1x64xf32> to vector<256x64xf32>
    %205 = arith.mulf %202, %204 : vector<256x64xf32>
    %206 = arith.addf %198, %205 : vector<256x64xf32>
    %c1_207 = arith.constant 1 : index
    %c2_208 = arith.constant 2 : index
    %c0_209 = arith.constant 0 : index
    %207 = vector.load %arg12[%c1_207, %c2_208, %c0_209] : memref<18x18x64xf32, #tpu.memory_space<vmem>>, vector<16x16x64xf32>
    %208 = vector.shape_cast %207 : vector<16x16x64xf32> to vector<256x64xf32>
    %209 = arith.truncf %208 : vector<256x64xf32> to vector<256x64xbf16>
    %210 = arith.extf %209 : vector<256x64xbf16> to vector<256x64xf32>
    %c5 = arith.constant 5 : index
    %c0_210 = arith.constant 0 : index
    %211 = vector.load %arg6[%c5, %c0_210] : memref<9x64xf32, #tpu.memory_space<vmem>>, vector<1x64xf32>
    %212 = vector.broadcast %211 : vector<1x64xf32> to vector<256x64xf32>
    %213 = arith.mulf %210, %212 : vector<256x64xf32>
    %214 = arith.addf %206, %213 : vector<256x64xf32>
    %c2_211 = arith.constant 2 : index
    %c0_212 = arith.constant 0 : index
    %c0_213 = arith.constant 0 : index
    %215 = vector.load %arg12[%c2_211, %c0_212, %c0_213] : memref<18x18x64xf32, #tpu.memory_space<vmem>>, vector<16x16x64xf32>
    %216 = vector.shape_cast %215 : vector<16x16x64xf32> to vector<256x64xf32>
    %217 = arith.truncf %216 : vector<256x64xf32> to vector<256x64xbf16>
    %218 = arith.extf %217 : vector<256x64xbf16> to vector<256x64xf32>
    %c6 = arith.constant 6 : index
    %c0_214 = arith.constant 0 : index
    %219 = vector.load %arg6[%c6, %c0_214] : memref<9x64xf32, #tpu.memory_space<vmem>>, vector<1x64xf32>
    %220 = vector.broadcast %219 : vector<1x64xf32> to vector<256x64xf32>
    %221 = arith.mulf %218, %220 : vector<256x64xf32>
    %222 = arith.addf %214, %221 : vector<256x64xf32>
    %c2_215 = arith.constant 2 : index
    %c1_216 = arith.constant 1 : index
    %c0_217 = arith.constant 0 : index
    %223 = vector.load %arg12[%c2_215, %c1_216, %c0_217] : memref<18x18x64xf32, #tpu.memory_space<vmem>>, vector<16x16x64xf32>
    %224 = vector.shape_cast %223 : vector<16x16x64xf32> to vector<256x64xf32>
    %225 = arith.truncf %224 : vector<256x64xf32> to vector<256x64xbf16>
    %226 = arith.extf %225 : vector<256x64xbf16> to vector<256x64xf32>
    %c7 = arith.constant 7 : index
    %c0_218 = arith.constant 0 : index
    %227 = vector.load %arg6[%c7, %c0_218] : memref<9x64xf32, #tpu.memory_space<vmem>>, vector<1x64xf32>
    %228 = vector.broadcast %227 : vector<1x64xf32> to vector<256x64xf32>
    %229 = arith.mulf %226, %228 : vector<256x64xf32>
    %230 = arith.addf %222, %229 : vector<256x64xf32>
    %c2_219 = arith.constant 2 : index
    %c2_220 = arith.constant 2 : index
    %c0_221 = arith.constant 0 : index
    %231 = vector.load %arg12[%c2_219, %c2_220, %c0_221] : memref<18x18x64xf32, #tpu.memory_space<vmem>>, vector<16x16x64xf32>
    %232 = vector.shape_cast %231 : vector<16x16x64xf32> to vector<256x64xf32>
    %233 = arith.truncf %232 : vector<256x64xf32> to vector<256x64xbf16>
    %234 = arith.extf %233 : vector<256x64xbf16> to vector<256x64xf32>
    %c8 = arith.constant 8 : index
    %c0_222 = arith.constant 0 : index
    %235 = vector.load %arg6[%c8, %c0_222] : memref<9x64xf32, #tpu.memory_space<vmem>>, vector<1x64xf32>
    %236 = vector.broadcast %235 : vector<1x64xf32> to vector<256x64xf32>
    %237 = arith.mulf %234, %236 : vector<256x64xf32>
    %238 = arith.addf %230, %237 : vector<256x64xf32>
    %cst_223 = arith.constant dense<0.000000e+00> : vector<256xf32>
    %239 = vector.multi_reduction <add>, %238, %cst_223 [1] : vector<256x64xf32> to vector<256xf32>
    %240 = vector.shape_cast %239 : vector<256xf32> to vector<256x1xf32>
    %c0_224 = arith.constant 0 : index
    %c0_225 = arith.constant 0 : index
    %241 = vector.load %arg7[%c0_224, %c0_225] : memref<1x1xf32, #tpu.memory_space<vmem>>, vector<1x1xf32>
    %242 = vector.broadcast %241 : vector<1x1xf32> to vector<256x1xf32>
    %243 = arith.addf %240, %242 : vector<256x1xf32>
    %244 = math.tanh %243 : vector<256x1xf32>
    %245 = vector.shape_cast %244 : vector<256x1xf32> to vector<1x256x1xf32>
    %c0_226 = arith.constant 0 : index
    %c0_227 = arith.constant 0 : index
    %c0_228 = arith.constant 0 : index
    %246 = vector.load %arg11[%c0_226, %c0_227, %c0_228] : memref<1x256x1xf32, #tpu.memory_space<vmem>>, vector<1x256x1xf32>
    tpu.vector_store %arg11[%c0_226, %c0_227, %c0_228], %245 {strides = array<i32>} : memref<1x256x1xf32, #tpu.memory_space<vmem>>, vector<1x256x1xf32>,
    return
  }
  func.func @transform_0(%arg0: i32) -> (i32, i32, i32) {
    %c0_i32 = arith.constant 0 : i32
    %c0_i32_0 = arith.constant 0 : i32
    %c0_i32_1 = arith.constant 0 : i32
    return %arg0, %c0_i32, %c0_i32_0 : i32, i32, i32
  }
  func.func @transform_1(%arg0: i32) -> (i32, i32) {
    %c0_i32 = arith.constant 0 : i32
    %c0_i32_0 = arith.constant 0 : i32
    %c0_i32_1 = arith.constant 0 : i32
    return %c0_i32, %c0_i32_0 : i32, i32
  }
  func.func @transform_2(%arg0: i32) -> (i32, i32) {
    %c0_i32 = arith.constant 0 : i32
    %c0_i32_0 = arith.constant 0 : i32
    %c0_i32_1 = arith.constant 0 : i32
    return %c0_i32, %c0_i32_0 : i32, i32
  }
  func.func @transform_3(%arg0: i32) -> (i32, i32) {
    %c0_i32 = arith.constant 0 : i32
    %c0_i32_0 = arith.constant 0 : i32
    %c0_i32_1 = arith.constant 0 : i32
    return %c0_i32, %c0_i32_0 : i32, i32
  }
  func.func @transform_4(%arg0: i32) -> (i32, i32) {
    %c0_i32 = arith.constant 0 : i32
    %c0_i32_0 = arith.constant 0 : i32
    %c0_i32_1 = arith.constant 0 : i32
    return %c0_i32, %c0_i32_0 : i32, i32
  }
  func.func @transform_5(%arg0: i32) -> (i32, i32) {
    %c0_i32 = arith.constant 0 : i32
    %c0_i32_0 = arith.constant 0 : i32
    %c0_i32_1 = arith.constant 0 : i32
    return %c0_i32, %c0_i32_0 : i32, i32
  }
  func.func @transform_6(%arg0: i32) -> (i32, i32) {
    %c0_i32 = arith.constant 0 : i32
    %c0_i32_0 = arith.constant 0 : i32
    %c0_i32_1 = arith.constant 0 : i32
    return %c0_i32, %c0_i32_0 : i32, i32
  }
  func.func @transform_7(%arg0: i32) -> (i32, i32) {
    %c0_i32 = arith.constant 0 : i32
    %c0_i32_0 = arith.constant 0 : i32
    %c0_i32_1 = arith.constant 0 : i32
    return %c0_i32, %c0_i32_0 : i32, i32
  }
  func.func @transform_8(%arg0: i32) -> (i32, i32) {
    %c0_i32 = arith.constant 0 : i32
    %c0_i32_0 = arith.constant 0 : i32
    %c0_i32_1 = arith.constant 0 : i32
    return %c0_i32, %c0_i32_0 : i32, i32
  }
  func.func @transform_9(%arg0: i32) -> (i32, i32) {
    %c0_i32 = arith.constant 0 : i32
    %c0_i32_0 = arith.constant 0 : i32
    %c0_i32_1 = arith.constant 0 : i32
    return %c0_i32, %c0_i32_0 : i32, i32
  }
  func.func @transform_10(%arg0: i32) -> (i32, i32, i32) {
    %c0_i32 = arith.constant 0 : i32
    %c0_i32_0 = arith.constant 0 : i32
    %c0_i32_1 = arith.constant 0 : i32
    return %arg0, %c0_i32, %c0_i32_0 : i32, i32, i32
  }
}

</mosaic_0001>

<bundles_post_ra>
// kernel: encoder_forward.1
= control target key start
LH: loop header
LB: loop body
LE: loop exit
PB: predicated region body
PF: predicated region fallthrough
CT: control target
= control target key end

     0   :  { %s10061_s15 = smov 0   ;;  %s13745_s0 = inlined_call_operand.vmem [shape: bf16[2,256,16], index: 0, kind: input, shape index: {}]   ;;  %s13746_s1 = inlined_call_operand.vmem [shape: bf16[16,64], index: 1, kind: input, shape index: {}]   ;;  %s13747_s2 = inlined_call_operand.vmem [shape: bf16[576,64], index: 2, kind: input, shape index: {}]   ;;  %s13748_s3 = inlined_call_operand.vmem [shape: bf16[576,64], index: 3, kind: input, shape index: {}]   ;;  %s13749_s4 = inlined_call_operand.vmem [shape: bf16[576,64], index: 4, kind: input, shape index: {}]   ;;  %s13750_s5 = inlined_call_operand.vmem [shape: f32[9,64], index: 5, kind: input, shape index: {}]   ;;  %s13751_s6 = inlined_call_operand.<no memory space> [shape: f32[1,1], index: 6, kind: input, shape index: {}]   ;;  %s13752_s7 = inlined_call_operand.vmem [shape: f32[4,64], index: 7, kind: input, shape index: {}]   ;;  %s13753_s8 = inlined_call_operand.vmem [shape: f32[4,64], index: 8, kind: input, shape index: {}]   ;;  %s13754_s9 = inlined_call_operand.vmem [shape: bf16[256,256], index: 9, kind: input, shape index: {}]   ;;  %s13755_s10 = inlined_call_operand.vmem [shape: f32[2,256,1], index: 10, kind: output, shape index: {}]  }
   0x1   :  { %v15_v0 = vstv %s13751_s6 }
   0x2   :  { %16 = vst [vmem:[#allocation4] sm:$0x1] %v15_v0 }
   0x3 LB: > { %s8462_s16 = sadd.s32 4294967295, %s9999_s15   ;;  %p8466_p0 = scmp.ge.s32.totalorder %s9999_s15, 1  ;;  %s9999_s15 = sphi %s10061_s15, %s22_s15  }
   0x4   : > { %p314_p1 = scmp.lt.s32.totalorder %s9999_s15, 3 }
   0x6   : > { %p315_p2 = pnand %p8466_p0, %p314_p1 }
   0x8   : > { %318 = sbr.rel (%p315_p2) target bundleno = 2374 (0x946), region = 60 }
   0xf   : > { %v9739_v1 = vld [vmem:[%s13746_s1] sm:$0xff]   ;;  %p352_p3 = scmp.lt.s32.totalorder %s8462_s16, 1  ;;  %vm539_vm0 = vcmask 130048   ;;  %vm363_vm1 = vcmask 523264   ;;  %v10001_v2 = vmov 0.0   ;;  %vm366_vm2 = vcmask 517120  }
  0x10   : > { %9575 = vmatprep.subr.bf16.mxu0 %v9739_v1  ;;  %371 = vst.msk [vmem:[#allocation2 + $0x30] sm:$0xff] %vm363_vm1, %v10001_v2  ;;  %372 = vst.msk [vmem:[#allocation2 + $0x38] sm:$0xff] %vm363_vm1, %v10001_v2  ;;  %v9756_v19 = vld [vmem:[%s13747_s2 + $0x40] sm:$0xff]   ;;  %v9758_v21 = vld [vmem:[%s13747_s2 + $0x48] sm:$0xff]   ;;  %vm1064_vm3 = vcmask 1048064   ;;  %vm8374_vm4 = vcmask 7168  }
  0x11   : > { %s13793_s16 = smov (!%p352_p3, %s8462_s16), 1  ;;  %364 = vst.msk [vmem:[#allocation2] sm:$0xff] %vm363_vm1, %v10001_v2  ;;  %365 = vst.msk [vmem:[#allocation2 + $0x8] sm:$0xff] %vm363_vm1, %v10001_v2  ;;  %9576 = vmatpush3.bf16.msra.mxu0 %v9739_v1  ;;  %8731 = vmatprep.subr.bf16.mxu1 %v9756_v19  ;;  %v9757_v20 = vld [vmem:[%s13747_s2] sm:$0xff]   ;;  %v9759_v22 = vld [vmem:[%s13747_s2 + $0x8] sm:$0xff]  }
  0x12   : > { %368 = vst.msk [vmem:[#allocation2 + $0x18] sm:$0xff] %vm363_vm1, %v10001_v2  ;;  %369 = vst.msk [vmem:[#allocation2 + $0x20] sm:$0xff] %vm363_vm1, %v10001_v2  ;;  %s8712_s6 = sshll.u32 %s13793_s16, 7  ;;  %8732 = vmatpush3.bf16.msra.mxu1 %v9757_v20  ;;  %v9760_v23 = vld [vmem:[%s13747_s2 + $0x50] sm:$0xff]   ;;  %v9762_v25 = vld [vmem:[%s13747_s2 + $0x58] sm:$0xff]   ;;  %s8713_s22 = sshll.u32 %s13793_s16, 8 }
  0x13   : > { %374 = vst.msk [vmem:[#allocation2 + $0x48] sm:$0xff] %vm363_vm1, %v10001_v2  ;;  %375 = vst.msk [vmem:[#allocation2 + $0x50] sm:$0xff] %vm363_vm1, %v10001_v2  ;;  %s10150_s21 = scalar_lea.vmem %s13745_s0, %s8712_s6  ;;  %8733 = vmatprep.subr.bf16.mxu1 %v9758_v21  ;;  %v9761_v24 = vld [vmem:[%s13747_s2 + $0x10] sm:$0xff]   ;;  %v10244_v26 = vld [vmem:[%s13752_s7] ss:$0 sm:$0xff]  ;;  %s10002_s6 = smov 64  }
  0x14   : > { %377 = vst.msk [vmem:[#allocation2 + $0x60] sm:$0xff] %vm363_vm1, %v10001_v2  ;;  %378 = vst.msk [vmem:[#allocation2 + $0x68] sm:$0xff] %vm363_vm1, %v10001_v2  ;;  %v9740_v3 = vld [vmem:[%s10150_s21] sm:$0xff]   ;;  %v9741_v4 = vld [vmem:[%s10150_s21 + $0x8] sm:$0xff]   ;;  %s13649_s25 = scalar_lea.vmem %s13755_s10, %s8713_s22 }
  0x15   : > { %380 = vst.msk [vmem:[#allocation2 + $0x78] sm:$0xff] %vm363_vm1, %v10001_v2  ;;  %381 = vst.msk [vmem:[#allocation2 + $0x80] sm:$0xff] %vm363_vm1, %v10001_v2  ;;  %9577 = vmatprep.mubr.msk.bf16.mxu0 %vm539_vm0, %v9740_v3  ;;  %v9742_v5 = vld [vmem:[%s10150_s21 + $0x10] sm:$0xff]   ;;  %v9743_v6 = vld [vmem:[%s10150_s21 + $0x18] sm:$0xff]  }
  0x16   : > { %383 = vst.msk [vmem:[#allocation2 + $0x90] sm:$0xff] %vm363_vm1, %v10001_v2  ;;  %384 = vst.msk [vmem:[#allocation2 + $0x98] sm:$0xff] %vm363_vm1, %v10001_v2  ;;  %9578 = vmatmul.mubr.msk.bf16.vlgmr.msra.gmra.mrb[0].mxu0 %vm539_vm0, %v9741_v4  ;;  %v9744_v7 = vld [vmem:[%s10150_s21 + $0x20] sm:$0xff]   ;;  %v9745_v8 = vld [vmem:[%s10150_s21 + $0x28] sm:$0xff]   ;;  %8734 = vmatpush3.bf16.msra.mxu1 %v9759_v22 }
  0x17   : > { %386 = vst.msk [vmem:[#allocation2 + $0xa8] sm:$0xff] %vm363_vm1, %v10001_v2  ;;  %387 = vst.msk [vmem:[#allocation2 + $0xb0] sm:$0xff] %vm363_vm1, %v10001_v2  ;;  %9581 = vmatprep.mubr.msk.bf16.mxu0 %vm539_vm0, %v9742_v5  ;;  %v9746_v9 = vld [vmem:[%s10150_s21 + $0x30] sm:$0xff]   ;;  %v9747_v10 = vld [vmem:[%s10150_s21 + $0x38] sm:$0xff]   ;;  %8735 = vmatprep.subr.bf16.mxu1 %v9760_v23 }
  0x18   : > { %389 = vst.msk [vmem:[#allocation2 + $0xc0] sm:$0xff] %vm363_vm1, %v10001_v2  ;;  %390 = vst.msk [vmem:[#allocation2 + $0xc8] sm:$0xff] %vm363_vm1, %v10001_v2  ;;  %v9748_v11 = vld [vmem:[%s10150_s21 + $0x40] sm:$0xff]   ;;  %v9749_v12 = vld [vmem:[%s10150_s21 + $0x48] sm:$0xff]  }
  0x19   : > { %392 = vst.msk [vmem:[#allocation2 + $0xd8] sm:$0xff] %vm363_vm1, %v10001_v2  ;;  %393 = vst.msk [vmem:[#allocation2 + $0xe0] sm:$0xff] %vm363_vm1, %v10001_v2  ;;  %v9750_v13 = vld [vmem:[%s10150_s21 + $0x50] sm:$0xff]   ;;  %v9751_v14 = vld [vmem:[%s10150_s21 + $0x58] sm:$0xff]  }
  0x1a   : > { %395 = vst.msk [vmem:[#allocation2 + $0xf0] sm:$0xff] %vm363_vm1, %v10001_v2  ;;  %396 = vst.msk [vmem:[#allocation2 + $0xf8] sm:$0xff] %vm363_vm1, %v10001_v2  ;;  %v9752_v15 = vld [vmem:[%s10150_s21 + $0x60] sm:$0xff]   ;;  %v9753_v16 = vld [vmem:[%s10150_s21 + $0x68] sm:$0xff]   ;;  %8736 = vmatpush3.bf16.msra.mxu1 %v9761_v24 }
  0x1b   : > { %398 = vst.msk [vmem:[#allocation2 + $0x108] sm:$0xff] %vm363_vm1, %v10001_v2  ;;  %399 = vst.msk [vmem:[#allocation2 + $0x110] sm:$0xff] %vm363_vm1, %v10001_v2  ;;  %v9754_v17 = vld [vmem:[%s10150_s21 + $0x70] sm:$0xff]   ;;  %v9755_v18 = vld [vmem:[%s10150_s21 + $0x78] sm:$0xff]   ;;  %8737 = vmatprep.subr.bf16.mxu1 %v9762_v25 }
  0x1c   : > { %401 = vst.msk [vmem:[#allocation2 + $0x120] sm:$0xff] %vm363_vm1, %v10001_v2  ;;  %402 = vst.msk [vmem:[#allocation2 + $0x128] sm:$0xff] %vm363_vm1, %v10001_v2  ;;  %v9763_v27 = vld [vmem:[%s13747_s2 + $0x18] sm:$0xff]   ;;  %v10252_v29 = vld [vmem:[%s13753_s8] ss:$0 sm:$0xff] }
  0x1d   : > { %404 = vst.msk [vmem:[#allocation2 + $0x138] sm:$0xff] %vm363_vm1, %v10001_v2  ;;  %405 = vst.msk [vmem:[#allocation2 + $0x140] sm:$0xff] %vm363_vm1, %v10001_v2  ;;  %v9764_v30 = vld [vmem:[%s13747_s2 + $0x60] sm:$0xff]   ;;  %v9766_v49 = vld [vmem:[%s13747_s2 + $0x68] sm:$0xff]  }
  0x1e   : > { %407 = vst.msk [vmem:[#allocation2 + $0x150] sm:$0xff] %vm363_vm1, %v10001_v2  ;;  %408 = vst.msk [vmem:[#allocation2 + $0x158] sm:$0xff] %vm363_vm1, %v10001_v2  ;;  %9582 = vmatmul.mubr.msk.bf16.gmra.mrb[4].mxu0 %vm539_vm0, %v9743_v6  ;;  %8738 = vmatpush3.bf16.msra.mxu1 %v9763_v27  ;;  %v9765_v38 = vld [vmem:[%s13747_s2 + $0x20] sm:$0xff]   ;;  %v9767_v50 = vld [vmem:[%s13747_s2 + $0x28] sm:$0xff]  }
  0x1f   : > { %410 = vst.msk [vmem:[#allocation2 + $0x168] sm:$0xff] %vm363_vm1, %v10001_v2  ;;  %411 = vst.msk [vmem:[#allocation2 + $0x170] sm:$0xff] %vm363_vm1, %v10001_v2  ;;  %9585 = vmatprep.mubr.msk.bf16.mxu0 %vm539_vm0, %v9744_v7  ;;  %8739 = vmatprep.subr.bf16.mxu1 %v9764_v30  ;;  %v1081_v43 = vld [vmem:[#allocation2 + $0x2] sm:$0xff]  ;;  %v9768_v63 = vld [vmem:[%s13747_s2 + $0x70] sm:$0xff]  }
  0x20   : > { %413 = vst.msk [vmem:[#allocation2 + $0x180] sm:$0xff] %vm363_vm1, %v10001_v2  ;;  %414 = vst.msk [vmem:[#allocation2 + $0x188] sm:$0xff] %vm363_vm1, %v10001_v2  ;;  %v888_v55 = vld [vmem:[#allocation2] sm:$0xff]  ;;  %v889_v56 = vld [vmem:[#allocation2 + $0x8] sm:$0xff] }
  0x21   : > { %416 = vst.msk [vmem:[#allocation2 + $0x198] sm:$0xff] %vm363_vm1, %v10001_v2  ;;  %417 = vst.msk [vmem:[#allocation2 + $0x1a0] sm:$0xff] %vm363_vm1, %v10001_v2  ;;  %v920_v59 = vpack.c.bf16 %v889_v56, %v888_v55  ;;  %v9769_v0 = vld [vmem:[%s13747_s2 + $0x30] sm:$0xff]   ;;  %v10294_v7 = vld [vmem:[#allocation2 + $0x1] sm:$0xff] }
  0x22   : > { %373 = vst.msk [vmem:[#allocation2 + $0x40] sm:$0x3] %vm366_vm2, %v10001_v2  ;;  %367 = vst.msk [vmem:[#allocation2 + $0x10] sm:$0x3] %vm366_vm2, %v10001_v2  ;;  %8740 = vmatpush3.bf16.msra.mxu1 %v9765_v38 }
  0x23   : > { %370 = vst.msk [vmem:[#allocation2 + $0x28] sm:$0x3] %vm366_vm2, %v10001_v2  ;;  %376 = vst.msk [vmem:[#allocation2 + $0x58] sm:$0x3] %vm366_vm2, %v10001_v2  ;;  %8741 = vmatprep.subr.bf16.mxu1 %v9766_v49 }
  0x24   : > { %379 = vst.msk [vmem:[#allocation2 + $0x70] sm:$0x3] %vm366_vm2, %v10001_v2  ;;  %382 = vst.msk [vmem:[#allocation2 + $0x88] sm:$0x3] %vm366_vm2, %v10001_v2 }
  0x25   : > { %385 = vst.msk [vmem:[#allocation2 + $0xa0] sm:$0x3] %vm366_vm2, %v10001_v2  ;;  %388 = vst.msk [vmem:[#allocation2 + $0xb8] sm:$0x3] %vm366_vm2, %v10001_v2 }
  0x26   : > { %9586 = vmatmul.mubr.msk.bf16.gmra.mrb[8].mxu0 %vm539_vm0, %v9745_v8  ;;  %391 = vst.msk [vmem:[#allocation2 + $0xd0] sm:$0x3] %vm366_vm2, %v10001_v2  ;;  %394 = vst.msk [vmem:[#allocation2 + $0xe8] sm:$0x3] %vm366_vm2, %v10001_v2  ;;  %8742 = vmatpush3.bf16.msra.mxu1 %v9767_v50 }
  0x27   : > { %9589 = vmatprep.mubr.msk.bf16.mxu0 %vm539_vm0, %v9746_v9  ;;  %397 = vst.msk [vmem:[#allocation2 + $0x100] sm:$0x3] %vm366_vm2, %v10001_v2  ;;  %400 = vst.msk [vmem:[#allocation2 + $0x118] sm:$0x3] %vm366_vm2, %v10001_v2  ;;  %8743 = vmatprep.subr.bf16.mxu1 %v9768_v63 }
  0x28   : > { %403 = vst.msk [vmem:[#allocation2 + $0x130] sm:$0x3] %vm366_vm2, %v10001_v2  ;;  %406 = vst.msk [vmem:[#allocation2 + $0x148] sm:$0x3] %vm366_vm2, %v10001_v2 }
  0x29   : > { %409 = vst.msk [vmem:[#allocation2 + $0x160] sm:$0x3] %vm366_vm2, %v10001_v2  ;;  %412 = vst.msk [vmem:[#allocation2 + $0x178] sm:$0x3] %vm366_vm2, %v10001_v2  ;;  %v1082_v44 = vld [vmem:[#allocation2 + $0xa] sm:$0xff] }
  0x2a   : > { %415 = vst.msk [vmem:[#allocation2 + $0x190] sm:$0x3] %vm366_vm2, %v10001_v2  ;;  %418 = vst.msk [vmem:[#allocation2 + $0x1a8] sm:$0x3] %vm366_vm2, %v10001_v2  ;;  %v1113_v47 = vpack.c.bf16 %v1082_v44, %v1081_v43  ;;  %8744 = vmatpush3.bf16.msra.mxu1 %v9769_v0 }
  0x2b   : > { %936 = vst.msk [vmem:[#allocation3] sm:$0xff] %vm363_vm1, %v920_v59 }
  0x2c   : > { %1129 = vst.msk [vmem:[#allocation3 + $0x8] sm:$0xff] %vm363_vm1, %v1113_v47 }
  0x2e   : > { %9590 = vmatmul.mubr.msk.bf16.gmra.mrb[12].mxu0 %vm539_vm0, %v9747_v10  ;;  %v10297_v10 = vld [vmem:[#allocation2 + $0x9] sm:$0xff] }
  0x2f   : > { %9593 = vmatprep.mubr.msk.bf16.mxu0 %vm539_vm0, %v9748_v11  ;;  %v9770_v11 = vld [vmem:[%s13747_s2 + $0x78] sm:$0xff]  }
  0x30   : > { %8745 = vmatprep.subr.bf16.mxu1 %v9770_v11 }
  0x36   : > { %9594 = vmatmul.mubr.msk.bf16.gmra.mrb[16].mxu0 %vm539_vm0, %v9749_v12 }
  0x37   : > { %9597 = vmatprep.mubr.msk.bf16.mxu0 %vm539_vm0, %v9750_v13 }
  0x3e   : > { %9598 = vmatmul.mubr.msk.bf16.gmra.mrb[20].mxu0 %vm539_vm0, %v9751_v14 }
  0x3f   : > { %9601 = vmatprep.mubr.msk.bf16.mxu0 %vm539_vm0, %v9752_v15 }
  0x46   : > { %9602 = vmatmul.mubr.msk.bf16.gmra.mrb[24].mxu0 %vm539_vm0, %v9753_v16 }
  0x47   : > { %9605 = vmatprep.mubr.msk.bf16.mxu0 %vm539_vm0, %v9754_v17 }
  0x4e   : > { %9606 = vmatmul.mubr.msk.bf16.gmra.mrb[28].mxu0 %vm539_vm0, %v9755_v18 }
  0xe9   : > { %v9579_v28 = vpop.f32.mrb[0].mxu0 }
  0xea   : > { %v756_v31 = vmul.f32 %v9579_v28, %v10244_v26  ;;  %v622_v32 = vpop.f32.mrb[1].mxu0  ;;  %v984_v28 = vpack.c.bf16 %v10297_v10, %v10294_v7 }
  0xeb   : > { %v754_v33 = vmul.f32 %v10244_v26, %v622_v32  ;;  %v9580_v34 = vpop.f32.mrb[2].mxu0 }
  0xec   : > { %v793_v35 = vadd.f32 %v10252_v29, %v756_v31  ;;  %v757_v36 = vmul.f32 %v9580_v34, %v10244_v26  ;;  %v625_v37 = vpop.f32.mrb[3].mxu0 }
  0xed   : > { %v791_v39 = vadd.f32 %v10252_v29, %v754_v33  ;;  %v755_v40 = vmul.f32 %v10244_v26, %v625_v37 }
  0xee   : > { %v825_v41 = vmax.f32 %v793_v35, 0.0  ;;  %v794_v42 = vadd.f32 %v10252_v29, %v757_v36 }
  0xef   : > { %v823_v45 = vmax.f32 %v791_v39, 0.0  ;;  %v792_v46 = vadd.f32 %v10252_v29, %v755_v40  ;;  %v9771_v39 = vld [vmem:[%s13747_s2 + $0x38] sm:$0xff]  }
  0xf0   : > { %858 = vst.msk [vmem:[#allocation2 + $0x31] sm:$0xff] %vm363_vm1, %v825_v41  ;;  %v826_v48 = vmax.f32 %v794_v42, 0.0  ;;  %8746 = vmatpush3.bf16.msra.mxu1 %v9771_v39 }
  0xf1   : > { %856 = vst.msk [vmem:[#allocation2 + $0x19] sm:$0xff] %vm363_vm1, %v823_v45  ;;  %v824_v51 = vmax.f32 %v792_v46, 0.0  ;;  %v9583_v52 = vpop.f32.mrb[4].mxu0 }
  0xf2   : > { %859 = vst.msk [vmem:[#allocation2 + $0x39] sm:$0xff] %vm363_vm1, %v826_v48  ;;  %v760_v53 = vmul.f32 %v9583_v52, %v10244_v26  ;;  %v638_v54 = vpop.f32.mrb[5].mxu0 }
  0xf3   : > { %857 = vst.msk [vmem:[#allocation2 + $0x21] sm:$0xff] %vm363_vm1, %v824_v51  ;;  %v758_v57 = vmul.f32 %v10244_v26, %v638_v54  ;;  %v9584_v58 = vpop.f32.mrb[6].mxu0 }
  0xf4   : > { %v797_v60 = vadd.f32 %v10252_v29, %v760_v53  ;;  %v761_v61 = vmul.f32 %v9584_v58, %v10244_v26  ;;  %v641_v62 = vpop.f32.mrb[7].mxu0 }
  0xf5   : > { %v795_v1 = vadd.f32 %v10252_v29, %v758_v57  ;;  %v759_v2 = vmul.f32 %v10244_v26, %v641_v62 }
  0xf6   : > { %v829_v3 = vmax.f32 %v797_v60, 0.0  ;;  %v798_v4 = vadd.f32 %v10252_v29, %v761_v61 }
  0xf7   : > { %v827_v5 = vmax.f32 %v795_v1, 0.0  ;;  %v796_v6 = vadd.f32 %v10252_v29, %v759_v2  ;;  %v1147_v9 = vld [vmem:[#allocation2 + $0x30] sm:$0xff] }
  0xf8   : > { %862 = vst.msk [vmem:[#allocation2 + $0x61] sm:$0xff] %vm363_vm1, %v829_v3  ;;  %v830_v8 = vmax.f32 %v798_v4, 0.0  ;;  %v1145_v15 = vld [vmem:[#allocation2 + $0x18] sm:$0xff]  ;;  %v1466_v33 = vld [vmem:[#allocation2 + $0x30] sm:$0xff] }
  0xf9   : > { %860 = vst.msk [vmem:[#allocation2 + $0x49] sm:$0xff] %vm363_vm1, %v827_v5  ;;  %v828_v12 = vmax.f32 %v796_v6, 0.0  ;;  %v9587_v13 = vpop.f32.mrb[8].mxu0  ;;  %v1148_v14 = vld [vmem:[#allocation2 + $0x38] sm:$0xff] }
  0xfa   : > { %v954_v16 = vld [vmem:[#allocation2 + $0x19] sm:$0xff]  ;;  %863 = vst.msk [vmem:[#allocation2 + $0x69] sm:$0xff] %vm363_vm1, %v830_v8  ;;  %v764_v18 = vmul.f32 %v9587_v13, %v10244_v26  ;;  %v654_v19 = vpop.f32.mrb[9].mxu0  ;;  %v1178_v20 = vpack.c.bf16 %v1148_v14, %v1147_v9  ;;  %v955_v22 = vld [vmem:[#allocation2 + $0x21] sm:$0xff]  ;;  %v1275_v47 = vld [vmem:[#allocation2 + $0x31] sm:$0xff] }
  0xfb   : > { %v10303_v17 = vld [vmem:[#allocation2 + $0x32] sm:$0xff]  ;;  %v1146_v21 = vld [vmem:[#allocation2 + $0x20] sm:$0xff]  ;;  %861 = vst.msk [vmem:[#allocation2 + $0x51] sm:$0xff] %vm363_vm1, %v828_v12  ;;  %v762_v24 = vmul.f32 %v10244_v26, %v654_v19  ;;  %v9588_v25 = vpop.f32.mrb[10].mxu0  ;;  %v985_v37 = vpack.c.bf16 %v955_v22, %v954_v16 }
  0xfc   : > { %v1337_v23 = vld [vmem:[#allocation2 + $0x1a] sm:$0xff]  ;;  %v1177_v27 = vpack.c.bf16 %v1146_v21, %v1145_v15  ;;  %v1338_v30 = vld [vmem:[#allocation2 + $0x22] sm:$0xff]  ;;  %v1085_v32 = vld [vmem:[#allocation2 + $0x32] sm:$0xff]  ;;  %v801_v34 = vadd.f32 %v10252_v29, %v764_v18  ;;  %v765_v35 = vmul.f32 %v9588_v25, %v10244_v26  ;;  %1211 = vrot.lane.b32.xlu1 %v1178_v20, %s10002_s6  ;;  %v657_v36 = vpop.f32.mrb[11].mxu0  ;;  %938 = vst.msk [vmem:[#allocation3 + $0x50] sm:$0xff] %vm363_vm1, %v1178_v20 }
  0xfd   : > { %v10311_v31 = vld [vmem:[#allocation2 + $0x3a] sm:$0xff]  ;;  %v10316_v38 = vpack.c.bf16 %v1338_v30, %v1337_v23  ;;  %v799_v42 = vadd.f32 %v10252_v29, %v762_v24  ;;  %v763_v43 = vmul.f32 %v10244_v26, %v657_v36  ;;  %v956_v60 = vld [vmem:[#allocation2 + $0x31] sm:$0xff] }
  0xfe   : > { %v1273_v40 = vld [vmem:[#allocation2 + $0x19] sm:$0xff]  ;;  %v1274_v41 = vld [vmem:[#allocation2 + $0x21] sm:$0xff]  ;;  %1209 = vrot.lane.b32.xlu0 %v1177_v27, %s10002_s6  ;;  %937 = vst.msk [vmem:[#allocation3 + $0x28] sm:$0xff] %vm363_vm1, %v1177_v27  ;;  %v1115_v44 = vpack.c.bf16 %v10311_v31, %v1085_v32  ;;  %v833_v49 = vmax.f32 %v801_v34, 0.0  ;;  %v802_v50 = vadd.f32 %v10252_v29, %v765_v35 }
  0xff   : > { %v1305_v45 = vpack.c.bf16 %v1274_v41, %v1273_v40  ;;  %v1467_v46 = vld [vmem:[#allocation2 + $0x38] sm:$0xff]  ;;  %1130 = vst.msk [vmem:[#allocation3 + $0x30] sm:$0xff] %vm363_vm1, %v10316_v38  ;;  %v831_v54 = vmax.f32 %v799_v42, 0.0  ;;  %v800_v55 = vadd.f32 %v10252_v29, %v763_v43  ;;  %v1151_v57 = vld [vmem:[#allocation2 + $0x60] sm:$0xff] }
 0x100   : > { %v1276_v48 = vld [vmem:[#allocation2 + $0x39] sm:$0xff]  ;;  %v1498_v51 = vpack.c.bf16 %v1467_v46, %v1466_v33  ;;  %1131 = vst.msk [vmem:[#allocation3 + $0x58] sm:$0xff] %vm363_vm1, %v1115_v44  ;;  %866 = vst.msk [vmem:[#allocation2 + $0x91] sm:$0xff] %vm363_vm1, %v833_v49  ;;  %v834_v59 = vmax.f32 %v802_v50, 0.0  ;;  %1018 = vrot.lane.b32.xlu1 %v985_v37, %s10002_s6  ;;  %v1149_v61 = vld [vmem:[#allocation2 + $0x48] sm:$0xff] }
 0x101   : > { %v1306_v52 = vpack.c.bf16 %v1276_v48, %v1275_v47  ;;  %v1659_v53 = vld [vmem:[#allocation2 + $0x3a] sm:$0xff]  ;;  %1321 = vst.msk [vmem:[#allocation3 + $0x10] sm:$0xff] %vm363_vm1, %v1305_v45  ;;  %864 = vst.msk [vmem:[#allocation2 + $0x79] sm:$0xff] %vm363_vm1, %v831_v54  ;;  %v832_v62 = vmax.f32 %v800_v55, 0.0  ;;  %v9591_v63 = vpop.f32.mrb[12].mxu0  ;;  %v958_v0 = vld [vmem:[#allocation2 + $0x49] sm:$0xff] }
 0x102   : > { %v957_v56 = vld [vmem:[#allocation2 + $0x39] sm:$0xff]  ;;  %v1690_v58 = vpack.c.bf16 %v1659_v53, %v10303_v17  ;;  %1514 = vst.msk [vmem:[#allocation3 + $0x18] sm:$0xff] %vm363_vm1, %v1498_v51  ;;  %1016 = vrot.lane.b32.xlu0 %v984_v28, %s10002_s6  ;;  %v1152_v1 = vld [vmem:[#allocation2 + $0x68] sm:$0xff]  ;;  %867 = vst.msk [vmem:[#allocation2 + $0x99] sm:$0xff] %vm363_vm1, %v834_v59  ;;  %v768_v7 = vmul.f32 %v9591_v63, %v10244_v26  ;;  %v670_v8 = vpop.f32.mrb[13].mxu0 }
 0x103   : > { %1322 = vst.msk [vmem:[#allocation3 + $0x38] sm:$0xff] %vm363_vm1, %v1306_v52  ;;  %v1468_v2 = vld [vmem:[#allocation2 + $0x48] sm:$0xff]  ;;  %v1470_v3 = vld [vmem:[#allocation2 + $0x60] sm:$0xff]  ;;  %v1661_v6 = vld [vmem:[#allocation2 + $0x52] sm:$0xff]  ;;  %v10345_v9 = vpack.c.bf16 %v957_v56, %v956_v60  ;;  %v1180_v11 = vpack.c.bf16 %v1152_v1, %v1151_v57  ;;  %v766_v12 = vmul.f32 %v10244_v26, %v670_v8  ;;  %v9592_v13 = vpop.f32.mrb[14].mxu0 }
 0x104   : > { %1706 = vst.msk [vmem:[#allocation3 + $0x20] sm:$0xff] %vm363_vm1, %v1690_v58  ;;  %v10341_v4 = vld [vmem:[#allocation2 + $0x62] sm:$0xff]  ;;  %v1660_v5 = vld [vmem:[#allocation2 + $0x4a] sm:$0xff]  ;;  %865 = vst.msk [vmem:[#allocation2 + $0x81] sm:$0xff] %vm363_vm1, %v832_v62  ;;  %v805_v21 = vadd.f32 %v10252_v29, %v768_v7  ;;  %v769_v22 = vmul.f32 %v9592_v13, %v10244_v26  ;;  %v673_v23 = vpop.f32.mrb[15].mxu0 }
 0x105   : > { %v1150_v10 = vld [vmem:[#allocation2 + $0x50] sm:$0xff]  ;;  %v960_v16 = vld [vmem:[#allocation2 + $0x61] sm:$0xff]  ;;  %v10349_v18 = vpack.c.bf16 %v1661_v6, %v1660_v5  ;;  %1020 = vrot.lane.b32.xlu1 %v10345_v9, %s10002_s6  ;;  %940 = vst.msk [vmem:[#allocation3 + $0xa0] sm:$0xff] %vm363_vm1, %v1180_v11  ;;  %v803_v30 = vadd.f32 %v10252_v29, %v766_v12  ;;  %v767_v32 = vmul.f32 %v10244_v26, %v673_v23 }
 0x106   : > { %v1179_v14 = vpack.c.bf16 %v1150_v10, %v1149_v61  ;;  %v959_v15 = vld [vmem:[#allocation2 + $0x51] sm:$0xff]  ;;  %v961_v17 = vld [vmem:[#allocation2 + $0x69] sm:$0xff]  ;;  %v1279_v36 = vld [vmem:[#allocation2 + $0x61] sm:$0xff]  ;;  %v837_v39 = vmax.f32 %v805_v21, 0.0  ;;  %v806_v40 = vadd.f32 %v10252_v29, %v769_v22 }
 0x107   : > { %v10351_v19 = vld [vmem:[#allocation2 + $0x6a] sm:$0xff]  ;;  %v1089_v20 = vld [vmem:[#allocation2 + $0x62] sm:$0xff]  ;;  %v10357_v24 = vpack.c.bf16 %v959_v15, %v958_v0  ;;  %1132 = vst.msk [vmem:[#allocation3 + $0x80] sm:$0xff] %vm363_vm1, %v10349_v18  ;;  %1707 = vst.msk [vmem:[#allocation3 + $0x48] sm:$0xff] %vm363_vm1, %v10349_v18  ;;  %v835_v44 = vmax.f32 %v803_v30, 0.0  ;;  %v804_v45 = vadd.f32 %v10252_v29, %v767_v32  ;;  %v10377_v50 = vpack.c.bf16 %v961_v17, %v960_v16 }
 0x108   : > { %v1469_v25 = vld [vmem:[#allocation2 + $0x50] sm:$0xff]  ;;  %1213 = vrot.lane.b32.xlu0 %v1179_v14, %s10002_s6  ;;  %939 = vst.msk [vmem:[#allocation3 + $0x78] sm:$0xff] %vm363_vm1, %v1179_v14  ;;  %v1117_v33 = vpack.c.bf16 %v10351_v19, %v1089_v20  ;;  %v1471_v35 = vld [vmem:[#allocation2 + $0x68] sm:$0xff]  ;;  %870 = vst.msk [vmem:[#allocation2 + $0xc1] sm:$0xff] %vm363_vm1, %v837_v39  ;;  %v838_v49 = vmax.f32 %v806_v40, 0.0 }
 0x109   : > { %v1277_v27 = vld [vmem:[#allocation2 + $0x49] sm:$0xff]  ;;  %v1278_v28 = vld [vmem:[#allocation2 + $0x51] sm:$0xff]  ;;  %v1499_v34 = vpack.c.bf16 %v1469_v25, %v1468_v2  ;;  %v1500_v42 = vpack.c.bf16 %v1471_v35, %v1470_v3  ;;  %1022 = vrot.lane.b32.xlu1 %v10357_v24, %s10002_s6  ;;  %868 = vst.msk [vmem:[#allocation2 + $0xa9] sm:$0xff] %vm363_vm1, %v835_v44  ;;  %v836_v52 = vmax.f32 %v804_v45, 0.0  ;;  %v9595_v53 = vpop.f32.mrb[16].mxu0  ;;  %v962_v54 = vld [vmem:[#allocation2 + $0x79] sm:$0xff] }
 0x10a   : > { %v1280_v37 = vld [vmem:[#allocation2 + $0x69] sm:$0xff]  ;;  %v1307_v41 = vpack.c.bf16 %v1278_v28, %v1277_v27  ;;  %1133 = vst.msk [vmem:[#allocation3 + $0xa8] sm:$0xff] %vm363_vm1, %v1117_v33  ;;  %v1153_v51 = vld [vmem:[#allocation2 + $0x78] sm:$0xff]  ;;  %871 = vst.msk [vmem:[#allocation2 + $0xc9] sm:$0xff] %vm363_vm1, %v838_v49  ;;  %v772_v59 = vmul.f32 %v9595_v53, %v10244_v26  ;;  %v686_v60 = vpop.f32.mrb[17].mxu0 }
 0x10b   : > { %v1663_v43 = vld [vmem:[#allocation2 + $0x6a] sm:$0xff]  ;;  %1515 = vst.msk [vmem:[#allocation3 + $0x40] sm:$0xff] %vm363_vm1, %v1499_v34  ;;  %v1308_v47 = vpack.c.bf16 %v1280_v37, %v1279_v36  ;;  %1516 = vst.msk [vmem:[#allocation3 + $0x68] sm:$0xff] %vm363_vm1, %v1500_v42  ;;  %v1156_v55 = vld [vmem:[#allocation2 + $0x98] sm:$0xff]  ;;  %v770_v0 = vmul.f32 %v10244_v26, %v686_v60  ;;  %v9596_v1 = vpop.f32.mrb[18].mxu0 }
 0x10c   : > { %v1155_v46 = vld [vmem:[#allocation2 + $0x90] sm:$0xff]  ;;  %v1692_v48 = vpack.c.bf16 %v1663_v43, %v10341_v4  ;;  %1323 = vst.msk [vmem:[#allocation3 + $0x60] sm:$0xff] %vm363_vm1, %v1307_v41  ;;  %1215 = vrot.lane.b32.xlu0 %v1180_v11, %s10002_s6  ;;  %v1472_v56 = vld [vmem:[#allocation2 + $0x78] sm:$0xff]  ;;  %v1154_v61 = vld [vmem:[#allocation2 + $0x80] sm:$0xff]  ;;  %v809_v10 = vadd.f32 %v10252_v29, %v772_v59  ;;  %v773_v11 = vmul.f32 %v9596_v1, %v10244_v26  ;;  %v689_v12 = vpop.f32.mrb[19].mxu0 }
 0x10d   : > { %1324 = vst.msk [vmem:[#allocation3 + $0x88] sm:$0xff] %vm363_vm1, %v1308_v47  ;;  %v1474_v57 = vld [vmem:[#allocation2 + $0x90] sm:$0xff]  ;;  %v10385_v58 = vld [vmem:[#allocation2 + $0x7a] sm:$0xff]  ;;  %v1182_v63 = vpack.c.bf16 %v1156_v55, %v1155_v46  ;;  %869 = vst.msk [vmem:[#allocation2 + $0xb1] sm:$0xff] %vm363_vm1, %v836_v52  ;;  %v1181_v2 = vpack.c.bf16 %v1154_v61, %v1153_v51  ;;  %1024 = vrot.lane.b32.xlu1 %v10377_v50, %s10002_s6  ;;  %v807_v20 = vadd.f32 %v10252_v29, %v770_v0 }
 0x10e   : > { %1708 = vst.msk [vmem:[#allocation3 + $0x70] sm:$0xff] %vm363_vm1, %v1692_v48  ;;  %v963_v62 = vld [vmem:[#allocation2 + $0x81] sm:$0xff]  ;;  %v964_v3 = vld [vmem:[#allocation2 + $0x91] sm:$0xff]  ;;  %v965_v5 = vld [vmem:[#allocation2 + $0x99] sm:$0xff]  ;;  %v771_v21 = vmul.f32 %v10244_v26, %v689_v12  ;;  %v841_v30 = vmax.f32 %v809_v10, 0.0  ;;  %v810_v32 = vadd.f32 %v10252_v29, %v773_v11 }
 0x10f   : > { %v1346_v6 = vld [vmem:[#allocation2 + $0x82] sm:$0xff]  ;;  %v10391_v7 = vld [vmem:[#allocation2 + $0x9a] sm:$0xff]  ;;  %v1093_v8 = vld [vmem:[#allocation2 + $0x92] sm:$0xff]  ;;  %v10397_v13 = vpack.c.bf16 %v963_v62, %v962_v54  ;;  %942 = vst.msk [vmem:[#allocation3 + $0xf0] sm:$0xff] %vm363_vm1, %v1182_v63  ;;  %v839_v36 = vmax.f32 %v807_v20, 0.0  ;;  %v10418_v43 = vpack.c.bf16 %v965_v5, %v964_v3 }
 0x110   : > { %v10400_v14 = vpack.c.bf16 %v1346_v6, %v10385_v58  ;;  %v1473_v15 = vld [vmem:[#allocation2 + $0x80] sm:$0xff]  ;;  %1217 = vrot.lane.b32.xlu0 %v1181_v2, %s10002_s6  ;;  %941 = vst.msk [vmem:[#allocation3 + $0xc8] sm:$0xff] %vm363_vm1, %v1181_v2  ;;  %v1119_v22 = vpack.c.bf16 %v10391_v7, %v1093_v8  ;;  %v1475_v25 = vld [vmem:[#allocation2 + $0x98] sm:$0xff]  ;;  %v808_v37 = vadd.f32 %v10252_v29, %v771_v21  ;;  %874 = vst.msk [vmem:[#allocation2 + $0xf1] sm:$0xff] %vm363_vm1, %v841_v30 }
 0x111   : > { %v1281_v16 = vld [vmem:[#allocation2 + $0x79] sm:$0xff]  ;;  %v1282_v17 = vld [vmem:[#allocation2 + $0x81] sm:$0xff]  ;;  %v1501_v23 = vpack.c.bf16 %v1473_v15, %v1472_v56  ;;  %v1283_v27 = vld [vmem:[#allocation2 + $0x91] sm:$0xff]  ;;  %v1502_v34 = vpack.c.bf16 %v1475_v25, %v1474_v57  ;;  %v842_v42 = vmax.f32 %v810_v32, 0.0  ;;  %1026 = vrot.lane.b32.xlu1 %v10397_v13, %s10002_s6  ;;  %872 = vst.msk [vmem:[#allocation2 + $0xd9] sm:$0xff] %vm363_vm1, %v839_v36  ;;  %v9599_v48 = vpop.f32.mrb[20].mxu0 }
 0x112   : > { %v1284_v28 = vld [vmem:[#allocation2 + $0x99] sm:$0xff]  ;;  %1134 = vst.msk [vmem:[#allocation3 + $0xd0] sm:$0xff] %vm363_vm1, %v10400_v14  ;;  %v1309_v33 = vpack.c.bf16 %v1282_v17, %v1281_v16  ;;  %v1665_v35 = vld [vmem:[#allocation2 + $0x82] sm:$0xff]  ;;  %1135 = vst.msk [vmem:[#allocation3 + $0xf8] sm:$0xff] %vm363_vm1, %v1119_v22  ;;  %v840_v47 = vmax.f32 %v808_v37, 0.0  ;;  %v776_v55 = vmul.f32 %v9599_v48, %v10244_v26  ;;  %v702_v56 = vpop.f32.mrb[21].mxu0 }
 0x113   : > { %v1159_v39 = vld [vmem:[#allocation2 + $0xc0] sm:$0xff]  ;;  %1517 = vst.msk [vmem:[#allocation3 + $0x90] sm:$0xff] %vm363_vm1, %v1501_v23  ;;  %v1310_v40 = vpack.c.bf16 %v1284_v28, %v1283_v27  ;;  %v1693_v41 = vpack.c.bf16 %v1665_v35, %v10385_v58  ;;  %v1157_v44 = vld [vmem:[#allocation2 + $0xa8] sm:$0xff]  ;;  %1518 = vst.msk [vmem:[#allocation3 + $0xb8] sm:$0xff] %vm363_vm1, %v1502_v34  ;;  %v774_v60 = vmul.f32 %v10244_v26, %v702_v56  ;;  %v9600_v61 = vpop.f32.mrb[22].mxu0 }
 0x114   : > { %v966_v45 = vld [vmem:[#allocation2 + $0xa9] sm:$0xff]  ;;  %1325 = vst.msk [vmem:[#allocation3 + $0xb0] sm:$0xff] %vm363_vm1, %v1309_v33  ;;  %1219 = vrot.lane.b32.xlu0 %v1182_v63, %s10002_s6  ;;  %v1478_v52 = vld [vmem:[#allocation2 + $0xc0] sm:$0xff]  ;;  %v10428_v53 = vld [vmem:[#allocation2 + $0x92] sm:$0xff]  ;;  %v813_v5 = vadd.f32 %v10252_v29, %v776_v55  ;;  %v777_v6 = vmul.f32 %v9600_v61, %v10244_v26  ;;  %v705_v8 = vpop.f32.mrb[23].mxu0 }
 0x115   : > { %v10422_v46 = vld [vmem:[#allocation2 + $0xc2] sm:$0xff]  ;;  %1326 = vst.msk [vmem:[#allocation3 + $0xd8] sm:$0xff] %vm363_vm1, %v1310_v40  ;;  %1709 = vst.msk [vmem:[#allocation3 + $0x98] sm:$0xff] %vm363_vm1, %v1693_v41  ;;  %v10430_v54 = vld [vmem:[#allocation2 + $0xaa] sm:$0xff]  ;;  %1028 = vrot.lane.b32.xlu1 %v10418_v43, %s10002_s6  ;;  %v811_v17 = vadd.f32 %v10252_v29, %v774_v60  ;;  %v775_v20 = vmul.f32 %v10244_v26, %v705_v8 }
 0x116   : > { %v1160_v49 = vld [vmem:[#allocation2 + $0xc8] sm:$0xff]  ;;  %875 = vst.msk [vmem:[#allocation2 + $0xf9] sm:$0xff] %vm363_vm1, %v842_v42  ;;  %v1158_v57 = vld [vmem:[#allocation2 + $0xb0] sm:$0xff]  ;;  %873 = vst.msk [vmem:[#allocation2 + $0xe1] sm:$0xff] %vm363_vm1, %v840_v47  ;;  %v845_v28 = vmax.f32 %v813_v5, 0.0  ;;  %v814_v30 = vadd.f32 %v10252_v29, %v777_v6 }
 0x117   : > { %v1476_v51 = vld [vmem:[#allocation2 + $0xa8] sm:$0xff]  ;;  %v967_v58 = vld [vmem:[#allocation2 + $0xb1] sm:$0xff]  ;;  %v1184_v59 = vpack.c.bf16 %v1160_v49, %v1159_v39  ;;  %v1183_v62 = vpack.c.bf16 %v1158_v57, %v1157_v44  ;;  %v1667_v34 = vld [vmem:[#allocation2 + $0x9a] sm:$0xff]  ;;  %v843_v37 = vmax.f32 %v811_v17, 0.0  ;;  %v812_v39 = vadd.f32 %v10252_v29, %v775_v20 }
 0x118   : > { %v10436_v63 = vpack.c.bf16 %v967_v58, %v966_v45  ;;  %v968_v0 = vld [vmem:[#allocation2 + $0xc1] sm:$0xff]  ;;  %v1350_v1 = vld [vmem:[#allocation2 + $0xb2] sm:$0xff]  ;;  %v1352_v2 = vld [vmem:[#allocation2 + $0xca] sm:$0xff]  ;;  %v1694_v41 = vpack.c.bf16 %v1667_v34, %v10428_v53  ;;  %878 = vst.msk [vmem:[#allocation2 + $0x121] sm:$0xff] %vm363_vm1, %v845_v28  ;;  %v846_v44 = vmax.f32 %v814_v30, 0.0 }
 0x119   : > { %v1477_v3 = vld [vmem:[#allocation2 + $0xb0] sm:$0xff]  ;;  %v10443_v10 = vpack.c.bf16 %v1350_v1, %v10430_v54  ;;  %v10446_v11 = vpack.c.bf16 %v1352_v2, %v10422_v46  ;;  %944 = vst.msk [vmem:[#allocation3 + $0x140] sm:$0xff] %vm363_vm1, %v1184_v59  ;;  %v1479_v16 = vld [vmem:[#allocation2 + $0xc8] sm:$0xff]  ;;  %1221 = vrot.lane.b32.xlu0 %v1183_v62, %s10002_s6  ;;  %943 = vst.msk [vmem:[#allocation3 + $0x118] sm:$0xff] %vm363_vm1, %v1183_v62  ;;  %v9603_v55 = vpop.f32.mrb[24].mxu0 }
 0x11a   : > { %v1285_v12 = vld [vmem:[#allocation2 + $0xa9] sm:$0xff]  ;;  %v1286_v15 = vld [vmem:[#allocation2 + $0xb1] sm:$0xff]  ;;  %v1503_v22 = vpack.c.bf16 %v1477_v3, %v1476_v51  ;;  %v1287_v25 = vld [vmem:[#allocation2 + $0xc1] sm:$0xff]  ;;  %v1504_v32 = vpack.c.bf16 %v1479_v16, %v1478_v52  ;;  %1030 = vrot.lane.b32.xlu1 %v10436_v63, %s10002_s6  ;;  %876 = vst.msk [vmem:[#allocation2 + $0x109] sm:$0xff] %vm363_vm1, %v843_v37  ;;  %v780_v58 = vmul.f32 %v9603_v55, %v10244_v26 }
 0x11b   : > { %v969_v21 = vld [vmem:[#allocation2 + $0xc9] sm:$0xff]  ;;  %v1311_v23 = vpack.c.bf16 %v1286_v15, %v1285_v12  ;;  %1136 = vst.msk [vmem:[#allocation3 + $0x120] sm:$0xff] %vm363_vm1, %v10443_v10  ;;  %1137 = vst.msk [vmem:[#allocation3 + $0x148] sm:$0xff] %vm363_vm1, %v10446_v11  ;;  %v1669_v35 = vld [vmem:[#allocation2 + $0xb2] sm:$0xff] }
 0x11c   : > { %v1288_v27 = vld [vmem:[#allocation2 + $0xc9] sm:$0xff]  ;;  %1519 = vst.msk [vmem:[#allocation3 + $0xe0] sm:$0xff] %vm363_vm1, %v1503_v22  ;;  %v1695_v42 = vpack.c.bf16 %v1669_v35, %v10430_v54  ;;  %v10466_v45 = vpack.c.bf16 %v969_v21, %v968_v0  ;;  %v1161_v47 = vld [vmem:[#allocation2 + $0xd8] sm:$0xff]  ;;  %v9772_v49 = vld [vmem:[%s13747_s2 + $0xc0] sm:$0xff]   ;;  %v844_v54 = vmax.f32 %v812_v39, 0.0  ;;  %v817_v16 = vadd.f32 %v10252_v29, %v780_v58 }
 0x11d   : > { %v1312_v33 = vpack.c.bf16 %v1288_v27, %v1287_v25  ;;  %v1671_v36 = vld [vmem:[#allocation2 + $0xca] sm:$0xff]  ;;  %1327 = vst.msk [vmem:[#allocation3 + $0x100] sm:$0xff] %vm363_vm1, %v1311_v23  ;;  %v970_v48 = vld [vmem:[#allocation2 + $0xd9] sm:$0xff]  ;;  %1520 = vst.msk [vmem:[#allocation3 + $0x108] sm:$0xff] %vm363_vm1, %v1504_v32  ;;  %1223 = vrot.lane.b32.xlu0 %v1184_v59, %s10002_s6  ;;  %8843 = vmatprep.subr.bf16.mxu0 %v9772_v49 }
 0x11e   : > { %v1163_v40 = vld [vmem:[#allocation2 + $0xf0] sm:$0xff]  ;;  %v1696_v51 = vpack.c.bf16 %v1671_v36, %v10422_v46  ;;  %v1164_v56 = vld [vmem:[#allocation2 + $0xf8] sm:$0xff]  ;;  %1710 = vst.msk [vmem:[#allocation3 + $0xc0] sm:$0xff] %vm363_vm1, %v1694_v41  ;;  %1711 = vst.msk [vmem:[#allocation3 + $0xe8] sm:$0xff] %vm363_vm1, %v1695_v42  ;;  %v718_v46 = vpop.f32.mrb[25].mxu0  ;;  %1032 = vrot.lane.b32.xlu1 %v10466_v45, %s10002_s6  ;;  %v849_v36 = vmax.f32 %v817_v16, 0.0 }
 0x11f   : > { %1328 = vst.msk [vmem:[#allocation3 + $0x128] sm:$0xff] %vm363_vm1, %v1312_v33  ;;  %v10474_v52 = vld [vmem:[#allocation2 + $0xf2] sm:$0xff]  ;;  %v10480_v57 = vld [vmem:[#allocation2 + $0xda] sm:$0xff]  ;;  %879 = vst.msk [vmem:[#allocation2 + $0x129] sm:$0xff] %vm363_vm1, %v846_v44  ;;  %v1186_v62 = vpack.c.bf16 %v1164_v56, %v1163_v40  ;;  %v778_v59 = vmul.f32 %v10244_v26, %v718_v46  ;;  %v9604_v1 = vpop.f32.mrb[26].mxu0 }
 0x120   : > { %v1162_v60 = vld [vmem:[#allocation2 + $0xe0] sm:$0xff]  ;;  %v1482_v0 = vld [vmem:[#allocation2 + $0xf0] sm:$0xff]  ;;  %1712 = vst.msk [vmem:[#allocation3 + $0x110] sm:$0xff] %vm363_vm1, %v1696_v51  ;;  %877 = vst.msk [vmem:[#allocation2 + $0x111] sm:$0xff] %vm363_vm1, %v844_v54  ;;  %v781_v17 = vmul.f32 %v9604_v1, %v10244_v26  ;;  %v721_v20 = vpop.f32.mrb[27].mxu0 }
 0x121   : > { %v971_v61 = vld [vmem:[#allocation2 + $0xe1] sm:$0xff]  ;;  %v1185_v2 = vpack.c.bf16 %v1162_v60, %v1161_v47  ;;  %v972_v5 = vld [vmem:[#allocation2 + $0xf1] sm:$0xff]  ;;  %v973_v6 = vld [vmem:[#allocation2 + $0xf9] sm:$0xff]  ;;  %946 = vst.msk [vmem:[#allocation3 + $0x190] sm:$0xff] %vm363_vm1, %v1186_v62  ;;  %v815_v28 = vadd.f32 %v10252_v29, %v778_v59  ;;  %v779_v30 = vmul.f32 %v10244_v26, %v721_v20 }
 0x122   : > { %v10487_v3 = vpack.c.bf16 %v971_v61, %v970_v48  ;;  %v1354_v8 = vld [vmem:[#allocation2 + $0xe2] sm:$0xff]  ;;  %v1356_v12 = vld [vmem:[#allocation2 + $0xfa] sm:$0xff]  ;;  %v818_v37 = vadd.f32 %v10252_v29, %v781_v17  ;;  %v1291_v41 = vld [vmem:[#allocation2 + $0xf1] sm:$0xff]  ;;  %882 = vst.msk [vmem:[#allocation2 + $0x151] sm:$0xff] %vm363_vm1, %v849_v36  ;;  %v10523_v55 = vpack.c.bf16 %v973_v6, %v972_v5 }
 0x123   : > { %v9773_v15 = vld [vmem:[%s13747_s2 + $0x80] sm:$0xff]   ;;  %v10497_v21 = vpack.c.bf16 %v1354_v8, %v10480_v57  ;;  %v10500_v22 = vpack.c.bf16 %v1356_v12, %v10474_v52  ;;  %v1480_v23 = vld [vmem:[#allocation2 + $0xd8] sm:$0xff]  ;;  %1225 = vrot.lane.b32.xlu0 %v1185_v2, %s10002_s6  ;;  %945 = vst.msk [vmem:[#allocation3 + $0x168] sm:$0xff] %vm363_vm1, %v1185_v2  ;;  %v9774_v32 = vld [vmem:[%s13747_s2 + $0xc8] sm:$0xff]   ;;  %v847_v44 = vmax.f32 %v815_v28, 0.0  ;;  %v816_v47 = vadd.f32 %v10252_v29, %v779_v30 }
 0x124   : > { %v1481_v25 = vld [vmem:[#allocation2 + $0xe0] sm:$0xff]  ;;  %8844 = vmatpush3.bf16.msra.mxu0 %v9773_v15  ;;  %v9775_v33 = vld [vmem:[%s13747_s2 + $0x88] sm:$0xff]   ;;  %v1483_v40 = vld [vmem:[#allocation2 + $0xf8] sm:$0xff]  ;;  %v850_v54 = vmax.f32 %v818_v37, 0.0  ;;  %1034 = vrot.lane.b32.xlu1 %v10487_v3, %s10002_s6 }
 0x125   : > { %v1289_v27 = vld [vmem:[#allocation2 + $0xd9] sm:$0xff]  ;;  %v1505_v34 = vpack.c.bf16 %v1481_v25, %v1480_v23  ;;  %v1290_v35 = vld [vmem:[#allocation2 + $0xe1] sm:$0xff]  ;;  %1138 = vst.msk [vmem:[#allocation3 + $0x170] sm:$0xff] %vm363_vm1, %v10497_v21  ;;  %1139 = vst.msk [vmem:[#allocation3 + $0x198] sm:$0xff] %vm363_vm1, %v10500_v22  ;;  %8845 = vmatprep.subr.bf16.mxu0 %v9774_v32  ;;  %v1506_v49 = vpack.c.bf16 %v1483_v40, %v1482_v0  ;;  %v848_v61 = vmax.f32 %v816_v47, 0.0  ;;  %v9607_v0 = vpop.f32.mrb[28].mxu0 }
 0x126   : > { %v1313_v39 = vpack.c.bf16 %v1290_v35, %v1289_v27  ;;  %v1292_v42 = vld [vmem:[#allocation2 + $0xf9] sm:$0xff]  ;;  %v1165_v56 = vld [vmem:[#allocation2 + $0x108] sm:$0xff]  ;;  %v9776_v46 = vld [vmem:[%s13747_s2 + $0xd0] sm:$0xff]   ;;  %880 = vst.msk [vmem:[#allocation2 + $0x139] sm:$0xff] %vm363_vm1, %v847_v44  ;;  %v784_v2 = vmul.f32 %v9607_v0, %v10244_v26  ;;  %v734_v5 = vpop.f32.mrb[29].mxu0 }
 0x127   : > { %v1167_v48 = vld [vmem:[#allocation2 + $0x120] sm:$0xff]  ;;  %1521 = vst.msk [vmem:[#allocation3 + $0x130] sm:$0xff] %vm363_vm1, %v1505_v34  ;;  %v1314_v51 = vpack.c.bf16 %v1292_v42, %v1291_v41  ;;  %v974_v58 = vld [vmem:[#allocation2 + $0x109] sm:$0xff]  ;;  %1227 = vrot.lane.b32.xlu0 %v1186_v62, %s10002_s6  ;;  %1522 = vst.msk [vmem:[#allocation3 + $0x158] sm:$0xff] %vm363_vm1, %v1506_v49  ;;  %v782_v62 = vmul.f32 %v10244_v26, %v734_v5  ;;  %v9608_v16 = vpop.f32.mrb[30].mxu0 }
 0x128   : > { %1329 = vst.msk [vmem:[#allocation3 + $0x150] sm:$0xff] %vm363_vm1, %v1313_v39  ;;  %v10529_v60 = vld [vmem:[#allocation2 + $0x122] sm:$0xff]  ;;  %8846 = vmatpush3.bf16.msra.mxu0 %v9775_v33  ;;  %v10535_v1 = vld [vmem:[#allocation2 + $0x10a] sm:$0xff]  ;;  %883 = vst.msk [vmem:[#allocation2 + $0x159] sm:$0xff] %vm363_vm1, %v850_v54  ;;  %v821_v32 = vadd.f32 %v10252_v29, %v784_v2  ;;  %v785_v33 = vmul.f32 %v9608_v16, %v10244_v26  ;;  %1036 = vrot.lane.b32.xlu1 %v10523_v55, %s10002_s6  ;;  %v737_v34 = vpop.f32.mrb[31].mxu0 }
 0x129   : > { %v1168_v59 = vld [vmem:[#allocation2 + $0x128] sm:$0xff]  ;;  %1330 = vst.msk [vmem:[#allocation3 + $0x178] sm:$0xff] %vm363_vm1, %v1314_v51  ;;  %v1166_v6 = vld [vmem:[#allocation2 + $0x110] sm:$0xff]  ;;  %8847 = vmatprep.subr.bf16.mxu0 %v9776_v46  ;;  %v1486_v15 = vld [vmem:[#allocation2 + $0x120] sm:$0xff]  ;;  %v819_v41 = vadd.f32 %v10252_v29, %v782_v62  ;;  %v783_v42 = vmul.f32 %v10244_v26, %v737_v34 }
 0x12a   : > { %v975_v8 = vld [vmem:[#allocation2 + $0x111] sm:$0xff]  ;;  %v1188_v12 = vpack.c.bf16 %v1168_v59, %v1167_v48  ;;  %881 = vst.msk [vmem:[#allocation2 + $0x141] sm:$0xff] %vm363_vm1, %v848_v61  ;;  %v1187_v17 = vpack.c.bf16 %v1166_v6, %v1165_v56  ;;  %v976_v23 = vld [vmem:[#allocation2 + $0x121] sm:$0xff]  ;;  %v977_v25 = vld [vmem:[#allocation2 + $0x129] sm:$0xff]  ;;  %v853_v49 = vmax.f32 %v821_v32, 0.0  ;;  %v822_v51 = vadd.f32 %v10252_v29, %v785_v33 }
 0x12b   : > { %v10541_v20 = vpack.c.bf16 %v975_v8, %v974_v58  ;;  %v1358_v27 = vld [vmem:[#allocation2 + $0x112] sm:$0xff]  ;;  %v1360_v28 = vld [vmem:[#allocation2 + $0x12a] sm:$0xff]  ;;  %v1295_v58 = vld [vmem:[#allocation2 + $0x121] sm:$0xff]  ;;  %v851_v61 = vmax.f32 %v819_v41, 0.0  ;;  %v820_v0 = vadd.f32 %v10252_v29, %v783_v42  ;;  %v10576_v8 = vpack.c.bf16 %v977_v25, %v976_v23 }
 0x12c   : > { %v9777_v30 = vld [vmem:[%s13747_s2 + $0x90] sm:$0xff]   ;;  %v10551_v35 = vpack.c.bf16 %v1358_v27, %v10535_v1  ;;  %v10554_v36 = vpack.c.bf16 %v1360_v28, %v10529_v60  ;;  %948 = vst.msk [vmem:[#allocation3 + $0x1e0] sm:$0xff] %vm363_vm1, %v1188_v12  ;;  %v9778_v37 = vld [vmem:[%s13747_s2 + $0xd8] sm:$0xff]   ;;  %v1484_v40 = vld [vmem:[#allocation2 + $0x108] sm:$0xff]  ;;  %1229 = vrot.lane.b32.xlu0 %v1187_v17, %s10002_s6  ;;  %v854_v6 = vmax.f32 %v822_v51, 0.0 }
 0x12d   : > { %v9779_v39 = vld [vmem:[%s13747_s2 + $0x98] sm:$0xff]   ;;  %947 = vst.msk [vmem:[#allocation3 + $0x1b8] sm:$0xff] %vm363_vm1, %v1187_v17  ;;  %8848 = vmatpush3.bf16.msra.mxu0 %v9777_v30  ;;  %v1485_v44 = vld [vmem:[#allocation2 + $0x110] sm:$0xff]  ;;  %v1487_v56 = vld [vmem:[#allocation2 + $0x128] sm:$0xff]  ;;  %1038 = vrot.lane.b32.xlu1 %v10541_v20, %s10002_s6 }
 0x12e   : > { %v1293_v47 = vld [vmem:[#allocation2 + $0x109] sm:$0xff]  ;;  %v1294_v48 = vld [vmem:[#allocation2 + $0x111] sm:$0xff]  ;;  %1140 = vst.msk [vmem:[#allocation3 + $0x1c0] sm:$0xff] %vm363_vm1, %v10551_v35  ;;  %1141 = vst.msk [vmem:[#allocation3 + $0x1e8] sm:$0xff] %vm363_vm1, %v10554_v36  ;;  %8849 = vmatprep.subr.bf16.mxu0 %v9778_v37  ;;  %v1507_v54 = vpack.c.bf16 %v1485_v44, %v1484_v40  ;;  %v1508_v2 = vpack.c.bf16 %v1487_v56, %v1486_v15  ;;  %v852_v15 = vmax.f32 %v820_v0, 0.0 }
 0x12f   : > { %v1315_v26 = vpack.c.bf16 %v1294_v48, %v1293_v47  ;;  %v1296_v46 = vld [vmem:[#allocation2 + $0x129] sm:$0xff]  ;;  %886 = vst.msk [vmem:[#allocation2 + $0x181] sm:$0xff] %vm363_vm1, %v853_v49  ;;  %v1169_v62 = vld [vmem:[#allocation2 + $0x138] sm:$0xff]  ;;  %v9780_v16 = vld [vmem:[%s13747_s2 + $0xe0] sm:$0xff]  }
 0x130   : > { %v1171_v59 = vld [vmem:[#allocation2 + $0x150] sm:$0xff]  ;;  %v1316_v5 = vpack.c.bf16 %v1296_v46, %v1295_v58  ;;  %1523 = vst.msk [vmem:[#allocation3 + $0x180] sm:$0xff] %vm363_vm1, %v1507_v54  ;;  %884 = vst.msk [vmem:[#allocation2 + $0x169] sm:$0xff] %vm363_vm1, %v851_v61  ;;  %1231 = vrot.lane.b32.xlu0 %v1188_v12, %s10002_s6  ;;  %v978_v17 = vld [vmem:[#allocation2 + $0x139] sm:$0xff] }
 0x131   : > { %1331 = vst.msk [vmem:[#allocation3 + $0x1a0] sm:$0xff] %vm363_vm1, %v1315_v26  ;;  %v10583_v29 = vld [vmem:[#allocation2 + $0x152] sm:$0xff]  ;;  %8850 = vmatpush3.bf16.msra.mxu0 %v9779_v39  ;;  %1524 = vst.msk [vmem:[#allocation3 + $0x1a8] sm:$0xff] %vm363_vm1, %v1508_v2  ;;  %v10589_v23 = vld [vmem:[#allocation2 + $0x13a] sm:$0xff]  ;;  %1040 = vrot.lane.b32.xlu1 %v10576_v8, %s10002_s6 }
 0x132   : > { %v1172_v27 = vld [vmem:[#allocation2 + $0x158] sm:$0xff]  ;;  %1332 = vst.msk [vmem:[#allocation3 + $0x1c8] sm:$0xff] %vm363_vm1, %v1316_v5  ;;  %887 = vst.msk [vmem:[#allocation2 + $0x189] sm:$0xff] %vm363_vm1, %v854_v6  ;;  %v1170_v25 = vld [vmem:[#allocation2 + $0x140] sm:$0xff]  ;;  %8851 = vmatprep.subr.bf16.mxu0 %v9780_v16 }
 0x133   : > { %v979_v28 = vld [vmem:[#allocation2 + $0x141] sm:$0xff]  ;;  %v1190_v30 = vpack.c.bf16 %v1172_v27, %v1171_v59  ;;  %v1490_v32 = vld [vmem:[#allocation2 + $0x150] sm:$0xff]  ;;  %885 = vst.msk [vmem:[#allocation2 + $0x171] sm:$0xff] %vm363_vm1, %v852_v15  ;;  %v1189_v33 = vpack.c.bf16 %v1170_v25, %v1169_v62  ;;  %v981_v34 = vld [vmem:[#allocation2 + $0x159] sm:$0xff] }
 0x134   : > { %v980_v12 = vld [vmem:[#allocation2 + $0x151] sm:$0xff]  ;;  %v1362_v37 = vld [vmem:[#allocation2 + $0x142] sm:$0xff]  ;;  %v1364_v39 = vld [vmem:[#allocation2 + $0x15a] sm:$0xff]  ;;  %v10598_v41 = vpack.c.bf16 %v979_v28, %v978_v17 }
 0x135   : > { %v9781_v40 = vld [vmem:[%s13747_s2 + $0xa0] sm:$0xff]   ;;  %v10601_v42 = vpack.c.bf16 %v1362_v37, %v10589_v23  ;;  %v10604_v44 = vpack.c.bf16 %v1364_v39, %v10583_v29  ;;  %950 = vst.msk [vmem:[#allocation3 + $0x230] sm:$0xff] %vm363_vm1, %v1190_v30  ;;  %v1488_v47 = vld [vmem:[#allocation2 + $0x138] sm:$0xff]  ;;  %1233 = vrot.lane.b32.xlu0 %v1189_v33, %s10002_s6  ;;  %949 = vst.msk [vmem:[#allocation3 + $0x208] sm:$0xff] %vm363_vm1, %v1189_v33  ;;  %v10622_v5 = vpack.c.bf16 %v981_v34, %v980_v12 }
 0x136   : > { %v1489_v48 = vld [vmem:[#allocation2 + $0x140] sm:$0xff]  ;;  %8852 = vmatpush3.bf16.msra.mxu0 %v9781_v40  ;;  %v9782_v51 = vld [vmem:[%s13747_s2 + $0xe8] sm:$0xff]   ;;  %v1491_v46 = vld [vmem:[#allocation2 + $0x158] sm:$0xff]  ;;  %1042 = vrot.lane.b32.xlu1 %v10598_v41, %s10002_s6 }
 0x137   : > { %v1297_v49 = vld [vmem:[#allocation2 + $0x139] sm:$0xff]  ;;  %v9783_v54 = vld [vmem:[%s13747_s2 + $0xa8] sm:$0xff]   ;;  %v1509_v26 = vpack.c.bf16 %v1489_v48, %v1488_v47  ;;  %1142 = vst.msk [vmem:[#allocation3 + $0x210] sm:$0xff] %vm363_vm1, %v10601_v42  ;;  %1143 = vst.msk [vmem:[#allocation3 + $0x238] sm:$0xff] %vm363_vm1, %v10604_v44  ;;  %8853 = vmatprep.subr.bf16.mxu0 %v9782_v51  ;;  %v1510_v59 = vpack.c.bf16 %v1491_v46, %v1490_v32 }
 0x138   : > { %v1298_v56 = vld [vmem:[#allocation2 + $0x141] sm:$0xff]  ;;  %v1299_v61 = vld [vmem:[#allocation2 + $0x151] sm:$0xff]  ;;  %v1300_v0 = vld [vmem:[#allocation2 + $0x159] sm:$0xff] }
 0x139   : > { %v1317_v58 = vpack.c.bf16 %v1298_v56, %v1297_v49  ;;  %1525 = vst.msk [vmem:[#allocation3 + $0x1d0] sm:$0xff] %vm363_vm1, %v1509_v26  ;;  %v1318_v2 = vpack.c.bf16 %v1300_v0, %v1299_v61  ;;  %v1173_v6 = vld [vmem:[#allocation2 + $0x168] sm:$0xff]  ;;  %v9784_v62 = vld [vmem:[%s13747_s2 + $0xf0] sm:$0xff]   ;;  %1235 = vrot.lane.b32.xlu0 %v1190_v30, %s10002_s6  ;;  %v1175_v15 = vld [vmem:[#allocation2 + $0x180] sm:$0xff] }
 0x13a   : > { %v982_v16 = vld [vmem:[#allocation2 + $0x169] sm:$0xff]  ;;  %8854 = vmatpush3.bf16.msra.mxu0 %v9783_v54  ;;  %1526 = vst.msk [vmem:[#allocation3 + $0x1f8] sm:$0xff] %vm363_vm1, %v1510_v59  ;;  %v983_v28 = vld [vmem:[#allocation2 + $0x171] sm:$0xff]  ;;  %1044 = vrot.lane.b32.xlu1 %v10622_v5, %s10002_s6  ;;  %v1494_v39 = vld [vmem:[#allocation2 + $0x180] sm:$0xff] }
 0x13b   : > { %1333 = vst.msk [vmem:[#allocation3 + $0x1f0] sm:$0xff] %vm363_vm1, %v1317_v58  ;;  %v1176_v17 = vld [vmem:[#allocation2 + $0x188] sm:$0xff]  ;;  %1334 = vst.msk [vmem:[#allocation3 + $0x218] sm:$0xff] %vm363_vm1, %v1318_v2  ;;  %v1174_v25 = vld [vmem:[#allocation2 + $0x170] sm:$0xff]  ;;  %8855 = vmatprep.subr.bf16.mxu0 %v9784_v62  ;;  %v10638_v30 = vpack.c.bf16 %v983_v28, %v982_v16 }
 0x13c   : > { %v10631_v27 = vld [vmem:[#allocation2 + $0x16a] sm:$0xff]  ;;  %v1191_v32 = vpack.c.bf16 %v1174_v25, %v1173_v6  ;;  %v1366_v33 = vld [vmem:[#allocation2 + $0x172] sm:$0xff]  ;;  %v1192_v40 = vpack.c.bf16 %v1176_v17, %v1175_v15  ;;  %v1303_v61 = vld [vmem:[#allocation2 + $0x181] sm:$0xff] }
 0x13d   : > { %v9785_v12 = vld [vmem:[%s13747_s2 + $0xb0] sm:$0xff]   ;;  %v10641_v34 = vpack.c.bf16 %v1366_v33, %v10631_v27  ;;  %v9786_v37 = vld [vmem:[%s13747_s2 + $0xf8] sm:$0xff]   ;;  %v1492_v48 = vld [vmem:[#allocation2 + $0x168] sm:$0xff] }
 0x13e   : > { %1237 = vrot.lane.b32.xlu0 %v1191_v32, %s10002_s6  ;;  %951 = vst.msk [vmem:[#allocation3 + $0x258] sm:$0xff] %vm363_vm1, %v1191_v32  ;;  %8856 = vmatpush3.bf16.msra.mxu0 %v9785_v12  ;;  %v9787_v47 = vld [vmem:[%s13747_s2 + $0xb8] sm:$0xff]   ;;  %v1493_v49 = vld [vmem:[#allocation2 + $0x170] sm:$0xff]  ;;  %v1495_v56 = vld [vmem:[#allocation2 + $0x188] sm:$0xff] }
 0x13f   : > { %1144 = vst.msk [vmem:[#allocation3 + $0x260] sm:$0xff] %vm363_vm1, %v10641_v34  ;;  %8857 = vmatprep.subr.bf16.mxu0 %v9786_v37  ;;  %v1511_v51 = vpack.c.bf16 %v1493_v49, %v1492_v48  ;;  %v1301_v54 = vld [vmem:[#allocation2 + $0x169] sm:$0xff]  ;;  %v1302_v26 = vld [vmem:[#allocation2 + $0x171] sm:$0xff]  ;;  %v1512_v46 = vpack.c.bf16 %v1495_v56, %v1494_v39  ;;  %1046 = vrot.lane.b32.xlu1 %v10638_v30, %s10002_s6  ;;  %v1675_v62 = vld [vmem:[#allocation2 + $0xfa] sm:$0xff] }
 0x140   : > { %v1319_v58 = vpack.c.bf16 %v1302_v26, %v1301_v54  ;;  %v1304_v0 = vld [vmem:[#allocation2 + $0x189] sm:$0xff]  ;;  %v1677_v16 = vld [vmem:[#allocation2 + $0x112] sm:$0xff]  ;;  %v1698_v17 = vpack.c.bf16 %v1675_v62, %v10474_v52  ;;  %v1683_v33 = vld [vmem:[#allocation2 + $0x15a] sm:$0xff] }
 0x141   : > { %v10653_v59 = vld [vmem:[#allocation2 + $0x182] sm:$0xff]  ;;  %1527 = vst.msk [vmem:[#allocation3 + $0x220] sm:$0xff] %vm363_vm1, %v1511_v51  ;;  %v1320_v2 = vpack.c.bf16 %v1304_v0, %v1303_v61  ;;  %1528 = vst.msk [vmem:[#allocation3 + $0x248] sm:$0xff] %vm363_vm1, %v1512_v46  ;;  %v1699_v25 = vpack.c.bf16 %v1677_v16, %v10535_v1  ;;  %v1679_v28 = vld [vmem:[#allocation2 + $0x12a] sm:$0xff]  ;;  %v1702_v39 = vpack.c.bf16 %v1683_v33, %v10583_v29 }
 0x142   : > { %1239 = vrot.lane.b32.xlu0 %v1192_v40, %s10002_s6  ;;  %8858 = vmatpush3.bf16.msra.mxu0 %v9787_v47  ;;  %1335 = vst.msk [vmem:[#allocation3 + $0x240] sm:$0xff] %vm363_vm1, %v1319_v58  ;;  %v1673_v6 = vld [vmem:[#allocation2 + $0xe2] sm:$0xff]  ;;  %v1700_v12 = vpack.c.bf16 %v1679_v28, %v10529_v60  ;;  %v1685_v40 = vld [vmem:[#allocation2 + $0x172] sm:$0xff]  ;;  %v1687_v47 = vld [vmem:[#allocation2 + $0x18a] sm:$0xff] }
 0x143   : > { %1336 = vst.msk [vmem:[#allocation3 + $0x268] sm:$0xff] %vm363_vm1, %v1320_v2  ;;  %v1697_v15 = vpack.c.bf16 %v1673_v6, %v10480_v57  ;;  %v1681_v32 = vld [vmem:[#allocation2 + $0x142] sm:$0xff]  ;;  %1401 = vrot.lane.b32.xlu1 %v10316_v38, %s10002_s6  ;;  %1714 = vst.msk [vmem:[#allocation3 + $0x160] sm:$0xff] %vm363_vm1, %v1698_v17  ;;  %v1703_v52 = vpack.c.bf16 %v1685_v40, %v10631_v27  ;;  %v1704_v57 = vpack.c.bf16 %v1687_v47, %v10653_v59  ;;  %v9976_v38 = vld [vmem:[#allocation2 + $0x32] sm:$0xff] }
 0x144   : > { %v1701_v37 = vpack.c.bf16 %v1681_v32, %v10589_v23  ;;  %1715 = vst.msk [vmem:[#allocation3 + $0x188] sm:$0xff] %vm363_vm1, %v1699_v25  ;;  %1716 = vst.msk [vmem:[#allocation3 + $0x1b0] sm:$0xff] %vm363_vm1, %v1700_v12  ;;  %v1370_v60 = vpack.c.bf16 %v10311_v31, %v9976_v38  ;;  %v1374_v31 = vpack.c.bf16 %v10391_v7, %v10428_v53  ;;  %v1496_v12 = vld [vmem:[#allocation2 + $0x198] sm:$0xff] }
 0x145   : > { %1713 = vst.msk [vmem:[#allocation3 + $0x138] sm:$0xff] %vm363_vm1, %v1697_v15  ;;  %1718 = vst.msk [vmem:[#allocation3 + $0x200] sm:$0xff] %vm363_vm1, %v1702_v39 }
 0x146   : > { %1594 = vrot.lane.b32.xlu0 %v10345_v9, %s10002_s6  ;;  %1717 = vst.msk [vmem:[#allocation3 + $0x1d8] sm:$0xff] %vm363_vm1, %v1701_v37  ;;  %1719 = vst.msk [vmem:[#allocation3 + $0x228] sm:$0xff] %vm363_vm1, %v1703_v52  ;;  %v1372_v9 = vpack.c.bf16 %v10351_v19, %v10341_v4  ;;  %v9788_v4 = vld [vmem:[%s13747_s2 + $0x100] sm:$0xff]  }
 0x147   : > { %1720 = vst.msk [vmem:[#allocation3 + $0x250] sm:$0xff] %vm363_vm1, %v1704_v57  ;;  %1403 = vrot.lane.b32.xlu1 %v1370_v60, %s10002_s6  ;;  %9609 = vmatprep.subr.bf16.mxu1 %v9788_v4  ;;  %v1497_v37 = vld [vmem:[#allocation2 + $0x1a0] sm:$0xff] }
 0x148   : > { %v1513_v40 = vpack.c.bf16 %v1497_v37, %v1496_v12 }
 0x14a   : > { %1596 = vrot.lane.b32.xlu0 %v10357_v24, %s10002_s6  ;;  %v1558_v24 = vld [vmem:[#allocation2 + $0x181] sm:$0xff]  ;;  %1529 = vst.msk [vmem:[#allocation3 + $0x270] sm:$0xff] %vm363_vm1, %v1513_v40 }
 0x14b   : > { %1405 = vrot.lane.b32.xlu1 %v10349_v18, %s10002_s6 }
 0x14e   : > { %1598 = vrot.lane.b32.xlu0 %v10377_v50, %s10002_s6  ;;  %v1559_v50 = vld [vmem:[#allocation2 + $0x189] sm:$0xff] }
 0x14f   : > { %1407 = vrot.lane.b32.xlu1 %v1372_v9, %s10002_s6  ;;  %v1576_v53 = vpack.c.bf16 %v1559_v50, %v1558_v24 }
 0x152   : > { %1600 = vrot.lane.b32.xlu0 %v10397_v13, %s10002_s6  ;;  %v1560_v13 = vld [vmem:[#allocation2 + $0x199] sm:$0xff] }
 0x153   : > { %1409 = vrot.lane.b32.xlu1 %v10400_v14, %s10002_s6  ;;  %v1561_v14 = vld [vmem:[#allocation2 + $0x1a1] sm:$0xff] }
 0x156   : > { %1602 = vrot.lane.b32.xlu0 %v10418_v43, %s10002_s6 }
 0x157   : > { %1411 = vrot.lane.b32.xlu1 %v1374_v31, %s10002_s6 }
 0x15a   : > { %1604 = vrot.lane.b32.xlu0 %v10436_v63, %s10002_s6  ;;  %v1368_v63 = vld [vmem:[#allocation2 + $0x18a] sm:$0xff] }
 0x15b   : > { %1413 = vrot.lane.b32.xlu1 %v10443_v10, %s10002_s6  ;;  %v1577_v10 = vpack.c.bf16 %v1561_v14, %v1560_v13 }
 0x15e   : > { %1606 = vrot.lane.b32.xlu0 %v10466_v45, %s10002_s6  ;;  %v1384_v45 = vpack.c.bf16 %v1368_v63, %v10653_v59 }
 0x15f   : > { %1415 = vrot.lane.b32.xlu1 %v10446_v11, %s10002_s6 }
 0x162   : > { %1608 = vrot.lane.b32.xlu0 %v10487_v3, %s10002_s6 }
 0x163   : > { %1417 = vrot.lane.b32.xlu1 %v10497_v21, %s10002_s6 }
 0x166   : > { %1610 = vrot.lane.b32.xlu0 %v10523_v55, %s10002_s6  ;;  %v9789_v55 = vld [vmem:[%s13747_s2 + $0x108] sm:$0xff]  }
 0x167   : > { %1419 = vrot.lane.b32.xlu1 %v10500_v22, %s10002_s6 }
 0x16a   : > { %1612 = vrot.lane.b32.xlu0 %v10541_v20, %s10002_s6 }
 0x16b   : > { %1421 = vrot.lane.b32.xlu1 %v10551_v35, %s10002_s6 }
 0x16e   : > { %1614 = vrot.lane.b32.xlu0 %v10576_v8, %s10002_s6  ;;  %v1212_v18 = vpop.permute.xlu1 %1211  ;;  %v9790_v8 = vld [vmem:[%s13747_s2 + $0x110] sm:$0xff]  }
 0x16f   : > { %1423 = vrot.lane.b32.xlu1 %v10554_v36, %s10002_s6  ;;  %1258 = vst.msk [vmem:[#allocation3 + $0x30] sm:$0xff] %vm1064_vm3, %v1212_v18  ;;  %v1689_v18 = vld [vmem:[#allocation2 + $0x1a2] sm:$0xff] }
 0x170   : > { %v1210_v19 = vpop.permute.xlu0 %1209 }
 0x171   : > { %1257 = vst.msk [vmem:[#allocation3 + $0x8] sm:$0xff] %vm1064_vm3, %v1210_v19 }
 0x172   : > { %1616 = vrot.lane.b32.xlu0 %v10598_v41, %s10002_s6  ;;  %v1019_v7 = vpop.permute.xlu1 %1018 }
 0x173   : > { %1425 = vrot.lane.b32.xlu1 %v10601_v42, %s10002_s6  ;;  %1066 = vst.msk [vmem:[#allocation3 + $0x28] sm:$0xff] %vm1064_vm3, %v1019_v7  ;;  %v9791_v42 = vld [vmem:[%s13747_s2 + $0x118] sm:$0xff]  }
 0x174   : > { %v1017_v43 = vpop.permute.xlu0 %1016 }
 0x175   : > { %1065 = vst.msk [vmem:[#allocation3] sm:$0xff] %vm1064_vm3, %v1017_v43 }
 0x176   : > { %1618 = vrot.lane.b32.xlu0 %v10622_v5, %s10002_s6  ;;  %v1728_v35 = vld [vmem:[#allocation3 + $0x30] sm:$0xff] }
 0x177   : > { %1427 = vrot.lane.b32.xlu1 %v10604_v44, %s10002_s6  ;;  %v1021_v11 = vpop.permute.xlu1 %1020 }
 0x178   : > { %1067 = vst.msk [vmem:[#allocation3 + $0x50] sm:$0xff] %vm1064_vm3, %v1021_v11  ;;  %v1723_v21 = vld [vmem:[#allocation3 + $0x8] sm:$0xff] }
 0x179   : > { %2170 = vmatprep.mubr.bf16.mxu1 %v1723_v21 }
 0x17a   : > { %1620 = vrot.lane.b32.xlu0 %v10638_v30, %s10002_s6  ;;  %v1214_v3 = vpop.permute.xlu0 %1213  ;;  %v1727_v5 = vld [vmem:[#allocation3 + $0x28] sm:$0xff] }
 0x17b   : > { %1429 = vrot.lane.b32.xlu1 %v10641_v34, %s10002_s6  ;;  %1259 = vst.msk [vmem:[#allocation3 + $0x58] sm:$0xff] %vm1064_vm3, %v1214_v3  ;;  %v1023_v22 = vpop.permute.xlu1 %1022 }
 0x17c   : > { %1068 = vst.msk [vmem:[#allocation3 + $0x78] sm:$0xff] %vm1064_vm3, %v1023_v22  ;;  %v1722_v20 = vld [vmem:[#allocation3] sm:$0xff] }
 0x17d   : > { %2171 = vmatmul.mubr.bf16.vlgmr.msra.gmra.mrb[0].mxu1 %v1722_v20 }
 0x17e   : > { %1622 = vrot.lane.b32.xlu0 %v1576_v53, %s10002_s6  ;;  %v1216_v1 = vpop.permute.xlu0 %1215  ;;  %2178 = vmatprep.mubr.bf16.mxu1 %v1728_v35 }
 0x17f   : > { %1431 = vrot.lane.b32.xlu1 %v1384_v45, %s10002_s6  ;;  %1260 = vst.msk [vmem:[#allocation3 + $0x80] sm:$0xff] %vm1064_vm3, %v1216_v1  ;;  %9610 = vmatpush3.bf16.msra.mxu1 %v9788_v4  ;;  %v1025_v36 = vpop.permute.xlu1 %1024  ;;  %v1732_v49 = vld [vmem:[#allocation3 + $0x50] sm:$0xff] }
 0x180   : > { %9611 = vmatprep.subr.bf16.mxu1 %v9789_v55  ;;  %1069 = vst.msk [vmem:[#allocation3 + $0xa0] sm:$0xff] %vm1064_vm3, %v1025_v36  ;;  %v1688_v4 = vld [vmem:[#allocation2 + $0x19a] sm:$0xff] }
 0x181   : > { %v1705_v50 = vpack.c.bf16 %v1689_v18, %v1688_v4 }
 0x182   : > { %1624 = vrot.lane.b32.xlu0 %v1577_v10, %s10002_s6  ;;  %v1218_v29 = vpop.permute.xlu0 %1217  ;;  %v1733_v41 = vld [vmem:[#allocation3 + $0x58] sm:$0xff] }
 0x183   : > { %1261 = vst.msk [vmem:[#allocation3 + $0xa8] sm:$0xff] %vm1064_vm3, %v1218_v29  ;;  %9612 = vmatpush3.bf16.msra.mxu1 %v9789_v55  ;;  %v1027_v23 = vpop.permute.xlu1 %1026  ;;  %v1737_v61 = vld [vmem:[#allocation3 + $0x78] sm:$0xff] }
 0x184   : > { %9613 = vmatprep.subr.bf16.mxu1 %v9790_v8  ;;  %1070 = vst.msk [vmem:[#allocation3 + $0xc8] sm:$0xff] %vm1064_vm3, %v1027_v23 }
 0x185   : > { %2179 = vmatmul.mubr.bf16.gmra.mrb[4].mxu1 %v1727_v5  ;;  %1721 = vst.msk [vmem:[#allocation3 + $0x278] sm:$0xff] %vm363_vm1, %v1705_v50 }
 0x186   : > { %v1220_v44 = vpop.permute.xlu0 %1219  ;;  %2186 = vmatprep.mubr.bf16.mxu1 %v1733_v41  ;;  %v1738_v51 = vld [vmem:[#allocation3 + $0x80] sm:$0xff] }
 0x187   : > { %1262 = vst.msk [vmem:[#allocation3 + $0xd0] sm:$0xff] %vm1064_vm3, %v1220_v44  ;;  %9614 = vmatpush3.bf16.msra.mxu1 %v9790_v8  ;;  %v1029_v27 = vpop.permute.xlu1 %1028  ;;  %v1742_v62 = vld [vmem:[#allocation3 + $0xa0] sm:$0xff] }
 0x188   : > { %9615 = vmatprep.subr.bf16.mxu1 %v9791_v42  ;;  %1071 = vst.msk [vmem:[#allocation3 + $0xf0] sm:$0xff] %vm1064_vm3, %v1029_v27 }
 0x18a   : > { %v1743_v58 = vld [vmem:[#allocation3 + $0xa8] sm:$0xff] }
 0x18b   : > { %v1222_v30 = vpop.permute.xlu0 %1221  ;;  %9616 = vmatpush3.bf16.msra.mxu1 %v9791_v42  ;;  %v1747_v33 = vld [vmem:[#allocation3 + $0xc8] sm:$0xff] }
 0x18c   : > { %1263 = vst.msk [vmem:[#allocation3 + $0xf8] sm:$0xff] %vm1064_vm3, %v1222_v30  ;;  %v1031_v34 = vpop.permute.xlu1 %1030  ;;  %v10795_v21 = vld [vmem:[#allocation3 + $0x278] sm:$0xff] }
 0x18d   : > { %1072 = vst.msk [vmem:[#allocation3 + $0x118] sm:$0xff] %vm1064_vm3, %v1031_v34  ;;  %2187 = vmatmul.mubr.bf16.gmra.mrb[8].mxu1 %v1732_v49 }
 0x18e   : > { %2194 = vmatprep.mubr.bf16.mxu1 %v1738_v51  ;;  %v1748_v16 = vld [vmem:[#allocation3 + $0xd0] sm:$0xff]  ;;  %3590 = vst.msk [vmem:[#allocation3 + $0x278] sm:$0xff] %vm363_vm1, %v1705_v50  ;;  %v1726_v50 = vld [vmem:[#allocation3 + $0x20] sm:$0xff] }
 0x18f   : > { %v1224_v48 = vpop.permute.xlu0 %1223  ;;  %v1752_v38 = vld [vmem:[#allocation3 + $0xf0] sm:$0xff] }
 0x190   : > { %1264 = vst.msk [vmem:[#allocation3 + $0x120] sm:$0xff] %vm1064_vm3, %v1224_v48  ;;  %v1033_v54 = vpop.permute.xlu1 %1032 }
 0x191   : > { %1073 = vst.msk [vmem:[#allocation3 + $0x140] sm:$0xff] %vm1064_vm3, %v1033_v54 }
 0x193   : > { %v1753_v28 = vld [vmem:[#allocation3 + $0xf8] sm:$0xff] }
 0x194   : > { %v1757_v13 = vld [vmem:[#allocation3 + $0x118] sm:$0xff] }
 0x195   : > { %v1226_v26 = vpop.permute.xlu0 %1225  ;;  %2195 = vmatmul.mubr.bf16.gmra.mrb[12].mxu1 %v1737_v61 }
 0x196   : > { %1265 = vst.msk [vmem:[#allocation3 + $0x148] sm:$0xff] %vm1064_vm3, %v1226_v26  ;;  %v1035_v56 = vpop.permute.xlu1 %1034  ;;  %2202 = vmatprep.mubr.bf16.mxu1 %v1743_v58 }
 0x197   : > { %1074 = vst.msk [vmem:[#allocation3 + $0x168] sm:$0xff] %vm1064_vm3, %v1035_v56  ;;  %v1758_v60 = vld [vmem:[#allocation3 + $0x120] sm:$0xff] }
 0x198   : > { %v1762_v45 = vld [vmem:[#allocation3 + $0x140] sm:$0xff] }
 0x199   : > { %v1228_v46 = vpop.permute.xlu0 %1227 }
 0x19a   : > { %1266 = vst.msk [vmem:[#allocation3 + $0x170] sm:$0xff] %vm1064_vm3, %v1228_v46  ;;  %v1037_v0 = vpop.permute.xlu1 %1036 }
 0x19b   : > { %1075 = vst.msk [vmem:[#allocation3 + $0x190] sm:$0xff] %vm1064_vm3, %v1037_v0 }
 0x19d   : > { %2203 = vmatmul.mubr.bf16.gmra.mrb[16].mxu1 %v1742_v62  ;;  %v1763_v24 = vld [vmem:[#allocation3 + $0x148] sm:$0xff] }
 0x19e   : > { %v1230_v59 = vpop.permute.xlu0 %1229  ;;  %2210 = vmatprep.mubr.bf16.mxu1 %v1748_v16  ;;  %v1767_v23 = vld [vmem:[#allocation3 + $0x168] sm:$0xff] }
 0x19f   : > { %1267 = vst.msk [vmem:[#allocation3 + $0x198] sm:$0xff] %vm1064_vm3, %v1230_v59  ;;  %v1039_v2 = vpop.permute.xlu1 %1038 }
 0x1a0   : > { %1076 = vst.msk [vmem:[#allocation3 + $0x1b8] sm:$0xff] %vm1064_vm3, %v1039_v2 }
 0x1a1   : > { %v1768_v22 = vld [vmem:[#allocation3 + $0x170] sm:$0xff] }
 0x1a2   : > { %v1232_v6 = vpop.permute.xlu0 %1231  ;;  %v1772_v34 = vld [vmem:[#allocation3 + $0x190] sm:$0xff] }
 0x1a3   : > { %1268 = vst.msk [vmem:[#allocation3 + $0x1c0] sm:$0xff] %vm1064_vm3, %v1232_v6  ;;  %v1041_v15 = vpop.permute.xlu1 %1040 }
 0x1a4   : > { %1077 = vst.msk [vmem:[#allocation3 + $0x1e0] sm:$0xff] %vm1064_vm3, %v1041_v15 }
 0x1a5   : > { %2211 = vmatmul.mubr.bf16.gmra.mrb[20].mxu1 %v1747_v33 }
 0x1a6   : > { %2218 = vmatprep.mubr.bf16.mxu1 %v1753_v28  ;;  %v1773_v8 = vld [vmem:[#allocation3 + $0x198] sm:$0xff] }
 0x1a7   : > { %v1234_v17 = vpop.permute.xlu0 %1233  ;;  %v1777_v61 = vld [vmem:[#allocation3 + $0x1b8] sm:$0xff] }
 0x1a8   : > { %1269 = vst.msk [vmem:[#allocation3 + $0x1e8] sm:$0xff] %vm1064_vm3, %v1234_v17  ;;  %v1043_v25 = vpop.permute.xlu1 %1042 }
 0x1a9   : > { %1078 = vst.msk [vmem:[#allocation3 + $0x208] sm:$0xff] %vm1064_vm3, %v1043_v25 }
 0x1aa   : > { %v1778_v48 = vld [vmem:[#allocation3 + $0x1c0] sm:$0xff] }
 0x1ab   : > { %v1236_v32 = vpop.permute.xlu0 %1235  ;;  %v1782_v15 = vld [vmem:[#allocation3 + $0x1e0] sm:$0xff] }
 0x1ac   : > { %1270 = vst.msk [vmem:[#allocation3 + $0x210] sm:$0xff] %vm1064_vm3, %v1236_v32  ;;  %v1045_v39 = vpop.permute.xlu1 %1044 }
 0x1ad   : > { %1079 = vst.msk [vmem:[#allocation3 + $0x230] sm:$0xff] %vm1064_vm3, %v1045_v39  ;;  %2219 = vmatmul.mubr.bf16.gmra.mrb[24].mxu1 %v1752_v38 }
 0x1ae   : > { %2226 = vmatprep.mubr.bf16.mxu1 %v1758_v60 }
 0x1af   : > { %v1783_v58 = vld [vmem:[#allocation3 + $0x1e8] sm:$0xff] }
 0x1b0   : > { %v1238_v47 = vpop.permute.xlu0 %1237  ;;  %v1787_v40 = vld [vmem:[#allocation3 + $0x208] sm:$0xff] }
 0x1b1   : > { %1271 = vst.msk [vmem:[#allocation3 + $0x238] sm:$0xff] %vm1064_vm3, %v1238_v47  ;;  %v1047_v52 = vpop.permute.xlu1 %1046 }
 0x1b2   : > { %1080 = vst.msk [vmem:[#allocation3 + $0x258] sm:$0xff] %vm1064_vm3, %v1047_v52 }
 0x1b3   : > { %v1788_v17 = vld [vmem:[#allocation3 + $0x210] sm:$0xff] }
 0x1b4   : > { %v1240_v57 = vpop.permute.xlu0 %1239 }
 0x1b5   : > { %1272 = vst.msk [vmem:[#allocation3 + $0x260] sm:$0xff] %vm1064_vm3, %v1240_v57  ;;  %v1402_v9 = vpop.permute.xlu1 %1401  ;;  %2227 = vmatmul.mubr.bf16.gmra.mrb[28].mxu1 %v1757_v13 }
 0x1b6   : > { %1449 = vst.msk [vmem:[#allocation3 + $0x10] sm:$0xff] %vm1064_vm3, %v1402_v9  ;;  %2234 = vmatprep.mubr.bf16.mxu1 %v1763_v24  ;;  %v1792_v9 = vld [vmem:[#allocation3 + $0x230] sm:$0xff] }
 0x1b8   : > { %v1595_v31 = vpop.permute.xlu0 %1594  ;;  %v1793_v37 = vld [vmem:[#allocation3 + $0x238] sm:$0xff] }
 0x1b9   : > { %1642 = vst.msk [vmem:[#allocation3 + $0x18] sm:$0xff] %vm1064_vm3, %v1595_v31  ;;  %v1404_v19 = vpop.permute.xlu1 %1403  ;;  %v1797_v24 = vld [vmem:[#allocation3 + $0x258] sm:$0xff] }
 0x1ba   : > { %1450 = vst.msk [vmem:[#allocation3 + $0x38] sm:$0xff] %vm1064_vm3, %v1404_v19 }
 0x1bc   : > { %v1597_v7 = vpop.permute.xlu0 %1596  ;;  %v1798_v4 = vld [vmem:[#allocation3 + $0x260] sm:$0xff] }
 0x1bd   : > { %1643 = vst.msk [vmem:[#allocation3 + $0x40] sm:$0xff] %vm1064_vm3, %v1597_v7  ;;  %v1406_v14 = vpop.permute.xlu1 %1405  ;;  %v1724_v63 = vld [vmem:[#allocation3 + $0x10] sm:$0xff]  ;;  %2235 = vmatmul.mubr.bf16.gmra.mrb[32].mxu1 %v1762_v45 }
 0x1be   : > { %1451 = vst.msk [vmem:[#allocation3 + $0x60] sm:$0xff] %vm1064_vm3, %v1406_v14  ;;  %2242 = vmatprep.mubr.bf16.mxu1 %v1768_v22  ;;  %v1731_v14 = vld [vmem:[#allocation3 + $0x48] sm:$0xff] }
 0x1bf   : > { %v1751_v22 = vld [vmem:[#allocation3 + $0xe8] sm:$0xff] }
 0x1c0   : > { %v1599_v43 = vpop.permute.xlu0 %1598  ;;  %v1725_v53 = vld [vmem:[#allocation3 + $0x18] sm:$0xff] }
 0x1c1   : > { %1644 = vst.msk [vmem:[#allocation3 + $0x68] sm:$0xff] %vm1064_vm3, %v1599_v43  ;;  %2331 = vmatprep.mubr.bf16.mxu0 %v1725_v53  ;;  %v1408_v10 = vpop.permute.xlu1 %1407  ;;  %v1729_v20 = vld [vmem:[#allocation3 + $0x38] sm:$0xff]  ;;  %v1736_v43 = vld [vmem:[#allocation3 + $0x70] sm:$0xff] }
 0x1c2   : > { %2332 = vmatmul.mubr.bf16.vlgmr.msra.gmra.mrb[32].mxu0 %v1724_v63  ;;  %1452 = vst.msk [vmem:[#allocation3 + $0x88] sm:$0xff] %vm1064_vm3, %v1408_v10  ;;  %v1741_v10 = vld [vmem:[#allocation3 + $0x98] sm:$0xff] }
 0x1c4   : > { %v1601_v11 = vpop.permute.xlu0 %1600  ;;  %v1730_v3 = vld [vmem:[#allocation3 + $0x40] sm:$0xff] }
 0x1c5   : > { %1645 = vst.msk [vmem:[#allocation3 + $0x90] sm:$0xff] %vm1064_vm3, %v1601_v11  ;;  %2339 = vmatprep.mubr.bf16.mxu0 %v1730_v3  ;;  %v1410_v55 = vpop.permute.xlu1 %1409  ;;  %2243 = vmatmul.mubr.bf16.gmra.mrb[36].mxu1 %v1767_v23  ;;  %v1734_v44 = vld [vmem:[#allocation3 + $0x60] sm:$0xff]  ;;  %v1771_v23 = vld [vmem:[#allocation3 + $0x188] sm:$0xff] }
 0x1c6   : > { %1453 = vst.msk [vmem:[#allocation3 + $0xb0] sm:$0xff] %vm1064_vm3, %v1410_v55  ;;  %2250 = vmatprep.mubr.bf16.mxu1 %v1773_v8  ;;  %v1746_v11 = vld [vmem:[#allocation3 + $0xc0] sm:$0xff]  ;;  %v1756_v55 = vld [vmem:[#allocation3 + $0x110] sm:$0xff] }
 0x1c8   : > { %v1603_v1 = vpop.permute.xlu0 %1602  ;;  %v1735_v35 = vld [vmem:[#allocation3 + $0x68] sm:$0xff] }
 0x1c9   : > { %1646 = vst.msk [vmem:[#allocation3 + $0xb8] sm:$0xff] %vm1064_vm3, %v1603_v1  ;;  %v1412_v36 = vpop.permute.xlu1 %1411  ;;  %v1739_v54 = vld [vmem:[#allocation3 + $0x88] sm:$0xff] }
 0x1ca   : > { %2340 = vmatmul.mubr.bf16.gmra.mrb[36].mxu0 %v1729_v20  ;;  %1454 = vst.msk [vmem:[#allocation3 + $0xd8] sm:$0xff] %vm1064_vm3, %v1412_v36  ;;  %v1766_v36 = vld [vmem:[#allocation3 + $0x160] sm:$0xff] }
 0x1cb   : > { %2347 = vmatprep.mubr.bf16.mxu0 %v1735_v35  ;;  %v1761_v35 = vld [vmem:[#allocation3 + $0x138] sm:$0xff] }
 0x1cc   : > { %v1605_v29 = vpop.permute.xlu0 %1604  ;;  %v1740_v5 = vld [vmem:[#allocation3 + $0x90] sm:$0xff] }
 0x1cd   : > { %1647 = vst.msk [vmem:[#allocation3 + $0xe0] sm:$0xff] %vm1064_vm3, %v1605_v29  ;;  %v1414_v41 = vpop.permute.xlu1 %1413  ;;  %2251 = vmatmul.mubr.bf16.gmra.mrb[40].mxu1 %v1772_v34  ;;  %v1744_v2 = vld [vmem:[#allocation3 + $0xb0] sm:$0xff] }
 0x1ce   : > { %1455 = vst.msk [vmem:[#allocation3 + $0x100] sm:$0xff] %vm1064_vm3, %v1414_v41  ;;  %2258 = vmatprep.mubr.bf16.mxu1 %v1778_v48  ;;  %v1776_v41 = vld [vmem:[#allocation3 + $0x1b0] sm:$0xff]  ;;  %v1791_v48 = vld [vmem:[#allocation3 + $0x228] sm:$0xff] }
 0x1d0   : > { %v1607_v42 = vpop.permute.xlu0 %1606  ;;  %v1745_v26 = vld [vmem:[#allocation3 + $0xb8] sm:$0xff] }
 0x1d1   : > { %1648 = vst.msk [vmem:[#allocation3 + $0x108] sm:$0xff] %vm1064_vm3, %v1607_v42  ;;  %v1416_v27 = vpop.permute.xlu1 %1415  ;;  %v1749_v32 = vld [vmem:[#allocation3 + $0xd8] sm:$0xff] }
 0x1d2   : > { %2348 = vmatmul.mubr.bf16.gmra.mrb[40].mxu0 %v1734_v44  ;;  %1456 = vst.msk [vmem:[#allocation3 + $0x128] sm:$0xff] %vm1064_vm3, %v1416_v27  ;;  %v1786_v27 = vld [vmem:[#allocation3 + $0x200] sm:$0xff] }
 0x1d3   : > { %2355 = vmatprep.mubr.bf16.mxu0 %v1740_v5  ;;  %v1781_v5 = vld [vmem:[#allocation3 + $0x1d8] sm:$0xff] }
 0x1d4   : > { %v1609_v30 = vpop.permute.xlu0 %1608  ;;  %v1750_v6 = vld [vmem:[#allocation3 + $0xe0] sm:$0xff] }
 0x1d5   : > { %1649 = vst.msk [vmem:[#allocation3 + $0x130] sm:$0xff] %vm1064_vm3, %v1609_v30  ;;  %v1418_v49 = vpop.permute.xlu1 %1417  ;;  %2259 = vmatmul.mubr.bf16.gmra.mrb[44].mxu1 %v1777_v61  ;;  %v1754_v57 = vld [vmem:[#allocation3 + $0x100] sm:$0xff] }
 0x1d6   : > { %1457 = vst.msk [vmem:[#allocation3 + $0x150] sm:$0xff] %vm1064_vm3, %v1418_v49  ;;  %2266 = vmatprep.mubr.bf16.mxu1 %v1783_v58  ;;  %v1796_v49 = vld [vmem:[#allocation3 + $0x250] sm:$0xff] }
 0x1d8   : > { %v1611_v51 = vpop.permute.xlu0 %1610  ;;  %v1755_v33 = vld [vmem:[#allocation3 + $0x108] sm:$0xff] }
 0x1d9   : > { %1650 = vst.msk [vmem:[#allocation3 + $0x158] sm:$0xff] %vm1064_vm3, %v1611_v51  ;;  %v1420_v56 = vpop.permute.xlu1 %1419  ;;  %v1759_v18 = vld [vmem:[#allocation3 + $0x128] sm:$0xff] }
 0x1da   : > { %2356 = vmatmul.mubr.bf16.gmra.mrb[44].mxu0 %v1739_v54  ;;  %1458 = vst.msk [vmem:[#allocation3 + $0x178] sm:$0xff] %vm1064_vm3, %v1420_v56 }
 0x1db   : > { %2363 = vmatprep.mubr.bf16.mxu0 %v1745_v26 }
 0x1dc   : > { %v1613_v46 = vpop.permute.xlu0 %1612  ;;  %v1760_v38 = vld [vmem:[#allocation3 + $0x130] sm:$0xff] }
 0x1dd   : > { %1651 = vst.msk [vmem:[#allocation3 + $0x180] sm:$0xff] %vm1064_vm3, %v1613_v46  ;;  %v1422_v0 = vpop.permute.xlu1 %1421  ;;  %2267 = vmatmul.mubr.bf16.gmra.mrb[48].mxu1 %v1782_v15  ;;  %v1764_v7 = vld [vmem:[#allocation3 + $0x150] sm:$0xff] }
 0x1de   : > { %1459 = vst.msk [vmem:[#allocation3 + $0x1a0] sm:$0xff] %vm1064_vm3, %v1422_v0  ;;  %2274 = vmatprep.mubr.bf16.mxu1 %v1788_v17 }
 0x1e0   : > { %v1615_v59 = vpop.permute.xlu0 %1614  ;;  %v1765_v19 = vld [vmem:[#allocation3 + $0x158] sm:$0xff] }
 0x1e1   : > { %1652 = vst.msk [vmem:[#allocation3 + $0x1a8] sm:$0xff] %vm1064_vm3, %v1615_v59  ;;  %v1424_v62 = vpop.permute.xlu1 %1423  ;;  %v1769_v53 = vld [vmem:[#allocation3 + $0x178] sm:$0xff] }
 0x1e2   : > { %2364 = vmatmul.mubr.bf16.gmra.mrb[48].mxu0 %v1744_v2  ;;  %1460 = vst.msk [vmem:[#allocation3 + $0x1c8] sm:$0xff] %vm1064_vm3, %v1424_v62 }
 0x1e3   : > { %2371 = vmatprep.mubr.bf16.mxu0 %v1750_v6 }
 0x1e4   : > { %v1617_v16 = vpop.permute.xlu0 %1616  ;;  %v1770_v13 = vld [vmem:[#allocation3 + $0x180] sm:$0xff] }
 0x1e5   : > { %1653 = vst.msk [vmem:[#allocation3 + $0x1d0] sm:$0xff] %vm1064_vm3, %v1617_v16  ;;  %v1426_v25 = vpop.permute.xlu1 %1425  ;;  %2275 = vmatmul.mubr.bf16.gmra.mrb[52].mxu1 %v1787_v40  ;;  %v1774_v45 = vld [vmem:[#allocation3 + $0x1a0] sm:$0xff]  ;;  %v2823_v40 = vld [vmem:[#allocation2 + $0x1] sm:$0xff] }
 0x1e6   : > { %1461 = vst.msk [vmem:[#allocation3 + $0x1f0] sm:$0xff] %vm1064_vm3, %v1426_v25  ;;  %2282 = vmatprep.mubr.bf16.mxu1 %v1793_v37 }
 0x1e8   : > { %v1619_v28 = vpop.permute.xlu0 %1618  ;;  %v1775_v63 = vld [vmem:[#allocation3 + $0x1a8] sm:$0xff] }
 0x1e9   : > { %1654 = vst.msk [vmem:[#allocation3 + $0x1f8] sm:$0xff] %vm1064_vm3, %v1619_v28  ;;  %v1428_v12 = vpop.permute.xlu1 %1427  ;;  %v1779_v1 = vld [vmem:[#allocation3 + $0x1c8] sm:$0xff] }
 0x1ea   : > { %2372 = vmatmul.mubr.bf16.gmra.mrb[52].mxu0 %v1749_v32  ;;  %1462 = vst.msk [vmem:[#allocation3 + $0x218] sm:$0xff] %vm1064_vm3, %v1428_v12 }
 0x1eb   : > { %2379 = vmatprep.mubr.bf16.mxu0 %v1755_v33 }
 0x1ec   : > { %v1621_v39 = vpop.permute.xlu0 %1620  ;;  %v1780_v3 = vld [vmem:[#allocation3 + $0x1d0] sm:$0xff] }
 0x1ed   : > { %1655 = vst.msk [vmem:[#allocation3 + $0x220] sm:$0xff] %vm1064_vm3, %v1621_v39  ;;  %v1430_v47 = vpop.permute.xlu1 %1429  ;;  %2283 = vmatmul.mubr.bf16.gmra.mrb[56].mxu1 %v1792_v9  ;;  %v1784_v8 = vld [vmem:[#allocation3 + $0x1f0] sm:$0xff] }
 0x1ee   : > { %1463 = vst.msk [vmem:[#allocation3 + $0x240] sm:$0xff] %vm1064_vm3, %v1430_v47  ;;  %2290 = vmatprep.mubr.bf16.mxu1 %v1798_v4  ;;  %v2824_v47 = vld [vmem:[#allocation2 + $0x9] sm:$0xff] }
 0x1f0   : > { %v1623_v52 = vpop.permute.xlu0 %1622  ;;  %v1785_v20 = vld [vmem:[#allocation3 + $0x1f8] sm:$0xff] }
 0x1f1   : > { %1656 = vst.msk [vmem:[#allocation3 + $0x248] sm:$0xff] %vm1064_vm3, %v1623_v52  ;;  %v1432_v60 = vpop.permute.xlu1 %1431  ;;  %v1789_v42 = vld [vmem:[#allocation3 + $0x218] sm:$0xff] }
 0x1f2   : > { %2380 = vmatmul.mubr.bf16.gmra.mrb[56].mxu0 %v1754_v57  ;;  %1464 = vst.msk [vmem:[#allocation3 + $0x268] sm:$0xff] %vm1064_vm3, %v1432_v60  ;;  %v2855_v57 = vpack.c.bf16 %v2824_v47, %v2823_v40 }
 0x1f3   : > { %2387 = vmatprep.mubr.bf16.mxu0 %v1760_v38 }
 0x1f4   : > { %v1625_v31 = vpop.permute.xlu0 %1624  ;;  %v1790_v29 = vld [vmem:[#allocation3 + $0x220] sm:$0xff]  ;;  %2887 = vrot.lane.b32.xlu1 %v2855_v57, %s10002_s6 }
 0x1f5   : > { %1657 = vst.msk [vmem:[#allocation3 + $0x270] sm:$0xff] %vm1064_vm3, %v1625_v31  ;;  %2291 = vmatmul.mubr.bf16.gmra.mrb[60].mxu1 %v1797_v24  ;;  %v1794_v34 = vld [vmem:[#allocation3 + $0x240] sm:$0xff] }
 0x1f6   : > { %9617 = vmatprep.mubr.msk.bf16.mxu1 %vm363_vm1, %v1726_v50 }
 0x1f8   : > { %v1795_v44 = vld [vmem:[#allocation3 + $0x248] sm:$0xff] }
 0x1f9   : > { %v1799_v51 = vld [vmem:[#allocation3 + $0x268] sm:$0xff] }
 0x1fa   : > { %2388 = vmatmul.mubr.bf16.gmra.mrb[60].mxu0 %v1759_v18 }
 0x1fb   : > { %2395 = vmatprep.mubr.bf16.mxu0 %v1765_v19 }
 0x1fc   : > { %v1800_v30 = vld [vmem:[#allocation3 + $0x270] sm:$0xff] }
 0x1fd   : > { %9618 = vmatmul.mubr.msk.bf16.vlgmr.msra.gmra.mrb[64].mxu1 %vm363_vm1, %v1731_v14 }
 0x1fe   : > { %9621 = vmatprep.mubr.msk.bf16.mxu1 %vm363_vm1, %v1736_v43 }
 0x202   : > { %2396 = vmatmul.mubr.bf16.gmra.mrb[64].mxu0 %v1764_v7 }
 0x203   : > { %2403 = vmatprep.mubr.bf16.mxu0 %v1770_v13 }
 0x205   : > { %9622 = vmatmul.mubr.msk.bf16.gmra.mrb[68].mxu1 %vm363_vm1, %v1741_v10 }
 0x206   : > { %9625 = vmatprep.mubr.msk.bf16.mxu1 %vm363_vm1, %v1746_v11 }
 0x20a   : > { %2404 = vmatmul.mubr.bf16.gmra.mrb[68].mxu0 %v1769_v53 }
 0x20b   : > { %2411 = vmatprep.mubr.bf16.mxu0 %v1775_v63 }
 0x20d   : > { %9626 = vmatmul.mubr.msk.bf16.gmra.mrb[72].mxu1 %vm363_vm1, %v1751_v22 }
 0x20e   : > { %9629 = vmatprep.mubr.msk.bf16.mxu1 %vm363_vm1, %v1756_v55 }
 0x212   : > { %2412 = vmatmul.mubr.bf16.gmra.mrb[72].mxu0 %v1774_v45 }
 0x213   : > { %2419 = vmatprep.mubr.bf16.mxu0 %v1780_v3 }
 0x215   : > { %9630 = vmatmul.mubr.msk.bf16.gmra.mrb[76].mxu1 %vm363_vm1, %v1761_v35 }
 0x216   : > { %9633 = vmatprep.mubr.msk.bf16.mxu1 %vm363_vm1, %v1766_v36 }
 0x21a   : > { %2420 = vmatmul.mubr.bf16.gmra.mrb[76].mxu0 %v1779_v1 }
 0x21b   : > { %2427 = vmatprep.mubr.bf16.mxu0 %v1785_v20 }
 0x21d   : > { %9634 = vmatmul.mubr.msk.bf16.gmra.mrb[80].mxu1 %vm363_vm1, %v1771_v23 }
 0x21e   : > { %9637 = vmatprep.mubr.msk.bf16.mxu1 %vm363_vm1, %v1776_v41 }
 0x222   : > { %2428 = vmatmul.mubr.bf16.gmra.mrb[80].mxu0 %v1784_v8 }
 0x223   : > { %2435 = vmatprep.mubr.bf16.mxu0 %v1790_v29 }
 0x225   : > { %9638 = vmatmul.mubr.msk.bf16.gmra.mrb[84].mxu1 %vm363_vm1, %v1781_v5 }
 0x226   : > { %9641 = vmatprep.mubr.msk.bf16.mxu1 %vm363_vm1, %v1786_v27 }
 0x22a   : > { %2436 = vmatmul.mubr.bf16.gmra.mrb[84].mxu0 %v1789_v42 }
 0x22b   : > { %2443 = vmatprep.mubr.bf16.mxu0 %v1795_v44 }
 0x22d   : > { %9642 = vmatmul.mubr.msk.bf16.gmra.mrb[88].mxu1 %vm363_vm1, %v1791_v48 }
 0x22e   : > { %9645 = vmatprep.mubr.msk.bf16.mxu1 %vm363_vm1, %v1796_v49 }
 0x232   : > { %2444 = vmatmul.mubr.bf16.gmra.mrb[88].mxu0 %v1794_v34 }
 0x233   : > { %2451 = vmatprep.mubr.bf16.mxu0 %v1800_v30 }
 0x235   : > { %9646 = vmatmul.mubr.msk.bf16.gmra.mrb[92].mxu1 %vm363_vm1, %v10795_v21 }
 0x23a   : > { %2452 = vmatmul.mubr.bf16.gmra.mrb[92].mxu0 %v1799_v51 }
 0x250   : > { %v8747_v54 = vpop.f32.mrb[0].mxu1 }
 0x251   : > { %v8748_v26 = vpop.f32.mrb[1].mxu1 }
 0x252   : > { %v8749_v56 = vadd.f32 %v8748_v26, %v8747_v54  ;;  %v8750_v58 = vpop.f32.mrb[2].mxu1 }
 0x253   : > { %v8751_v46 = vpop.f32.mrb[3].mxu1 }
 0x254   : > { %v8752_v61 = vadd.f32 %v8751_v46, %v8750_v58 }
 0x258   : > { %v8753_v0 = vpop.f32.mrb[4].mxu1 }
 0x259   : > { %v8754_v59 = vpop.f32.mrb[5].mxu1 }
 0x25a   : > { %v10840_v2 = vadd.f32 %v8754_v59, %v8753_v0  ;;  %v8756_v6 = vpop.f32.mrb[6].mxu1 }
 0x25b   : > { %v8757_v62 = vpop.f32.mrb[7].mxu1 }
 0x25c   : > { %v10842_v16 = vadd.f32 %v8757_v62, %v8756_v6 }
 0x260   : > { %v8759_v15 = vpop.f32.mrb[8].mxu1 }
 0x261   : > { %v8760_v17 = vpop.f32.mrb[9].mxu1 }
 0x262   : > { %v10844_v25 = vadd.f32 %v8760_v17, %v8759_v15  ;;  %v8762_v28 = vpop.f32.mrb[10].mxu1 }
 0x263   : > { %v8763_v21 = vpop.f32.mrb[11].mxu1 }
 0x264   : > { %v10846_v32 = vadd.f32 %v8763_v21, %v8762_v28 }
 0x268   : > { %v8765_v33 = vpop.f32.mrb[12].mxu1 }
 0x269   : > { %v8766_v12 = vpop.f32.mrb[13].mxu1 }
 0x26a   : > { %v10848_v37 = vadd.f32 %v8766_v12, %v8765_v33  ;;  %v8768_v39 = vpop.f32.mrb[14].mxu1 }
 0x26b   : > { %v8769_v52 = vpop.f32.mrb[15].mxu1 }
 0x26c   : > { %v10850_v38 = vadd.f32 %v8769_v52, %v8768_v39 }
 0x270   : > { %v8771_v60 = vpop.f32.mrb[16].mxu1 }
 0x271   : > { %v8772_v9 = vpop.f32.mrb[17].mxu1 }
 0x272   : > { %v10853_v31 = vadd.f32 %v8772_v9, %v8771_v60  ;;  %v8774_v4 = vpop.f32.mrb[18].mxu1 }
 0x273   : > { %v8775_v18 = vpop.f32.mrb[19].mxu1 }
 0x274   : > { %v10855_v19 = vadd.f32 %v8775_v18, %v8774_v4 }
 0x278   : > { %v8777_v24 = vpop.f32.mrb[20].mxu1 }
 0x279   : > { %v8778_v50 = vpop.f32.mrb[21].mxu1 }
 0x27a   : > { %v10857_v7 = vadd.f32 %v8778_v50, %v8777_v24  ;;  %v8780_v13 = vpop.f32.mrb[22].mxu1 }
 0x27b   : > { %v8781_v14 = vpop.f32.mrb[23].mxu1 }
 0x27c   : > { %v10859_v43 = vadd.f32 %v8781_v14, %v8780_v13 }
 0x280   : > { %v8783_v53 = vpop.f32.mrb[24].mxu1 }
 0x281   : > { %v8784_v63 = vpop.f32.mrb[25].mxu1 }
 0x282   : > { %v10861_v10 = vadd.f32 %v8784_v63, %v8783_v53  ;;  %v8786_v11 = vpop.f32.mrb[26].mxu1 }
 0x283   : > { %v8787_v45 = vpop.f32.mrb[27].mxu1 }
 0x284   : > { %v10863_v3 = vadd.f32 %v8787_v45, %v8786_v11 }
 0x288   : > { %v8789_v22 = vpop.f32.mrb[28].mxu1 }
 0x289   : > { %v8790_v55 = vpop.f32.mrb[29].mxu1 }
 0x28a   : > { %v10865_v1 = vadd.f32 %v8790_v55, %v8789_v22  ;;  %v8792_v20 = vpop.f32.mrb[30].mxu1 }
 0x28b   : > { %v8793_v35 = vpop.f32.mrb[31].mxu1 }
 0x28c   : > { %v10867_v36 = vadd.f32 %v8793_v35, %v8792_v20 }
 0x290   : > { %v8795_v42 = vpop.f32.mrb[32].mxu1 }
 0x291   : > { %v8796_v27 = vpop.f32.mrb[33].mxu1 }
 0x292   : > { %v10871_v34 = vadd.f32 %v8796_v27, %v8795_v42  ;;  %v8798_v48 = vpop.f32.mrb[34].mxu1 }
 0x293   : > { %v8799_v49 = vpop.f32.mrb[35].mxu1 }
 0x294   : > { %v10875_v54 = vadd.f32 %v8799_v49, %v8798_v48 }
 0x295   : > { %v8859_v8 = vpop.f32.mrb[32].mxu0 }
 0x296   : > { %v8860_v29 = vpop.f32.mrb[33].mxu0 }
 0x297   : > { %v8861_v23 = vadd.f32 %v8860_v29, %v8859_v8  ;;  %v8862_v41 = vpop.f32.mrb[34].mxu0 }
 0x298   : > { %v8863_v44 = vpop.f32.mrb[35].mxu0  ;;  %v8801_v59 = vpop.f32.mrb[36].mxu1 }
 0x299   : > { %v8864_v5 = vadd.f32 %v8863_v44, %v8862_v41  ;;  %v10869_v30 = vadd.f32 %v8861_v23, %v8749_v56  ;;  %v8802_v15 = vpop.f32.mrb[37].mxu1 }
 0x29a   : > { %v10880_v56 = vadd.f32 %v8802_v15, %v8801_v59  ;;  %v8804_v28 = vpop.f32.mrb[38].mxu1 }
 0x29b   : > { %v10873_v51 = vadd.f32 %v8864_v5, %v8752_v61  ;;  %v8805_v21 = vpop.f32.mrb[39].mxu1 }
 0x29c   : > { %v10885_v33 = vadd.f32 %v8805_v21, %v8804_v28 }
 0x29d   : > { %v8865_v26 = vpop.f32.mrb[36].mxu0 }
 0x29e   : > { %v8866_v58 = vpop.f32.mrb[37].mxu0 }
 0x29f   : > { %v8867_v46 = vadd.f32 %v8866_v58, %v8865_v26  ;;  %v8868_v0 = vpop.f32.mrb[38].mxu0 }
 0x2a0   : > { %v8869_v6 = vpop.f32.mrb[39].mxu0  ;;  %v8807_v52 = vpop.f32.mrb[40].mxu1 }
 0x2a1   : > { %v8870_v62 = vadd.f32 %v8869_v6, %v8868_v0  ;;  %v10878_v17 = vadd.f32 %v8867_v46, %v10840_v2  ;;  %v8808_v9 = vpop.f32.mrb[41].mxu1 }
 0x2a2   : > { %v10890_v4 = vadd.f32 %v8808_v9, %v8807_v52  ;;  %v8810_v18 = vpop.f32.mrb[42].mxu1 }
 0x2a3   : > { %v10883_v61 = vadd.f32 %v8870_v62, %v10842_v16  ;;  %v8811_v24 = vpop.f32.mrb[43].mxu1 }
 0x2a4   : > { %v10895_v50 = vadd.f32 %v8811_v24, %v8810_v18  ;;  %v9792_v18 = vld [vmem:[%s13748_s3 + $0x40] sm:$0xff]  }
 0x2a5   : > { %v8871_v12 = vpop.f32.mrb[40].mxu0  ;;  %8975 = vmatprep.subr.bf16.mxu0 %v9792_v18 }
 0x2a6   : > { %v8872_v39 = vpop.f32.mrb[41].mxu0 }
 0x2a7   : > { %v8873_v40 = vadd.f32 %v8872_v39, %v8871_v12  ;;  %v8874_v47 = vpop.f32.mrb[42].mxu0 }
 0x2a8   : > { %v8875_v57 = vpop.f32.mrb[43].mxu0  ;;  %v8813_v11 = vpop.f32.mrb[44].mxu1 }
 0x2a9   : > { %v8876_v60 = vadd.f32 %v8875_v57, %v8874_v47  ;;  %v10888_v2 = vadd.f32 %v8873_v40, %v10844_v25  ;;  %v8814_v55 = vpop.f32.mrb[45].mxu1 }
 0x2aa   : > { %v10900_v20 = vadd.f32 %v8814_v55, %v8813_v11  ;;  %v8816_v35 = vpop.f32.mrb[46].mxu1  ;;  %v9794_v55 = vld [vmem:[%s13748_s3 + $0x48] sm:$0xff]  }
 0x2ab   : > { %v10893_v16 = vadd.f32 %v8876_v60, %v10846_v32  ;;  %v8817_v8 = vpop.f32.mrb[47].mxu1 }
 0x2ac   : > { %v10905_v29 = vadd.f32 %v8817_v8, %v8816_v35 }
 0x2ad   : > { %v8877_v13 = vpop.f32.mrb[44].mxu0 }
 0x2ae   : > { %v8878_v14 = vpop.f32.mrb[45].mxu0 }
 0x2af   : > { %v8879_v53 = vadd.f32 %v8878_v14, %v8877_v13  ;;  %v8880_v63 = vpop.f32.mrb[46].mxu0 }
 0x2b0   : > { %v8881_v45 = vpop.f32.mrb[47].mxu0  ;;  %v8819_v5 = vpop.f32.mrb[48].mxu1 }
 0x2b1   : > { %v8882_v22 = vadd.f32 %v8881_v45, %v8880_v63  ;;  %v10898_v25 = vadd.f32 %v8879_v53, %v10848_v37  ;;  %v8820_v49 = vpop.f32.mrb[49].mxu1 }
 0x2b2   : > { %v10910_v26 = vadd.f32 %v8820_v49, %v8819_v5  ;;  %v8822_v58 = vpop.f32.mrb[50].mxu1 }
 0x2b3   : > { %v10903_v32 = vadd.f32 %v8882_v22, %v10850_v38  ;;  %v8823_v46 = vpop.f32.mrb[51].mxu1  ;;  %v9793_v22 = vld [vmem:[%s13748_s3] sm:$0xff]  }
 0x2b4   : > { %v10915_v0 = vadd.f32 %v8823_v46, %v8822_v58  ;;  %8976 = vmatpush3.bf16.msra.mxu0 %v9793_v22 }
 0x2b5   : > { %v8883_v23 = vpop.f32.mrb[48].mxu0  ;;  %8977 = vmatprep.subr.bf16.mxu0 %v9794_v55  ;;  %v9801_v55 = vld [vmem:[%s13748_s3 + $0x20] sm:$0xff]  }
 0x2b6   : > { %v8884_v41 = vpop.f32.mrb[49].mxu0 }
 0x2b7   : > { %v8885_v42 = vadd.f32 %v8884_v41, %v8883_v23  ;;  %v8886_v44 = vpop.f32.mrb[50].mxu0 }
 0x2b8   : > { %v8887_v27 = vpop.f32.mrb[51].mxu0  ;;  %v8825_v28 = vpop.f32.mrb[52].mxu1 }
 0x2b9   : > { %v8888_v48 = vadd.f32 %v8887_v27, %v8886_v44  ;;  %v10908_v37 = vadd.f32 %v8885_v42, %v10853_v31  ;;  %v8826_v39 = vpop.f32.mrb[53].mxu1  ;;  %v9795_v42 = vld [vmem:[%s13748_s3 + $0x8] sm:$0xff]   ;;  %v9796_v44 = vld [vmem:[%s13748_s3 + $0x50] sm:$0xff]  }
 0x2ba   : > { %v10920_v40 = vadd.f32 %v8826_v39, %v8825_v28  ;;  %v8828_v47 = vpop.f32.mrb[54].mxu1  ;;  %8978 = vmatpush3.bf16.msra.mxu0 %v9795_v42 }
 0x2bb   : > { %v10913_v38 = vadd.f32 %v8888_v48, %v10855_v19  ;;  %v8829_v52 = vpop.f32.mrb[55].mxu1  ;;  %8979 = vmatprep.subr.bf16.mxu0 %v9796_v44 }
 0x2bc   : > { %v10925_v57 = vadd.f32 %v8829_v52, %v8828_v47  ;;  %v9799_v47 = vld [vmem:[%s13748_s3 + $0x18] sm:$0xff]   ;;  %v9800_v52 = vld [vmem:[%s13748_s3 + $0x60] sm:$0xff]  }
 0x2bd   : > { %v8889_v59 = vpop.f32.mrb[52].mxu0 }
 0x2be   : > { %v8890_v6 = vpop.f32.mrb[53].mxu0 }
 0x2bf   : > { %v8891_v62 = vadd.f32 %v8890_v6, %v8889_v59  ;;  %v8892_v15 = vpop.f32.mrb[54].mxu0 }
 0x2c0   : > { %v8893_v21 = vpop.f32.mrb[55].mxu0  ;;  %v8831_v14 = vpop.f32.mrb[56].mxu1 }
 0x2c1   : > { %v8894_v12 = vadd.f32 %v8893_v21, %v8892_v15  ;;  %v10918_v31 = vadd.f32 %v8891_v62, %v10857_v7  ;;  %v8832_v63 = vpop.f32.mrb[57].mxu1  ;;  %v9797_v62 = vld [vmem:[%s13748_s3 + $0x10] sm:$0xff]   ;;  %v9798_v15 = vld [vmem:[%s13748_s3 + $0x58] sm:$0xff]  }
 0x2c2   : > { %v8834_v45 = vpop.f32.mrb[58].mxu1  ;;  %8980 = vmatpush3.bf16.msra.mxu0 %v9797_v62  ;;  %v2951_v62 = vld [vmem:[#allocation2 + $0x2] sm:$0xff] }
 0x2c3   : > { %v10923_v19 = vadd.f32 %v8894_v12, %v10859_v43  ;;  %v10933_v43 = vadd.f32 %v8832_v63, %v8831_v14  ;;  %v8835_v35 = vpop.f32.mrb[59].mxu1  ;;  %8981 = vmatprep.subr.bf16.mxu0 %v9798_v15 }
 0x2c4   : > { %v10944_v23 = vadd.f32 %v8835_v35, %v8834_v45  ;;  %v2759_v35 = vld [vmem:[#allocation2] sm:$0xff] }
 0x2c5   : > { %v8895_v60 = vpop.f32.mrb[56].mxu0 }
 0x2c6   : > { %v8896_v9 = vpop.f32.mrb[57].mxu0  ;;  %8982 = vmatpush3.bf16.msra.mxu0 %v9799_v47 }
 0x2c7   : > { %v8897_v24 = vadd.f32 %v8896_v9, %v8895_v60  ;;  %v8898_v13 = vpop.f32.mrb[58].mxu0  ;;  %8983 = vmatprep.subr.bf16.mxu0 %v9800_v52 }
 0x2c8   : > { %v8899_v7 = vpop.f32.mrb[59].mxu0  ;;  %v8837_v48 = vpop.f32.mrb[60].mxu1 }
 0x2c9   : > { %v8900_v53 = vadd.f32 %v8899_v7, %v8898_v13  ;;  %v10931_v11 = vadd.f32 %v8897_v24, %v10861_v10  ;;  %v8838_v58 = vpop.f32.mrb[61].mxu1  ;;  %v10983_v7 = vld [vmem:[%s13753_s8 + $0x1] ss:$0 sm:$0xff] }
 0x2ca   : > { %v10955_v59 = vadd.f32 %v8838_v58, %v8837_v48  ;;  %v8840_v6 = vpop.f32.mrb[62].mxu1  ;;  %8984 = vmatpush3.bf16.msra.mxu0 %v9801_v55 }
 0x2cb   : > { %v10942_v8 = vadd.f32 %v8900_v53, %v10863_v3  ;;  %v8841_v28 = vpop.f32.mrb[63].mxu1 }
 0x2cc   : > { %v10966_v12 = vadd.f32 %v8841_v28, %v8840_v6  ;;  %v9803_v6 = vld [vmem:[%s13748_s3 + $0x28] sm:$0xff]  }
 0x2cd   : > { %v8901_v10 = vpop.f32.mrb[60].mxu0 }
 0x2ce   : > { %v8902_v41 = vpop.f32.mrb[61].mxu0 }
 0x2cf   : > { %v8903_v5 = vadd.f32 %v8902_v41, %v8901_v10  ;;  %v8904_v27 = vpop.f32.mrb[62].mxu0  ;;  %v2760_v10 = vld [vmem:[#allocation2 + $0x8] sm:$0xff] }
 0x2d0   : > { %v8905_v49 = vpop.f32.mrb[63].mxu0  ;;  %v9619_v24 = vpop.f32.mrb[64].mxu1 }
 0x2d1   : > { %v8906_v3 = vadd.f32 %v8905_v49, %v8904_v27  ;;  %v10953_v46 = vadd.f32 %v8903_v5, %v10865_v1  ;;  %v2503_v14 = vadd.f32 %v9619_v24, %v10878_v17  ;;  %v2494_v53 = vpop.f32.mrb[65].mxu1 }
 0x2d2   : > { %v2495_v45 = vadd.f32 %v2494_v53, %v10869_v30  ;;  %v9620_v22 = vpop.f32.mrb[66].mxu1  ;;  %v9802_v30 = vld [vmem:[%s13748_s3 + $0x68] sm:$0xff]  }
 0x2d3   : > { %v10964_v21 = vadd.f32 %v8906_v3, %v10867_v36  ;;  %v10977_v36 = vld [vmem:[%s13752_s7 + $0x1] ss:$0 sm:$0xff]  ;;  %v2506_v41 = vadd.f32 %v9620_v22, %v10883_v61  ;;  %v2497_v42 = vpop.f32.mrb[67].mxu1  ;;  %8985 = vmatprep.subr.bf16.mxu0 %v9802_v30  ;;  %v9804_v22 = vld [vmem:[%s13748_s3 + $0x70] sm:$0xff]  }
 0x2d4   : > { %v2628_v17 = vmul.f32 %v10977_v36, %v2503_v14  ;;  %v2626_v5 = vmul.f32 %v10977_v36, %v2495_v45  ;;  %v2498_v27 = vadd.f32 %v2497_v42, %v10873_v51  ;;  %v2952_v51 = vld [vmem:[#allocation2 + $0xa] sm:$0xff]  ;;  %8986 = vmatpush3.bf16.msra.mxu0 %v9803_v6  ;;  %v2888_v6 = vpop.permute.xlu1 %2887 }
 0x2d5   : > { %v8907_v1 = vpop.f32.mrb[64].mxu0  ;;  %v2629_v49 = vmul.f32 %v10977_v36, %v2506_v41  ;;  %v2983_v47 = vpack.c.bf16 %v2952_v51, %v2951_v62  ;;  %8987 = vmatprep.subr.bf16.mxu0 %v9804_v22 }
 0x2d6   : > { %v8908_v39 = vpop.f32.mrb[65].mxu0  ;;  %v2665_v48 = vadd.f32 %v10983_v7, %v2628_v17  ;;  %v2627_v61 = vmul.f32 %v10977_v36, %v2498_v27 }
 0x2d7   : > { %v8909_v60 = vadd.f32 %v8908_v39, %v8907_v1  ;;  %v8910_v9 = vpop.f32.mrb[66].mxu0  ;;  %v2666_v28 = vadd.f32 %v10983_v7, %v2629_v49  ;;  %2999 = vst.msk [vmem:[#allocation3 + $0x8] sm:$0xff] %vm363_vm1, %v2983_v47 }
 0x2d8   : > { %v8911_v18 = vpop.f32.mrb[67].mxu0  ;;  %v2697_v15 = vmax.f32 %v2665_v48, 0.0 }
 0x2d9   : > { %v8912_v13 = vadd.f32 %v8911_v18, %v8910_v9  ;;  %v10986_v63 = vadd.f32 %v8909_v60, %v10871_v34  ;;  %v2791_v34 = vpack.c.bf16 %v2760_v10, %v2759_v35  ;;  %v2664_v60 = vadd.f32 %v10983_v7, %v2627_v61  ;;  %v9623_v18 = vpop.f32.mrb[68].mxu1 }
 0x2da   : > { %2729 = vst.msk [vmem:[#allocation2 + $0x31] sm:$0xff] %vm363_vm1, %v2697_v15  ;;  %v2698_v24 = vmax.f32 %v2666_v28, 0.0  ;;  %v2519_v14 = vadd.f32 %v9623_v18, %v10898_v25  ;;  %v2510_v53 = vpop.f32.mrb[69].mxu1  ;;  %v9805_v25 = vld [vmem:[%s13748_s3 + $0x30] sm:$0xff]  }
 0x2db   : > { %v10995_v44 = vadd.f32 %v8912_v13, %v10875_v54  ;;  %2807 = vst.msk [vmem:[#allocation3] sm:$0xff] %vm363_vm1, %v2791_v34  ;;  %v2663_v54 = vadd.f32 %v10983_v7, %v2626_v5  ;;  %v2696_v55 = vmax.f32 %v2664_v60, 0.0  ;;  %v2511_v35 = vadd.f32 %v2510_v53, %v10888_v2  ;;  %v9624_v10 = vpop.f32.mrb[70].mxu1  ;;  %8988 = vmatpush3.bf16.msra.mxu0 %v9805_v25 }
 0x2dc   : > { %2730 = vst.msk [vmem:[#allocation2 + $0x39] sm:$0xff] %vm363_vm1, %v2698_v24  ;;  %v2522_v17 = vadd.f32 %v9624_v10, %v10903_v32  ;;  %v2513_v41 = vpop.f32.mrb[71].mxu1  ;;  %v9806_v32 = vld [vmem:[%s13748_s3 + $0x78] sm:$0xff]  }
 0x2dd   : > { %v8913_v3 = vpop.f32.mrb[68].mxu0  ;;  %v2695_v52 = vmax.f32 %v2663_v54, 0.0  ;;  %2728 = vst.msk [vmem:[#allocation2 + $0x21] sm:$0xff] %vm363_vm1, %v2696_v55  ;;  %v2630_v2 = vmul.f32 %v10977_v36, %v2511_v35  ;;  %v2514_v34 = vadd.f32 %v2513_v41, %v10893_v16  ;;  %8989 = vmatprep.subr.bf16.mxu0 %v9806_v32 }
 0x2de   : > { %v8914_v58 = vpop.f32.mrb[69].mxu0  ;;  %v2633_v5 = vmul.f32 %v10977_v36, %v2522_v17  ;;  %2935 = vst.msk [vmem:[#allocation3] sm:$0xff] %vm1064_vm3, %v2888_v6 }
 0x2df   : > { %v8915_v1 = vadd.f32 %v8914_v58, %v8913_v3  ;;  %v8916_v39 = vpop.f32.mrb[70].mxu0  ;;  %2727 = vst.msk [vmem:[#allocation2 + $0x19] sm:$0xff] %vm363_vm1, %v2695_v52  ;;  %v2631_v48 = vmul.f32 %v10977_v36, %v2514_v34  ;;  %v9807_v3 = vld [vmem:[%s13748_s3 + $0x38] sm:$0xff]  }
 0x2e0   : > { %v8917_v9 = vpop.f32.mrb[71].mxu0  ;;  %v2670_v54 = vadd.f32 %v10983_v7, %v2633_v5  ;;  %v9627_v28 = vpop.f32.mrb[72].mxu1  ;;  %8990 = vmatpush3.bf16.msra.mxu0 %v9807_v3 }
 0x2e1   : > { %v8918_v13 = vadd.f32 %v8917_v9, %v8916_v39  ;;  %v11015_v45 = vadd.f32 %v8915_v1, %v10880_v56  ;;  %v2632_v56 = vmul.f32 %v10977_v36, %v2519_v14  ;;  %v2668_v51 = vadd.f32 %v10983_v7, %v2631_v48  ;;  %v3017_v1 = vld [vmem:[#allocation2 + $0x30] sm:$0xff]  ;;  %v2526_v9 = vpop.f32.mrb[73].mxu1  ;;  %v9808_v14 = vld [vmem:[%s13748_s3 + $0xc0] sm:$0xff]  }
 0x2e2   : > { %v2827_v39 = vld [vmem:[#allocation2 + $0x31] sm:$0xff]  ;;  %v2702_v47 = vmax.f32 %v2670_v54, 0.0  ;;  %v2535_v60 = vadd.f32 %v9627_v28, %v10918_v31  ;;  %v2527_v22 = vadd.f32 %v2526_v9, %v10908_v37  ;;  %v9628_v55 = vpop.f32.mrb[74].mxu1  ;;  %9087 = vmatprep.subr.bf16.mxu1 %v9808_v14 }
 0x2e3   : > { %v11030_v42 = vadd.f32 %v8918_v13, %v10885_v33  ;;  %v2669_v30 = vadd.f32 %v10983_v7, %v2632_v56  ;;  %v2667_v33 = vadd.f32 %v10983_v7, %v2630_v2  ;;  %v2700_v53 = vmax.f32 %v2668_v51, 0.0  ;;  %v3018_v35 = vld [vmem:[#allocation2 + $0x38] sm:$0xff]  ;;  %v2529_v56 = vpop.f32.mrb[75].mxu1  ;;  %v3335_v28 = vld [vmem:[#allocation2 + $0x30] sm:$0xff] }
 0x2e4   : > { %v2828_v10 = vld [vmem:[#allocation2 + $0x39] sm:$0xff]  ;;  %2734 = vst.msk [vmem:[#allocation2 + $0x69] sm:$0xff] %vm363_vm1, %v2702_v47  ;;  %v2636_v31 = vmul.f32 %v10977_v36, %v2535_v60  ;;  %v2826_v41 = vld [vmem:[#allocation2 + $0x21] sm:$0xff]  ;;  %v11061_v2 = vpack.c.bf16 %v3018_v35, %v3017_v1  ;;  %v2634_v37 = vmul.f32 %v10977_v36, %v2527_v22  ;;  %v2530_v5 = vadd.f32 %v2529_v56, %v10913_v38 }
 0x2e5   : > { %v8919_v27 = vpop.f32.mrb[72].mxu0  ;;  %v2701_v16 = vmax.f32 %v2669_v30, 0.0  ;;  %v2699_v62 = vmax.f32 %v2667_v33, 0.0  ;;  %v3209_v25 = vld [vmem:[#allocation2 + $0x32] sm:$0xff]  ;;  %v11063_v34 = vpack.c.bf16 %v2828_v10, %v2827_v39  ;;  %2732 = vst.msk [vmem:[#allocation2 + $0x51] sm:$0xff] %vm363_vm1, %v2700_v53  ;;  %v3208_v33 = vld [vmem:[#allocation2 + $0x22] sm:$0xff] }
 0x2e6   : > { %v8920_v49 = vpop.f32.mrb[73].mxu0  ;;  %v3015_v18 = vld [vmem:[#allocation2 + $0x18] sm:$0xff]  ;;  %v3016_v17 = vld [vmem:[#allocation2 + $0x20] sm:$0xff]  ;;  %2809 = vst.msk [vmem:[#allocation3 + $0x50] sm:$0xff] %vm363_vm1, %v11061_v2  ;;  %v9810_v38 = vld [vmem:[%s13748_s3 + $0xc8] sm:$0xff]   ;;  %v2671_v6 = vadd.f32 %v10983_v7, %v2634_v37 }
 0x2e7   : > { %v8921_v61 = vadd.f32 %v8920_v49, %v8919_v27  ;;  %v8922_v58 = vpop.f32.mrb[74].mxu0  ;;  %2733 = vst.msk [vmem:[#allocation2 + $0x61] sm:$0xff] %vm363_vm1, %v2701_v16  ;;  %v2825_v24 = vld [vmem:[#allocation2 + $0x19] sm:$0xff]  ;;  %2731 = vst.msk [vmem:[#allocation2 + $0x49] sm:$0xff] %vm363_vm1, %v2699_v62  ;;  %v3047_v27 = vpack.c.bf16 %v3016_v17, %v3015_v18  ;;  %v2673_v49 = vadd.f32 %v10983_v7, %v2636_v31  ;;  %v3144_v1 = vld [vmem:[#allocation2 + $0x21] sm:$0xff] }
 0x2e8   : > { %v8923_v15 = vpop.f32.mrb[75].mxu0  ;;  %v3207_v30 = vld [vmem:[#allocation2 + $0x1a] sm:$0xff]  ;;  %v2856_v32 = vpack.c.bf16 %v2826_v41, %v2825_v24  ;;  %v2635_v62 = vmul.f32 %v10977_v36, %v2530_v5  ;;  %v3145_v24 = vld [vmem:[#allocation2 + $0x31] sm:$0xff]  ;;  %v2703_v53 = vmax.f32 %v2671_v6, 0.0  ;;  %v9631_v35 = vpop.f32.mrb[76].mxu1 }
 0x2e9   : > { %v8924_v52 = vadd.f32 %v8923_v15, %v8922_v58  ;;  %v11051_v13 = vadd.f32 %v8921_v61, %v10890_v4  ;;  %v2538_v4 = vadd.f32 %v9628_v55, %v10923_v19  ;;  %v3210_v48 = vld [vmem:[#allocation2 + $0x3a] sm:$0xff]  ;;  %v11076_v61 = vpack.c.bf16 %v3208_v33, %v3207_v30  ;;  %3079 = vrot.lane.b32.xlu0 %v3047_v27, %s10002_s6  ;;  %v9811_v15 = vld [vmem:[%s13748_s3 + $0x88] sm:$0xff]   ;;  %v2542_v30 = vpop.f32.mrb[77].mxu1 }
 0x2ea   : > { %v9809_v19 = vld [vmem:[%s13748_s3 + $0x80] sm:$0xff]   ;;  %v3336_v58 = vld [vmem:[#allocation2 + $0x38] sm:$0xff]  ;;  %2889 = vrot.lane.b32.xlu1 %v2856_v32, %s10002_s6  ;;  %2808 = vst.msk [vmem:[#allocation3 + $0x28] sm:$0xff] %vm363_vm1, %v3047_v27  ;;  %v2705_v39 = vmax.f32 %v2673_v49, 0.0  ;;  %v2672_v22 = vadd.f32 %v10983_v7, %v2635_v62  ;;  %v2551_v41 = vadd.f32 %v9631_v35, %v10953_v46  ;;  %v9812_v32 = vld [vmem:[%s13748_s3 + $0xd0] sm:$0xff]  }
 0x2eb   : > { %v2637_v3 = vmul.f32 %v10977_v36, %v2538_v4  ;;  %v11074_v54 = vadd.f32 %v8924_v52, %v10895_v50  ;;  %v11087_v50 = vpack.c.bf16 %v3210_v48, %v3209_v25  ;;  %3000 = vst.msk [vmem:[#allocation3 + $0x30] sm:$0xff] %vm363_vm1, %v11076_v61  ;;  %9088 = vmatpush3.bf16.msra.mxu1 %v9809_v19  ;;  %v3143_v18 = vld [vmem:[#allocation2 + $0x19] sm:$0xff]  ;;  %2735 = vst.msk [vmem:[#allocation2 + $0x79] sm:$0xff] %vm363_vm1, %v2703_v53  ;;  %v9632_v19 = vpop.f32.mrb[78].mxu1  ;;  %v2832_v46 = vld [vmem:[#allocation2 + $0x69] sm:$0xff] }
 0x2ec   : > { %v3367_v9 = vpack.c.bf16 %v3336_v58, %v3335_v28  ;;  %v3146_v14 = vld [vmem:[#allocation2 + $0x39] sm:$0xff]  ;;  %9089 = vmatprep.subr.bf16.mxu1 %v9810_v38  ;;  %v3175_v31 = vpack.c.bf16 %v3144_v1, %v3143_v18  ;;  %2737 = vst.msk [vmem:[#allocation2 + $0x91] sm:$0xff] %vm363_vm1, %v2705_v39  ;;  %v2704_v33 = vmax.f32 %v2672_v22, 0.0  ;;  %v2543_v48 = vadd.f32 %v2542_v30, %v10931_v11  ;;  %v2830_v58 = vld [vmem:[#allocation2 + $0x51] sm:$0xff] }
 0x2ed   : > { %v8925_v16 = vpop.f32.mrb[76].mxu0  ;;  %v2674_v47 = vadd.f32 %v10983_v7, %v2637_v3  ;;  %3001 = vst.msk [vmem:[#allocation3 + $0x58] sm:$0xff] %vm363_vm1, %v11087_v50  ;;  %v3176_v4 = vpack.c.bf16 %v3146_v14, %v3145_v24  ;;  %3081 = vrot.lane.b32.xlu0 %v11061_v2, %s10002_s6  ;;  %v2640_v3 = vmul.f32 %v10977_v36, %v2551_v41  ;;  %v11146_v14 = vld [vmem:[%s13748_s3 + $0x98] sm:$0xff]  }
 0x2ee   : > { %v8926_v51 = vpop.f32.mrb[77].mxu0  ;;  %v3021_v10 = vld [vmem:[#allocation2 + $0x60] sm:$0xff]  ;;  %v3019_v37 = vld [vmem:[#allocation2 + $0x48] sm:$0xff]  ;;  %3383 = vst.msk [vmem:[#allocation3 + $0x18] sm:$0xff] %vm363_vm1, %v3367_v9  ;;  %2891 = vrot.lane.b32.xlu1 %v11063_v34, %s10002_s6  ;;  %3191 = vst.msk [vmem:[#allocation3 + $0x10] sm:$0xff] %vm363_vm1, %v3175_v31  ;;  %v2554_v11 = vadd.f32 %v9632_v19, %v10964_v21 }
 0x2ef   : > { %v8927_v52 = vadd.f32 %v8926_v51, %v8925_v16  ;;  %v8928_v60 = vpop.f32.mrb[78].mxu0  ;;  %v2831_v25 = vld [vmem:[#allocation2 + $0x61] sm:$0xff]  ;;  %v2706_v56 = vmax.f32 %v2674_v47, 0.0  ;;  %v2829_v5 = vld [vmem:[#allocation2 + $0x49] sm:$0xff]  ;;  %3192 = vst.msk [vmem:[#allocation3 + $0x38] sm:$0xff] %vm363_vm1, %v3176_v4  ;;  %v2545_v16 = vpop.f32.mrb[79].mxu1  ;;  %9090 = vmatpush3.bf16.msra.mxu1 %v9811_v15  ;;  %v2638_v51 = vmul.f32 %v10977_v36, %v2543_v48 }
 0x2f0   : > { %v8929_v55 = vpop.f32.mrb[79].mxu0  ;;  %v3213_v49 = vld [vmem:[#allocation2 + $0x62] sm:$0xff]  ;;  %v3020_v38 = vld [vmem:[#allocation2 + $0x50] sm:$0xff]  ;;  %v11121_v6 = vpack.c.bf16 %v2832_v46, %v2831_v25  ;;  %2736 = vst.msk [vmem:[#allocation2 + $0x81] sm:$0xff] %vm363_vm1, %v2704_v33  ;;  %v2546_v28 = vadd.f32 %v2545_v16, %v10942_v8  ;;  %v11126_v39 = vpack.c.bf16 %v2830_v58, %v2829_v5  ;;  %9091 = vmatprep.subr.bf16.mxu1 %v9812_v32  ;;  %v9814_v8 = vld [vmem:[%s13748_s3 + $0xd8] sm:$0xff]  }
 0x2f1   : > { %v8930_v17 = vadd.f32 %v8929_v55, %v8928_v60  ;;  %v11102_v27 = vadd.f32 %v8927_v52, %v10900_v20  ;;  %v3022_v20 = vld [vmem:[#allocation2 + $0x68] sm:$0xff]  ;;  %2738 = vst.msk [vmem:[#allocation2 + $0x99] sm:$0xff] %vm363_vm1, %v2706_v56  ;;  %v3049_v1 = vpack.c.bf16 %v3020_v38, %v3019_v37  ;;  %v3212_v47 = vld [vmem:[#allocation2 + $0x52] sm:$0xff]  ;;  %v2677_v60 = vadd.f32 %v10983_v7, %v2640_v3  ;;  %v3339_v53 = vld [vmem:[#allocation2 + $0x60] sm:$0xff] }
 0x2f2   : > { %v11119_v2 = vpack.c.bf16 %v3022_v20, %v3021_v10  ;;  %v3211_v62 = vld [vmem:[#allocation2 + $0x4a] sm:$0xff]  ;;  %v2641_v15 = vmul.f32 %v10977_v36, %v2554_v11  ;;  %v2675_v22 = vadd.f32 %v10983_v7, %v2638_v51  ;;  %2893 = vrot.lane.b32.xlu1 %v11126_v39, %s10002_s6  ;;  %v9635_v20 = vpop.f32.mrb[80].mxu1  ;;  %v3149_v16 = vld [vmem:[#allocation2 + $0x61] sm:$0xff] }
 0x2f3   : > { %v3214_v21 = vld [vmem:[#allocation2 + $0x6a] sm:$0xff]  ;;  %v11134_v18 = vadd.f32 %v8930_v17, %v10905_v29  ;;  %v11136_v24 = vpack.c.bf16 %v3212_v47, %v3211_v62  ;;  %v2639_v29 = vmul.f32 %v10977_v36, %v2546_v28  ;;  %3083 = vrot.lane.b32.xlu0 %v3049_v1, %s10002_s6  ;;  %2810 = vst.msk [vmem:[#allocation3 + $0x78] sm:$0xff] %vm363_vm1, %v3049_v1  ;;  %v2709_v4 = vmax.f32 %v2677_v60, 0.0  ;;  %v2558_v51 = vpop.f32.mrb[81].mxu1  ;;  %v3023_v28 = vld [vmem:[#allocation2 + $0x78] sm:$0xff] }
 0x2f4   : > { %v9813_v52 = vld [vmem:[%s13748_s3 + $0x90] sm:$0xff]   ;;  %2811 = vst.msk [vmem:[#allocation3 + $0xa0] sm:$0xff] %vm363_vm1, %v11119_v2  ;;  %v11153_v35 = vpack.c.bf16 %v3214_v21, %v3213_v49  ;;  %v3337_v10 = vld [vmem:[#allocation2 + $0x48] sm:$0xff]  ;;  %v2678_v56 = vadd.f32 %v10983_v7, %v2641_v15  ;;  %v2707_v33 = vmax.f32 %v2675_v22, 0.0  ;;  %v2567_v62 = vadd.f32 %v9635_v20, %v11015_v45  ;;  %v2833_v1 = vld [vmem:[#allocation2 + $0x79] sm:$0xff]  ;;  %v9636_v15 = vpop.f32.mrb[82].mxu1 }
 0x2f5   : > { %v8931_v9 = vpop.f32.mrb[80].mxu0  ;;  %v3338_v25 = vld [vmem:[#allocation2 + $0x50] sm:$0xff]  ;;  %v3340_v31 = vld [vmem:[#allocation2 + $0x68] sm:$0xff]  ;;  %3002 = vst.msk [vmem:[#allocation3 + $0x80] sm:$0xff] %vm363_vm1, %v11136_v24  ;;  %9092 = vmatpush3.bf16.msra.mxu1 %v9813_v52  ;;  %v2676_v48 = vadd.f32 %v10983_v7, %v2639_v29  ;;  %2741 = vst.msk [vmem:[#allocation2 + $0xc1] sm:$0xff] %vm363_vm1, %v2709_v4  ;;  %v2559_v60 = vadd.f32 %v2558_v51, %v10986_v63  ;;  %v2570_v63 = vadd.f32 %v9636_v15, %v11030_v42  ;;  %v2561_v22 = vpop.f32.mrb[83].mxu1 }
 0x2f6   : > { %v8932_v55 = vpop.f32.mrb[81].mxu0  ;;  %v3368_v30 = vpack.c.bf16 %v3338_v25, %v3337_v10  ;;  %v3147_v37 = vld [vmem:[#allocation2 + $0x49] sm:$0xff]  ;;  %v3148_v5 = vld [vmem:[#allocation2 + $0x51] sm:$0xff]  ;;  %3003 = vst.msk [vmem:[#allocation3 + $0xa8] sm:$0xff] %vm363_vm1, %v11153_v35  ;;  %9093 = vmatprep.subr.bf16.mxu1 %v9814_v8  ;;  %v3369_v3 = vpack.c.bf16 %v3340_v31, %v3339_v53  ;;  %v2710_v38 = vmax.f32 %v2678_v56, 0.0  ;;  %v9816_v21 = vld [vmem:[%s13748_s3 + $0xe0] sm:$0xff]   ;;  %2895 = vrot.lane.b32.xlu1 %v11121_v6, %s10002_s6 }
 0x2f7   : > { %v8933_v17 = vadd.f32 %v8932_v55, %v8931_v9  ;;  %v8934_v41 = vpop.f32.mrb[82].mxu0  ;;  %v3150_v32 = vld [vmem:[#allocation2 + $0x69] sm:$0xff]  ;;  %v2835_v49 = vld [vmem:[#allocation2 + $0x91] sm:$0xff]  ;;  %v3177_v11 = vpack.c.bf16 %v3148_v5, %v3147_v37  ;;  %2739 = vst.msk [vmem:[#allocation2 + $0xa9] sm:$0xff] %vm363_vm1, %v2707_v33  ;;  %v2708_v52 = vmax.f32 %v2676_v48, 0.0  ;;  %3085 = vrot.lane.b32.xlu0 %v11119_v2, %s10002_s6  ;;  %v2644_v53 = vmul.f32 %v10977_v36, %v2567_v62  ;;  %v3024_v29 = vld [vmem:[#allocation2 + $0x80] sm:$0xff] }
 0x2f8   : > { %v8935_v19 = vpop.f32.mrb[83].mxu0  ;;  %v3025_v46 = vld [vmem:[#allocation2 + $0x90] sm:$0xff]  ;;  %3384 = vst.msk [vmem:[#allocation3 + $0x40] sm:$0xff] %vm363_vm1, %v3368_v30  ;;  %v2836_v45 = vld [vmem:[#allocation2 + $0x99] sm:$0xff]  ;;  %3385 = vst.msk [vmem:[#allocation3 + $0x68] sm:$0xff] %vm363_vm1, %v3369_v3  ;;  %v3178_v8 = vpack.c.bf16 %v3150_v32, %v3149_v16  ;;  %v2642_v31 = vmul.f32 %v10977_v36, %v2559_v60  ;;  %v2562_v4 = vadd.f32 %v2561_v22, %v10995_v44 }
 0x2f9   : > { %v8936_v58 = vadd.f32 %v8935_v19, %v8934_v41  ;;  %v11165_v47 = vadd.f32 %v8933_v17, %v10910_v26  ;;  %v3026_v26 = vld [vmem:[#allocation2 + $0x98] sm:$0xff]  ;;  %3193 = vst.msk [vmem:[#allocation3 + $0x60] sm:$0xff] %vm363_vm1, %v3177_v11  ;;  %2742 = vst.msk [vmem:[#allocation2 + $0xc9] sm:$0xff] %vm363_vm1, %v2710_v38  ;;  %v2834_v2 = vld [vmem:[#allocation2 + $0x81] sm:$0xff]  ;;  %v11184_v10 = vpack.c.bf16 %v2836_v45, %v2835_v49  ;;  %9094 = vmatpush3.bf16.msra.mxu1 %v11146_v14  ;;  %v9639_v45 = vpop.f32.mrb[84].mxu1 }
 0x2fa   : > { %v3217_v9 = vld [vmem:[#allocation2 + $0x92] sm:$0xff]  ;;  %v11182_v55 = vpack.c.bf16 %v3026_v26, %v3025_v46  ;;  %v3215_v25 = vld [vmem:[#allocation2 + $0x7a] sm:$0xff]  ;;  %2740 = vst.msk [vmem:[#allocation2 + $0xb1] sm:$0xff] %vm363_vm1, %v2708_v52  ;;  %v3051_v56 = vpack.c.bf16 %v3024_v29, %v3023_v28  ;;  %v11190_v17 = vpack.c.bf16 %v2834_v2, %v2833_v1  ;;  %v3216_v42 = vld [vmem:[#allocation2 + $0x82] sm:$0xff]  ;;  %9095 = vmatprep.subr.bf16.mxu1 %v9816_v21  ;;  %v2574_v2 = vpop.f32.mrb[85].mxu1 }
 0x2fb   : > { %v3218_v41 = vld [vmem:[#allocation2 + $0x9a] sm:$0xff]  ;;  %3194 = vst.msk [vmem:[#allocation3 + $0x88] sm:$0xff] %vm363_vm1, %v3178_v8  ;;  %v2681_v14 = vadd.f32 %v10983_v7, %v2644_v53  ;;  %v2645_v37 = vmul.f32 %v10977_v36, %v2570_v63  ;;  %v11199_v32 = vadd.f32 %v8936_v58, %v10915_v0  ;;  %v11201_v44 = vpack.c.bf16 %v3216_v42, %v3215_v25  ;;  %v9818_v33 = vld [vmem:[%s13748_s3 + $0xe8] sm:$0xff]   ;;  %v3343_v19 = vld [vmem:[#allocation2 + $0x90] sm:$0xff] }
 0x2fc   : > { %v9817_v30 = vld [vmem:[%s13748_s3 + $0xa0] sm:$0xff]   ;;  %2813 = vst.msk [vmem:[#allocation3 + $0xf0] sm:$0xff] %vm363_vm1, %v11182_v55  ;;  %v9819_v48 = vld [vmem:[%s13748_s3 + $0xa8] sm:$0xff]   ;;  %v2679_v20 = vadd.f32 %v10983_v7, %v2642_v31  ;;  %v2643_v46 = vmul.f32 %v10977_v36, %v2562_v4  ;;  %3087 = vrot.lane.b32.xlu0 %v3051_v56, %s10002_s6  ;;  %2897 = vrot.lane.b32.xlu1 %v11190_v17, %s10002_s6  ;;  %2812 = vst.msk [vmem:[#allocation3 + $0xc8] sm:$0xff] %vm363_vm1, %v3051_v56 }
 0x2fd   : > { %v8937_v5 = vpop.f32.mrb[84].mxu0  ;;  %v11216_v49 = vpack.c.bf16 %v3218_v41, %v3217_v9  ;;  %v3341_v3 = vld [vmem:[#allocation2 + $0x78] sm:$0xff]  ;;  %v3342_v11 = vld [vmem:[#allocation2 + $0x80] sm:$0xff]  ;;  %v2713_v38 = vmax.f32 %v2681_v14, 0.0  ;;  %v2682_v58 = vadd.f32 %v10983_v7, %v2645_v37  ;;  %3004 = vst.msk [vmem:[#allocation3 + $0xd0] sm:$0xff] %vm363_vm1, %v11201_v44  ;;  %9096 = vmatpush3.bf16.msra.mxu1 %v9817_v30  ;;  %v2583_v29 = vadd.f32 %v9639_v45, %v11102_v27  ;;  %v9820_v56 = vld [vmem:[%s13748_s3 + $0xf0] sm:$0xff]  }
 0x2fe   : > { %v8938_v0 = vpop.f32.mrb[85].mxu0  ;;  %v3344_v16 = vld [vmem:[#allocation2 + $0x98] sm:$0xff]  ;;  %v3370_v28 = vpack.c.bf16 %v3342_v11, %v3341_v3  ;;  %v3152_v21 = vld [vmem:[#allocation2 + $0x81] sm:$0xff]  ;;  %v2711_v60 = vmax.f32 %v2679_v20, 0.0  ;;  %v2680_v15 = vadd.f32 %v10983_v7, %v2643_v46  ;;  %9097 = vmatprep.subr.bf16.mxu1 %v9818_v33  ;;  %v2575_v41 = vadd.f32 %v2574_v2, %v11051_v13  ;;  %v9640_v30 = vpop.f32.mrb[86].mxu1 }
 0x2ff   : > { %v8939_v62 = vadd.f32 %v8938_v0, %v8937_v5  ;;  %v8940_v51 = vpop.f32.mrb[86].mxu0  ;;  %v3151_v1 = vld [vmem:[#allocation2 + $0x79] sm:$0xff]  ;;  %3005 = vst.msk [vmem:[#allocation3 + $0xf8] sm:$0xff] %vm363_vm1, %v11216_v49  ;;  %v3371_v9 = vpack.c.bf16 %v3344_v16, %v3343_v19  ;;  %v3153_v53 = vld [vmem:[#allocation2 + $0x91] sm:$0xff]  ;;  %2745 = vst.msk [vmem:[#allocation2 + $0xf1] sm:$0xff] %vm363_vm1, %v2713_v38  ;;  %v2714_v63 = vmax.f32 %v2682_v58, 0.0  ;;  %v2648_v5 = vmul.f32 %v10977_v36, %v2583_v29 }
 0x300   : > { %v3154_v52 = vld [vmem:[#allocation2 + $0x99] sm:$0xff]  ;;  %v8941_v26 = vpop.f32.mrb[87].mxu0  ;;  %v3179_v8 = vpack.c.bf16 %v3152_v21, %v3151_v1  ;;  %v3027_v25 = vld [vmem:[#allocation2 + $0xa8] sm:$0xff]  ;;  %3386 = vst.msk [vmem:[#allocation3 + $0x90] sm:$0xff] %vm363_vm1, %v3370_v28  ;;  %2743 = vst.msk [vmem:[#allocation2 + $0xd9] sm:$0xff] %vm363_vm1, %v2711_v60  ;;  %v2712_v42 = vmax.f32 %v2680_v15, 0.0  ;;  %3089 = vrot.lane.b32.xlu0 %v11182_v55, %s10002_s6  ;;  %2899 = vrot.lane.b32.xlu1 %v11184_v10, %s10002_s6  ;;  %v2586_v13 = vadd.f32 %v9640_v30, %v11134_v18 }
 0x301   : > { %v8942_v22 = vadd.f32 %v8941_v26, %v8940_v51  ;;  %v11228_v31 = vadd.f32 %v8939_v62, %v10920_v40  ;;  %v3029_v4 = vld [vmem:[#allocation2 + $0xc0] sm:$0xff]  ;;  %v2837_v40 = vld [vmem:[#allocation2 + $0xa9] sm:$0xff]  ;;  %3387 = vst.msk [vmem:[#allocation3 + $0xb8] sm:$0xff] %vm363_vm1, %v3371_v9  ;;  %v3180_v37 = vpack.c.bf16 %v3154_v52, %v3153_v53  ;;  %2746 = vst.msk [vmem:[#allocation2 + $0xf9] sm:$0xff] %vm363_vm1, %v2714_v63  ;;  %v2577_v33 = vpop.f32.mrb[87].mxu1  ;;  %9098 = vmatpush3.bf16.msra.mxu1 %v9819_v48 }
 0x302   : > { %v3030_v27 = vld [vmem:[#allocation2 + $0xc8] sm:$0xff]  ;;  %3195 = vst.msk [vmem:[#allocation3 + $0xb0] sm:$0xff] %vm363_vm1, %v3179_v8  ;;  %v3028_v19 = vld [vmem:[#allocation2 + $0xb0] sm:$0xff]  ;;  %2744 = vst.msk [vmem:[#allocation2 + $0xe1] sm:$0xff] %vm363_vm1, %v2712_v42  ;;  %v2646_v3 = vmul.f32 %v10977_v36, %v2575_v41  ;;  %v2578_v11 = vadd.f32 %v2577_v33, %v11074_v54  ;;  %9099 = vmatprep.subr.bf16.mxu1 %v9820_v56  ;;  %v2685_v48 = vadd.f32 %v10983_v7, %v2648_v5  ;;  %v9643_v42 = vpop.f32.mrb[88].mxu1 }
 0x303   : > { %v3221_v14 = vld [vmem:[#allocation2 + $0xc2] sm:$0xff]  ;;  %v2838_v55 = vld [vmem:[#allocation2 + $0xb1] sm:$0xff]  ;;  %v11246_v20 = vadd.f32 %v8942_v22, %v10925_v57  ;;  %v3054_v46 = vpack.c.bf16 %v3030_v27, %v3029_v4  ;;  %v3053_v16 = vpack.c.bf16 %v3028_v19, %v3027_v25  ;;  %3196 = vst.msk [vmem:[#allocation3 + $0xd8] sm:$0xff] %vm363_vm1, %v3180_v37  ;;  %v2649_v62 = vmul.f32 %v10977_v36, %v2586_v13  ;;  %v2590_v37 = vpop.f32.mrb[89].mxu1 }
 0x304   : > { %v3219_v0 = vld [vmem:[#allocation2 + $0xaa] sm:$0xff]  ;;  %v11251_v38 = vpack.c.bf16 %v2838_v55, %v2837_v40  ;;  %v3220_v58 = vld [vmem:[#allocation2 + $0xb2] sm:$0xff]  ;;  %v2683_v1 = vadd.f32 %v10983_v7, %v2646_v3  ;;  %v2647_v21 = vmul.f32 %v10977_v36, %v2578_v11  ;;  %v3347_v45 = vld [vmem:[#allocation2 + $0xc0] sm:$0xff]  ;;  %v2717_v9 = vmax.f32 %v2685_v48, 0.0 }
 0x305   : > { %v3222_v18 = vld [vmem:[#allocation2 + $0xca] sm:$0xff]  ;;  %v8943_v51 = vpop.f32.mrb[88].mxu0  ;;  %v11259_v28 = vpack.c.bf16 %v3220_v58, %v3219_v0  ;;  %2815 = vst.msk [vmem:[#allocation3 + $0x140] sm:$0xff] %vm363_vm1, %v3054_v46  ;;  %v9822_v54 = vld [vmem:[%s13748_s3 + $0xf8] sm:$0xff]   ;;  %3091 = vrot.lane.b32.xlu0 %v3053_v16, %s10002_s6  ;;  %2814 = vst.msk [vmem:[#allocation3 + $0x118] sm:$0xff] %vm363_vm1, %v3053_v16  ;;  %v2686_v8 = vadd.f32 %v10983_v7, %v2649_v62  ;;  %v2591_v55 = vadd.f32 %v2590_v37, %v11165_v47  ;;  %v9644_v0 = vpop.f32.mrb[90].mxu1 }
 0x306   : > { %v9821_v57 = vld [vmem:[%s13748_s3 + $0xb0] sm:$0xff]   ;;  %v8944_v52 = vpop.f32.mrb[89].mxu0  ;;  %2901 = vrot.lane.b32.xlu1 %v11251_v38, %s10002_s6  ;;  %v11270_v60 = vpack.c.bf16 %v3222_v18, %v3221_v14  ;;  %v9823_v15 = vld [vmem:[%s13748_s3 + $0xb8] sm:$0xff]   ;;  %v3345_v22 = vld [vmem:[#allocation2 + $0xa8] sm:$0xff]  ;;  %v2715_v25 = vmax.f32 %v2683_v1, 0.0  ;;  %v2684_v4 = vadd.f32 %v10983_v7, %v2647_v21  ;;  %2749 = vst.msk [vmem:[#allocation2 + $0x121] sm:$0xff] %vm363_vm1, %v2717_v9  ;;  %v2599_v14 = vadd.f32 %v9643_v42, %v11228_v31 }
 0x307   : > { %v3346_v26 = vld [vmem:[#allocation2 + $0xb0] sm:$0xff]  ;;  %v8945_v53 = vadd.f32 %v8944_v52, %v8943_v51  ;;  %v8946_v63 = vpop.f32.mrb[90].mxu0  ;;  %3006 = vst.msk [vmem:[#allocation3 + $0x120] sm:$0xff] %vm363_vm1, %v11259_v28  ;;  %9100 = vmatpush3.bf16.msra.mxu1 %v9821_v57  ;;  %v3348_v29 = vld [vmem:[#allocation2 + $0xc8] sm:$0xff]  ;;  %v2718_v40 = vmax.f32 %v2686_v8, 0.0  ;;  %v3031_v3 = vld [vmem:[#allocation2 + $0xd8] sm:$0xff]  ;;  %v2602_v47 = vadd.f32 %v9644_v0, %v11246_v20  ;;  %v2650_v51 = vmul.f32 %v10977_v36, %v2591_v55 }
 0x308   : > { %v3156_v2 = vld [vmem:[#allocation2 + $0xb1] sm:$0xff]  ;;  %v8947_v56 = vpop.f32.mrb[91].mxu0  ;;  %3007 = vst.msk [vmem:[#allocation3 + $0x148] sm:$0xff] %vm363_vm1, %v11270_v60  ;;  %9101 = vmatprep.subr.bf16.mxu1 %v9822_v54  ;;  %v3372_v41 = vpack.c.bf16 %v3346_v26, %v3345_v22  ;;  %v3373_v30 = vpack.c.bf16 %v3348_v29, %v3347_v45  ;;  %v2840_v13 = vld [vmem:[#allocation2 + $0xc9] sm:$0xff]  ;;  %2747 = vst.msk [vmem:[#allocation2 + $0x109] sm:$0xff] %vm363_vm1, %v2715_v25  ;;  %v2716_v19 = vmax.f32 %v2684_v4, 0.0 }
 0x309   : > { %v8948_v27 = vadd.f32 %v8947_v56, %v8946_v63  ;;  %v11285_v5 = vadd.f32 %v8945_v53, %v10933_v43  ;;  %v3155_v33 = vld [vmem:[#allocation2 + $0xa9] sm:$0xff]  ;;  %3093 = vrot.lane.b32.xlu0 %v3054_v46, %s10002_s6  ;;  %v2839_v11 = vld [vmem:[#allocation2 + $0xc1] sm:$0xff]  ;;  %v3034_v16 = vld [vmem:[#allocation2 + $0xf8] sm:$0xff]  ;;  %2750 = vst.msk [vmem:[#allocation2 + $0x129] sm:$0xff] %vm363_vm1, %v2718_v40  ;;  %v2652_v58 = vmul.f32 %v10977_v36, %v2599_v14  ;;  %v2593_v18 = vpop.f32.mrb[91].mxu1 }
 0x30a   : > { %3463 = vrot.lane.b32.xlu1 %v11063_v34, %s10002_s6  ;;  %v3033_v31 = vld [vmem:[#allocation2 + $0xf0] sm:$0xff]  ;;  %3388 = vst.msk [vmem:[#allocation3 + $0xe0] sm:$0xff] %vm363_vm1, %v3372_v41  ;;  %3389 = vst.msk [vmem:[#allocation3 + $0x108] sm:$0xff] %vm363_vm1, %v3373_v30  ;;  %v3181_v43 = vpack.c.bf16 %v3156_v2, %v3155_v33  ;;  %v3032_v46 = vld [vmem:[#allocation2 + $0xe0] sm:$0xff]  ;;  %v2594_v54 = vadd.f32 %v2593_v18, %v11199_v32  ;;  %v2653_v26 = vmul.f32 %v10977_v36, %v2602_v47  ;;  %v9647_v55 = vpop.f32.mrb[92].mxu1 }
 0x30b   : > { %v11298_v57 = vadd.f32 %v8948_v27, %v10944_v23  ;;  %v11300_v34 = vpack.c.bf16 %v3034_v16, %v3033_v31  ;;  %v3223_v48 = vld [vmem:[#allocation2 + $0xda] sm:$0xff]  ;;  %v3225_v62 = vld [vmem:[#allocation2 + $0xf2] sm:$0xff]  ;;  %9102 = vmatpush3.bf16.msra.mxu1 %v9823_v15  ;;  %2748 = vst.msk [vmem:[#allocation2 + $0x111] sm:$0xff] %vm363_vm1, %v2716_v19  ;;  %v3055_v1 = vpack.c.bf16 %v3032_v46, %v3031_v3  ;;  %v3224_v21 = vld [vmem:[#allocation2 + $0xe2] sm:$0xff] }
 0x30c   : > { %v3226_v52 = vld [vmem:[#allocation2 + $0xfa] sm:$0xff]  ;;  %3197 = vst.msk [vmem:[#allocation3 + $0x100] sm:$0xff] %vm363_vm1, %v3181_v43  ;;  %v2689_v23 = vadd.f32 %v10983_v7, %v2652_v58  ;;  %v11308_v9 = vpack.c.bf16 %v2840_v13, %v2839_v11  ;;  %v11310_v15 = vpack.c.bf16 %v3224_v21, %v3223_v48  ;;  %v3158_v8 = vld [vmem:[#allocation2 + $0xc9] sm:$0xff]  ;;  %v11314_v53 = vld [vmem:[#allocation2 + $0x32] sm:$0xff]  ;;  %v2687_v63 = vadd.f32 %v10983_v7, %v2650_v51  ;;  %v2606_v58 = vpop.f32.mrb[93].mxu1 }
 0x30d   : > { %v3350_v20 = vld [vmem:[#allocation2 + $0xe0] sm:$0xff]  ;;  %v8949_v45 = vpop.f32.mrb[92].mxu0  ;;  %2817 = vst.msk [vmem:[#allocation3 + $0x190] sm:$0xff] %vm363_vm1, %v11300_v34  ;;  %v2651_v22 = vmul.f32 %v10977_v36, %v2594_v54  ;;  %3095 = vrot.lane.b32.xlu0 %v3055_v1, %s10002_s6  ;;  %v11321_v2 = vpack.c.bf16 %v3226_v52, %v3225_v62  ;;  %2816 = vst.msk [vmem:[#allocation3 + $0x168] sm:$0xff] %vm363_vm1, %v3055_v1  ;;  %v3349_v25 = vld [vmem:[#allocation2 + $0xd8] sm:$0xff]  ;;  %v2690_v41 = vadd.f32 %v10983_v7, %v2653_v26  ;;  %v9648_v62 = vpop.f32.mrb[94].mxu1 }
 0x30e   : > { %v3160_v32 = vld [vmem:[#allocation2 + $0xe1] sm:$0xff]  ;;  %v8950_v29 = vpop.f32.mrb[93].mxu0  ;;  %3271 = vrot.lane.b32.xlu1 %v11076_v61, %s10002_s6  ;;  %v3162_v56 = vld [vmem:[#allocation2 + $0xf9] sm:$0xff]  ;;  %v2721_v42 = vmax.f32 %v2689_v23, 0.0  ;;  %3008 = vst.msk [vmem:[#allocation3 + $0x170] sm:$0xff] %vm363_vm1, %v11310_v15  ;;  %v3374_v27 = vpack.c.bf16 %v3350_v20, %v3349_v25  ;;  %v2719_v61 = vmax.f32 %v2687_v63, 0.0  ;;  %v2607_v48 = vadd.f32 %v2606_v58, %v11285_v5 }
 0x30f   : > { %v3157_v4 = vld [vmem:[#allocation2 + $0xc1] sm:$0xff]  ;;  %v8951_v30 = vadd.f32 %v8950_v29, %v8949_v45  ;;  %v8952_v40 = vpop.f32.mrb[94].mxu0  ;;  %v3159_v14 = vld [vmem:[#allocation2 + $0xd9] sm:$0xff]  ;;  %v2688_v33 = vadd.f32 %v10983_v7, %v2651_v22  ;;  %3009 = vst.msk [vmem:[#allocation3 + $0x198] sm:$0xff] %vm363_vm1, %v11321_v2  ;;  %v3161_v11 = vld [vmem:[#allocation2 + $0xf1] sm:$0xff]  ;;  %v2722_v31 = vmax.f32 %v2690_v41, 0.0 }
 0x310   : > { %v3352_v37 = vld [vmem:[#allocation2 + $0xf8] sm:$0xff]  ;;  %v8953_v19 = vpop.f32.mrb[95].mxu0  ;;  %v3182_v0 = vpack.c.bf16 %v3158_v8, %v3157_v4  ;;  %v3183_v3 = vpack.c.bf16 %v3160_v32, %v3159_v14  ;;  %2753 = vst.msk [vmem:[#allocation2 + $0x151] sm:$0xff] %vm363_vm1, %v2721_v42  ;;  %v2842_v47 = vld [vmem:[#allocation2 + $0xe1] sm:$0xff]  ;;  %3390 = vst.msk [vmem:[#allocation3 + $0x130] sm:$0xff] %vm363_vm1, %v3374_v27  ;;  %v3184_v18 = vpack.c.bf16 %v3162_v56, %v3161_v11  ;;  %v2609_v52 = vpop.f32.mrb[95].mxu1 }
 0x311   : > { %v3528_v13 = vld [vmem:[#allocation2 + $0x3a] sm:$0xff]  ;;  %v8954_v16 = vadd.f32 %v8953_v19, %v8952_v40  ;;  %v2454_v43 = vadd.f32 %v8951_v30, %v10955_v59  ;;  %v3351_v7 = vld [vmem:[#allocation2 + $0xf0] sm:$0xff]  ;;  %2751 = vst.msk [vmem:[#allocation2 + $0x139] sm:$0xff] %vm363_vm1, %v2719_v61  ;;  %v2720_v46 = vmax.f32 %v2688_v33, 0.0  ;;  %2903 = vrot.lane.b32.xlu0 %v11308_v9, %s10002_s6  ;;  %v3229_v59 = vld [vmem:[#allocation2 + $0x122] sm:$0xff]  ;;  %v2654_v8 = vmul.f32 %v10977_v36, %v2607_v48 }
 0x312   : > { %3465 = vrot.lane.b32.xlu1 %v11126_v39, %s10002_s6  ;;  %v2841_v51 = vld [vmem:[#allocation2 + $0xd9] sm:$0xff]  ;;  %3198 = vst.msk [vmem:[#allocation3 + $0x128] sm:$0xff] %vm363_vm1, %v3182_v0  ;;  %3199 = vst.msk [vmem:[#allocation3 + $0x150] sm:$0xff] %vm363_vm1, %v3183_v3  ;;  %v3375_v54 = vpack.c.bf16 %v3352_v37, %v3351_v7  ;;  %v3559_v1 = vpack.c.bf16 %v3528_v13, %v11314_v53  ;;  %v3035_v20 = vld [vmem:[#allocation2 + $0x108] sm:$0xff]  ;;  %v2610_v32 = vadd.f32 %v2609_v52, %v11298_v57 }
 0x313   : > { %2754 = vst.msk [vmem:[#allocation2 + $0x159] sm:$0xff] %vm363_vm1, %v2722_v31  ;;  %v2615_v21 = vadd.f32 %v9647_v55, %v2454_v43  ;;  %v2457_v5 = vadd.f32 %v8954_v16, %v10966_v12  ;;  %v3036_v23 = vld [vmem:[#allocation2 + $0x110] sm:$0xff]  ;;  %v2783_v45 = vld [vmem:[#allocation2 + $0x120] sm:$0xff]  ;;  %3200 = vst.msk [vmem:[#allocation3 + $0x178] sm:$0xff] %vm363_vm1, %v3184_v18  ;;  %v11348_v53 = vpack.c.bf16 %v2842_v47, %v2841_v51 }
 0x314   : > { %v3227_v26 = vld [vmem:[#allocation2 + $0x10a] sm:$0xff]  ;;  %2752 = vst.msk [vmem:[#allocation2 + $0x141] sm:$0xff] %vm363_vm1, %v2720_v46  ;;  %v11350_v63 = vpack.c.bf16 %v3036_v23, %v3035_v20  ;;  %v3228_v22 = vld [vmem:[#allocation2 + $0x112] sm:$0xff]  ;;  %3391 = vst.msk [vmem:[#allocation3 + $0x158] sm:$0xff] %vm363_vm1, %v3375_v54 }
 0x315   : > { %v3529_v39 = vld [vmem:[#allocation2 + $0x4a] sm:$0xff]  ;;  %3575 = vst.msk [vmem:[#allocation3 + $0x20] sm:$0xff] %vm363_vm1, %v3559_v1  ;;  %v2656_v25 = vmul.f32 %v10977_v36, %v2615_v21  ;;  %v2618_v4 = vadd.f32 %v9648_v62, %v2457_v5  ;;  %v11355_v56 = vpack.c.bf16 %v3228_v22, %v3227_v26  ;;  %v9977_v40 = vld [vmem:[%s13753_s8 + $0x1] ss:$0 sm:$0xff]  ;;  %3097 = vrot.lane.b32.xlu0 %v11300_v34, %s10002_s6  ;;  %v3530_v33 = vld [vmem:[#allocation2 + $0x52] sm:$0xff] }
 0x316   : > { %v3230_v12 = vld [vmem:[#allocation2 + $0x12a] sm:$0xff]  ;;  %v2691_v27 = vadd.f32 %v9977_v40, %v2654_v8  ;;  %v9978_v14 = vld [vmem:[%s13752_s7 + $0x1] ss:$0 sm:$0xff]  ;;  %3273 = vrot.lane.b32.xlu1 %v11087_v50, %s10002_s6  ;;  %2818 = vst.msk [vmem:[#allocation3 + $0x1b8] sm:$0xff] %vm363_vm1, %v11350_v63  ;;  %v3531_v11 = vld [vmem:[#allocation2 + $0x62] sm:$0xff]  ;;  %v3560_v58 = vpack.c.bf16 %v3530_v33, %v3529_v39 }
 0x317   : > { %v2784_v29 = vld [vmem:[#allocation2 + $0x128] sm:$0xff]  ;;  %v11357_v42 = vpack.c.bf16 %v3230_v12, %v3229_v59  ;;  %v3164_v57 = vld [vmem:[#allocation2 + $0x111] sm:$0xff]  ;;  %v2655_v37 = vmul.f32 %v9978_v14, %v2610_v32  ;;  %v2693_v19 = vadd.f32 %v9977_v40, %v2656_v25  ;;  %v2657_v55 = vmul.f32 %v9978_v14, %v2618_v4  ;;  %3010 = vst.msk [vmem:[#allocation3 + $0x1c0] sm:$0xff] %vm363_vm1, %v11355_v56  ;;  %v2844_v51 = vld [vmem:[#allocation2 + $0xf9] sm:$0xff] }
 0x318   : > { %v3163_v41 = vld [vmem:[#allocation2 + $0x109] sm:$0xff]  ;;  %v2803_v36 = vpack.c.bf16 %v2784_v29, %v2783_v45  ;;  %v3165_v3 = vld [vmem:[#allocation2 + $0x121] sm:$0xff]  ;;  %v2723_v31 = vmax.f32 %v2691_v27, 0.0  ;;  %3576 = vst.msk [vmem:[#allocation3 + $0x48] sm:$0xff] %vm363_vm1, %v3560_v58  ;;  %v2785_v54 = vld [vmem:[#allocation2 + $0x138] sm:$0xff] }
 0x319   : > { %v3354_v30 = vld [vmem:[#allocation2 + $0x110] sm:$0xff]  ;;  %v3353_v13 = vld [vmem:[#allocation2 + $0x108] sm:$0xff]  ;;  %3011 = vst.msk [vmem:[#allocation3 + $0x1e8] sm:$0xff] %vm363_vm1, %v11357_v42  ;;  %v3185_v0 = vpack.c.bf16 %v3164_v57, %v3163_v41  ;;  %v2692_v16 = vadd.f32 %v9977_v40, %v2655_v37  ;;  %v2725_v47 = vmax.f32 %v2693_v19, 0.0  ;;  %v2694_v18 = vadd.f32 %v9977_v40, %v2657_v55  ;;  %2905 = vrot.lane.b32.xlu0 %v11348_v53, %s10002_s6  ;;  %v3533_v21 = vld [vmem:[#allocation2 + $0x7a] sm:$0xff] }
 0x31a   : > { %v3166_v61 = vld [vmem:[#allocation2 + $0x129] sm:$0xff]  ;;  %v3376_v34 = vpack.c.bf16 %v3354_v30, %v3353_v13  ;;  %2819 = vst.msk [vmem:[#allocation3 + $0x1e0] sm:$0xff] %vm363_vm1, %v2803_v36  ;;  %3393 = vst.msk [vmem:[#allocation3 + $0x1a8] sm:$0xff] %vm363_vm1, %v2803_v36  ;;  %3467 = vrot.lane.b32.xlu1 %v11121_v6, %s10002_s6  ;;  %v3233_v48 = vld [vmem:[#allocation2 + $0x152] sm:$0xff] }
 0x31b   : > { %v3532_v50 = vld [vmem:[#allocation2 + $0x6a] sm:$0xff]  ;;  %v3186_v43 = vpack.c.bf16 %v3166_v61, %v3165_v3  ;;  %3201 = vst.msk [vmem:[#allocation3 + $0x1a0] sm:$0xff] %vm363_vm1, %v3185_v0  ;;  %2755 = vst.msk [vmem:[#allocation2 + $0x169] sm:$0xff] %vm363_vm1, %v2723_v31  ;;  %v2724_v46 = vmax.f32 %v2692_v16, 0.0  ;;  %v2726_v62 = vmax.f32 %v2694_v18, 0.0  ;;  %v3231_v59 = vld [vmem:[#allocation2 + $0x13a] sm:$0xff] }
 0x31c   : > { %3392 = vst.msk [vmem:[#allocation3 + $0x180] sm:$0xff] %vm363_vm1, %v3376_v34  ;;  %v3561_v7 = vpack.c.bf16 %v3532_v50, %v3531_v11  ;;  %2757 = vst.msk [vmem:[#allocation2 + $0x181] sm:$0xff] %vm363_vm1, %v2725_v47  ;;  %v2787_v1 = vld [vmem:[#allocation2 + $0x150] sm:$0xff]  ;;  %v3232_v5 = vld [vmem:[#allocation2 + $0x142] sm:$0xff] }
 0x31d   : > { %3202 = vst.msk [vmem:[#allocation3 + $0x1c8] sm:$0xff] %vm363_vm1, %v3186_v43  ;;  %2756 = vst.msk [vmem:[#allocation2 + $0x171] sm:$0xff] %vm363_vm1, %v2724_v46  ;;  %v3234_v52 = vld [vmem:[#allocation2 + $0x15a] sm:$0xff]  ;;  %v11390_v20 = vpack.c.bf16 %v3232_v5, %v3231_v59  ;;  %3099 = vrot.lane.b32.xlu0 %v11350_v63, %s10002_s6  ;;  %v2843_v32 = vld [vmem:[#allocation2 + $0xf1] sm:$0xff] }
 0x31e   : > { %3577 = vst.msk [vmem:[#allocation3 + $0x70] sm:$0xff] %vm363_vm1, %v3561_v7  ;;  %v2786_v6 = vld [vmem:[#allocation2 + $0x140] sm:$0xff]  ;;  %2758 = vst.msk [vmem:[#allocation2 + $0x189] sm:$0xff] %vm363_vm1, %v2726_v62  ;;  %v11392_v23 = vpack.c.bf16 %v3234_v52, %v3233_v48  ;;  %v2788_v45 = vld [vmem:[#allocation2 + $0x158] sm:$0xff]  ;;  %3275 = vrot.lane.b32.xlu1 %v11136_v24, %s10002_s6  ;;  %v11404_v24 = vpack.c.bf16 %v2844_v51, %v2843_v32 }
 0x31f   : > { %v2804_v26 = vpack.c.bf16 %v2786_v6, %v2785_v54  ;;  %v3167_v39 = vld [vmem:[#allocation2 + $0x139] sm:$0xff]  ;;  %v3168_v8 = vld [vmem:[#allocation2 + $0x141] sm:$0xff]  ;;  %v2805_v22 = vpack.c.bf16 %v2788_v45, %v2787_v1  ;;  %v3169_v29 = vld [vmem:[#allocation2 + $0x151] sm:$0xff]  ;;  %3012 = vst.msk [vmem:[#allocation3 + $0x210] sm:$0xff] %vm363_vm1, %v11390_v20 }
 0x320   : > { %v3187_v12 = vpack.c.bf16 %v3168_v8, %v3167_v39  ;;  %v3170_v25 = vld [vmem:[#allocation2 + $0x159] sm:$0xff]  ;;  %3013 = vst.msk [vmem:[#allocation3 + $0x238] sm:$0xff] %vm363_vm1, %v11392_v23  ;;  %v3534_v63 = vld [vmem:[#allocation2 + $0x82] sm:$0xff]  ;;  %v3537_v27 = vld [vmem:[#allocation2 + $0xaa] sm:$0xff] }
 0x321   : > { %2820 = vst.msk [vmem:[#allocation3 + $0x208] sm:$0xff] %vm363_vm1, %v2804_v26  ;;  %3394 = vst.msk [vmem:[#allocation3 + $0x1d0] sm:$0xff] %vm363_vm1, %v2804_v26  ;;  %v3188_v4 = vpack.c.bf16 %v3170_v25, %v3169_v29  ;;  %v3535_v41 = vld [vmem:[#allocation2 + $0x92] sm:$0xff]  ;;  %v3536_v57 = vld [vmem:[#allocation2 + $0x9a] sm:$0xff]  ;;  %v3562_v30 = vpack.c.bf16 %v3534_v63, %v3533_v21  ;;  %2907 = vrot.lane.b32.xlu0 %v11404_v24, %s10002_s6 }
 0x322   : > { %2821 = vst.msk [vmem:[#allocation3 + $0x230] sm:$0xff] %vm363_vm1, %v2805_v22  ;;  %3203 = vst.msk [vmem:[#allocation3 + $0x1f0] sm:$0xff] %vm363_vm1, %v3187_v12  ;;  %v3563_v40 = vpack.c.bf16 %v3536_v57, %v3535_v41  ;;  %v3538_v14 = vld [vmem:[#allocation2 + $0xb2] sm:$0xff]  ;;  %v3038_v37 = vld [vmem:[#allocation2 + $0x128] sm:$0xff]  ;;  %3469 = vrot.lane.b32.xlu1 %v11190_v17, %s10002_s6 }
 0x323   : > { %3395 = vst.msk [vmem:[#allocation3 + $0x1f8] sm:$0xff] %vm363_vm1, %v2805_v22  ;;  %3204 = vst.msk [vmem:[#allocation3 + $0x218] sm:$0xff] %vm363_vm1, %v3188_v4  ;;  %v3564_v36 = vpack.c.bf16 %v3538_v14, %v3537_v27  ;;  %v3037_v13 = vld [vmem:[#allocation2 + $0x120] sm:$0xff]  ;;  %v2846_v19 = vld [vmem:[#allocation2 + $0x111] sm:$0xff] }
 0x324   : > { %3578 = vst.msk [vmem:[#allocation3 + $0x98] sm:$0xff] %vm363_vm1, %v3562_v30  ;;  %3579 = vst.msk [vmem:[#allocation3 + $0xc0] sm:$0xff] %vm363_vm1, %v3563_v40  ;;  %v3235_v61 = vld [vmem:[#allocation2 + $0x16a] sm:$0xff]  ;;  %v3058_v33 = vpack.c.bf16 %v3038_v37, %v3037_v13  ;;  %v3236_v55 = vld [vmem:[#allocation2 + $0x172] sm:$0xff] }
 0x325   : > { %3580 = vst.msk [vmem:[#allocation3 + $0xe8] sm:$0xff] %vm363_vm1, %v3564_v36  ;;  %v3539_v0 = vld [vmem:[#allocation2 + $0xc2] sm:$0xff]  ;;  %v11417_v34 = vpack.c.bf16 %v3236_v55, %v3235_v61  ;;  %v2790_v11 = vld [vmem:[#allocation2 + $0x170] sm:$0xff]  ;;  %v3541_v51 = vld [vmem:[#allocation2 + $0xda] sm:$0xff] }
 0x326   : > { %v2789_v3 = vld [vmem:[#allocation2 + $0x168] sm:$0xff]  ;;  %3101 = vrot.lane.b32.xlu0 %v3058_v33, %s10002_s6  ;;  %3277 = vrot.lane.b32.xlu1 %v11153_v35, %s10002_s6  ;;  %v3172_v31 = vld [vmem:[#allocation2 + $0x171] sm:$0xff]  ;;  %v3363_v7 = vld [vmem:[#allocation2 + $0x180] sm:$0xff] }
 0x327   : > { %v3171_v50 = vld [vmem:[#allocation2 + $0x169] sm:$0xff]  ;;  %v2806_v17 = vpack.c.bf16 %v2790_v11, %v2789_v3  ;;  %v3173_v43 = vld [vmem:[#allocation2 + $0x181] sm:$0xff]  ;;  %3014 = vst.msk [vmem:[#allocation3 + $0x260] sm:$0xff] %vm363_vm1, %v11417_v34  ;;  %v3039_v21 = vld [vmem:[#allocation2 + $0x138] sm:$0xff] }
 0x328   : > { %v3174_v16 = vld [vmem:[#allocation2 + $0x189] sm:$0xff]  ;;  %v3189_v47 = vpack.c.bf16 %v3172_v31, %v3171_v50  ;;  %v3040_v59 = vld [vmem:[#allocation2 + $0x140] sm:$0xff]  ;;  %v3543_v52 = vld [vmem:[#allocation2 + $0xf2] sm:$0xff] }
 0x329   : > { %v2845_v58 = vld [vmem:[#allocation2 + $0x109] sm:$0xff]  ;;  %v3190_v18 = vpack.c.bf16 %v3174_v16, %v3173_v43  ;;  %2822 = vst.msk [vmem:[#allocation3 + $0x258] sm:$0xff] %vm363_vm1, %v2806_v17  ;;  %3396 = vst.msk [vmem:[#allocation3 + $0x220] sm:$0xff] %vm363_vm1, %v2806_v17  ;;  %v3544_v6 = vld [vmem:[#allocation2 + $0xfa] sm:$0xff]  ;;  %v3059_v22 = vpack.c.bf16 %v3040_v59, %v3039_v21 }
 0x32a   : > { %v3364_v46 = vld [vmem:[#allocation2 + $0x188] sm:$0xff]  ;;  %v11424_v48 = vpack.c.bf16 %v2846_v19, %v2845_v58  ;;  %3205 = vst.msk [vmem:[#allocation3 + $0x240] sm:$0xff] %vm363_vm1, %v3189_v47  ;;  %3471 = vrot.lane.b32.xlu1 %v11184_v10, %s10002_s6  ;;  %v3567_v45 = vpack.c.bf16 %v3544_v6, %v3543_v52  ;;  %v3546_v8 = vld [vmem:[#allocation2 + $0x112] sm:$0xff]  ;;  %v3549_v25 = vld [vmem:[#allocation2 + $0x13a] sm:$0xff] }
 0x32b   : > { %v3381_v62 = vpack.c.bf16 %v3364_v46, %v3363_v7  ;;  %v3540_v35 = vld [vmem:[#allocation2 + $0xca] sm:$0xff]  ;;  %3206 = vst.msk [vmem:[#allocation3 + $0x268] sm:$0xff] %vm363_vm1, %v3190_v18  ;;  %v3542_v1 = vld [vmem:[#allocation2 + $0xe2] sm:$0xff]  ;;  %v3551_v41 = vld [vmem:[#allocation2 + $0x152] sm:$0xff] }
 0x32c   : > { %v3565_v54 = vpack.c.bf16 %v3540_v35, %v3539_v0  ;;  %2909 = vrot.lane.b32.xlu0 %v11424_v48, %s10002_s6  ;;  %v3566_v5 = vpack.c.bf16 %v3542_v1, %v3541_v51  ;;  %v2848_v26 = vld [vmem:[#allocation2 + $0x129] sm:$0xff]  ;;  %3583 = vst.msk [vmem:[#allocation3 + $0x160] sm:$0xff] %vm363_vm1, %v3567_v45  ;;  %v3552_v57 = vld [vmem:[#allocation2 + $0x15a] sm:$0xff]  ;;  %v3554_v27 = vld [vmem:[#allocation2 + $0x172] sm:$0xff] }
 0x32d   : > { %3397 = vst.msk [vmem:[#allocation3 + $0x248] sm:$0xff] %vm363_vm1, %v3381_v62  ;;  %v3545_v39 = vld [vmem:[#allocation2 + $0x10a] sm:$0xff]  ;;  %v3547_v32 = vld [vmem:[#allocation2 + $0x122] sm:$0xff]  ;;  %v3571_v40 = vpack.c.bf16 %v3552_v57, %v3551_v41  ;;  %v3042_v19 = vld [vmem:[#allocation2 + $0x158] sm:$0xff] }
 0x32e   : > { %3581 = vst.msk [vmem:[#allocation3 + $0x110] sm:$0xff] %vm363_vm1, %v3565_v54  ;;  %3582 = vst.msk [vmem:[#allocation3 + $0x138] sm:$0xff] %vm363_vm1, %v3566_v5  ;;  %v3568_v12 = vpack.c.bf16 %v3546_v8, %v3545_v39  ;;  %v3548_v29 = vld [vmem:[#allocation2 + $0x12a] sm:$0xff]  ;;  %v3550_v10 = vld [vmem:[#allocation2 + $0x142] sm:$0xff]  ;;  %3279 = vrot.lane.b32.xlu1 %v11201_v44, %s10002_s6 }
 0x32f   : > { %v3569_v4 = vpack.c.bf16 %v3548_v29, %v3547_v32  ;;  %v3570_v63 = vpack.c.bf16 %v3550_v10, %v3549_v25  ;;  %v3553_v30 = vld [vmem:[#allocation2 + $0x16a] sm:$0xff]  ;;  %v3555_v14 = vld [vmem:[#allocation2 + $0x182] sm:$0xff]  ;;  %3587 = vst.msk [vmem:[#allocation3 + $0x200] sm:$0xff] %vm363_vm1, %v3571_v40  ;;  %v2849_v3 = vld [vmem:[#allocation2 + $0x139] sm:$0xff] }
 0x330   : > { %3103 = vrot.lane.b32.xlu0 %v3059_v22, %s10002_s6  ;;  %3584 = vst.msk [vmem:[#allocation3 + $0x188] sm:$0xff] %vm363_vm1, %v3568_v12  ;;  %v3556_v37 = vld [vmem:[#allocation2 + $0x18a] sm:$0xff]  ;;  %v2847_v36 = vld [vmem:[#allocation2 + $0x121] sm:$0xff]  ;;  %v3572_v13 = vpack.c.bf16 %v3554_v27, %v3553_v30  ;;  %v2852_v16 = vld [vmem:[#allocation2 + $0x159] sm:$0xff] }
 0x331   : > { %3585 = vst.msk [vmem:[#allocation3 + $0x1b0] sm:$0xff] %vm363_vm1, %v3569_v4  ;;  %3586 = vst.msk [vmem:[#allocation3 + $0x1d8] sm:$0xff] %vm363_vm1, %v3570_v63  ;;  %v3573_v61 = vpack.c.bf16 %v3556_v37, %v3555_v14  ;;  %v2867_v33 = vpack.c.bf16 %v2848_v26, %v2847_v36  ;;  %v3041_v44 = vld [vmem:[#allocation2 + $0x150] sm:$0xff]  ;;  %v2850_v0 = vld [vmem:[#allocation2 + $0x141] sm:$0xff] }
 0x332   : > { %3588 = vst.msk [vmem:[#allocation3 + $0x228] sm:$0xff] %vm363_vm1, %v3572_v13  ;;  %3473 = vrot.lane.b32.xlu1 %v11251_v38, %s10002_s6  ;;  %v3060_v55 = vpack.c.bf16 %v3042_v19, %v3041_v44  ;;  %v2868_v11 = vpack.c.bf16 %v2850_v0, %v2849_v3  ;;  %v3044_v50 = vld [vmem:[#allocation2 + $0x170] sm:$0xff]  ;;  %v3043_v17 = vld [vmem:[#allocation2 + $0x168] sm:$0xff]  ;;  %v9827_v39 = vld [vmem:[%s13748_s3 + $0x118] sm:$0xff]  }
 0x333   : > { %3589 = vst.msk [vmem:[#allocation3 + $0x250] sm:$0xff] %vm363_vm1, %v3573_v61  ;;  %v3061_v31 = vpack.c.bf16 %v3044_v50, %v3043_v17  ;;  %v2851_v38 = vld [vmem:[#allocation2 + $0x151] sm:$0xff]  ;;  %v3046_v58 = vld [vmem:[#allocation2 + $0x188] sm:$0xff]  ;;  %v3366_v12 = vld [vmem:[#allocation2 + $0x1a0] sm:$0xff] }
 0x334   : > { %2911 = vrot.lane.b32.xlu0 %v2867_v33, %s10002_s6  ;;  %v2869_v43 = vpack.c.bf16 %v2852_v16, %v2851_v38  ;;  %v2854_v18 = vld [vmem:[#allocation2 + $0x171] sm:$0xff]  ;;  %v9825_v1 = vld [vmem:[%s13748_s3 + $0x108] sm:$0xff]  }
 0x335   : > { %v3591_v51 = vld [vmem:[#allocation3] sm:$0xff]  ;;  %v3365_v22 = vld [vmem:[#allocation2 + $0x198] sm:$0xff] }
 0x336   : > { %3281 = vrot.lane.b32.xlu1 %v11216_v49, %s10002_s6  ;;  %v3045_v49 = vld [vmem:[#allocation2 + $0x180] sm:$0xff]  ;;  %v9826_v6 = vld [vmem:[%s13748_s3 + $0x110] sm:$0xff]   ;;  %v3382_v10 = vpack.c.bf16 %v3366_v12, %v3365_v22 }
 0x337   : > { %v3062_v47 = vpack.c.bf16 %v3046_v58, %v3045_v49 }
 0x338   : > { %3105 = vrot.lane.b32.xlu0 %v3060_v55, %s10002_s6  ;;  %3398 = vst.msk [vmem:[#allocation3 + $0x270] sm:$0xff] %vm363_vm1, %v3382_v10 }
 0x33a   : > { %3475 = vrot.lane.b32.xlu1 %v11308_v9, %s10002_s6  ;;  %v2853_v9 = vld [vmem:[#allocation2 + $0x169] sm:$0xff] }
 0x33b   : > { %v2870_v7 = vpack.c.bf16 %v2854_v18, %v2853_v9 }
 0x33c   : > { %2913 = vrot.lane.b32.xlu0 %v2868_v11, %s10002_s6 }
 0x33e   : > { %3283 = vrot.lane.b32.xlu1 %v11259_v28, %s10002_s6  ;;  %v9824_v28 = vld [vmem:[%s13748_s3 + $0x100] sm:$0xff]  }
 0x33f   : > { %9649 = vmatprep.subr.bf16.mxu0 %v9824_v28 }
 0x340   : > { %3107 = vrot.lane.b32.xlu0 %v3061_v31, %s10002_s6 }
 0x342   : > { %3477 = vrot.lane.b32.xlu1 %v11348_v53, %s10002_s6  ;;  %v3238_v53 = vld [vmem:[#allocation2 + $0x18a] sm:$0xff] }
 0x344   : > { %2915 = vrot.lane.b32.xlu0 %v2869_v43, %s10002_s6 }
 0x346   : > { %3285 = vrot.lane.b32.xlu1 %v11270_v60, %s10002_s6 }
 0x348   : > { %3109 = vrot.lane.b32.xlu0 %v3062_v47, %s10002_s6 }
 0x34a   : > { %3287 = vrot.lane.b32.xlu1 %v11310_v15, %s10002_s6 }
 0x34c   : > { %2917 = vrot.lane.b32.xlu0 %v2870_v7, %s10002_s6 }
 0x34e   : > { %3289 = vrot.lane.b32.xlu1 %v11321_v2, %s10002_s6  ;;  %v3237_v2 = vld [vmem:[#allocation2 + $0x182] sm:$0xff] }
 0x350   : > { %3479 = vrot.lane.b32.xlu0 %v11404_v24, %s10002_s6  ;;  %v3430_v24 = vld [vmem:[#allocation2 + $0x1a1] sm:$0xff] }
 0x352   : > { %3291 = vrot.lane.b32.xlu1 %v11355_v56, %s10002_s6  ;;  %v3428_v56 = vld [vmem:[#allocation2 + $0x189] sm:$0xff] }
 0x354   : > { %3481 = vrot.lane.b32.xlu0 %v11424_v48, %s10002_s6  ;;  %v3254_v48 = vpack.c.bf16 %v3238_v53, %v3237_v2 }
 0x356   : > { %3293 = vrot.lane.b32.xlu1 %v11357_v42, %s10002_s6  ;;  %v3427_v42 = vld [vmem:[#allocation2 + $0x181] sm:$0xff] }
 0x357   : > { %v3445_v62 = vpack.c.bf16 %v3428_v56, %v3427_v42 }
 0x358   : > { %3483 = vrot.lane.b32.xlu0 %v2867_v33, %s10002_s6 }
 0x35a   : > { %3295 = vrot.lane.b32.xlu1 %v11390_v20, %s10002_s6  ;;  %v3429_v20 = vld [vmem:[#allocation2 + $0x199] sm:$0xff] }
 0x35b   : > { %v3080_v60 = vpop.permute.xlu0 %3079  ;;  %v3446_v35 = vpack.c.bf16 %v3430_v24, %v3429_v20 }
 0x35c   : > { %3485 = vrot.lane.b32.xlu0 %v2868_v11, %s10002_s6  ;;  %v2890_v15 = vpop.permute.xlu1 %2889  ;;  %3127 = vst.msk [vmem:[#allocation3 + $0x8] sm:$0xff] %vm1064_vm3, %v3080_v60 }
 0x35d   : > { %2936 = vst.msk [vmem:[#allocation3 + $0x28] sm:$0xff] %vm1064_vm3, %v2890_v15 }
 0x35e   : > { %3297 = vrot.lane.b32.xlu1 %v11392_v23, %s10002_s6 }
 0x35f   : > { %v3082_v23 = vpop.permute.xlu0 %3081 }
 0x360   : > { %3487 = vrot.lane.b32.xlu0 %v2869_v43, %s10002_s6  ;;  %v2892_v46 = vpop.permute.xlu1 %2891  ;;  %3128 = vst.msk [vmem:[#allocation3 + $0x30] sm:$0xff] %vm1064_vm3, %v3082_v23 }
 0x361   : > { %2937 = vst.msk [vmem:[#allocation3 + $0x50] sm:$0xff] %vm1064_vm3, %v2892_v46 }
 0x362   : > { %3299 = vrot.lane.b32.xlu1 %v11417_v34, %s10002_s6 }
 0x363   : > { %v3592_v54 = vld [vmem:[#allocation3 + $0x8] sm:$0xff] }
 0x364   : > { %3489 = vrot.lane.b32.xlu0 %v2870_v7, %s10002_s6  ;;  %v2894_v59 = vpop.permute.xlu1 %2893  ;;  %4039 = vmatprep.mubr.bf16.mxu0 %v3592_v54  ;;  %v3596_v8 = vld [vmem:[#allocation3 + $0x28] sm:$0xff]  ;;  %v11538_v54 = vld [vmem:[#allocation3 + $0x278] sm:$0xff] }
 0x365   : > { %v3084_v34 = vpop.permute.xlu0 %3083  ;;  %2938 = vst.msk [vmem:[#allocation3 + $0x78] sm:$0xff] %vm1064_vm3, %v2894_v59  ;;  %4040 = vmatmul.mubr.bf16.vlgmr.msra.gmra.mrb[96].mxu0 %v3591_v51 }
 0x366   : > { %3301 = vrot.lane.b32.xlu1 %v3254_v48, %s10002_s6  ;;  %3129 = vst.msk [vmem:[#allocation3 + $0x58] sm:$0xff] %vm1064_vm3, %v3084_v34  ;;  %9650 = vmatpush3.bf16.msra.mxu0 %v9824_v28  ;;  %v5795_v48 = vld [vmem:[#allocation2 + $0x19a] sm:$0xff] }
 0x367   : > { %v3597_v52 = vld [vmem:[#allocation3 + $0x30] sm:$0xff]  ;;  %9651 = vmatprep.subr.bf16.mxu0 %v9825_v1 }
 0x368   : > { %3491 = vrot.lane.b32.xlu0 %v3445_v62, %s10002_s6  ;;  %v2896_v5 = vpop.permute.xlu1 %2895  ;;  %4047 = vmatprep.mubr.bf16.mxu0 %v3597_v52  ;;  %v3601_v41 = vld [vmem:[#allocation3 + $0x50] sm:$0xff] }
 0x369   : > { %v3086_v21 = vpop.permute.xlu0 %3085  ;;  %2939 = vst.msk [vmem:[#allocation3 + $0xa0] sm:$0xff] %vm1064_vm3, %v2896_v5  ;;  %v5796_v62 = vld [vmem:[#allocation2 + $0x1a2] sm:$0xff] }
 0x36a   : > { %3130 = vst.msk [vmem:[#allocation3 + $0x80] sm:$0xff] %vm1064_vm3, %v3086_v21  ;;  %9652 = vmatpush3.bf16.msra.mxu0 %v9825_v1 }
 0x36b   : > { %9653 = vmatprep.subr.bf16.mxu0 %v9826_v6 }
 0x36c   : > { %3493 = vrot.lane.b32.xlu0 %v3446_v35, %s10002_s6  ;;  %v3606_v37 = vld [vmem:[#allocation3 + $0x78] sm:$0xff]  ;;  %v5812_v35 = vpack.c.bf16 %v5796_v62, %v5795_v48  ;;  %v3595_v62 = vld [vmem:[#allocation3 + $0x20] sm:$0xff] }
 0x36d   : > { %4048 = vmatmul.mubr.bf16.gmra.mrb[100].mxu0 %v3596_v8  ;;  %v3602_v32 = vld [vmem:[#allocation3 + $0x58] sm:$0xff] }
 0x36e   : > { %v3088_v26 = vpop.permute.xlu0 %3087  ;;  %v2898_v45 = vpop.permute.xlu1 %2897  ;;  %4055 = vmatprep.mubr.bf16.mxu0 %v3602_v32  ;;  %9654 = vmatpush3.bf16.msra.mxu0 %v9826_v6  ;;  %5828 = vst.msk [vmem:[#allocation3 + $0x278] sm:$0xff] %vm363_vm1, %v5812_v35 }
 0x36f   : > { %3131 = vst.msk [vmem:[#allocation3 + $0xa8] sm:$0xff] %vm1064_vm3, %v3088_v26  ;;  %2940 = vst.msk [vmem:[#allocation3 + $0xc8] sm:$0xff] %vm1064_vm3, %v2898_v45  ;;  %9655 = vmatprep.subr.bf16.mxu0 %v9827_v39 }
 0x370   : > { %v3611_v0 = vld [vmem:[#allocation3 + $0xa0] sm:$0xff] }
 0x371   : > { %v3607_v57 = vld [vmem:[#allocation3 + $0x80] sm:$0xff] }
 0x372   : > { %v3090_v29 = vpop.permute.xlu0 %3089  ;;  %v2900_v25 = vpop.permute.xlu1 %2899  ;;  %9656 = vmatpush3.bf16.msra.mxu0 %v9827_v39 }
 0x373   : > { %3132 = vst.msk [vmem:[#allocation3 + $0xd0] sm:$0xff] %vm1064_vm3, %v3090_v29  ;;  %2941 = vst.msk [vmem:[#allocation3 + $0xf0] sm:$0xff] %vm1064_vm3, %v2900_v25 }
 0x375   : > { %4056 = vmatmul.mubr.bf16.gmra.mrb[104].mxu0 %v3601_v41 }
 0x376   : > { %4063 = vmatprep.mubr.bf16.mxu0 %v3607_v57  ;;  %v3612_v36 = vld [vmem:[#allocation3 + $0xa8] sm:$0xff] }
 0x377   : > { %v3092_v4 = vpop.permute.xlu0 %3091  ;;  %v3616_v43 = vld [vmem:[#allocation3 + $0xc8] sm:$0xff] }
 0x378   : > { %v2902_v63 = vpop.permute.xlu1 %2901  ;;  %3133 = vst.msk [vmem:[#allocation3 + $0xf8] sm:$0xff] %vm1064_vm3, %v3092_v4 }
 0x379   : > { %2942 = vst.msk [vmem:[#allocation3 + $0x118] sm:$0xff] %vm1064_vm3, %v2902_v63 }
 0x37a   : > { %v3617_v3 = vld [vmem:[#allocation3 + $0xd0] sm:$0xff] }
 0x37b   : > { %v3094_v30 = vpop.permute.xlu0 %3093  ;;  %v3621_v60 = vld [vmem:[#allocation3 + $0xf0] sm:$0xff] }
 0x37c   : > { %v3464_v40 = vpop.permute.xlu1 %3463  ;;  %3134 = vst.msk [vmem:[#allocation3 + $0x120] sm:$0xff] %vm1064_vm3, %v3094_v30 }
 0x37d   : > { %3511 = vst.msk [vmem:[#allocation3 + $0x18] sm:$0xff] %vm1064_vm3, %v3464_v40  ;;  %4064 = vmatmul.mubr.bf16.gmra.mrb[108].mxu0 %v3606_v37 }
 0x37e   : > { %4071 = vmatprep.mubr.bf16.mxu0 %v3612_v36 }
 0x37f   : > { %v3096_v27 = vpop.permute.xlu0 %3095  ;;  %v3622_v58 = vld [vmem:[#allocation3 + $0xf8] sm:$0xff] }
 0x380   : > { %v3272_v14 = vpop.permute.xlu1 %3271  ;;  %3135 = vst.msk [vmem:[#allocation3 + $0x148] sm:$0xff] %vm1064_vm3, %v3096_v27  ;;  %v3626_v23 = vld [vmem:[#allocation3 + $0x118] sm:$0xff] }
 0x381   : > { %3319 = vst.msk [vmem:[#allocation3 + $0x10] sm:$0xff] %vm1064_vm3, %v3272_v14 }
 0x383   : > { %v2904_v13 = vpop.permute.xlu0 %2903  ;;  %v3627_v15 = vld [vmem:[#allocation3 + $0x120] sm:$0xff] }
 0x384   : > { %v3466_v61 = vpop.permute.xlu1 %3465  ;;  %v3594_v33 = vld [vmem:[#allocation3 + $0x18] sm:$0xff]  ;;  %2943 = vst.msk [vmem:[#allocation3 + $0x140] sm:$0xff] %vm1064_vm3, %v2904_v13 }
 0x385   : > { %3512 = vst.msk [vmem:[#allocation3 + $0x40] sm:$0xff] %vm1064_vm3, %v3466_v61  ;;  %4200 = vmatprep.mubr.bf16.mxu1 %v3594_v33  ;;  %4072 = vmatmul.mubr.bf16.gmra.mrb[112].mxu0 %v3611_v0 }
 0x386   : > { %4079 = vmatprep.mubr.bf16.mxu0 %v3617_v3 }
 0x387   : > { %v3098_v19 = vpop.permute.xlu0 %3097  ;;  %v3632_v46 = vld [vmem:[#allocation3 + $0x148] sm:$0xff] }
 0x388   : > { %v3274_v44 = vpop.permute.xlu1 %3273  ;;  %v3593_v55 = vld [vmem:[#allocation3 + $0x10] sm:$0xff]  ;;  %3136 = vst.msk [vmem:[#allocation3 + $0x170] sm:$0xff] %vm1064_vm3, %v3098_v19 }
 0x389   : > { %3320 = vst.msk [vmem:[#allocation3 + $0x38] sm:$0xff] %vm1064_vm3, %v3274_v44  ;;  %4201 = vmatmul.mubr.bf16.vlgmr.msra.gmra.mrb[96].mxu1 %v3593_v55 }
 0x38b   : > { %v2906_v11 = vpop.permute.xlu0 %2905  ;;  %v3631_v52 = vld [vmem:[#allocation3 + $0x140] sm:$0xff] }
 0x38c   : > { %v3468_v50 = vpop.permute.xlu1 %3467  ;;  %v3599_v17 = vld [vmem:[#allocation3 + $0x40] sm:$0xff]  ;;  %2944 = vst.msk [vmem:[#allocation3 + $0x168] sm:$0xff] %vm1064_vm3, %v2906_v11 }
 0x38d   : > { %3513 = vst.msk [vmem:[#allocation3 + $0x68] sm:$0xff] %vm1064_vm3, %v3468_v50  ;;  %4208 = vmatprep.mubr.bf16.mxu1 %v3599_v17  ;;  %4080 = vmatmul.mubr.bf16.gmra.mrb[116].mxu0 %v3616_v43 }
 0x38e   : > { %4087 = vmatprep.mubr.bf16.mxu0 %v3622_v58 }
 0x38f   : > { %v3100_v31 = vpop.permute.xlu0 %3099  ;;  %v3637_v6 = vld [vmem:[#allocation3 + $0x170] sm:$0xff] }
 0x390   : > { %v3276_v16 = vpop.permute.xlu1 %3275  ;;  %v3598_v38 = vld [vmem:[#allocation3 + $0x38] sm:$0xff]  ;;  %3137 = vst.msk [vmem:[#allocation3 + $0x198] sm:$0xff] %vm1064_vm3, %v3100_v31 }
 0x391   : > { %3321 = vst.msk [vmem:[#allocation3 + $0x60] sm:$0xff] %vm1064_vm3, %v3276_v16  ;;  %4209 = vmatmul.mubr.bf16.gmra.mrb[100].mxu1 %v3598_v38 }
 0x393   : > { %v2908_v49 = vpop.permute.xlu0 %2907  ;;  %v3636_v12 = vld [vmem:[#allocation3 + $0x168] sm:$0xff] }
 0x394   : > { %v3470_v47 = vpop.permute.xlu1 %3469  ;;  %v3604_v18 = vld [vmem:[#allocation3 + $0x68] sm:$0xff]  ;;  %2945 = vst.msk [vmem:[#allocation3 + $0x190] sm:$0xff] %vm1064_vm3, %v2908_v49 }
 0x395   : > { %3514 = vst.msk [vmem:[#allocation3 + $0x90] sm:$0xff] %vm1064_vm3, %v3470_v47  ;;  %4216 = vmatprep.mubr.bf16.mxu1 %v3604_v18  ;;  %4088 = vmatmul.mubr.bf16.gmra.mrb[120].mxu0 %v3621_v60 }
 0x396   : > { %4095 = vmatprep.mubr.bf16.mxu0 %v3627_v15 }
 0x397   : > { %v3642_v29 = vld [vmem:[#allocation3 + $0x198] sm:$0xff] }
 0x398   : > { %v3102_v9 = vpop.permute.xlu0 %3101  ;;  %v3278_v7 = vpop.permute.xlu1 %3277  ;;  %v3603_v28 = vld [vmem:[#allocation3 + $0x60] sm:$0xff] }
 0x399   : > { %3138 = vst.msk [vmem:[#allocation3 + $0x1c0] sm:$0xff] %vm1064_vm3, %v3102_v9  ;;  %3322 = vst.msk [vmem:[#allocation3 + $0x88] sm:$0xff] %vm1064_vm3, %v3278_v7  ;;  %4217 = vmatmul.mubr.bf16.gmra.mrb[104].mxu1 %v3603_v28 }
 0x39b   : > { %v3641_v30 = vld [vmem:[#allocation3 + $0x190] sm:$0xff] }
 0x39c   : > { %v3472_v53 = vpop.permute.xlu1 %3471  ;;  %v3609_v56 = vld [vmem:[#allocation3 + $0x90] sm:$0xff] }
 0x39d   : > { %3515 = vst.msk [vmem:[#allocation3 + $0xb8] sm:$0xff] %vm1064_vm3, %v3472_v53  ;;  %4224 = vmatprep.mubr.bf16.mxu1 %v3609_v56  ;;  %4096 = vmatmul.mubr.bf16.gmra.mrb[124].mxu0 %v3626_v23 }
 0x39e   : > { %v2910_v2 = vpop.permute.xlu0 %2909  ;;  %4103 = vmatprep.mubr.bf16.mxu0 %v3632_v46 }
 0x39f   : > { %2946 = vst.msk [vmem:[#allocation3 + $0x1b8] sm:$0xff] %vm1064_vm3, %v2910_v2 }
 0x3a0   : > { %v3280_v20 = vpop.permute.xlu1 %3279  ;;  %v3608_v24 = vld [vmem:[#allocation3 + $0x88] sm:$0xff]  ;;  %v3647_v40 = vld [vmem:[#allocation3 + $0x1c0] sm:$0xff] }
 0x3a1   : > { %3323 = vst.msk [vmem:[#allocation3 + $0xb0] sm:$0xff] %vm1064_vm3, %v3280_v20  ;;  %4225 = vmatmul.mubr.bf16.gmra.mrb[108].mxu1 %v3608_v24 }
 0x3a2   : > { %v3104_v42 = vpop.permute.xlu0 %3103 }
 0x3a3   : > { %3139 = vst.msk [vmem:[#allocation3 + $0x1e8] sm:$0xff] %vm1064_vm3, %v3104_v42 }
 0x3a4   : > { %v3474_v34 = vpop.permute.xlu1 %3473  ;;  %v3614_v59 = vld [vmem:[#allocation3 + $0xb8] sm:$0xff] }
 0x3a5   : > { %3516 = vst.msk [vmem:[#allocation3 + $0xe0] sm:$0xff] %vm1064_vm3, %v3474_v34  ;;  %4232 = vmatprep.mubr.bf16.mxu1 %v3614_v59  ;;  %4104 = vmatmul.mubr.bf16.gmra.mrb[128].mxu0 %v3631_v52  ;;  %v3605_v59 = vld [vmem:[#allocation3 + $0x70] sm:$0xff]  ;;  %v3615_v52 = vld [vmem:[#allocation3 + $0xc0] sm:$0xff] }
 0x3a6   : > { %v2912_v51 = vpop.permute.xlu0 %2911  ;;  %4111 = vmatprep.mubr.bf16.mxu0 %v3637_v6  ;;  %v3646_v33 = vld [vmem:[#allocation3 + $0x1b8] sm:$0xff] }
 0x3a7   : > { %2947 = vst.msk [vmem:[#allocation3 + $0x1e0] sm:$0xff] %vm1064_vm3, %v2912_v51  ;;  %v3600_v51 = vld [vmem:[#allocation3 + $0x48] sm:$0xff] }
 0x3a8   : > { %v3282_v21 = vpop.permute.xlu1 %3281  ;;  %v3613_v5 = vld [vmem:[#allocation3 + $0xb0] sm:$0xff] }
 0x3a9   : > { %3324 = vst.msk [vmem:[#allocation3 + $0xd8] sm:$0xff] %vm1064_vm3, %v3282_v21  ;;  %4233 = vmatmul.mubr.bf16.gmra.mrb[112].mxu1 %v3613_v5  ;;  %v3610_v21 = vld [vmem:[#allocation3 + $0x98] sm:$0xff] }
 0x3aa   : > { %v3106_v1 = vpop.permute.xlu0 %3105  ;;  %v3652_v19 = vld [vmem:[#allocation3 + $0x1e8] sm:$0xff] }
 0x3ab   : > { %3140 = vst.msk [vmem:[#allocation3 + $0x210] sm:$0xff] %vm1064_vm3, %v3106_v1 }
 0x3ac   : > { %v3476_v45 = vpop.permute.xlu1 %3475  ;;  %v3619_v39 = vld [vmem:[#allocation3 + $0xe0] sm:$0xff] }
 0x3ad   : > { %3517 = vst.msk [vmem:[#allocation3 + $0x108] sm:$0xff] %vm1064_vm3, %v3476_v45  ;;  %4240 = vmatprep.mubr.bf16.mxu1 %v3619_v39  ;;  %4112 = vmatmul.mubr.bf16.gmra.mrb[132].mxu0 %v3636_v12  ;;  %v3620_v45 = vld [vmem:[#allocation3 + $0xe8] sm:$0xff]  ;;  %v3625_v39 = vld [vmem:[#allocation3 + $0x110] sm:$0xff] }
 0x3ae   : > { %v2914_v26 = vpop.permute.xlu0 %2913  ;;  %4119 = vmatprep.mubr.bf16.mxu0 %v3642_v29  ;;  %v3651_v50 = vld [vmem:[#allocation3 + $0x1e0] sm:$0xff]  ;;  %v3640_v12 = vld [vmem:[#allocation3 + $0x188] sm:$0xff]  ;;  %v3645_v29 = vld [vmem:[#allocation3 + $0x1b0] sm:$0xff] }
 0x3af   : > { %2948 = vst.msk [vmem:[#allocation3 + $0x208] sm:$0xff] %vm1064_vm3, %v2914_v26 }
 0x3b0   : > { %v3284_v32 = vpop.permute.xlu1 %3283  ;;  %v3618_v22 = vld [vmem:[#allocation3 + $0xd8] sm:$0xff] }
 0x3b1   : > { %3325 = vst.msk [vmem:[#allocation3 + $0x100] sm:$0xff] %vm1064_vm3, %v3284_v32  ;;  %4241 = vmatmul.mubr.bf16.gmra.mrb[116].mxu1 %v3618_v22  ;;  %v3630_v32 = vld [vmem:[#allocation3 + $0x138] sm:$0xff]  ;;  %v3635_v22 = vld [vmem:[#allocation3 + $0x160] sm:$0xff] }
 0x3b2   : > { %v3108_v8 = vpop.permute.xlu0 %3107  ;;  %v3657_v31 = vld [vmem:[#allocation3 + $0x210] sm:$0xff] }
 0x3b3   : > { %3141 = vst.msk [vmem:[#allocation3 + $0x238] sm:$0xff] %vm1064_vm3, %v3108_v8 }
 0x3b4   : > { %v3478_v10 = vpop.permute.xlu1 %3477  ;;  %v3624_v4 = vld [vmem:[#allocation3 + $0x108] sm:$0xff] }
 0x3b5   : > { %3518 = vst.msk [vmem:[#allocation3 + $0x130] sm:$0xff] %vm1064_vm3, %v3478_v10  ;;  %4248 = vmatprep.mubr.bf16.mxu1 %v3624_v4  ;;  %4120 = vmatmul.mubr.bf16.gmra.mrb[136].mxu0 %v3641_v30  ;;  %v3655_v10 = vld [vmem:[#allocation3 + $0x200] sm:$0xff]  ;;  %v3660_v4 = vld [vmem:[#allocation3 + $0x228] sm:$0xff] }
 0x3b6   : > { %v2916_v25 = vpop.permute.xlu0 %2915  ;;  %4127 = vmatprep.mubr.bf16.mxu0 %v3647_v40  ;;  %v3656_v47 = vld [vmem:[#allocation3 + $0x208] sm:$0xff] }
 0x3b7   : > { %2949 = vst.msk [vmem:[#allocation3 + $0x230] sm:$0xff] %vm1064_vm3, %v2916_v25  ;;  %v3650_v25 = vld [vmem:[#allocation3 + $0x1d8] sm:$0xff] }
 0x3b8   : > { %v3286_v63 = vpop.permute.xlu1 %3285  ;;  %v3623_v57 = vld [vmem:[#allocation3 + $0x100] sm:$0xff] }
 0x3b9   : > { %3326 = vst.msk [vmem:[#allocation3 + $0x128] sm:$0xff] %vm1064_vm3, %v3286_v63  ;;  %4249 = vmatmul.mubr.bf16.gmra.mrb[120].mxu1 %v3623_v57  ;;  %v3665_v63 = vld [vmem:[#allocation3 + $0x250] sm:$0xff] }
 0x3ba   : > { %v3110_v41 = vpop.permute.xlu0 %3109  ;;  %v3662_v9 = vld [vmem:[#allocation3 + $0x238] sm:$0xff] }
 0x3bb   : > { %3142 = vst.msk [vmem:[#allocation3 + $0x260] sm:$0xff] %vm1064_vm3, %v3110_v41 }
 0x3bc   : > { %v3288_v27 = vpop.permute.xlu1 %3287  ;;  %v3629_v37 = vld [vmem:[#allocation3 + $0x130] sm:$0xff] }
 0x3bd   : > { %3327 = vst.msk [vmem:[#allocation3 + $0x150] sm:$0xff] %vm1064_vm3, %v3288_v27  ;;  %4256 = vmatprep.mubr.bf16.mxu1 %v3629_v37  ;;  %4128 = vmatmul.mubr.bf16.gmra.mrb[140].mxu0 %v3646_v33 }
 0x3be   : > { %v2918_v14 = vpop.permute.xlu0 %2917  ;;  %4135 = vmatprep.mubr.bf16.mxu0 %v3652_v19  ;;  %v3661_v53 = vld [vmem:[#allocation3 + $0x230] sm:$0xff] }
 0x3bf   : > { %2950 = vst.msk [vmem:[#allocation3 + $0x258] sm:$0xff] %vm1064_vm3, %v2918_v14 }
 0x3c0   : > { %v3290_v36 = vpop.permute.xlu1 %3289  ;;  %v3628_v61 = vld [vmem:[#allocation3 + $0x128] sm:$0xff] }
 0x3c1   : > { %3328 = vst.msk [vmem:[#allocation3 + $0x178] sm:$0xff] %vm1064_vm3, %v3290_v36  ;;  %4257 = vmatmul.mubr.bf16.gmra.mrb[124].mxu1 %v3628_v61 }
 0x3c2   : > { %v3480_v13 = vpop.permute.xlu0 %3479  ;;  %v3667_v42 = vld [vmem:[#allocation3 + $0x260] sm:$0xff] }
 0x3c3   : > { %3519 = vst.msk [vmem:[#allocation3 + $0x158] sm:$0xff] %vm1064_vm3, %v3480_v13 }
 0x3c4   : > { %v3292_v44 = vpop.permute.xlu1 %3291  ;;  %v3633_v17 = vld [vmem:[#allocation3 + $0x150] sm:$0xff] }
 0x3c5   : > { %3329 = vst.msk [vmem:[#allocation3 + $0x1a0] sm:$0xff] %vm1064_vm3, %v3292_v44  ;;  %4136 = vmatmul.mubr.bf16.gmra.mrb[144].mxu0 %v3651_v50 }
 0x3c6   : > { %v3482_v55 = vpop.permute.xlu0 %3481  ;;  %4143 = vmatprep.mubr.bf16.mxu0 %v3657_v31  ;;  %v3666_v23 = vld [vmem:[#allocation3 + $0x258] sm:$0xff] }
 0x3c7   : > { %3520 = vst.msk [vmem:[#allocation3 + $0x180] sm:$0xff] %vm1064_vm3, %v3482_v55 }
 0x3c8   : > { %v3294_v0 = vpop.permute.xlu1 %3293  ;;  %v3638_v18 = vld [vmem:[#allocation3 + $0x178] sm:$0xff] }
 0x3c9   : > { %3330 = vst.msk [vmem:[#allocation3 + $0x1c8] sm:$0xff] %vm1064_vm3, %v3294_v0 }
 0x3ca   : > { %v3484_v3 = vpop.permute.xlu0 %3483  ;;  %v3634_v11 = vld [vmem:[#allocation3 + $0x158] sm:$0xff] }
 0x3cb   : > { %3521 = vst.msk [vmem:[#allocation3 + $0x1a8] sm:$0xff] %vm1064_vm3, %v3484_v3  ;;  %4264 = vmatprep.mubr.bf16.mxu1 %v3634_v11 }
 0x3cc   : > { %4265 = vmatmul.mubr.bf16.gmra.mrb[128].mxu1 %v3633_v17  ;;  %v3296_v16 = vpop.permute.xlu1 %3295  ;;  %v3643_v56 = vld [vmem:[#allocation3 + $0x1a0] sm:$0xff] }
 0x3cd   : > { %3331 = vst.msk [vmem:[#allocation3 + $0x1f0] sm:$0xff] %vm1064_vm3, %v3296_v16  ;;  %4144 = vmatmul.mubr.bf16.gmra.mrb[148].mxu0 %v3656_v47 }
 0x3ce   : > { %v3486_v38 = vpop.permute.xlu0 %3485  ;;  %v3639_v43 = vld [vmem:[#allocation3 + $0x180] sm:$0xff]  ;;  %4151 = vmatprep.mubr.bf16.mxu0 %v3662_v9 }
 0x3cf   : > { %3522 = vst.msk [vmem:[#allocation3 + $0x1d0] sm:$0xff] %vm1064_vm3, %v3486_v38  ;;  %4272 = vmatprep.mubr.bf16.mxu1 %v3639_v43 }
 0x3d0   : > { %v3298_v58 = vpop.permute.xlu1 %3297  ;;  %v3648_v46 = vld [vmem:[#allocation3 + $0x1c8] sm:$0xff] }
 0x3d1   : > { %3332 = vst.msk [vmem:[#allocation3 + $0x218] sm:$0xff] %vm1064_vm3, %v3298_v58 }
 0x3d2   : > { %v3488_v49 = vpop.permute.xlu0 %3487  ;;  %v3644_v7 = vld [vmem:[#allocation3 + $0x1a8] sm:$0xff] }
 0x3d3   : > { %3523 = vst.msk [vmem:[#allocation3 + $0x1f8] sm:$0xff] %vm1064_vm3, %v3488_v49 }
 0x3d4   : > { %4273 = vmatmul.mubr.bf16.gmra.mrb[132].mxu1 %v3638_v18  ;;  %v3300_v28 = vpop.permute.xlu1 %3299  ;;  %v3653_v35 = vld [vmem:[#allocation3 + $0x1f0] sm:$0xff] }
 0x3d5   : > { %4280 = vmatprep.mubr.bf16.mxu1 %v3644_v7  ;;  %3333 = vst.msk [vmem:[#allocation3 + $0x240] sm:$0xff] %vm1064_vm3, %v3300_v28  ;;  %4152 = vmatmul.mubr.bf16.gmra.mrb[152].mxu0 %v3661_v53 }
 0x3d6   : > { %v3490_v60 = vpop.permute.xlu0 %3489  ;;  %v3649_v20 = vld [vmem:[#allocation3 + $0x1d0] sm:$0xff]  ;;  %4159 = vmatprep.mubr.bf16.mxu0 %v3667_v42 }
 0x3d7   : > { %3524 = vst.msk [vmem:[#allocation3 + $0x220] sm:$0xff] %vm1064_vm3, %v3490_v60 }
 0x3d8   : > { %v3302_v15 = vpop.permute.xlu1 %3301  ;;  %v3658_v1 = vld [vmem:[#allocation3 + $0x218] sm:$0xff] }
 0x3d9   : > { %3334 = vst.msk [vmem:[#allocation3 + $0x268] sm:$0xff] %vm1064_vm3, %v3302_v15 }
 0x3da   : > { %v3492_v2 = vpop.permute.xlu0 %3491  ;;  %v3654_v48 = vld [vmem:[#allocation3 + $0x1f8] sm:$0xff] }
 0x3db   : > { %3525 = vst.msk [vmem:[#allocation3 + $0x248] sm:$0xff] %vm1064_vm3, %v3492_v2 }
 0x3dc   : > { %4281 = vmatmul.mubr.bf16.gmra.mrb[136].mxu1 %v3643_v56  ;;  %v3663_v26 = vld [vmem:[#allocation3 + $0x240] sm:$0xff] }
 0x3dd   : > { %4288 = vmatprep.mubr.bf16.mxu1 %v3649_v20  ;;  %4160 = vmatmul.mubr.bf16.gmra.mrb[156].mxu0 %v3666_v23 }
 0x3de   : > { %v3494_v24 = vpop.permute.xlu0 %3493  ;;  %9657 = vmatprep.mubr.msk.bf16.mxu0 %vm363_vm1, %v3595_v62  ;;  %v3659_v34 = vld [vmem:[#allocation3 + $0x220] sm:$0xff] }
 0x3df   : > { %3526 = vst.msk [vmem:[#allocation3 + $0x270] sm:$0xff] %vm1064_vm3, %v3494_v24 }
 0x3e0   : > { %v3668_v8 = vld [vmem:[#allocation3 + $0x268] sm:$0xff] }
 0x3e2   : > { %v3664_v5 = vld [vmem:[#allocation3 + $0x248] sm:$0xff] }
 0x3e4   : > { %4289 = vmatmul.mubr.bf16.gmra.mrb[140].mxu1 %v3648_v46 }
 0x3e5   : > { %4296 = vmatprep.mubr.bf16.mxu1 %v3654_v48  ;;  %9658 = vmatmul.mubr.msk.bf16.vlgmr.msra.gmra.mrb[160].mxu0 %vm363_vm1, %v3600_v51 }
 0x3e6   : > { %9661 = vmatprep.mubr.msk.bf16.mxu0 %vm363_vm1, %v3605_v59  ;;  %v3669_v6 = vld [vmem:[#allocation3 + $0x270] sm:$0xff] }
 0x3ec   : > { %4297 = vmatmul.mubr.bf16.gmra.mrb[144].mxu1 %v3653_v35 }
 0x3ed   : > { %4304 = vmatprep.mubr.bf16.mxu1 %v3659_v34  ;;  %9662 = vmatmul.mubr.msk.bf16.gmra.mrb[164].mxu0 %vm363_vm1, %v3610_v21 }
 0x3ee   : > { %9665 = vmatprep.mubr.msk.bf16.mxu0 %vm363_vm1, %v3615_v52 }
 0x3f4   : > { %4305 = vmatmul.mubr.bf16.gmra.mrb[148].mxu1 %v3658_v1 }
 0x3f5   : > { %4312 = vmatprep.mubr.bf16.mxu1 %v3664_v5  ;;  %9666 = vmatmul.mubr.msk.bf16.gmra.mrb[168].mxu0 %vm363_vm1, %v3620_v45 }
 0x3f6   : > { %9669 = vmatprep.mubr.msk.bf16.mxu0 %vm363_vm1, %v3625_v39 }
 0x3fc   : > { %4313 = vmatmul.mubr.bf16.gmra.mrb[152].mxu1 %v3663_v26 }
 0x3fd   : > { %4320 = vmatprep.mubr.bf16.mxu1 %v3669_v6  ;;  %9670 = vmatmul.mubr.msk.bf16.gmra.mrb[172].mxu0 %vm363_vm1, %v3630_v32 }
 0x3fe   : > { %9673 = vmatprep.mubr.msk.bf16.mxu0 %vm363_vm1, %v3635_v22 }
 0x404   : > { %4321 = vmatmul.mubr.bf16.gmra.mrb[156].mxu1 %v3668_v8 }
 0x405   : > { %9674 = vmatmul.mubr.msk.bf16.gmra.mrb[176].mxu0 %vm363_vm1, %v3640_v12 }
 0x406   : > { %9677 = vmatprep.mubr.msk.bf16.mxu0 %vm363_vm1, %v3645_v29 }
 0x40d   : > { %9678 = vmatmul.mubr.msk.bf16.gmra.mrb[180].mxu0 %vm363_vm1, %v3650_v25 }
 0x40e   : > { %9681 = vmatprep.mubr.msk.bf16.mxu0 %vm363_vm1, %v3655_v10 }
 0x415   : > { %9682 = vmatmul.mubr.msk.bf16.gmra.mrb[184].mxu0 %vm363_vm1, %v3660_v4 }
 0x416   : > { %9685 = vmatprep.mubr.msk.bf16.mxu0 %vm363_vm1, %v3665_v63 }
 0x41d   : > { %9686 = vmatmul.mubr.msk.bf16.gmra.mrb[188].mxu0 %vm363_vm1, %v11538_v54 }
 0x438   : > { %v8991_v41 = vpop.f32.mrb[96].mxu0 }
 0x439   : > { %v8992_v57 = vpop.f32.mrb[97].mxu0 }
 0x43a   : > { %v8993_v30 = vadd.f32 %v8992_v57, %v8991_v41  ;;  %v8994_v40 = vpop.f32.mrb[98].mxu0 }
 0x43b   : > { %v8995_v27 = vpop.f32.mrb[99].mxu0 }
 0x43c   : > { %v8996_v14 = vadd.f32 %v8995_v27, %v8994_v40 }
 0x440   : > { %v8997_v37 = vpop.f32.mrb[100].mxu0 }
 0x441   : > { %v8998_v36 = vpop.f32.mrb[101].mxu0 }
 0x442   : > { %v8999_v13 = vadd.f32 %v8998_v36, %v8997_v37  ;;  %v9000_v61 = vpop.f32.mrb[102].mxu0 }
 0x443   : > { %v9001_v33 = vpop.f32.mrb[103].mxu0 }
 0x444   : > { %v9002_v19 = vadd.f32 %v9001_v33, %v9000_v61 }
 0x448   : > { %v9003_v44 = vpop.f32.mrb[104].mxu0 }
 0x449   : > { %v9004_v55 = vpop.f32.mrb[105].mxu0 }
 0x44a   : > { %v9005_v0 = vadd.f32 %v9004_v55, %v9003_v44  ;;  %v9006_v3 = vpop.f32.mrb[106].mxu0 }
 0x44b   : > { %v9007_v11 = vpop.f32.mrb[107].mxu0 }
 0x44c   : > { %v9008_v50 = vadd.f32 %v9007_v11, %v9006_v3 }
 0x450   : > { %v9009_v17 = vpop.f32.mrb[108].mxu0 }
 0x451   : > { %v9010_v54 = vpop.f32.mrb[109].mxu0 }
 0x452   : > { %v9011_v31 = vadd.f32 %v9010_v54, %v9009_v17  ;;  %v9012_v16 = vpop.f32.mrb[110].mxu0 }
 0x453   : > { %v9013_v38 = vpop.f32.mrb[111].mxu0 }
 0x454   : > { %v9014_v43 = vadd.f32 %v9013_v38, %v9012_v16 }
 0x458   : > { %v9015_v49 = vpop.f32.mrb[112].mxu0 }
 0x459   : > { %v9016_v9 = vpop.f32.mrb[113].mxu0 }
 0x45a   : > { %v9017_v28 = vadd.f32 %v9016_v9, %v9015_v49  ;;  %v9018_v60 = vpop.f32.mrb[114].mxu0 }
 0x45b   : > { %v9019_v53 = vpop.f32.mrb[115].mxu0 }
 0x45c   : > { %v9103_v58 = vpop.f32.mrb[96].mxu1  ;;  %v9020_v42 = vadd.f32 %v9019_v53, %v9018_v60 }
 0x45d   : > { %v9104_v47 = vpop.f32.mrb[97].mxu1 }
 0x45e   : > { %v9105_v18 = vadd.f32 %v9104_v47, %v9103_v58  ;;  %v9106_v7 = vpop.f32.mrb[98].mxu1 }
 0x45f   : > { %v9107_v15 = vpop.f32.mrb[99].mxu1 }
 0x460   : > { %v9108_v2 = vadd.f32 %v9107_v15, %v9106_v7  ;;  %v11587_v56 = vadd.f32 %v9105_v18, %v8993_v30  ;;  %v9021_v23 = vpop.f32.mrb[116].mxu0 }
 0x461   : > { %v9022_v62 = vpop.f32.mrb[117].mxu0 }
 0x462   : > { %v11589_v20 = vadd.f32 %v9108_v2, %v8996_v14  ;;  %v9023_v51 = vadd.f32 %v9022_v62, %v9021_v23  ;;  %v9024_v34 = vpop.f32.mrb[118].mxu0 }
 0x463   : > { %v9025_v21 = vpop.f32.mrb[119].mxu0 }
 0x464   : > { %v9109_v24 = vpop.f32.mrb[100].mxu1  ;;  %v9026_v52 = vadd.f32 %v9025_v21, %v9024_v34 }
 0x465   : > { %v9110_v46 = vpop.f32.mrb[101].mxu1 }
 0x466   : > { %v9111_v48 = vadd.f32 %v9110_v46, %v9109_v24  ;;  %v9112_v35 = vpop.f32.mrb[102].mxu1 }
 0x467   : > { %v9113_v59 = vpop.f32.mrb[103].mxu1 }
 0x468   : > { %v9114_v1 = vadd.f32 %v9113_v59, %v9112_v35  ;;  %v11591_v5 = vadd.f32 %v9111_v48, %v8999_v13  ;;  %v9027_v45 = vpop.f32.mrb[120].mxu0 }
 0x469   : > { %v9028_v32 = vpop.f32.mrb[121].mxu0 }
 0x46a   : > { %v11593_v6 = vadd.f32 %v9114_v1, %v9002_v19  ;;  %v11595_v12 = vadd.f32 %v9028_v32, %v9027_v45  ;;  %v9030_v29 = vpop.f32.mrb[122].mxu0 }
 0x46b   : > { %v9031_v4 = vpop.f32.mrb[123].mxu0 }
 0x46c   : > { %v9115_v26 = vpop.f32.mrb[104].mxu1  ;;  %v9032_v41 = vadd.f32 %v9031_v4, %v9030_v29 }
 0x46d   : > { %v9116_v39 = vpop.f32.mrb[105].mxu1 }
 0x46e   : > { %v9117_v8 = vadd.f32 %v9116_v39, %v9115_v26  ;;  %v9118_v22 = vpop.f32.mrb[106].mxu1 }
 0x46f   : > { %v9119_v25 = vpop.f32.mrb[107].mxu1 }
 0x470   : > { %v9120_v10 = vadd.f32 %v9119_v25, %v9118_v22  ;;  %v11597_v63 = vadd.f32 %v9117_v8, %v9005_v0  ;;  %v9033_v40 = vpop.f32.mrb[124].mxu0 }
 0x471   : > { %v9034_v37 = vpop.f32.mrb[125].mxu0 }
 0x472   : > { %v11599_v57 = vadd.f32 %v9120_v10, %v9008_v50  ;;  %v11601_v13 = vadd.f32 %v9034_v37, %v9033_v40  ;;  %v9036_v61 = vpop.f32.mrb[126].mxu0 }
 0x473   : > { %v9037_v44 = vpop.f32.mrb[127].mxu0 }
 0x474   : > { %v9121_v30 = vpop.f32.mrb[108].mxu1  ;;  %v9038_v3 = vadd.f32 %v9037_v44, %v9036_v61 }
 0x475   : > { %v9122_v27 = vpop.f32.mrb[109].mxu1 }
 0x476   : > { %v9123_v14 = vadd.f32 %v9122_v27, %v9121_v30  ;;  %v9124_v36 = vpop.f32.mrb[110].mxu1 }
 0x477   : > { %v9125_v33 = vpop.f32.mrb[111].mxu1 }
 0x478   : > { %v9126_v19 = vadd.f32 %v9125_v33, %v9124_v36  ;;  %v11603_v55 = vadd.f32 %v9123_v14, %v9011_v31  ;;  %v9039_v50 = vpop.f32.mrb[128].mxu0 }
 0x479   : > { %v9040_v16 = vpop.f32.mrb[129].mxu0 }
 0x47a   : > { %v11605_v0 = vadd.f32 %v9126_v19, %v9014_v43  ;;  %v11607_v58 = vadd.f32 %v9040_v16, %v9039_v50  ;;  %v9042_v49 = vpop.f32.mrb[130].mxu0 }
 0x47b   : > { %v9043_v9 = vpop.f32.mrb[131].mxu0 }
 0x47c   : > { %v9127_v11 = vpop.f32.mrb[112].mxu1  ;;  %v9044_v60 = vadd.f32 %v9043_v9, %v9042_v49 }
 0x47d   : > { %v9128_v17 = vpop.f32.mrb[113].mxu1 }
 0x47e   : > { %v9129_v54 = vadd.f32 %v9128_v17, %v9127_v11  ;;  %v9130_v38 = vpop.f32.mrb[114].mxu1 }
 0x47f   : > { %v9131_v47 = vpop.f32.mrb[115].mxu1 }
 0x480   : > { %v9132_v18 = vadd.f32 %v9131_v47, %v9130_v38  ;;  %v11609_v7 = vadd.f32 %v9129_v54, %v9017_v28  ;;  %v9045_v43 = vpop.f32.mrb[132].mxu0  ;;  %v9830_v28 = vld [vmem:[%s13754_s9 + $0x4] ss:$8 sps:$4 sm:$0xff]  }
 0x481   : > { %v9046_v24 = vpop.f32.mrb[133].mxu0  ;;  %4836 = vmatprep.mubr.bf16.mxu1 %v9830_v28 }
 0x482   : > { %v11611_v31 = vadd.f32 %v9132_v18, %v9020_v42  ;;  %v11613_v46 = vadd.f32 %v9046_v24, %v9045_v43  ;;  %v9048_v48 = vpop.f32.mrb[134].mxu0 }
 0x483   : > { %v9049_v34 = vpop.f32.mrb[135].mxu0 }
 0x484   : > { %v9133_v15 = vpop.f32.mrb[116].mxu1  ;;  %v9050_v42 = vadd.f32 %v9049_v34, %v9048_v48 }
 0x485   : > { %v9134_v2 = vpop.f32.mrb[117].mxu1 }
 0x486   : > { %v9135_v53 = vadd.f32 %v9134_v2, %v9133_v15  ;;  %v9136_v23 = vpop.f32.mrb[118].mxu1 }
 0x487   : > { %v9137_v62 = vpop.f32.mrb[119].mxu1 }
 0x488   : > { %v9138_v35 = vadd.f32 %v9137_v62, %v9136_v23  ;;  %v11615_v59 = vadd.f32 %v9135_v53, %v9023_v51  ;;  %v9051_v26 = vpop.f32.mrb[136].mxu0 }
 0x489   : > { %v9052_v8 = vpop.f32.mrb[137].mxu0 }
 0x48a   : > { %v11620_v1 = vadd.f32 %v9138_v35, %v9026_v52  ;;  %v9053_v22 = vadd.f32 %v9052_v8, %v9051_v26  ;;  %v9054_v29 = vpop.f32.mrb[138].mxu0 }
 0x48b   : > { %v9055_v51 = vpop.f32.mrb[139].mxu0 }
 0x48c   : > { %v9139_v21 = vpop.f32.mrb[120].mxu1  ;;  %v9056_v30 = vadd.f32 %v9055_v51, %v9054_v29 }
 0x48d   : > { %v9140_v45 = vpop.f32.mrb[121].mxu1 }
 0x48e   : > { %v9141_v39 = vadd.f32 %v9140_v45, %v9139_v21  ;;  %v9142_v32 = vpop.f32.mrb[122].mxu1 }
 0x48f   : > { %v9143_v25 = vpop.f32.mrb[123].mxu1 }
 0x490   : > { %v9144_v10 = vadd.f32 %v9143_v25, %v9142_v32  ;;  %v11623_v4 = vadd.f32 %v9141_v39, %v11595_v12  ;;  %v9057_v27 = vpop.f32.mrb[140].mxu0 }
 0x491   : > { %v9058_v36 = vpop.f32.mrb[141].mxu0 }
 0x492   : > { %v11625_v40 = vadd.f32 %v9144_v10, %v9032_v41  ;;  %v9059_v33 = vadd.f32 %v9058_v36, %v9057_v27  ;;  %v9060_v19 = vpop.f32.mrb[142].mxu0 }
 0x493   : > { %v9061_v50 = vpop.f32.mrb[143].mxu0 }
 0x494   : > { %v9145_v52 = vpop.f32.mrb[124].mxu1  ;;  %v9062_v54 = vadd.f32 %v9061_v50, %v9060_v19 }
 0x495   : > { %v9146_v14 = vpop.f32.mrb[125].mxu1 }
 0x496   : > { %v9147_v37 = vadd.f32 %v9146_v14, %v9145_v52  ;;  %v9148_v61 = vpop.f32.mrb[126].mxu1 }
 0x497   : > { %v9149_v44 = vpop.f32.mrb[127].mxu1 }
 0x498   : > { %v9150_v11 = vadd.f32 %v9149_v44, %v9148_v61  ;;  %v11628_v17 = vadd.f32 %v9147_v37, %v11601_v13  ;;  %v9063_v16 = vpop.f32.mrb[144].mxu0 }
 0x499   : > { %v9064_v38 = vpop.f32.mrb[145].mxu0 }
 0x49a   : > { %v11630_v12 = vadd.f32 %v9150_v11, %v9038_v3  ;;  %v11632_v47 = vadd.f32 %v9064_v38, %v9063_v16  ;;  %v9066_v9 = vpop.f32.mrb[146].mxu0 }
 0x49b   : > { %v9067_v43 = vpop.f32.mrb[147].mxu0 }
 0x49c   : > { %v11634_v53 = vadd.f32 %v9067_v43, %v9066_v9 }
 0x49f   : > { %v9151_v41 = vpop.f32.mrb[128].mxu1 }
 0x4a0   : > { %v9152_v49 = vpop.f32.mrb[129].mxu1  ;;  %v9069_v3 = vpop.f32.mrb[148].mxu0 }
 0x4a1   : > { %v9153_v18 = vadd.f32 %v9152_v49, %v9151_v41  ;;  %v9154_v15 = vpop.f32.mrb[130].mxu1  ;;  %v9070_v62 = vpop.f32.mrb[149].mxu0 }
 0x4a2   : > { %v9155_v2 = vpop.f32.mrb[131].mxu1  ;;  %v11641_v34 = vadd.f32 %v9070_v62, %v9069_v3  ;;  %v9072_v21 = vpop.f32.mrb[150].mxu0  ;;  %v11669_v62 = vld [vmem:[%s13752_s7 + $0x2] ss:$0 sm:$0xff] }
 0x4a3   : > { %v9156_v24 = vadd.f32 %v9155_v2, %v9154_v15  ;;  %v11637_v13 = vadd.f32 %v9153_v18, %v11607_v58  ;;  %v9073_v45 = vpop.f32.mrb[151].mxu0 }
 0x4a4   : > { %v11643_v8 = vadd.f32 %v9073_v45, %v9072_v21 }
 0x4a5   : > { %v11639_v23 = vadd.f32 %v9156_v24, %v9044_v60 }
 0x4a7   : > { %v9157_v48 = vpop.f32.mrb[132].mxu1 }
 0x4a8   : > { %v9158_v35 = vpop.f32.mrb[133].mxu1  ;;  %v9075_v60 = vpop.f32.mrb[152].mxu0 }
 0x4a9   : > { %v9159_v28 = vadd.f32 %v9158_v35, %v9157_v48  ;;  %v9160_v26 = vpop.f32.mrb[134].mxu1  ;;  %v9076_v10 = vpop.f32.mrb[153].mxu0 }
 0x4aa   : > { %v9161_v39 = vpop.f32.mrb[135].mxu1  ;;  %v11650_v52 = vadd.f32 %v9076_v10, %v9075_v60  ;;  %v9078_v14 = vpop.f32.mrb[154].mxu0 }
 0x4ab   : > { %v9162_v32 = vadd.f32 %v9161_v39, %v9160_v26  ;;  %v11646_v29 = vadd.f32 %v9159_v28, %v11613_v46  ;;  %v9079_v36 = vpop.f32.mrb[155].mxu0  ;;  %v11675_v26 = vld [vmem:[%s13753_s8 + $0x2] ss:$0 sm:$0xff] }
 0x4ac   : > { %v11652_v19 = vadd.f32 %v9079_v36, %v9078_v14 }
 0x4ad   : > { %v11648_v58 = vadd.f32 %v9162_v32, %v9050_v42 }
 0x4af   : > { %v9163_v25 = vpop.f32.mrb[136].mxu1 }
 0x4b0   : > { %v9164_v51 = vpop.f32.mrb[137].mxu1  ;;  %v9081_v42 = vpop.f32.mrb[156].mxu0 }
 0x4b1   : > { %v9165_v27 = vadd.f32 %v9164_v51, %v9163_v25  ;;  %v9166_v37 = vpop.f32.mrb[138].mxu1  ;;  %v9082_v16 = vpop.f32.mrb[157].mxu0 }
 0x4b2   : > { %v9167_v61 = vpop.f32.mrb[139].mxu1  ;;  %v11658_v38 = vadd.f32 %v9082_v16, %v9081_v42  ;;  %v9084_v18 = vpop.f32.mrb[158].mxu0 }
 0x4b3   : > { %v9168_v44 = vadd.f32 %v9167_v61, %v9166_v37  ;;  %v11654_v11 = vadd.f32 %v9165_v27, %v9053_v22  ;;  %v9085_v15 = vpop.f32.mrb[159].mxu0 }
 0x4b4   : > { %v11660_v2 = vadd.f32 %v9085_v15, %v9084_v18 }
 0x4b5   : > { %v11656_v46 = vadd.f32 %v9168_v44, %v9056_v30 }
 0x4b7   : > { %v9169_v50 = vpop.f32.mrb[140].mxu1 }
 0x4b8   : > { %v9170_v41 = vpop.f32.mrb[141].mxu1  ;;  %v9659_v48 = vpop.f32.mrb[160].mxu0 }
 0x4b9   : > { %v9171_v49 = vadd.f32 %v9170_v41, %v9169_v50  ;;  %v9172_v9 = vpop.f32.mrb[142].mxu1  ;;  %v4372_v35 = vadd.f32 %v9659_v48, %v11591_v5  ;;  %v4363_v21 = vpop.f32.mrb[161].mxu0 }
 0x4ba   : > { %v9173_v43 = vpop.f32.mrb[143].mxu1  ;;  %v9660_v39 = vpop.f32.mrb[162].mxu0 }
 0x4bb   : > { %v9174_v24 = vadd.f32 %v9173_v43, %v9172_v9  ;;  %v11662_v3 = vadd.f32 %v9171_v49, %v9059_v33  ;;  %v4497_v32 = vmul.f32 %v11669_v62, %v4372_v35  ;;  %v4375_v60 = vadd.f32 %v9660_v39, %v11593_v6  ;;  %v4366_v10 = vpop.f32.mrb[163].mxu0 }
 0x4bc   : > { %v4367_v27 = vadd.f32 %v4366_v10, %v11589_v20 }
 0x4bd   : > { %v11664_v22 = vadd.f32 %v9174_v24, %v9062_v54  ;;  %v4364_v54 = vadd.f32 %v4363_v21, %v11587_v56  ;;  %v4534_v37 = vadd.f32 %v11675_v26, %v4497_v32  ;;  %v4498_v56 = vmul.f32 %v11669_v62, %v4375_v60 }
 0x4be   : > { %v4496_v61 = vmul.f32 %v11669_v62, %v4367_v27 }
 0x4bf   : > { %v9175_v30 = vpop.f32.mrb[144].mxu1  ;;  %v4495_v5 = vmul.f32 %v11669_v62, %v4364_v54  ;;  %v4535_v44 = vadd.f32 %v11675_v26, %v4498_v56  ;;  %v4566_v16 = vmax.f32 %v4534_v37, 0.0 }
 0x4c0   : > { %v9176_v28 = vpop.f32.mrb[145].mxu1  ;;  %v4533_v42 = vadd.f32 %v11675_v26, %v4496_v61  ;;  %v9663_v20 = vpop.f32.mrb[164].mxu0 }
 0x4c1   : > { %v9177_v33 = vadd.f32 %v9176_v28, %v9175_v30  ;;  %v9178_v45 = vpop.f32.mrb[146].mxu1  ;;  %v4532_v36 = vadd.f32 %v11675_v26, %v4495_v5  ;;  %v4388_v41 = vadd.f32 %v9663_v20, %v11603_v55  ;;  %v4379_v18 = vpop.f32.mrb[165].mxu0 }
 0x4c2   : > { %v9179_v25 = vpop.f32.mrb[147].mxu1  ;;  %v4565_v15 = vmax.f32 %v4533_v42, 0.0  ;;  %v4380_v24 = vadd.f32 %v4379_v18, %v11597_v63 }
 0x4c3   : > { %v9180_v51 = vadd.f32 %v9179_v25, %v9178_v45  ;;  %v11683_v14 = vadd.f32 %v9177_v33, %v11632_v47  ;;  %v4567_v47 = vmax.f32 %v4535_v44, 0.0  ;;  %v4564_v9 = vmax.f32 %v4532_v36, 0.0 }
 0x4c4   : > { %v4501_v35 = vmul.f32 %v11669_v62, %v4388_v41  ;;  %v4499_v55 = vmul.f32 %v11669_v62, %v4380_v24 }
 0x4c5   : > { %v11690_v6 = vadd.f32 %v9180_v51, %v11634_v53  ;;  %v9664_v53 = vpop.f32.mrb[166].mxu0  ;;  %v11696_v48 = vpack.c.bf16 %v4567_v47, %v4566_v16  ;;  %v11700_v54 = vpack.c.bf16 %v4565_v15, %v4564_v9 }
 0x4c6   : > { %v4391_v28 = vadd.f32 %v9664_v53, %v11605_v0  ;;  %v4382_v33 = vpop.f32.mrb[167].mxu0  ;;  %v4538_v32 = vadd.f32 %v11675_v26, %v4501_v35  ;;  %v4536_v25 = vadd.f32 %v11675_v26, %v4499_v55 }
 0x4c7   : > { %v9181_v50 = vpop.f32.mrb[148].mxu1  ;;  %v4383_v39 = vadd.f32 %v4382_v33, %v11599_v57 }
 0x4c8   : > { %v9182_v49 = vpop.f32.mrb[149].mxu1  ;;  %v4502_v63 = vmul.f32 %v11669_v62, %v4391_v28  ;;  %v9667_v57 = vpop.f32.mrb[168].mxu0  ;;  %v4570_v37 = vmax.f32 %v4538_v32, 0.0  ;;  %v4568_v44 = vmax.f32 %v4536_v25, 0.0 }
 0x4c9   : > { %v9183_v43 = vadd.f32 %v9182_v49, %v9181_v50  ;;  %v9184_v30 = vpop.f32.mrb[150].mxu1  ;;  %v4500_v0 = vmul.f32 %v11669_v62, %v4383_v39  ;;  %v4404_v36 = vadd.f32 %v9667_v57, %v11615_v59 }
 0x4ca   : > { %v9185_v21 = vpop.f32.mrb[151].mxu1  ;;  %v4539_v5 = vadd.f32 %v11675_v26, %v4502_v63 }
 0x4cb   : > { %v9186_v45 = vadd.f32 %v9185_v21, %v9184_v30  ;;  %v11707_v60 = vadd.f32 %v9183_v43, %v11641_v34  ;;  %v4537_v51 = vadd.f32 %v11675_v26, %v4500_v0  ;;  %v4395_v34 = vpop.f32.mrb[169].mxu0  ;;  %v4505_v41 = vmul.f32 %v11669_v62, %v4404_v36 }
 0x4cc   : > { %v4571_v56 = vmax.f32 %v4539_v5, 0.0  ;;  %v4396_v20 = vadd.f32 %v4395_v34, %v11609_v7 }
 0x4cd   : > { %v11712_v10 = vadd.f32 %v9186_v45, %v11643_v8  ;;  %v4569_v42 = vmax.f32 %v4537_v51, 0.0  ;;  %v9668_v8 = vpop.f32.mrb[170].mxu0  ;;  %v4542_v30 = vadd.f32 %v11675_v26, %v4505_v41 }
 0x4ce   : > { %v11718_v47 = vpack.c.bf16 %v4571_v56, %v4570_v37  ;;  %v4407_v49 = vadd.f32 %v9668_v8, %v11620_v1  ;;  %v4398_v9 = vpop.f32.mrb[171].mxu0  ;;  %v4503_v59 = vmul.f32 %v11669_v62, %v4396_v20 }
 0x4cf   : > { %v9187_v27 = vpop.f32.mrb[152].mxu1  ;;  %v11722_v15 = vpack.c.bf16 %v4569_v42, %v4568_v44  ;;  %v4399_v24 = vadd.f32 %v4398_v9, %v11611_v31  ;;  %v4574_v45 = vmax.f32 %v4542_v30, 0.0 }
 0x4d0   : > { %v9188_v61 = vpop.f32.mrb[153].mxu1  ;;  %v4506_v7 = vmul.f32 %v11669_v62, %v4407_v49  ;;  %v4540_v35 = vadd.f32 %v11675_v26, %v4503_v59  ;;  %v9671_v31 = vpop.f32.mrb[172].mxu0 }
 0x4d1   : > { %v9189_v50 = vadd.f32 %v9188_v61, %v9187_v27  ;;  %v9190_v16 = vpop.f32.mrb[154].mxu1  ;;  %v4504_v1 = vmul.f32 %v11669_v62, %v4399_v24  ;;  %v4420_v32 = vadd.f32 %v9671_v31, %v11628_v17 }
 0x4d2   : > { %v9191_v18 = vpop.f32.mrb[155].mxu1  ;;  %v4543_v21 = vadd.f32 %v11675_v26, %v4506_v7  ;;  %v4572_v25 = vmax.f32 %v4540_v35, 0.0 }
 0x4d3   : > { %v9192_v43 = vadd.f32 %v9191_v18, %v9190_v16  ;;  %v11729_v53 = vadd.f32 %v9189_v50, %v11650_v52  ;;  %v4541_v33 = vadd.f32 %v11675_v26, %v4504_v1  ;;  %v4411_v52 = vpop.f32.mrb[173].mxu0  ;;  %v4509_v37 = vmul.f32 %v11669_v62, %v4420_v32 }
 0x4d4   : > { %v4575_v39 = vmax.f32 %v4543_v21, 0.0  ;;  %v4412_v51 = vadd.f32 %v4411_v52, %v11623_v4 }
 0x4d5   : > { %v11734_v28 = vadd.f32 %v9192_v43, %v11652_v19  ;;  %v4573_v0 = vmax.f32 %v4541_v33, 0.0  ;;  %v9672_v19 = vpop.f32.mrb[174].mxu0  ;;  %v4546_v50 = vadd.f32 %v11675_v26, %v4509_v37 }
 0x4d6   : > { %v11740_v57 = vpack.c.bf16 %v4575_v39, %v4574_v45  ;;  %v4423_v56 = vadd.f32 %v9672_v19, %v11630_v12  ;;  %v4414_v61 = vpop.f32.mrb[175].mxu0  ;;  %v4507_v17 = vmul.f32 %v11669_v62, %v4412_v51 }
 0x4d7   : > { %v9193_v55 = vpop.f32.mrb[156].mxu1  ;;  %v11744_v34 = vpack.c.bf16 %v4573_v0, %v4572_v25  ;;  %v4415_v42 = vadd.f32 %v4414_v61, %v11625_v40  ;;  %v4578_v40 = vmax.f32 %v4546_v50, 0.0 }
 0x4d8   : > { %v9194_v63 = vpop.f32.mrb[157].mxu1  ;;  %v4510_v4 = vmul.f32 %v11669_v62, %v4423_v56  ;;  %v4544_v16 = vadd.f32 %v11675_v26, %v4507_v17  ;;  %v9675_v18 = vpop.f32.mrb[176].mxu0 }
 0x4d9   : > { %v9195_v5 = vadd.f32 %v9194_v63, %v9193_v55  ;;  %v9196_v27 = vpop.f32.mrb[158].mxu1  ;;  %v4508_v12 = vmul.f32 %v11669_v62, %v4415_v42  ;;  %v4436_v59 = vadd.f32 %v9675_v18, %v11646_v29  ;;  %v4427_v43 = vpop.f32.mrb[177].mxu0 }
 0x4da   : > { %v9197_v36 = vpop.f32.mrb[159].mxu1  ;;  %v4547_v41 = vadd.f32 %v11675_v26, %v4510_v4  ;;  %v4576_v24 = vmax.f32 %v4544_v16, 0.0  ;;  %v4428_v30 = vadd.f32 %v4427_v43, %v11637_v13  ;;  %v9676_v7 = vpop.f32.mrb[178].mxu0 }
 0x4db   : > { %v9198_v44 = vadd.f32 %v9197_v36, %v9196_v27  ;;  %v11751_v20 = vadd.f32 %v9195_v5, %v11658_v38  ;;  %v4545_v49 = vadd.f32 %v11675_v26, %v4508_v12  ;;  %v4439_v1 = vadd.f32 %v9676_v7, %v11648_v58  ;;  %v4430_v21 = vpop.f32.mrb[179].mxu0 }
 0x4dc   : > { %v4579_v9 = vmax.f32 %v4547_v41, 0.0  ;;  %v4511_v55 = vmul.f32 %v11669_v62, %v4428_v30  ;;  %v4431_v31 = vadd.f32 %v4430_v21, %v11639_v23 }
 0x4dd   : > { %v11756_v8 = vadd.f32 %v9198_v44, %v11660_v2  ;;  %v4577_v38 = vmax.f32 %v4545_v49, 0.0  ;;  %v4513_v2 = vmul.f32 %v11669_v62, %v4436_v59  ;;  %v4514_v45 = vmul.f32 %v11669_v62, %v4439_v1 }
 0x4de   : > { %v11762_v35 = vpack.c.bf16 %v4579_v9, %v4578_v40  ;;  %v4548_v13 = vadd.f32 %v11675_v26, %v4511_v55  ;;  %v4512_v39 = vmul.f32 %v11669_v62, %v4431_v31 }
 0x4df   : > { %v11766_v33 = vpack.c.bf16 %v4577_v38, %v4576_v24  ;;  %v4550_v29 = vadd.f32 %v11675_v26, %v4513_v2  ;;  %v4551_v32 = vadd.f32 %v11675_v26, %v4514_v45 }
 0x4e0   : > { %v4549_v63 = vadd.f32 %v11675_v26, %v4512_v39  ;;  %v9679_v58 = vpop.f32.mrb[180].mxu0  ;;  %v4580_v51 = vmax.f32 %v4548_v13, 0.0 }
 0x4e1   : > { %v4582_v52 = vmax.f32 %v4550_v29, 0.0  ;;  %v4583_v25 = vmax.f32 %v4551_v32, 0.0  ;;  %v4452_v0 = vadd.f32 %v9679_v58, %v11662_v3  ;;  %v4443_v5 = vpop.f32.mrb[181].mxu0 }
 0x4e2   : > { %v4581_v23 = vmax.f32 %v4549_v63, 0.0  ;;  %v4444_v27 = vadd.f32 %v4443_v5, %v11654_v11  ;;  %v9680_v19 = vpop.f32.mrb[182].mxu0 }
 0x4e3   : > { %v4517_v37 = vmul.f32 %v11669_v62, %v4452_v0  ;;  %v4455_v56 = vadd.f32 %v9680_v19, %v11664_v22  ;;  %v4446_v36 = vpop.f32.mrb[183].mxu0  ;;  %v4637_v61 = vpack.c.bf16 %v4583_v25, %v4582_v52 }
 0x4e4   : > { %v4515_v17 = vmul.f32 %v11669_v62, %v4444_v27  ;;  %v4447_v44 = vadd.f32 %v4446_v36, %v11656_v46  ;;  %v4636_v42 = vpack.c.bf16 %v4581_v23, %v4580_v51 }
 0x4e5   : > { %v4554_v50 = vadd.f32 %v11675_v26, %v4517_v37  ;;  %v4518_v3 = vmul.f32 %v11669_v62, %v4455_v56 }
 0x4e6   : > { %v4552_v4 = vadd.f32 %v11675_v26, %v4515_v17  ;;  %v4516_v11 = vmul.f32 %v11669_v62, %v4447_v44  ;;  %9219 = vmatprep.subr.bf16.mxu1 %v4636_v42  ;;  %v9839_v44 = vld [vmem:[%s13754_s9 + $0x30] ss:$8 sps:$4 sm:$0xff]   ;;  %v9840_v42 = vld [vmem:[%s13754_s9 + $0x44] ss:$8 sps:$4 sm:$0xff]  }
 0x4e7   : > { %v4555_v16 = vadd.f32 %v11675_v26, %v4518_v3  ;;  %9220 = vmatpush3.bf16.msra.mxu1 %v11700_v54  ;;  %v4586_v41 = vmax.f32 %v4554_v50, 0.0  ;;  %v9842_v50 = vld [vmem:[%s13754_s9 + $0x40] ss:$8 sps:$4 sm:$0xff]   ;;  %v9843_v3 = vld [vmem:[%s13754_s9 + $0x54] ss:$8 sps:$4 sm:$0xff]  }
 0x4e8   : > { %v4553_v22 = vadd.f32 %v11675_v26, %v4516_v11  ;;  %v9683_v12 = vpop.f32.mrb[184].mxu0  ;;  %9221 = vmatprep.subr.bf16.mxu1 %v4637_v61  ;;  %v4584_v40 = vmax.f32 %v4552_v4, 0.0  ;;  %v9845_v4 = vld [vmem:[%s13754_s9 + $0x50] ss:$8 sps:$4 sm:$0xff]   ;;  %v9846_v11 = vld [vmem:[%s13754_s9 + $0x64] ss:$8 sps:$4 sm:$0xff]  }
 0x4e9   : > { %v4587_v46 = vmax.f32 %v4555_v16, 0.0  ;;  %v4468_v49 = vadd.f32 %v9683_v12, %v11707_v60  ;;  %v4459_v18 = vpop.f32.mrb[185].mxu0  ;;  %v9848_v16 = vld [vmem:[%s13754_s9 + $0x60] ss:$8 sps:$4 sm:$0xff]   ;;  %v9851_v12 = vld [vmem:[%s13754_s9 + $0x70] ss:$8 sps:$4 sm:$0xff]  }
 0x4ea   : > { %v4585_v9 = vmax.f32 %v4553_v22, 0.0  ;;  %v4460_v59 = vadd.f32 %v4459_v18, %v11683_v14  ;;  %v9684_v43 = vpop.f32.mrb[186].mxu0  ;;  %v9849_v22 = vld [vmem:[%s13754_s9 + $0x74] ss:$8 sps:$4 sm:$0xff]   ;;  %v9857_v18 = vld [vmem:[%s13754_s9 + $0x90] ss:$8 sps:$4 sm:$0xff]  }
 0x4eb   : > { %v4521_v24 = vmul.f32 %v11669_v62, %v4468_v49  ;;  %v4471_v38 = vadd.f32 %v9684_v43, %v11712_v10  ;;  %v4462_v30 = vpop.f32.mrb[187].mxu0  ;;  %9222 = vmatpush3.bf16.msra.mxu1 %v11696_v48  ;;  %v4639_v54 = vpack.c.bf16 %v4587_v46, %v4586_v41  ;;  %v9852_v41 = vld [vmem:[%s13754_s9 + $0x84] ss:$8 sps:$4 sm:$0xff]   ;;  %v9854_v46 = vld [vmem:[%s13754_s9 + $0x80] ss:$8 sps:$4 sm:$0xff]  }
 0x4ec   : > { %v4519_v7 = vmul.f32 %v11669_v62, %v4460_v59  ;;  %v4463_v2 = vadd.f32 %v4462_v30, %v11690_v6  ;;  %v4638_v1 = vpack.c.bf16 %v4585_v9, %v4584_v40  ;;  %v9855_v49 = vld [vmem:[%s13754_s9 + $0x94] ss:$8 sps:$4 sm:$0xff]   ;;  %v9858_v40 = vld [vmem:[%s13754_s9 + $0xa4] ss:$8 sps:$4 sm:$0xff]   ;;  %v9860_v9 = vld [vmem:[%s13754_s9 + $0xa0] ss:$8 sps:$4 sm:$0xff]  }
 0x4ed   : > { %v4558_v60 = vadd.f32 %v11675_v26, %v4521_v24  ;;  %v4522_v21 = vmul.f32 %v11669_v62, %v4471_v38  ;;  %v9861_v59 = vld [vmem:[%s13754_s9 + $0xb4] ss:$8 sps:$4 sm:$0xff]   ;;  %v9863_v43 = vld [vmem:[%s13754_s9 + $0xb0] ss:$8 sps:$4 sm:$0xff]   ;;  %v9864_v24 = vld [vmem:[%s13754_s9 + $0xc4] ss:$8 sps:$4 sm:$0xff]  }
 0x4ee   : > { %v4556_v14 = vadd.f32 %v11675_v26, %v4519_v7  ;;  %v4520_v55 = vmul.f32 %v11669_v62, %v4463_v2  ;;  %9223 = vmatprep.subr.bf16.mxu1 %v4638_v1  ;;  %v9866_v38 = vld [vmem:[%s13754_s9 + $0xc0] ss:$8 sps:$4 sm:$0xff]   ;;  %v9867_v30 = vld [vmem:[%s13754_s9 + $0xd4] ss:$8 sps:$4 sm:$0xff]   ;;  %v9869_v2 = vld [vmem:[%s13754_s9 + $0xd0] ss:$8 sps:$4 sm:$0xff]  }
 0x4ef   : > { %v4559_v10 = vadd.f32 %v11675_v26, %v4522_v21  ;;  %9224 = vmatpush3.bf16.msra.mxu1 %v11722_v15  ;;  %v4590_v29 = vmax.f32 %v4558_v60, 0.0  ;;  %v5062_v7 = vld [vmem:[#allocation2 + $0x9] sm:$0xff] }
 0x4f0   : > { %v4557_v48 = vadd.f32 %v11675_v26, %v4520_v55  ;;  %v9687_v31 = vpop.f32.mrb[188].mxu0  ;;  %9225 = vmatprep.subr.bf16.mxu1 %v4639_v54  ;;  %v4588_v39 = vmax.f32 %v4556_v14, 0.0  ;;  %v5061_v54 = vld [vmem:[#allocation2 + $0x1] sm:$0xff]  ;;  %v9873_v14 = vld [vmem:[%s13754_s9 + $0xf4] ss:$8 sps:$4 sm:$0xff]  }
 0x4f1   : > { %v4591_v6 = vmax.f32 %v4559_v10, 0.0  ;;  %v4484_v45 = vadd.f32 %v9687_v31, %v11751_v20  ;;  %v4475_v13 = vpop.f32.mrb[189].mxu0  ;;  %v5093_v1 = vpack.c.bf16 %v5062_v7, %v5061_v54  ;;  %v9870_v60 = vld [vmem:[%s13754_s9 + $0xe4] ss:$8 sps:$4 sm:$0xff]   ;;  %v9872_v21 = vld [vmem:[%s13754_s9 + $0xe0] ss:$8 sps:$4 sm:$0xff]  }
 0x4f2   : > { %v4589_v32 = vmax.f32 %v4557_v48, 0.0  ;;  %v4476_v63 = vadd.f32 %v4475_v13, %v11729_v53  ;;  %v9688_v58 = vpop.f32.mrb[190].mxu0  ;;  %v9875_v55 = vld [vmem:[%s13754_s9 + $0xf0] ss:$8 sps:$4 sm:$0xff]   ;;  %v9876_v10 = vld [vmem:[%s13749_s4 + $0x40] sm:$0xff]   ;;  %v9878_v31 = vld [vmem:[%s13749_s4 + $0x48] sm:$0xff]  }
 0x4f3   : > { %v4525_v52 = vmul.f32 %v11669_v62, %v4484_v45  ;;  %v4487_v25 = vadd.f32 %v9688_v58, %v11756_v8  ;;  %v4478_v0 = vpop.f32.mrb[191].mxu0  ;;  %9226 = vmatpush3.bf16.msra.mxu1 %v11718_v47  ;;  %v4641_v15 = vpack.c.bf16 %v4591_v6, %v4590_v29  ;;  %5125 = vrot.lane.b32.xlu1 %v5093_v1, %s10002_s6  ;;  %v9877_v48 = vld [vmem:[%s13749_s4] sm:$0xff]   ;;  %v9879_v29 = vld [vmem:[%s13749_s4 + $0x8] sm:$0xff]   ;;  %v9880_v6 = vld [vmem:[%s13749_s4 + $0x50] sm:$0xff]  }
 0x4f4   : > { %v4523_v5 = vmul.f32 %v11669_v62, %v4476_v63  ;;  %v4479_v51 = vadd.f32 %v4478_v0, %v11734_v28  ;;  %v4640_v23 = vpack.c.bf16 %v4589_v32, %v4588_v39  ;;  %9331 = vmatprep.subr.bf16.mxu0 %v9876_v10  ;;  %v9881_v45 = vld [vmem:[%s13749_s4 + $0x10] sm:$0xff]   ;;  %v9882_v13 = vld [vmem:[%s13749_s4 + $0x58] sm:$0xff]   ;;  %v9884_v32 = vld [vmem:[%s13749_s4 + $0x60] sm:$0xff]  }
 0x4f5   : > { %v4562_v20 = vadd.f32 %v11675_v26, %v4525_v52  ;;  %v4526_v27 = vmul.f32 %v11669_v62, %v4487_v25  ;;  %9332 = vmatpush3.bf16.msra.mxu0 %v9877_v48  ;;  %v9883_v39 = vld [vmem:[%s13749_s4 + $0x18] sm:$0xff]   ;;  %v9885_v52 = vld [vmem:[%s13749_s4 + $0x20] sm:$0xff]  }
 0x4f6   : > { %v4560_v53 = vadd.f32 %v11675_v26, %v4523_v5  ;;  %v4524_v19 = vmul.f32 %v11669_v62, %v4479_v51  ;;  %9227 = vmatprep.subr.bf16.mxu1 %v4640_v23  ;;  %v9828_v62 = vld [vmem:[%s13754_s9] ss:$8 sps:$4 sm:$0xff]   ;;  %9333 = vmatprep.subr.bf16.mxu0 %v9878_v31 }
 0x4f7   : > { %v4563_v8 = vadd.f32 %v11675_v26, %v4526_v27  ;;  %9228 = vmatpush3.bf16.msra.mxu1 %v11744_v34  ;;  %v4594_v37 = vmax.f32 %v4562_v20, 0.0  ;;  %v9834_v34 = vld [vmem:[%s13754_s9 + $0x24] ss:$8 sps:$4 sm:$0xff]  }
 0x4f8   : > { %v4561_v47 = vadd.f32 %v11675_v26, %v4524_v19  ;;  %9229 = vmatprep.subr.bf16.mxu1 %v4641_v15  ;;  %v4592_v28 = vmax.f32 %v4560_v53, 0.0  ;;  %v9831_v26 = vld [vmem:[%s13754_s9 + $0x14] ss:$8 sps:$4 sm:$0xff]   ;;  %v9886_v15 = vld [vmem:[%s13749_s4 + $0x68] sm:$0xff]   ;;  %v4997_v27 = vld [vmem:[#allocation2] sm:$0xff] }
 0x4f9   : > { %v4595_v56 = vmax.f32 %v4563_v8, 0.0  ;;  %9334 = vmatpush3.bf16.msra.mxu0 %v9879_v29  ;;  %v5189_v23 = vld [vmem:[#allocation2 + $0x2] sm:$0xff]  ;;  %v5190_v20 = vld [vmem:[#allocation2 + $0xa] sm:$0xff] }
 0x4fa   : > { %v4593_v36 = vmax.f32 %v4561_v47, 0.0  ;;  %9335 = vmatprep.subr.bf16.mxu0 %v9880_v6  ;;  %v9887_v53 = vld [vmem:[%s13749_s4 + $0x28] sm:$0xff]   ;;  %v5221_v19 = vpack.c.bf16 %v5190_v20, %v5189_v23 }
 0x4fb   : > { %9230 = vmatpush3.bf16.msra.mxu1 %v11740_v57  ;;  %v4643_v61 = vpack.c.bf16 %v4595_v56, %v4594_v37  ;;  %v9833_v57 = vld [vmem:[%s13754_s9 + $0x10] ss:$8 sps:$4 sm:$0xff]   ;;  %v4998_v8 = vld [vmem:[#allocation2 + $0x8] sm:$0xff] }
 0x4fc   : > { %v4642_v17 = vpack.c.bf16 %v4593_v36, %v4592_v28  ;;  %v5029_v47 = vpack.c.bf16 %v4998_v8, %v4997_v27  ;;  %v9888_v37 = vld [vmem:[%s13749_s4 + $0x70] sm:$0xff]   ;;  %5237 = vst.msk [vmem:[#allocation3 + $0x8] sm:$0xff] %vm363_vm1, %v5221_v19 }
 0x4fd   : > { %9336 = vmatpush3.bf16.msra.mxu0 %v9881_v45 }
 0x4fe   : > { %9231 = vmatprep.subr.bf16.mxu1 %v4642_v17  ;;  %9337 = vmatprep.subr.bf16.mxu0 %v9882_v13  ;;  %5045 = vst.msk [vmem:[#allocation3] sm:$0xff] %vm363_vm1, %v5029_v47 }
 0x4ff   : > { %9232 = vmatpush3.bf16.msra.mxu1 %v11766_v33  ;;  %v9837_v33 = vld [vmem:[%s13754_s9 + $0x34] ss:$8 sps:$4 sm:$0xff]  }
 0x500   : > { %9233 = vmatprep.subr.bf16.mxu1 %v4643_v61  ;;  %v9889_v61 = vld [vmem:[%s13749_s4 + $0x30] sm:$0xff]  }
 0x501   : > { %9338 = vmatpush3.bf16.msra.mxu0 %v9883_v39 }
 0x502   : > { %9339 = vmatprep.subr.bf16.mxu0 %v9884_v32 }
 0x503   : > { %9234 = vmatpush3.bf16.msra.mxu1 %v11762_v35  ;;  %v9836_v35 = vld [vmem:[%s13754_s9 + $0x20] ss:$8 sps:$4 sm:$0xff]  }
 0x505   : > { %9340 = vmatpush3.bf16.msra.mxu0 %v9885_v52 }
 0x506   : > { %4837 = vmatmul.mubr.bf16.vlgmr.msra.gmra.mrb[160].mxu1 %v9828_v62  ;;  %9341 = vmatprep.subr.bf16.mxu0 %v9886_v15 }
 0x507   : > { %4844 = vmatprep.mubr.bf16.mxu1 %v9831_v26  ;;  %v9890_v26 = vld [vmem:[%s13749_s4 + $0x78] sm:$0xff]  }
 0x509   : > { %9342 = vmatpush3.bf16.msra.mxu0 %v9887_v53 }
 0x50a   : > { %9343 = vmatprep.subr.bf16.mxu0 %v9888_v37 }
 0x50d   : > { %9344 = vmatpush3.bf16.msra.mxu0 %v9889_v61 }
 0x50e   : > { %4845 = vmatmul.mubr.bf16.gmra.mrb[164].mxu1 %v9833_v57  ;;  %9345 = vmatprep.subr.bf16.mxu0 %v9890_v26 }
 0x50f   : > { %4852 = vmatprep.mubr.bf16.mxu1 %v9834_v34 }
 0x516   : > { %4853 = vmatmul.mubr.bf16.gmra.mrb[168].mxu1 %v9836_v35 }
 0x517   : > { %4860 = vmatprep.mubr.bf16.mxu1 %v9837_v33 }
 0x51e   : > { %4861 = vmatmul.mubr.bf16.gmra.mrb[172].mxu1 %v9839_v44  ;;  %v9891_v44 = vld [vmem:[%s13749_s4 + $0x38] sm:$0xff]  }
 0x51f   : > { %4868 = vmatprep.mubr.bf16.mxu1 %v9840_v42  ;;  %9346 = vmatpush3.bf16.msra.mxu0 %v9891_v44 }
 0x526   : > { %4869 = vmatmul.mubr.bf16.gmra.mrb[176].mxu1 %v9842_v50 }
 0x527   : > { %4876 = vmatprep.mubr.bf16.mxu1 %v9843_v3 }
 0x52e   : > { %4877 = vmatmul.mubr.bf16.gmra.mrb[180].mxu1 %v9845_v4 }
 0x52f   : > { %4884 = vmatprep.mubr.bf16.mxu1 %v9846_v11 }
 0x536   : > { %4885 = vmatmul.mubr.bf16.gmra.mrb[184].mxu1 %v9848_v16 }
 0x537   : > { %4892 = vmatprep.mubr.bf16.mxu1 %v9849_v22 }
 0x53e   : > { %4893 = vmatmul.mubr.bf16.gmra.mrb[188].mxu1 %v9851_v12 }
 0x53f   : > { %4900 = vmatprep.mubr.bf16.mxu1 %v9852_v41 }
 0x546   : > { %4901 = vmatmul.mubr.bf16.gmra.mrb[192].mxu1 %v9854_v46 }
 0x547   : > { %4908 = vmatprep.mubr.bf16.mxu1 %v9855_v49 }
 0x54e   : > { %4909 = vmatmul.mubr.bf16.gmra.mrb[196].mxu1 %v9857_v18 }
 0x54f   : > { %4916 = vmatprep.mubr.bf16.mxu1 %v9858_v40 }
 0x556   : > { %4917 = vmatmul.mubr.bf16.gmra.mrb[200].mxu1 %v9860_v9 }
 0x557   : > { %4924 = vmatprep.mubr.bf16.mxu1 %v9861_v59 }
 0x55e   : > { %4925 = vmatmul.mubr.bf16.gmra.mrb[204].mxu1 %v9863_v43 }
 0x55f   : > { %4932 = vmatprep.mubr.bf16.mxu1 %v9864_v24 }
 0x565   : > { %v5126_v28 = vpop.permute.xlu1 %5125 }
 0x566   : > { %4933 = vmatmul.mubr.bf16.gmra.mrb[208].mxu1 %v9866_v38  ;;  %5173 = vst.msk [vmem:[#allocation3] sm:$0xff] %vm1064_vm3, %v5126_v28 }
 0x567   : > { %4940 = vmatprep.mubr.bf16.mxu1 %v9867_v30 }
 0x56e   : > { %4941 = vmatmul.mubr.bf16.gmra.mrb[212].mxu1 %v9869_v2 }
 0x56f   : > { %4948 = vmatprep.mubr.bf16.mxu1 %v9870_v60 }
 0x576   : > { %4949 = vmatmul.mubr.bf16.gmra.mrb[216].mxu1 %v9872_v21 }
 0x577   : > { %4956 = vmatprep.mubr.bf16.mxu1 %v9873_v14 }
 0x57e   : > { %4957 = vmatmul.mubr.bf16.gmra.mrb[220].mxu1 %v9875_v55 }
 0x5d9   : > { %v9235_v63 = vpop.f32.mrb[160].mxu1 }
 0x5da   : > { %v9236_v58 = vpop.f32.mrb[161].mxu1 }
 0x5db   : > { %v9237_v25 = vadd.f32 %v9236_v58, %v9235_v63  ;;  %v9238_v0 = vpop.f32.mrb[162].mxu1 }
 0x5dc   : > { %v9239_v5 = vpop.f32.mrb[163].mxu1 }
 0x5dd   : > { %4965 = vst.msk [vmem:[#allocation2 + $0x19] sm:$0xff] %vm363_vm1, %v9237_v25  ;;  %v9240_v51 = vadd.f32 %v9239_v5, %v9238_v0 }
 0x5df   : > { %4966 = vst.msk [vmem:[#allocation2 + $0x21] sm:$0xff] %vm363_vm1, %v9240_v51 }
 0x5e1   : > { %v9241_v56 = vpop.f32.mrb[164].mxu1 }
 0x5e2   : > { %v9242_v36 = vpop.f32.mrb[165].mxu1 }
 0x5e3   : > { %v9243_v17 = vadd.f32 %v9242_v36, %v9241_v56  ;;  %v9244_v62 = vpop.f32.mrb[166].mxu1 }
 0x5e4   : > { %v9245_v57 = vpop.f32.mrb[167].mxu1  ;;  %v5253_v35 = vld [vmem:[#allocation2 + $0x18] sm:$0xff] }
 0x5e5   : > { %4967 = vst.msk [vmem:[#allocation2 + $0x31] sm:$0xff] %vm363_vm1, %v9243_v17  ;;  %v9246_v34 = vadd.f32 %v9245_v57, %v9244_v62  ;;  %v5063_v33 = vld [vmem:[#allocation2 + $0x19] sm:$0xff] }
 0x5e6   : > { %v5254_v42 = vld [vmem:[#allocation2 + $0x20] sm:$0xff] }
 0x5e7   : > { %v5064_v50 = vld [vmem:[#allocation2 + $0x21] sm:$0xff]  ;;  %4968 = vst.msk [vmem:[#allocation2 + $0x39] sm:$0xff] %vm363_vm1, %v9246_v34  ;;  %v5285_v4 = vpack.c.bf16 %v5254_v42, %v5253_v35  ;;  %v5381_v22 = vld [vmem:[#allocation2 + $0x19] sm:$0xff] }
 0x5e8   : > { %v5445_v3 = vld [vmem:[#allocation2 + $0x1a] sm:$0xff]  ;;  %v5094_v11 = vpack.c.bf16 %v5064_v50, %v5063_v33  ;;  %v5446_v16 = vld [vmem:[#allocation2 + $0x22] sm:$0xff] }
 0x5e9   : > { %v5382_v12 = vld [vmem:[#allocation2 + $0x21] sm:$0xff]  ;;  %v11969_v41 = vpack.c.bf16 %v5446_v16, %v5445_v3  ;;  %v9247_v49 = vpop.f32.mrb[168].mxu1  ;;  %5317 = vrot.lane.b32.xlu0 %v5285_v4, %s10002_s6  ;;  %5046 = vst.msk [vmem:[#allocation3 + $0x28] sm:$0xff] %vm363_vm1, %v5285_v4 }
 0x5ea   : > { %v5413_v46 = vpack.c.bf16 %v5382_v12, %v5381_v22  ;;  %5127 = vrot.lane.b32.xlu1 %v5094_v11, %s10002_s6  ;;  %v9248_v18 = vpop.f32.mrb[169].mxu1 }
 0x5eb   : > { %5238 = vst.msk [vmem:[#allocation3 + $0x30] sm:$0xff] %vm363_vm1, %v11969_v41  ;;  %v9249_v40 = vadd.f32 %v9248_v18, %v9247_v49  ;;  %v9250_v9 = vpop.f32.mrb[170].mxu1 }
 0x5ec   : > { %5429 = vst.msk [vmem:[#allocation3 + $0x10] sm:$0xff] %vm363_vm1, %v5413_v46  ;;  %v9251_v59 = vpop.f32.mrb[171].mxu1  ;;  %v5255_v43 = vld [vmem:[#allocation2 + $0x30] sm:$0xff] }
 0x5ed   : > { %4969 = vst.msk [vmem:[#allocation2 + $0x49] sm:$0xff] %vm363_vm1, %v9249_v40  ;;  %v9252_v24 = vadd.f32 %v9251_v59, %v9250_v9  ;;  %v5065_v38 = vld [vmem:[#allocation2 + $0x31] sm:$0xff] }
 0x5ee   : > { %v5573_v30 = vld [vmem:[#allocation2 + $0x30] sm:$0xff]  ;;  %v5256_v7 = vld [vmem:[#allocation2 + $0x38] sm:$0xff] }
 0x5ef   : > { %v5383_v54 = vld [vmem:[#allocation2 + $0x31] sm:$0xff]  ;;  %v5066_v2 = vld [vmem:[#allocation2 + $0x39] sm:$0xff]  ;;  %4970 = vst.msk [vmem:[#allocation2 + $0x51] sm:$0xff] %vm363_vm1, %v9252_v24  ;;  %v5286_v60 = vpack.c.bf16 %v5256_v7, %v5255_v43 }
 0x5f0   : > { %v5447_v1 = vld [vmem:[#allocation2 + $0x32] sm:$0xff]  ;;  %v11979_v21 = vpack.c.bf16 %v5066_v2, %v5065_v38  ;;  %v5448_v14 = vld [vmem:[#allocation2 + $0x3a] sm:$0xff] }
 0x5f1   : > { %v5574_v55 = vld [vmem:[#allocation2 + $0x38] sm:$0xff]  ;;  %v11981_v48 = vpack.c.bf16 %v5448_v14, %v5447_v1  ;;  %v9253_v13 = vpop.f32.mrb[172].mxu1  ;;  %5319 = vrot.lane.b32.xlu0 %v5286_v60, %s10002_s6  ;;  %5047 = vst.msk [vmem:[#allocation3 + $0x50] sm:$0xff] %vm363_vm1, %v5286_v60 }
 0x5f2   : > { %v5384_v10 = vld [vmem:[#allocation2 + $0x39] sm:$0xff]  ;;  %v5605_v31 = vpack.c.bf16 %v5574_v55, %v5573_v30  ;;  %5129 = vrot.lane.b32.xlu1 %v11979_v21, %s10002_s6  ;;  %v9254_v32 = vpop.f32.mrb[173].mxu1 }
 0x5f3   : > { %v5414_v29 = vpack.c.bf16 %v5384_v10, %v5383_v54  ;;  %v5765_v6 = vld [vmem:[#allocation2 + $0x32] sm:$0xff]  ;;  %v5766_v45 = vld [vmem:[#allocation2 + $0x3a] sm:$0xff]  ;;  %5239 = vst.msk [vmem:[#allocation3 + $0x58] sm:$0xff] %vm363_vm1, %v11981_v48  ;;  %v9255_v63 = vadd.f32 %v9254_v32, %v9253_v13  ;;  %v9256_v58 = vpop.f32.mrb[174].mxu1 }
 0x5f4   : > { %v5797_v39 = vpack.c.bf16 %v5766_v45, %v5765_v6  ;;  %5621 = vst.msk [vmem:[#allocation3 + $0x18] sm:$0xff] %vm363_vm1, %v5605_v31  ;;  %v9257_v52 = vpop.f32.mrb[175].mxu1  ;;  %v5257_v25 = vld [vmem:[#allocation2 + $0x48] sm:$0xff]  ;;  %v9892_v31 = vld [vmem:[%s13749_s4 + $0xc0] sm:$0xff]  }
 0x5f5   : > { %5430 = vst.msk [vmem:[#allocation3 + $0x38] sm:$0xff] %vm363_vm1, %v5414_v29  ;;  %4971 = vst.msk [vmem:[#allocation2 + $0x61] sm:$0xff] %vm363_vm1, %v9255_v63  ;;  %v9258_v0 = vadd.f32 %v9257_v52, %v9256_v58  ;;  %v5067_v15 = vld [vmem:[#allocation2 + $0x49] sm:$0xff]  ;;  %v9893_v29 = vld [vmem:[%s13749_s4 + $0x80] sm:$0xff]   ;;  %9443 = vmatprep.subr.bf16.mxu1 %v9892_v31 }
 0x5f6   : > { %5813 = vst.msk [vmem:[#allocation3 + $0x20] sm:$0xff] %vm363_vm1, %v5797_v39  ;;  %v5575_v5 = vld [vmem:[#allocation2 + $0x48] sm:$0xff]  ;;  %v5258_v23 = vld [vmem:[#allocation2 + $0x50] sm:$0xff]  ;;  %9444 = vmatpush3.bf16.msra.mxu1 %v9893_v29  ;;  %v9901_v31 = vld [vmem:[%s13749_s4 + $0xa0] sm:$0xff]  }
 0x5f7   : > { %v5385_v51 = vld [vmem:[#allocation2 + $0x49] sm:$0xff]  ;;  %v5068_v20 = vld [vmem:[#allocation2 + $0x51] sm:$0xff]  ;;  %4972 = vst.msk [vmem:[#allocation2 + $0x69] sm:$0xff] %vm363_vm1, %v9258_v0  ;;  %v5287_v53 = vpack.c.bf16 %v5258_v23, %v5257_v25 }
 0x5f8   : > { %v5449_v27 = vld [vmem:[#allocation2 + $0x4a] sm:$0xff]  ;;  %v11994_v19 = vpack.c.bf16 %v5068_v20, %v5067_v15  ;;  %v5450_v8 = vld [vmem:[#allocation2 + $0x52] sm:$0xff] }
 0x5f9   : > { %v5576_v47 = vld [vmem:[#allocation2 + $0x50] sm:$0xff]  ;;  %v11996_v56 = vpack.c.bf16 %v5450_v8, %v5449_v27  ;;  %v9259_v62 = vpop.f32.mrb[176].mxu1  ;;  %5321 = vrot.lane.b32.xlu0 %v5287_v53, %s10002_s6  ;;  %5048 = vst.msk [vmem:[#allocation3 + $0x78] sm:$0xff] %vm363_vm1, %v5287_v53  ;;  %v9894_v6 = vld [vmem:[%s13749_s4 + $0xc8] sm:$0xff]  }
 0x5fa   : > { %v5386_v37 = vld [vmem:[#allocation2 + $0x51] sm:$0xff]  ;;  %v5606_v28 = vpack.c.bf16 %v5576_v47, %v5575_v5  ;;  %5131 = vrot.lane.b32.xlu1 %v11994_v19, %s10002_s6  ;;  %v9260_v57 = vpop.f32.mrb[177].mxu1  ;;  %9445 = vmatprep.subr.bf16.mxu1 %v9894_v6 }
 0x5fb   : > { %v5415_v36 = vpack.c.bf16 %v5386_v37, %v5385_v51  ;;  %v5767_v61 = vld [vmem:[#allocation2 + $0x4a] sm:$0xff]  ;;  %v5768_v17 = vld [vmem:[#allocation2 + $0x52] sm:$0xff]  ;;  %5240 = vst.msk [vmem:[#allocation3 + $0x80] sm:$0xff] %vm363_vm1, %v11996_v56  ;;  %v9261_v34 = vadd.f32 %v9260_v57, %v9259_v62  ;;  %v9262_v35 = vpop.f32.mrb[178].mxu1 }
 0x5fc   : > { %v5798_v26 = vpack.c.bf16 %v5768_v17, %v5767_v61  ;;  %5622 = vst.msk [vmem:[#allocation3 + $0x40] sm:$0xff] %vm363_vm1, %v5606_v28  ;;  %v9263_v33 = vpop.f32.mrb[179].mxu1  ;;  %v5259_v44 = vld [vmem:[#allocation2 + $0x60] sm:$0xff]  ;;  %v9895_v62 = vld [vmem:[%s13749_s4 + $0x88] sm:$0xff]   ;;  %v9896_v57 = vld [vmem:[%s13749_s4 + $0xd0] sm:$0xff]  }
 0x5fd   : > { %5431 = vst.msk [vmem:[#allocation3 + $0x60] sm:$0xff] %vm363_vm1, %v5415_v36  ;;  %4973 = vst.msk [vmem:[#allocation2 + $0x79] sm:$0xff] %vm363_vm1, %v9261_v34  ;;  %v9264_v42 = vadd.f32 %v9263_v33, %v9262_v35  ;;  %v5069_v50 = vld [vmem:[#allocation2 + $0x61] sm:$0xff]  ;;  %v9897_v34 = vld [vmem:[%s13749_s4 + $0x90] sm:$0xff]   ;;  %9446 = vmatpush3.bf16.msra.mxu1 %v9895_v62 }
 0x5fe   : > { %5814 = vst.msk [vmem:[#allocation3 + $0x48] sm:$0xff] %vm363_vm1, %v5798_v26  ;;  %v5577_v3 = vld [vmem:[#allocation2 + $0x60] sm:$0xff]  ;;  %v5260_v11 = vld [vmem:[#allocation2 + $0x68] sm:$0xff]  ;;  %v9898_v35 = vld [vmem:[%s13749_s4 + $0xd8] sm:$0xff]   ;;  %9447 = vmatprep.subr.bf16.mxu1 %v9896_v57 }
 0x5ff   : > { %v5387_v4 = vld [vmem:[#allocation2 + $0x61] sm:$0xff]  ;;  %v5070_v16 = vld [vmem:[#allocation2 + $0x69] sm:$0xff]  ;;  %4974 = vst.msk [vmem:[#allocation2 + $0x81] sm:$0xff] %vm363_vm1, %v9264_v42  ;;  %v5288_v12 = vpack.c.bf16 %v5260_v11, %v5259_v44 }
 0x600   : > { %v5451_v22 = vld [vmem:[#allocation2 + $0x62] sm:$0xff]  ;;  %v12009_v46 = vpack.c.bf16 %v5070_v16, %v5069_v50  ;;  %v5452_v49 = vld [vmem:[#allocation2 + $0x6a] sm:$0xff] }
 0x601   : > { %v5578_v18 = vld [vmem:[#allocation2 + $0x68] sm:$0xff]  ;;  %v12011_v9 = vpack.c.bf16 %v5452_v49, %v5451_v22  ;;  %v9265_v30 = vpop.f32.mrb[180].mxu1  ;;  %5323 = vrot.lane.b32.xlu0 %v5288_v12, %s10002_s6  ;;  %5049 = vst.msk [vmem:[#allocation3 + $0xa0] sm:$0xff] %vm363_vm1, %v5288_v12  ;;  %9448 = vmatpush3.bf16.msra.mxu1 %v9897_v34 }
 0x602   : > { %v5388_v40 = vld [vmem:[#allocation2 + $0x69] sm:$0xff]  ;;  %v5607_v59 = vpack.c.bf16 %v5578_v18, %v5577_v3  ;;  %5133 = vrot.lane.b32.xlu1 %v12009_v46, %s10002_s6  ;;  %v9266_v7 = vpop.f32.mrb[181].mxu1  ;;  %9449 = vmatprep.subr.bf16.mxu1 %v9898_v35 }
 0x603   : > { %v5416_v43 = vpack.c.bf16 %v5388_v40, %v5387_v4  ;;  %v5769_v24 = vld [vmem:[#allocation2 + $0x62] sm:$0xff]  ;;  %v5770_v38 = vld [vmem:[#allocation2 + $0x6a] sm:$0xff]  ;;  %5241 = vst.msk [vmem:[#allocation3 + $0xa8] sm:$0xff] %vm363_vm1, %v12011_v9  ;;  %v9267_v2 = vadd.f32 %v9266_v7, %v9265_v30  ;;  %v9268_v1 = vpop.f32.mrb[182].mxu1 }
 0x604   : > { %v5799_v54 = vpack.c.bf16 %v5770_v38, %v5769_v24  ;;  %5623 = vst.msk [vmem:[#allocation3 + $0x68] sm:$0xff] %vm363_vm1, %v5607_v59  ;;  %v9269_v60 = vpop.f32.mrb[183].mxu1  ;;  %v5261_v14 = vld [vmem:[#allocation2 + $0x78] sm:$0xff] }
 0x605   : > { %5432 = vst.msk [vmem:[#allocation3 + $0x88] sm:$0xff] %vm363_vm1, %v5416_v43  ;;  %v5071_v55 = vld [vmem:[#allocation2 + $0x79] sm:$0xff]  ;;  %4975 = vst.msk [vmem:[#allocation2 + $0x91] sm:$0xff] %vm363_vm1, %v9267_v2  ;;  %v9270_v10 = vadd.f32 %v9269_v60, %v9268_v1 }
 0x606   : > { %5815 = vst.msk [vmem:[#allocation3 + $0x70] sm:$0xff] %vm363_vm1, %v5799_v54  ;;  %v5579_v45 = vld [vmem:[#allocation2 + $0x78] sm:$0xff]  ;;  %v5262_v13 = vld [vmem:[#allocation2 + $0x80] sm:$0xff] }
 0x607   : > { %v5072_v39 = vld [vmem:[#allocation2 + $0x81] sm:$0xff]  ;;  %4976 = vst.msk [vmem:[#allocation2 + $0x99] sm:$0xff] %vm363_vm1, %v9270_v10  ;;  %v5289_v63 = vpack.c.bf16 %v5262_v13, %v5261_v14  ;;  %v5389_v0 = vld [vmem:[#allocation2 + $0x79] sm:$0xff] }
 0x608   : > { %v5453_v32 = vld [vmem:[#allocation2 + $0x7a] sm:$0xff]  ;;  %v12033_v58 = vpack.c.bf16 %v5072_v39, %v5071_v55  ;;  %v5454_v52 = vld [vmem:[#allocation2 + $0x82] sm:$0xff] }
 0x609   : > { %v5580_v25 = vld [vmem:[#allocation2 + $0x80] sm:$0xff]  ;;  %v12035_v15 = vpack.c.bf16 %v5454_v52, %v5453_v32  ;;  %v9271_v27 = vpop.f32.mrb[184].mxu1  ;;  %5325 = vrot.lane.b32.xlu0 %v5289_v63, %s10002_s6  ;;  %5050 = vst.msk [vmem:[#allocation3 + $0xc8] sm:$0xff] %vm363_vm1, %v5289_v63  ;;  %v9899_v14 = vld [vmem:[%s13749_s4 + $0x98] sm:$0xff]  }
 0x60a   : > { %v5608_v5 = vpack.c.bf16 %v5580_v25, %v5579_v45  ;;  %v5390_v51 = vld [vmem:[#allocation2 + $0x81] sm:$0xff]  ;;  %5135 = vrot.lane.b32.xlu1 %v12033_v58, %s10002_s6  ;;  %v9272_v47 = vpop.f32.mrb[185].mxu1  ;;  %9450 = vmatpush3.bf16.msra.mxu1 %v9899_v14 }
 0x60b   : > { %v5771_v23 = vld [vmem:[#allocation2 + $0x7a] sm:$0xff]  ;;  %v5772_v20 = vld [vmem:[#allocation2 + $0x82] sm:$0xff]  ;;  %v5417_v53 = vpack.c.bf16 %v5390_v51, %v5389_v0  ;;  %5242 = vst.msk [vmem:[#allocation3 + $0xd0] sm:$0xff] %vm363_vm1, %v12035_v15  ;;  %v9273_v37 = vadd.f32 %v9272_v47, %v9271_v27  ;;  %v9274_v28 = vpop.f32.mrb[186].mxu1 }
 0x60c   : > { %v5800_v8 = vpack.c.bf16 %v5772_v20, %v5771_v23  ;;  %5624 = vst.msk [vmem:[#allocation3 + $0x90] sm:$0xff] %vm363_vm1, %v5608_v5  ;;  %v9275_v36 = vpop.f32.mrb[187].mxu1  ;;  %v5263_v61 = vld [vmem:[#allocation2 + $0x90] sm:$0xff]  ;;  %v9900_v10 = vld [vmem:[%s13749_s4 + $0xe0] sm:$0xff]  }
 0x60d   : > { %5433 = vst.msk [vmem:[#allocation3 + $0xb0] sm:$0xff] %vm363_vm1, %v5417_v53  ;;  %v5073_v17 = vld [vmem:[#allocation2 + $0x91] sm:$0xff]  ;;  %4977 = vst.msk [vmem:[#allocation2 + $0xa9] sm:$0xff] %vm363_vm1, %v9273_v37  ;;  %v9276_v26 = vadd.f32 %v9275_v36, %v9274_v28  ;;  %9451 = vmatprep.subr.bf16.mxu1 %v9900_v10 }
 0x60e   : > { %5816 = vst.msk [vmem:[#allocation3 + $0x98] sm:$0xff] %vm363_vm1, %v5800_v8  ;;  %v5264_v33 = vld [vmem:[#allocation2 + $0x98] sm:$0xff]  ;;  %v5581_v11 = vld [vmem:[#allocation2 + $0x90] sm:$0xff]  ;;  %9452 = vmatpush3.bf16.msra.mxu1 %v9901_v31 }
 0x60f   : > { %v5074_v44 = vld [vmem:[#allocation2 + $0x99] sm:$0xff]  ;;  %4978 = vst.msk [vmem:[#allocation2 + $0xb1] sm:$0xff] %vm363_vm1, %v9276_v26  ;;  %v5290_v50 = vpack.c.bf16 %v5264_v33, %v5263_v61  ;;  %v5391_v49 = vld [vmem:[#allocation2 + $0x91] sm:$0xff]  ;;  %v9902_v61 = vld [vmem:[%s13749_s4 + $0xe8] sm:$0xff]  }
 0x610   : > { %v5455_v42 = vld [vmem:[#allocation2 + $0x92] sm:$0xff]  ;;  %v12060_v3 = vpack.c.bf16 %v5074_v44, %v5073_v17  ;;  %v5456_v4 = vld [vmem:[#allocation2 + $0x9a] sm:$0xff]  ;;  %v9903_v26 = vld [vmem:[%s13749_s4 + $0xa8] sm:$0xff]   ;;  %9453 = vmatprep.subr.bf16.mxu1 %v9902_v61 }
 0x611   : > { %v5582_v16 = vld [vmem:[#allocation2 + $0x98] sm:$0xff]  ;;  %v12062_v22 = vpack.c.bf16 %v5456_v4, %v5455_v42  ;;  %v9277_v59 = vpop.f32.mrb[188].mxu1  ;;  %5327 = vrot.lane.b32.xlu0 %v5290_v50, %s10002_s6  ;;  %5051 = vst.msk [vmem:[#allocation3 + $0xf0] sm:$0xff] %vm363_vm1, %v5290_v50 }
 0x612   : > { %v5609_v12 = vpack.c.bf16 %v5582_v16, %v5581_v11  ;;  %v5392_v18 = vld [vmem:[#allocation2 + $0x99] sm:$0xff]  ;;  %5137 = vrot.lane.b32.xlu1 %v12060_v3, %s10002_s6  ;;  %v9278_v38 = vpop.f32.mrb[189].mxu1  ;;  %9454 = vmatpush3.bf16.msra.mxu1 %v9903_v26  ;;  %v9905_v16 = vld [vmem:[%s13749_s4 + $0xb0] sm:$0xff]  }
 0x613   : > { %v5773_v40 = vld [vmem:[#allocation2 + $0x92] sm:$0xff]  ;;  %v5418_v43 = vpack.c.bf16 %v5392_v18, %v5391_v49  ;;  %v5774_v24 = vld [vmem:[#allocation2 + $0x9a] sm:$0xff]  ;;  %5243 = vst.msk [vmem:[#allocation3 + $0xf8] sm:$0xff] %vm363_vm1, %v12062_v22  ;;  %v9279_v54 = vadd.f32 %v9278_v38, %v9277_v59  ;;  %v9280_v7 = vpop.f32.mrb[190].mxu1 }
 0x614   : > { %5625 = vst.msk [vmem:[#allocation3 + $0xb8] sm:$0xff] %vm363_vm1, %v5609_v12  ;;  %v5801_v30 = vpack.c.bf16 %v5774_v24, %v5773_v40  ;;  %v9281_v2 = vpop.f32.mrb[191].mxu1  ;;  %v5265_v1 = vld [vmem:[#allocation2 + $0xa8] sm:$0xff] }
 0x615   : > { %5434 = vst.msk [vmem:[#allocation3 + $0xd8] sm:$0xff] %vm363_vm1, %v5418_v43  ;;  %v5075_v60 = vld [vmem:[#allocation2 + $0xa9] sm:$0xff]  ;;  %4979 = vst.msk [vmem:[#allocation2 + $0xc1] sm:$0xff] %vm363_vm1, %v9279_v54  ;;  %v9282_v55 = vadd.f32 %v9281_v2, %v9280_v7  ;;  %v9907_v2 = vld [vmem:[%s13749_s4 + $0xb8] sm:$0xff]  }
 0x616   : > { %5817 = vst.msk [vmem:[#allocation3 + $0xc0] sm:$0xff] %vm363_vm1, %v5801_v30  ;;  %v5583_v29 = vld [vmem:[#allocation2 + $0xa8] sm:$0xff]  ;;  %v5266_v6 = vld [vmem:[#allocation2 + $0xb0] sm:$0xff] }
 0x617   : > { %v5076_v45 = vld [vmem:[#allocation2 + $0xb1] sm:$0xff]  ;;  %4980 = vst.msk [vmem:[#allocation2 + $0xc9] sm:$0xff] %vm363_vm1, %v9282_v55  ;;  %v5291_v39 = vpack.c.bf16 %v5266_v6, %v5265_v1  ;;  %v5393_v25 = vld [vmem:[#allocation2 + $0xa9] sm:$0xff] }
 0x618   : > { %v5457_v13 = vld [vmem:[#allocation2 + $0xaa] sm:$0xff]  ;;  %v12084_v32 = vpack.c.bf16 %v5076_v45, %v5075_v60  ;;  %v5458_v63 = vld [vmem:[#allocation2 + $0xb2] sm:$0xff] }
 0x619   : > { %v5584_v52 = vld [vmem:[#allocation2 + $0xb0] sm:$0xff]  ;;  %v12086_v0 = vpack.c.bf16 %v5458_v63, %v5457_v13  ;;  %v9283_v27 = vpop.f32.mrb[192].mxu1  ;;  %5329 = vrot.lane.b32.xlu0 %v5291_v39, %s10002_s6  ;;  %5052 = vst.msk [vmem:[#allocation3 + $0x118] sm:$0xff] %vm363_vm1, %v5291_v39 }
 0x61a   : > { %v5610_v5 = vpack.c.bf16 %v5584_v52, %v5583_v29  ;;  %v5394_v51 = vld [vmem:[#allocation2 + $0xb1] sm:$0xff]  ;;  %5139 = vrot.lane.b32.xlu1 %v12084_v32, %s10002_s6  ;;  %v9284_v47 = vpop.f32.mrb[193].mxu1 }
 0x61b   : > { %v5775_v23 = vld [vmem:[#allocation2 + $0xaa] sm:$0xff]  ;;  %v5776_v20 = vld [vmem:[#allocation2 + $0xb2] sm:$0xff]  ;;  %v5419_v53 = vpack.c.bf16 %v5394_v51, %v5393_v25  ;;  %5244 = vst.msk [vmem:[#allocation3 + $0x120] sm:$0xff] %vm363_vm1, %v12086_v0  ;;  %v9285_v37 = vadd.f32 %v9284_v47, %v9283_v27  ;;  %v9286_v28 = vpop.f32.mrb[194].mxu1 }
 0x61c   : > { %v5802_v8 = vpack.c.bf16 %v5776_v20, %v5775_v23  ;;  %5626 = vst.msk [vmem:[#allocation3 + $0xe0] sm:$0xff] %vm363_vm1, %v5610_v5  ;;  %v9287_v36 = vpop.f32.mrb[195].mxu1  ;;  %v5267_v62 = vld [vmem:[#allocation2 + $0xc0] sm:$0xff] }
 0x61d   : > { %5435 = vst.msk [vmem:[#allocation3 + $0x100] sm:$0xff] %vm363_vm1, %v5419_v53  ;;  %4981 = vst.msk [vmem:[#allocation2 + $0xd9] sm:$0xff] %vm363_vm1, %v9285_v37  ;;  %v9288_v17 = vadd.f32 %v9287_v36, %v9286_v28  ;;  %v5585_v57 = vld [vmem:[#allocation2 + $0xc0] sm:$0xff] }
 0x61e   : > { %5818 = vst.msk [vmem:[#allocation3 + $0xe8] sm:$0xff] %vm363_vm1, %v5802_v8  ;;  %5701 = vrot.lane.b32.xlu1 %v11979_v21, %s10002_s6  ;;  %v5268_v34 = vld [vmem:[#allocation2 + $0xc8] sm:$0xff]  ;;  %v9904_v21 = vld [vmem:[%s13749_s4 + $0xf0] sm:$0xff]  }
 0x61f   : > { %v5459_v35 = vld [vmem:[#allocation2 + $0xc2] sm:$0xff]  ;;  %4982 = vst.msk [vmem:[#allocation2 + $0xe1] sm:$0xff] %vm363_vm1, %v9288_v17  ;;  %v5292_v44 = vpack.c.bf16 %v5268_v34, %v5267_v62  ;;  %v5460_v42 = vld [vmem:[#allocation2 + $0xca] sm:$0xff]  ;;  %9455 = vmatprep.subr.bf16.mxu1 %v9904_v21 }
 0x620   : > { %v5395_v33 = vld [vmem:[#allocation2 + $0xc1] sm:$0xff]  ;;  %v5396_v4 = vld [vmem:[#allocation2 + $0xc9] sm:$0xff]  ;;  %v12107_v11 = vpack.c.bf16 %v5460_v42, %v5459_v35  ;;  %9456 = vmatpush3.bf16.msra.mxu1 %v9905_v16 }
 0x621   : > { %v5586_v50 = vld [vmem:[#allocation2 + $0xc8] sm:$0xff]  ;;  %v5420_v49 = vpack.c.bf16 %v5396_v4, %v5395_v33  ;;  %v9289_v40 = vpop.f32.mrb[196].mxu1  ;;  %5331 = vrot.lane.b32.xlu0 %v5292_v44, %s10002_s6  ;;  %5053 = vst.msk [vmem:[#allocation3 + $0x140] sm:$0xff] %vm363_vm1, %v5292_v44 }
 0x622   : > { %v5611_v12 = vpack.c.bf16 %v5586_v50, %v5585_v57  ;;  %v5777_v18 = vld [vmem:[#allocation2 + $0xc2] sm:$0xff]  ;;  %5509 = vrot.lane.b32.xlu1 %v11969_v41, %s10002_s6  ;;  %v5778_v59 = vld [vmem:[#allocation2 + $0xca] sm:$0xff]  ;;  %v9290_v43 = vpop.f32.mrb[197].mxu1  ;;  %5245 = vst.msk [vmem:[#allocation3 + $0x148] sm:$0xff] %vm363_vm1, %v12107_v11  ;;  %v9906_v41 = vld [vmem:[%s13749_s4 + $0xf8] sm:$0xff]  }
 0x623   : > { %5436 = vst.msk [vmem:[#allocation3 + $0x128] sm:$0xff] %vm363_vm1, %v5420_v49  ;;  %v5803_v24 = vpack.c.bf16 %v5778_v59, %v5777_v18  ;;  %v9291_v38 = vadd.f32 %v9290_v43, %v9289_v40  ;;  %v9292_v30 = vpop.f32.mrb[198].mxu1  ;;  %v5078_v14 = vld [vmem:[#allocation2 + $0xc9] sm:$0xff]  ;;  %9457 = vmatprep.subr.bf16.mxu1 %v9906_v41  ;;  %v5077_v23 = vld [vmem:[#allocation2 + $0xc1] sm:$0xff] }
 0x624   : > { %5627 = vst.msk [vmem:[#allocation3 + $0x108] sm:$0xff] %vm363_vm1, %v5611_v12  ;;  %v9293_v54 = vpop.f32.mrb[199].mxu1  ;;  %v5269_v1 = vld [vmem:[#allocation2 + $0xd8] sm:$0xff]  ;;  %9458 = vmatpush3.bf16.msra.mxu1 %v9907_v2  ;;  %v12143_v8 = vpack.c.bf16 %v5078_v14, %v5077_v23 }
 0x625   : > { %5819 = vst.msk [vmem:[#allocation3 + $0x110] sm:$0xff] %vm363_vm1, %v5803_v24  ;;  %4983 = vst.msk [vmem:[#allocation2 + $0xf1] sm:$0xff] %vm363_vm1, %v9291_v38  ;;  %v9294_v7 = vadd.f32 %v9293_v54, %v9292_v30  ;;  %v5015_v29 = vld [vmem:[#allocation2 + $0xd8] sm:$0xff] }
 0x626   : > { %5703 = vrot.lane.b32.xlu1 %v11994_v19, %s10002_s6  ;;  %v5270_v60 = vld [vmem:[#allocation2 + $0xe0] sm:$0xff] }
 0x627   : > { %v5461_v55 = vld [vmem:[#allocation2 + $0xda] sm:$0xff]  ;;  %4984 = vst.msk [vmem:[#allocation2 + $0xf9] sm:$0xff] %vm363_vm1, %v9294_v7  ;;  %v5293_v10 = vpack.c.bf16 %v5270_v60, %v5269_v1  ;;  %v5462_v31 = vld [vmem:[#allocation2 + $0xe2] sm:$0xff] }
 0x628   : > { %v5016_v6 = vld [vmem:[#allocation2 + $0xe0] sm:$0xff]  ;;  %v12134_v45 = vpack.c.bf16 %v5462_v31, %v5461_v55 }
 0x629   : > { %v5038_v13 = vpack.c.bf16 %v5016_v6, %v5015_v29  ;;  %v5397_v19 = vld [vmem:[#allocation2 + $0xd9] sm:$0xff]  ;;  %v5398_v39 = vld [vmem:[#allocation2 + $0xe1] sm:$0xff]  ;;  %v9295_v52 = vpop.f32.mrb[200].mxu1  ;;  %5333 = vrot.lane.b32.xlu0 %v5293_v10, %s10002_s6 }
 0x62a   : > { %v5779_v63 = vld [vmem:[#allocation2 + $0xda] sm:$0xff]  ;;  %5511 = vrot.lane.b32.xlu1 %v11981_v48, %s10002_s6  ;;  %v5421_v25 = vpack.c.bf16 %v5398_v39, %v5397_v19  ;;  %v5780_v5 = vld [vmem:[#allocation2 + $0xe2] sm:$0xff]  ;;  %v9296_v51 = vpop.f32.mrb[201].mxu1  ;;  %5246 = vst.msk [vmem:[#allocation3 + $0x170] sm:$0xff] %vm363_vm1, %v12134_v45 }
 0x62b   : > { %5054 = vst.msk [vmem:[#allocation3 + $0x168] sm:$0xff] %vm363_vm1, %v5038_v13  ;;  %5628 = vst.msk [vmem:[#allocation3 + $0x130] sm:$0xff] %vm363_vm1, %v5038_v13  ;;  %v5804_v20 = vpack.c.bf16 %v5780_v5, %v5779_v63  ;;  %v9297_v27 = vadd.f32 %v9296_v51, %v9295_v52  ;;  %v9298_v53 = vpop.f32.mrb[202].mxu1  ;;  %v5080_v35 = vld [vmem:[#allocation2 + $0xe1] sm:$0xff]  ;;  %v5079_v12 = vld [vmem:[#allocation2 + $0xd9] sm:$0xff] }
 0x62c   : > { %5437 = vst.msk [vmem:[#allocation3 + $0x150] sm:$0xff] %vm363_vm1, %v5421_v25  ;;  %v9299_v47 = vpop.f32.mrb[203].mxu1  ;;  %v5271_v37 = vld [vmem:[#allocation2 + $0xf0] sm:$0xff]  ;;  %v12163_v40 = vpack.c.bf16 %v5080_v35, %v5079_v12 }
 0x62d   : > { %5820 = vst.msk [vmem:[#allocation3 + $0x138] sm:$0xff] %vm363_vm1, %v5804_v20  ;;  %4985 = vst.msk [vmem:[#allocation2 + $0x109] sm:$0xff] %vm363_vm1, %v9297_v27  ;;  %v9300_v48 = vadd.f32 %v9299_v47, %v9298_v53  ;;  %5141 = vrot.lane.b32.xlu0 %v12143_v8, %s10002_s6  ;;  %v5017_v28 = vld [vmem:[#allocation2 + $0xf0] sm:$0xff] }
 0x62e   : > { %5705 = vrot.lane.b32.xlu1 %v12009_v46, %s10002_s6  ;;  %v5272_v36 = vld [vmem:[#allocation2 + $0xf8] sm:$0xff] }
 0x62f   : > { %v5463_v61 = vld [vmem:[#allocation2 + $0xf2] sm:$0xff]  ;;  %4986 = vst.msk [vmem:[#allocation2 + $0x111] sm:$0xff] %vm363_vm1, %v9300_v48  ;;  %v5294_v62 = vpack.c.bf16 %v5272_v36, %v5271_v37  ;;  %v5464_v26 = vld [vmem:[#allocation2 + $0xfa] sm:$0xff] }
 0x630   : > { %v5399_v17 = vld [vmem:[#allocation2 + $0xf1] sm:$0xff]  ;;  %v5400_v34 = vld [vmem:[#allocation2 + $0xf9] sm:$0xff]  ;;  %v12153_v33 = vpack.c.bf16 %v5464_v26, %v5463_v61 }
 0x631   : > { %v5018_v57 = vld [vmem:[#allocation2 + $0xf8] sm:$0xff]  ;;  %v5422_v42 = vpack.c.bf16 %v5400_v34, %v5399_v17  ;;  %v9301_v21 = vpop.f32.mrb[204].mxu1  ;;  %5335 = vrot.lane.b32.xlu0 %v5294_v62, %s10002_s6 }
 0x632   : > { %v5039_v44 = vpack.c.bf16 %v5018_v57, %v5017_v28  ;;  %v5781_v50 = vld [vmem:[#allocation2 + $0xf2] sm:$0xff]  ;;  %v5782_v4 = vld [vmem:[#allocation2 + $0xfa] sm:$0xff]  ;;  %5513 = vrot.lane.b32.xlu1 %v11996_v56, %s10002_s6  ;;  %v9302_v16 = vpop.f32.mrb[205].mxu1  ;;  %5247 = vst.msk [vmem:[#allocation3 + $0x198] sm:$0xff] %vm363_vm1, %v12153_v33 }
 0x633   : > { %v5805_v46 = vpack.c.bf16 %v5782_v4, %v5781_v50  ;;  %5438 = vst.msk [vmem:[#allocation3 + $0x178] sm:$0xff] %vm363_vm1, %v5422_v42  ;;  %v9303_v49 = vadd.f32 %v9302_v16, %v9301_v21  ;;  %v9304_v18 = vpop.f32.mrb[206].mxu1  ;;  %v5082_v60 = vld [vmem:[#allocation2 + $0xf9] sm:$0xff]  ;;  %v5081_v19 = vld [vmem:[#allocation2 + $0xf1] sm:$0xff] }
 0x634   : > { %5055 = vst.msk [vmem:[#allocation3 + $0x190] sm:$0xff] %vm363_vm1, %v5039_v44  ;;  %5629 = vst.msk [vmem:[#allocation3 + $0x158] sm:$0xff] %vm363_vm1, %v5039_v44  ;;  %v9305_v59 = vpop.f32.mrb[207].mxu1  ;;  %v5273_v43 = vld [vmem:[#allocation2 + $0x108] sm:$0xff]  ;;  %v12182_v52 = vpack.c.bf16 %v5082_v60, %v5081_v19 }
 0x635   : > { %5821 = vst.msk [vmem:[#allocation3 + $0x160] sm:$0xff] %vm363_vm1, %v5805_v46  ;;  %4987 = vst.msk [vmem:[#allocation2 + $0x121] sm:$0xff] %vm363_vm1, %v9303_v49  ;;  %v9306_v56 = vadd.f32 %v9305_v59, %v9304_v18  ;;  %5143 = vrot.lane.b32.xlu0 %v12163_v40, %s10002_s6  ;;  %v5019_v24 = vld [vmem:[#allocation2 + $0x108] sm:$0xff] }
 0x636   : > { %5707 = vrot.lane.b32.xlu1 %v12033_v58, %s10002_s6  ;;  %v5274_v38 = vld [vmem:[#allocation2 + $0x110] sm:$0xff] }
 0x637   : > { %v5465_v30 = vld [vmem:[#allocation2 + $0x10a] sm:$0xff]  ;;  %4988 = vst.msk [vmem:[#allocation2 + $0x129] sm:$0xff] %vm363_vm1, %v9306_v56  ;;  %v5295_v41 = vpack.c.bf16 %v5274_v38, %v5273_v43  ;;  %v5466_v7 = vld [vmem:[#allocation2 + $0x112] sm:$0xff] }
 0x638   : > { %v5401_v54 = vld [vmem:[#allocation2 + $0x109] sm:$0xff]  ;;  %v5402_v1 = vld [vmem:[#allocation2 + $0x111] sm:$0xff]  ;;  %v12172_v14 = vpack.c.bf16 %v5466_v7, %v5465_v30 }
 0x639   : > { %v5020_v2 = vld [vmem:[#allocation2 + $0x110] sm:$0xff]  ;;  %v5423_v10 = vpack.c.bf16 %v5402_v1, %v5401_v54  ;;  %v9307_v6 = vpop.f32.mrb[208].mxu1  ;;  %5337 = vrot.lane.b32.xlu0 %v5295_v41, %s10002_s6  ;;  %v12215_v54 = vld [vmem:[%s13749_s4 + $0x100] sm:$0xff]  }
 0x63a   : > { %v5040_v55 = vpack.c.bf16 %v5020_v2, %v5019_v24  ;;  %v5783_v31 = vld [vmem:[#allocation2 + $0x10a] sm:$0xff]  ;;  %v5784_v29 = vld [vmem:[#allocation2 + $0x112] sm:$0xff]  ;;  %5515 = vrot.lane.b32.xlu1 %v12011_v9, %s10002_s6  ;;  %v9308_v13 = vpop.f32.mrb[209].mxu1  ;;  %5248 = vst.msk [vmem:[#allocation3 + $0x1c0] sm:$0xff] %vm363_vm1, %v12172_v14  ;;  %9689 = vmatprep.subr.bf16.mxu0 %v12215_v54 }
 0x63b   : > { %v5806_v58 = vpack.c.bf16 %v5784_v29, %v5783_v31  ;;  %5439 = vst.msk [vmem:[#allocation3 + $0x1a0] sm:$0xff] %vm363_vm1, %v5423_v10  ;;  %v9309_v39 = vadd.f32 %v9308_v13, %v9307_v6  ;;  %v9310_v63 = vpop.f32.mrb[210].mxu1  ;;  %v5084_v28 = vld [vmem:[#allocation2 + $0x111] sm:$0xff]  ;;  %v5083_v35 = vld [vmem:[#allocation2 + $0x109] sm:$0xff] }
 0x63c   : > { %5056 = vst.msk [vmem:[#allocation3 + $0x1b8] sm:$0xff] %vm363_vm1, %v5040_v55  ;;  %5630 = vst.msk [vmem:[#allocation3 + $0x180] sm:$0xff] %vm363_vm1, %v5040_v55  ;;  %v9311_v25 = vpop.f32.mrb[211].mxu1  ;;  %v5275_v5 = vld [vmem:[#allocation2 + $0x120] sm:$0xff]  ;;  %v12201_v50 = vpack.c.bf16 %v5084_v28, %v5083_v35 }
 0x63d   : > { %5822 = vst.msk [vmem:[#allocation3 + $0x188] sm:$0xff] %vm363_vm1, %v5806_v58  ;;  %4989 = vst.msk [vmem:[#allocation2 + $0x139] sm:$0xff] %vm363_vm1, %v9309_v39  ;;  %v9312_v9 = vadd.f32 %v9311_v25, %v9310_v63  ;;  %5145 = vrot.lane.b32.xlu0 %v12182_v52, %s10002_s6  ;;  %v5021_v51 = vld [vmem:[#allocation2 + $0x120] sm:$0xff] }
 0x63e   : > { %5709 = vrot.lane.b32.xlu1 %v12060_v3, %s10002_s6  ;;  %v5276_v23 = vld [vmem:[#allocation2 + $0x128] sm:$0xff] }
 0x63f   : > { %v5467_v20 = vld [vmem:[#allocation2 + $0x122] sm:$0xff]  ;;  %4990 = vst.msk [vmem:[#allocation2 + $0x141] sm:$0xff] %vm363_vm1, %v9312_v9  ;;  %v5296_v53 = vpack.c.bf16 %v5276_v23, %v5275_v5  ;;  %v5468_v47 = vld [vmem:[#allocation2 + $0x12a] sm:$0xff] }
 0x640   : > { %v5403_v27 = vld [vmem:[#allocation2 + $0x121] sm:$0xff]  ;;  %v5404_v37 = vld [vmem:[#allocation2 + $0x129] sm:$0xff]  ;;  %v12191_v36 = vpack.c.bf16 %v5468_v47, %v5467_v20 }
 0x641   : > { %v5022_v48 = vld [vmem:[#allocation2 + $0x128] sm:$0xff]  ;;  %v5424_v17 = vpack.c.bf16 %v5404_v37, %v5403_v27  ;;  %v9313_v57 = vpop.f32.mrb[212].mxu1  ;;  %5339 = vrot.lane.b32.xlu0 %v5296_v53, %s10002_s6 }
 0x642   : > { %v5041_v61 = vpack.c.bf16 %v5022_v48, %v5021_v51  ;;  %v5785_v62 = vld [vmem:[#allocation2 + $0x122] sm:$0xff]  ;;  %v5786_v26 = vld [vmem:[#allocation2 + $0x12a] sm:$0xff]  ;;  %5517 = vrot.lane.b32.xlu1 %v12035_v15, %s10002_s6  ;;  %v9314_v34 = vpop.f32.mrb[213].mxu1  ;;  %5249 = vst.msk [vmem:[#allocation3 + $0x1e8] sm:$0xff] %vm363_vm1, %v12191_v36 }
 0x643   : > { %v5807_v3 = vpack.c.bf16 %v5786_v26, %v5785_v62  ;;  %5440 = vst.msk [vmem:[#allocation3 + $0x1c8] sm:$0xff] %vm363_vm1, %v5424_v17  ;;  %v9315_v44 = vadd.f32 %v9314_v34, %v9313_v57  ;;  %v9316_v42 = vpop.f32.mrb[214].mxu1  ;;  %v5086_v12 = vld [vmem:[#allocation2 + $0x129] sm:$0xff]  ;;  %v5085_v55 = vld [vmem:[#allocation2 + $0x121] sm:$0xff] }
 0x644   : > { %5057 = vst.msk [vmem:[#allocation3 + $0x1e0] sm:$0xff] %vm363_vm1, %v5041_v61  ;;  %5631 = vst.msk [vmem:[#allocation3 + $0x1a8] sm:$0xff] %vm363_vm1, %v5041_v61  ;;  %v9317_v4 = vpop.f32.mrb[215].mxu1  ;;  %v5277_v21 = vld [vmem:[#allocation2 + $0x138] sm:$0xff]  ;;  %v12226_v29 = vpack.c.bf16 %v5086_v12, %v5085_v55 }
 0x645   : > { %5823 = vst.msk [vmem:[#allocation3 + $0x1b0] sm:$0xff] %vm363_vm1, %v5807_v3  ;;  %4991 = vst.msk [vmem:[#allocation2 + $0x151] sm:$0xff] %vm363_vm1, %v9315_v44  ;;  %v9318_v15 = vadd.f32 %v9317_v4, %v9316_v42  ;;  %5147 = vrot.lane.b32.xlu0 %v12201_v50, %s10002_s6  ;;  %v5023_v46 = vld [vmem:[#allocation2 + $0x138] sm:$0xff] }
 0x646   : > { %5711 = vrot.lane.b32.xlu1 %v12084_v32, %s10002_s6  ;;  %v5278_v16 = vld [vmem:[#allocation2 + $0x140] sm:$0xff] }
 0x647   : > { %v5469_v49 = vld [vmem:[#allocation2 + $0x13a] sm:$0xff]  ;;  %4992 = vst.msk [vmem:[#allocation2 + $0x159] sm:$0xff] %vm363_vm1, %v9318_v15  ;;  %v5297_v59 = vpack.c.bf16 %v5278_v16, %v5277_v21  ;;  %v5470_v56 = vld [vmem:[#allocation2 + $0x142] sm:$0xff] }
 0x648   : > { %v5405_v18 = vld [vmem:[#allocation2 + $0x139] sm:$0xff]  ;;  %v5406_v24 = vld [vmem:[#allocation2 + $0x141] sm:$0xff]  ;;  %v12210_v38 = vpack.c.bf16 %v5470_v56, %v5469_v49 }
 0x649   : > { %v5024_v43 = vld [vmem:[#allocation2 + $0x140] sm:$0xff]  ;;  %v5425_v32 = vpack.c.bf16 %v5406_v24, %v5405_v18  ;;  %v9319_v2 = vpop.f32.mrb[216].mxu1  ;;  %5341 = vrot.lane.b32.xlu0 %v5297_v59, %s10002_s6 }
 0x64a   : > { %v5042_v30 = vpack.c.bf16 %v5024_v43, %v5023_v46  ;;  %v5787_v41 = vld [vmem:[#allocation2 + $0x13a] sm:$0xff]  ;;  %v5788_v7 = vld [vmem:[#allocation2 + $0x142] sm:$0xff]  ;;  %5519 = vrot.lane.b32.xlu1 %v12062_v22, %s10002_s6  ;;  %v9320_v60 = vpop.f32.mrb[217].mxu1  ;;  %5250 = vst.msk [vmem:[#allocation3 + $0x210] sm:$0xff] %vm363_vm1, %v12210_v38 }
 0x64b   : > { %v5808_v1 = vpack.c.bf16 %v5788_v7, %v5787_v41  ;;  %5441 = vst.msk [vmem:[#allocation3 + $0x1f0] sm:$0xff] %vm363_vm1, %v5425_v32  ;;  %v9321_v10 = vadd.f32 %v9320_v60, %v9319_v2  ;;  %v9322_v31 = vpop.f32.mrb[218].mxu1  ;;  %v5088_v23 = vld [vmem:[#allocation2 + $0x141] sm:$0xff]  ;;  %v5087_v61 = vld [vmem:[#allocation2 + $0x139] sm:$0xff] }
 0x64c   : > { %5058 = vst.msk [vmem:[#allocation3 + $0x208] sm:$0xff] %vm363_vm1, %v5042_v30  ;;  %5632 = vst.msk [vmem:[#allocation3 + $0x1d0] sm:$0xff] %vm363_vm1, %v5042_v30  ;;  %v9323_v22 = vpop.f32.mrb[219].mxu1  ;;  %v5279_v58 = vld [vmem:[#allocation2 + $0x150] sm:$0xff]  ;;  %v12245_v26 = vpack.c.bf16 %v5088_v23, %v5087_v61 }
 0x64d   : > { %5824 = vst.msk [vmem:[#allocation3 + $0x1d8] sm:$0xff] %vm363_vm1, %v5808_v1  ;;  %4993 = vst.msk [vmem:[#allocation2 + $0x169] sm:$0xff] %vm363_vm1, %v9321_v10  ;;  %v9324_v6 = vadd.f32 %v9323_v22, %v9322_v31  ;;  %5149 = vrot.lane.b32.xlu0 %v12226_v29, %s10002_s6  ;;  %v5025_v13 = vld [vmem:[#allocation2 + $0x150] sm:$0xff] }
 0x64e   : > { %5713 = vrot.lane.b32.xlu1 %v12143_v8, %s10002_s6  ;;  %v5280_v19 = vld [vmem:[#allocation2 + $0x158] sm:$0xff] }
 0x64f   : > { %v5471_v39 = vld [vmem:[#allocation2 + $0x152] sm:$0xff]  ;;  %4994 = vst.msk [vmem:[#allocation2 + $0x171] sm:$0xff] %vm363_vm1, %v9324_v6  ;;  %v5298_v25 = vpack.c.bf16 %v5280_v19, %v5279_v58  ;;  %v5472_v9 = vld [vmem:[#allocation2 + $0x15a] sm:$0xff] }
 0x650   : > { %v5407_v63 = vld [vmem:[#allocation2 + $0x151] sm:$0xff]  ;;  %v5408_v51 = vld [vmem:[#allocation2 + $0x159] sm:$0xff]  ;;  %v12235_v20 = vpack.c.bf16 %v5472_v9, %v5471_v39 }
 0x651   : > { %v5026_v5 = vld [vmem:[#allocation2 + $0x158] sm:$0xff]  ;;  %v5426_v53 = vpack.c.bf16 %v5408_v51, %v5407_v63  ;;  %v9325_v37 = vpop.f32.mrb[220].mxu1  ;;  %5343 = vrot.lane.b32.xlu0 %v5298_v25, %s10002_s6  ;;  %v5829_v6 = vld [vmem:[#allocation3] sm:$0xff]  ;;  %v9909_v63 = vld [vmem:[%s13749_s4 + $0x108] sm:$0xff]  }
 0x652   : > { %v5043_v27 = vpack.c.bf16 %v5026_v5, %v5025_v13  ;;  %v5789_v47 = vld [vmem:[#allocation2 + $0x152] sm:$0xff]  ;;  %v5790_v48 = vld [vmem:[#allocation2 + $0x15a] sm:$0xff]  ;;  %5521 = vrot.lane.b32.xlu1 %v12086_v0, %s10002_s6  ;;  %v9326_v28 = vpop.f32.mrb[221].mxu1  ;;  %5251 = vst.msk [vmem:[#allocation3 + $0x238] sm:$0xff] %vm363_vm1, %v12235_v20 }
 0x653   : > { %v5809_v8 = vpack.c.bf16 %v5790_v48, %v5789_v47  ;;  %5442 = vst.msk [vmem:[#allocation3 + $0x218] sm:$0xff] %vm363_vm1, %v5426_v53  ;;  %v9327_v17 = vadd.f32 %v9326_v28, %v9325_v37  ;;  %v9328_v62 = vpop.f32.mrb[222].mxu1  ;;  %v5090_v16 = vld [vmem:[#allocation2 + $0x159] sm:$0xff]  ;;  %v5668_v53 = vld [vmem:[#allocation2 + $0x1a1] sm:$0xff] }
 0x654   : > { %5059 = vst.msk [vmem:[#allocation3 + $0x230] sm:$0xff] %vm363_vm1, %v5043_v27  ;;  %5633 = vst.msk [vmem:[#allocation3 + $0x1f8] sm:$0xff] %vm363_vm1, %v5043_v27  ;;  %v9329_v57 = vpop.f32.mrb[223].mxu1  ;;  %v5281_v3 = vld [vmem:[#allocation2 + $0x168] sm:$0xff]  ;;  %v5667_v27 = vld [vmem:[#allocation2 + $0x199] sm:$0xff] }
 0x655   : > { %5825 = vst.msk [vmem:[#allocation3 + $0x200] sm:$0xff] %vm363_vm1, %v5809_v8  ;;  %4995 = vst.msk [vmem:[#allocation2 + $0x181] sm:$0xff] %vm363_vm1, %v9327_v17  ;;  %v9330_v0 = vadd.f32 %v9329_v57, %v9328_v62  ;;  %5151 = vrot.lane.b32.xlu0 %v12245_v26, %s10002_s6  ;;  %v5027_v34 = vld [vmem:[#allocation2 + $0x168] sm:$0xff]  ;;  %v5684_v47 = vpack.c.bf16 %v5668_v53, %v5667_v27 }
 0x656   : > { %5715 = vrot.lane.b32.xlu1 %v12163_v40, %s10002_s6  ;;  %v5282_v35 = vld [vmem:[#allocation2 + $0x170] sm:$0xff] }
 0x657   : > { %v5473_v44 = vld [vmem:[#allocation2 + $0x16a] sm:$0xff]  ;;  %4996 = vst.msk [vmem:[#allocation2 + $0x189] sm:$0xff] %vm363_vm1, %v9330_v0  ;;  %v5299_v4 = vpack.c.bf16 %v5282_v35, %v5281_v3  ;;  %v5474_v15 = vld [vmem:[#allocation2 + $0x172] sm:$0xff]  ;;  %v5604_v3 = vld [vmem:[#allocation2 + $0x1a0] sm:$0xff] }
 0x658   : > { %v5409_v42 = vld [vmem:[#allocation2 + $0x169] sm:$0xff]  ;;  %v5410_v46 = vld [vmem:[#allocation2 + $0x171] sm:$0xff]  ;;  %v12254_v12 = vpack.c.bf16 %v5474_v15, %v5473_v44 }
 0x659   : > { %v5028_v21 = vld [vmem:[#allocation2 + $0x170] sm:$0xff]  ;;  %v5427_v18 = vpack.c.bf16 %v5410_v46, %v5409_v42  ;;  %5345 = vrot.lane.b32.xlu0 %v5299_v4, %s10002_s6  ;;  %v5603_v0 = vld [vmem:[#allocation2 + $0x198] sm:$0xff] }
 0x65a   : > { %v5044_v49 = vpack.c.bf16 %v5028_v21, %v5027_v34  ;;  %5523 = vrot.lane.b32.xlu1 %v12107_v11, %s10002_s6  ;;  %v5089_v40 = vld [vmem:[#allocation2 + $0x151] sm:$0xff]  ;;  %5252 = vst.msk [vmem:[#allocation3 + $0x260] sm:$0xff] %vm363_vm1, %v12254_v12  ;;  %5826 = vst.msk [vmem:[#allocation3 + $0x228] sm:$0xff] %vm363_vm1, %v12254_v12  ;;  %v5620_v34 = vpack.c.bf16 %v5604_v3, %v5603_v0 }
 0x65b   : > { %5443 = vst.msk [vmem:[#allocation3 + $0x240] sm:$0xff] %vm363_vm1, %v5427_v18  ;;  %v12266_v59 = vpack.c.bf16 %v5090_v16, %v5089_v40  ;;  %v5318_v56 = vpop.permute.xlu0 %5317  ;;  %v5092_v10 = vld [vmem:[#allocation2 + $0x171] sm:$0xff] }
 0x65c   : > { %5060 = vst.msk [vmem:[#allocation3 + $0x258] sm:$0xff] %vm363_vm1, %v5044_v49  ;;  %5634 = vst.msk [vmem:[#allocation3 + $0x220] sm:$0xff] %vm363_vm1, %v5044_v49  ;;  %v5128_v43 = vpop.permute.xlu1 %5127  ;;  %v5283_v11 = vld [vmem:[#allocation2 + $0x180] sm:$0xff] }
 0x65d   : > { %5365 = vst.msk [vmem:[#allocation3 + $0x8] sm:$0xff] %vm1064_vm3, %v5318_v56  ;;  %5174 = vst.msk [vmem:[#allocation3 + $0x28] sm:$0xff] %vm1064_vm3, %v5128_v43  ;;  %5153 = vrot.lane.b32.xlu0 %v12266_v59, %s10002_s6  ;;  %v5665_v24 = vld [vmem:[#allocation2 + $0x181] sm:$0xff] }
 0x65e   : > { %5525 = vrot.lane.b32.xlu1 %v12134_v45, %s10002_s6  ;;  %v5284_v30 = vld [vmem:[#allocation2 + $0x188] sm:$0xff]  ;;  %v5601_v60 = vld [vmem:[#allocation2 + $0x180] sm:$0xff]  ;;  %5636 = vst.msk [vmem:[#allocation3 + $0x270] sm:$0xff] %vm363_vm1, %v5620_v34 }
 0x65f   : > { %v5666_v32 = vld [vmem:[#allocation2 + $0x189] sm:$0xff]  ;;  %v5300_v7 = vpack.c.bf16 %v5284_v30, %v5283_v11 }
 0x660   : > { %v5475_v41 = vld [vmem:[#allocation2 + $0x182] sm:$0xff]  ;;  %v12274_v2 = vpack.c.bf16 %v5666_v32, %v5665_v24  ;;  %v5476_v1 = vld [vmem:[#allocation2 + $0x18a] sm:$0xff] }
 0x661   : > { %v5602_v55 = vld [vmem:[#allocation2 + $0x188] sm:$0xff]  ;;  %v5492_v31 = vpack.c.bf16 %v5476_v1, %v5475_v41  ;;  %5347 = vrot.lane.b32.xlu0 %v5300_v7, %s10002_s6 }
 0x662   : > { %v5619_v22 = vpack.c.bf16 %v5602_v55, %v5601_v60  ;;  %5527 = vrot.lane.b32.xlu1 %v12153_v33, %s10002_s6  ;;  %5444 = vst.msk [vmem:[#allocation3 + $0x268] sm:$0xff] %vm363_vm1, %v12274_v2  ;;  %v5091_v45 = vld [vmem:[#allocation2 + $0x169] sm:$0xff] }
 0x663   : > { %5827 = vst.msk [vmem:[#allocation3 + $0x250] sm:$0xff] %vm363_vm1, %v5492_v31  ;;  %v5108_v58 = vpack.c.bf16 %v5092_v10, %v5091_v45  ;;  %v5320_v13 = vpop.permute.xlu0 %5319  ;;  %v9910_v33 = vld [vmem:[%s13749_s4 + $0x110] sm:$0xff]  }
 0x664   : > { %5635 = vst.msk [vmem:[#allocation3 + $0x248] sm:$0xff] %vm363_vm1, %v5619_v22  ;;  %v5830_v19 = vld [vmem:[#allocation3 + $0x8] sm:$0xff]  ;;  %v5130_v39 = vpop.permute.xlu1 %5129 }
 0x665   : > { %5366 = vst.msk [vmem:[#allocation3 + $0x30] sm:$0xff] %vm1064_vm3, %v5320_v13  ;;  %6277 = vmatprep.mubr.bf16.mxu0 %v5830_v19  ;;  %5175 = vst.msk [vmem:[#allocation3 + $0x50] sm:$0xff] %vm1064_vm3, %v5130_v39  ;;  %5155 = vrot.lane.b32.xlu0 %v5108_v58, %s10002_s6 }
 0x666   : > { %6278 = vmatmul.mubr.bf16.vlgmr.msra.gmra.mrb[192].mxu0 %v5829_v6  ;;  %5529 = vrot.lane.b32.xlu1 %v12172_v14, %s10002_s6  ;;  %v9911_v14 = vld [vmem:[%s13749_s4 + $0x118] sm:$0xff]  }
 0x667   : > { %9690 = vmatpush3.bf16.msra.mxu0 %v12215_v54  ;;  %v5834_v54 = vld [vmem:[#allocation3 + $0x28] sm:$0xff] }
 0x668   : > { %9691 = vmatprep.subr.bf16.mxu0 %v9909_v63 }
 0x669   : > { %5717 = vrot.lane.b32.xlu0 %v12182_v52, %s10002_s6 }
 0x66a   : > { %5531 = vrot.lane.b32.xlu1 %v12191_v36, %s10002_s6 }
 0x66b   : > { %9692 = vmatpush3.bf16.msra.mxu0 %v9909_v63  ;;  %v5322_v25 = vpop.permute.xlu0 %5321 }
 0x66c   : > { %v5835_v9 = vld [vmem:[#allocation3 + $0x30] sm:$0xff]  ;;  %v5132_v5 = vpop.permute.xlu1 %5131  ;;  %9693 = vmatprep.subr.bf16.mxu0 %v9910_v33  ;;  %5367 = vst.msk [vmem:[#allocation3 + $0x58] sm:$0xff] %vm1064_vm3, %v5322_v25 }
 0x66d   : > { %6285 = vmatprep.mubr.bf16.mxu0 %v5835_v9  ;;  %5176 = vst.msk [vmem:[#allocation3 + $0x78] sm:$0xff] %vm1064_vm3, %v5132_v5  ;;  %5719 = vrot.lane.b32.xlu0 %v12201_v50, %s10002_s6  ;;  %v5839_v23 = vld [vmem:[#allocation3 + $0x50] sm:$0xff] }
 0x66e   : > { %6286 = vmatmul.mubr.bf16.gmra.mrb[196].mxu0 %v5834_v54  ;;  %5533 = vrot.lane.b32.xlu1 %v12210_v38, %s10002_s6 }
 0x66f   : > { %9694 = vmatpush3.bf16.msra.mxu0 %v9910_v33 }
 0x670   : > { %9695 = vmatprep.subr.bf16.mxu0 %v9911_v14 }
 0x671   : > { %5721 = vrot.lane.b32.xlu0 %v12226_v29, %s10002_s6 }
 0x672   : > { %5535 = vrot.lane.b32.xlu1 %v12235_v20, %s10002_s6 }
 0x673   : > { %9696 = vmatpush3.bf16.msra.mxu0 %v9911_v14  ;;  %v5324_v52 = vpop.permute.xlu0 %5323  ;;  %v5840_v36 = vld [vmem:[#allocation3 + $0x58] sm:$0xff] }
 0x674   : > { %v5134_v51 = vpop.permute.xlu1 %5133  ;;  %5368 = vst.msk [vmem:[#allocation3 + $0x80] sm:$0xff] %vm1064_vm3, %v5324_v52  ;;  %6293 = vmatprep.mubr.bf16.mxu0 %v5840_v36  ;;  %v5844_v20 = vld [vmem:[#allocation3 + $0x78] sm:$0xff] }
 0x675   : > { %5177 = vst.msk [vmem:[#allocation3 + $0xa0] sm:$0xff] %vm1064_vm3, %v5134_v51  ;;  %5723 = vrot.lane.b32.xlu0 %v12245_v26, %s10002_s6 }
 0x676   : > { %6294 = vmatmul.mubr.bf16.gmra.mrb[200].mxu0 %v5839_v23  ;;  %5537 = vrot.lane.b32.xlu1 %v12254_v12, %s10002_s6 }
 0x679   : > { %5725 = vrot.lane.b32.xlu0 %v12266_v59, %s10002_s6 }
 0x67a   : > { %5539 = vrot.lane.b32.xlu1 %v5492_v31, %s10002_s6 }
 0x67b   : > { %v5326_v50 = vpop.permute.xlu0 %5325  ;;  %v5845_v38 = vld [vmem:[#allocation3 + $0x80] sm:$0xff] }
 0x67c   : > { %v5136_v29 = vpop.permute.xlu1 %5135  ;;  %5369 = vst.msk [vmem:[#allocation3 + $0xa8] sm:$0xff] %vm1064_vm3, %v5326_v50  ;;  %6301 = vmatprep.mubr.bf16.mxu0 %v5845_v38  ;;  %v5849_v28 = vld [vmem:[#allocation3 + $0xa0] sm:$0xff] }
 0x67d   : > { %5178 = vst.msk [vmem:[#allocation3 + $0xc8] sm:$0xff] %vm1064_vm3, %v5136_v29  ;;  %5727 = vrot.lane.b32.xlu0 %v5108_v58, %s10002_s6 }
 0x67e   : > { %6302 = vmatmul.mubr.bf16.gmra.mrb[204].mxu0 %v5844_v20 }
 0x681   : > { %5729 = vrot.lane.b32.xlu0 %v12274_v2, %s10002_s6 }
 0x683   : > { %v5328_v48 = vpop.permute.xlu0 %5327  ;;  %v5850_v37 = vld [vmem:[#allocation3 + $0xa8] sm:$0xff] }
 0x684   : > { %v5138_v8 = vpop.permute.xlu1 %5137  ;;  %5370 = vst.msk [vmem:[#allocation3 + $0xd0] sm:$0xff] %vm1064_vm3, %v5328_v48  ;;  %6309 = vmatprep.mubr.bf16.mxu0 %v5850_v37  ;;  %v5854_v26 = vld [vmem:[#allocation3 + $0xc8] sm:$0xff] }
 0x685   : > { %5179 = vst.msk [vmem:[#allocation3 + $0xf0] sm:$0xff] %vm1064_vm3, %v5138_v8  ;;  %5731 = vrot.lane.b32.xlu0 %v5684_v47, %s10002_s6 }
 0x686   : > { %6310 = vmatmul.mubr.bf16.gmra.mrb[208].mxu0 %v5849_v28 }
 0x68b   : > { %v5330_v61 = vpop.permute.xlu0 %5329  ;;  %v5855_v17 = vld [vmem:[#allocation3 + $0xd0] sm:$0xff] }
 0x68c   : > { %v5140_v62 = vpop.permute.xlu1 %5139  ;;  %5371 = vst.msk [vmem:[#allocation3 + $0xf8] sm:$0xff] %vm1064_vm3, %v5330_v61  ;;  %6317 = vmatprep.mubr.bf16.mxu0 %v5855_v17  ;;  %v5859_v4 = vld [vmem:[#allocation3 + $0xf0] sm:$0xff] }
 0x68d   : > { %5180 = vst.msk [vmem:[#allocation3 + $0x118] sm:$0xff] %vm1064_vm3, %v5140_v62 }
 0x68e   : > { %6318 = vmatmul.mubr.bf16.gmra.mrb[212].mxu0 %v5854_v26 }
 0x690   : > { %v5702_v57 = vpop.permute.xlu1 %5701 }
 0x691   : > { %5749 = vst.msk [vmem:[#allocation3 + $0x18] sm:$0xff] %vm1064_vm3, %v5702_v57 }
 0x693   : > { %v5332_v35 = vpop.permute.xlu0 %5331  ;;  %v5860_v44 = vld [vmem:[#allocation3 + $0xf8] sm:$0xff] }
 0x694   : > { %v5510_v42 = vpop.permute.xlu1 %5509  ;;  %5372 = vst.msk [vmem:[#allocation3 + $0x120] sm:$0xff] %vm1064_vm3, %v5332_v35  ;;  %6325 = vmatprep.mubr.bf16.mxu0 %v5860_v44  ;;  %v5864_v18 = vld [vmem:[#allocation3 + $0x118] sm:$0xff] }
 0x695   : > { %5557 = vst.msk [vmem:[#allocation3 + $0x10] sm:$0xff] %vm1064_vm3, %v5510_v42 }
 0x696   : > { %6326 = vmatmul.mubr.bf16.gmra.mrb[216].mxu0 %v5859_v4 }
 0x698   : > { %v5704_v15 = vpop.permute.xlu1 %5703  ;;  %v5832_v21 = vld [vmem:[#allocation3 + $0x18] sm:$0xff] }
 0x699   : > { %5750 = vst.msk [vmem:[#allocation3 + $0x40] sm:$0xff] %vm1064_vm3, %v5704_v15  ;;  %6438 = vmatprep.mubr.bf16.mxu1 %v5832_v21 }
 0x69b   : > { %v5334_v46 = vpop.permute.xlu0 %5333  ;;  %v5865_v16 = vld [vmem:[#allocation3 + $0x120] sm:$0xff] }
 0x69c   : > { %v5512_v12 = vpop.permute.xlu1 %5511  ;;  %v5831_v49 = vld [vmem:[#allocation3 + $0x10] sm:$0xff]  ;;  %5373 = vst.msk [vmem:[#allocation3 + $0x148] sm:$0xff] %vm1064_vm3, %v5334_v46  ;;  %6333 = vmatprep.mubr.bf16.mxu0 %v5865_v16 }
 0x69d   : > { %5558 = vst.msk [vmem:[#allocation3 + $0x38] sm:$0xff] %vm1064_vm3, %v5512_v12  ;;  %6439 = vmatmul.mubr.bf16.vlgmr.msra.gmra.mrb[224].mxu1 %v5831_v49 }
 0x69e   : > { %6334 = vmatmul.mubr.bf16.gmra.mrb[220].mxu0 %v5864_v18  ;;  %v5833_v18 = vld [vmem:[#allocation3 + $0x20] sm:$0xff] }
 0x69f   : > { %v5142_v40 = vpop.permute.xlu0 %5141 }
 0x6a0   : > { %v5706_v59 = vpop.permute.xlu1 %5705  ;;  %v5837_v56 = vld [vmem:[#allocation3 + $0x40] sm:$0xff]  ;;  %5181 = vst.msk [vmem:[#allocation3 + $0x140] sm:$0xff] %vm1064_vm3, %v5142_v40 }
 0x6a1   : > { %5751 = vst.msk [vmem:[#allocation3 + $0x68] sm:$0xff] %vm1064_vm3, %v5706_v59  ;;  %6446 = vmatprep.mubr.bf16.mxu1 %v5837_v56 }
 0x6a3   : > { %v5336_v43 = vpop.permute.xlu0 %5335  ;;  %v5870_v11 = vld [vmem:[#allocation3 + $0x148] sm:$0xff] }
 0x6a4   : > { %v5514_v24 = vpop.permute.xlu1 %5513  ;;  %v5836_v30 = vld [vmem:[#allocation3 + $0x38] sm:$0xff]  ;;  %5374 = vst.msk [vmem:[#allocation3 + $0x170] sm:$0xff] %vm1064_vm3, %v5336_v43  ;;  %6341 = vmatprep.mubr.bf16.mxu0 %v5870_v11 }
 0x6a5   : > { %5559 = vst.msk [vmem:[#allocation3 + $0x60] sm:$0xff] %vm1064_vm3, %v5514_v24  ;;  %6447 = vmatmul.mubr.bf16.gmra.mrb[228].mxu1 %v5836_v30  ;;  %v5838_v24 = vld [vmem:[#allocation3 + $0x48] sm:$0xff] }
 0x6a7   : > { %v5144_v32 = vpop.permute.xlu0 %5143  ;;  %v5869_v41 = vld [vmem:[#allocation3 + $0x140] sm:$0xff] }
 0x6a8   : > { %v5708_v7 = vpop.permute.xlu1 %5707  ;;  %v5842_v2 = vld [vmem:[#allocation3 + $0x68] sm:$0xff]  ;;  %5182 = vst.msk [vmem:[#allocation3 + $0x168] sm:$0xff] %vm1064_vm3, %v5144_v32  ;;  %6342 = vmatmul.mubr.bf16.gmra.mrb[224].mxu0 %v5869_v41  ;;  %v5843_v41 = vld [vmem:[#allocation3 + $0x70] sm:$0xff] }
 0x6a9   : > { %5752 = vst.msk [vmem:[#allocation3 + $0x90] sm:$0xff] %vm1064_vm3, %v5708_v7  ;;  %6454 = vmatprep.mubr.bf16.mxu1 %v5842_v2 }
 0x6ab   : > { %v5338_v1 = vpop.permute.xlu0 %5337  ;;  %v5875_v60 = vld [vmem:[#allocation3 + $0x170] sm:$0xff] }
 0x6ac   : > { %v5516_v55 = vpop.permute.xlu1 %5515  ;;  %v5841_v10 = vld [vmem:[#allocation3 + $0x60] sm:$0xff]  ;;  %5375 = vst.msk [vmem:[#allocation3 + $0x198] sm:$0xff] %vm1064_vm3, %v5338_v1  ;;  %6349 = vmatprep.mubr.bf16.mxu0 %v5875_v60 }
 0x6ad   : > { %5560 = vst.msk [vmem:[#allocation3 + $0x88] sm:$0xff] %vm1064_vm3, %v5516_v55  ;;  %6455 = vmatmul.mubr.bf16.gmra.mrb[232].mxu1 %v5841_v10  ;;  %v5848_v10 = vld [vmem:[#allocation3 + $0x98] sm:$0xff] }
 0x6af   : > { %v5146_v31 = vpop.permute.xlu0 %5145  ;;  %v5874_v22 = vld [vmem:[#allocation3 + $0x168] sm:$0xff] }
 0x6b0   : > { %v5710_v45 = vpop.permute.xlu1 %5709  ;;  %v5847_v6 = vld [vmem:[#allocation3 + $0x90] sm:$0xff]  ;;  %5183 = vst.msk [vmem:[#allocation3 + $0x190] sm:$0xff] %vm1064_vm3, %v5146_v31  ;;  %6350 = vmatmul.mubr.bf16.gmra.mrb[228].mxu0 %v5874_v22  ;;  %v5853_v22 = vld [vmem:[#allocation3 + $0xc0] sm:$0xff] }
 0x6b1   : > { %5753 = vst.msk [vmem:[#allocation3 + $0xb8] sm:$0xff] %vm1064_vm3, %v5710_v45  ;;  %6462 = vmatprep.mubr.bf16.mxu1 %v5847_v6 }
 0x6b3   : > { %v5340_v58 = vpop.permute.xlu0 %5339  ;;  %v5880_v13 = vld [vmem:[#allocation3 + $0x198] sm:$0xff] }
 0x6b4   : > { %v5518_v19 = vpop.permute.xlu1 %5517  ;;  %v5846_v39 = vld [vmem:[#allocation3 + $0x88] sm:$0xff]  ;;  %5376 = vst.msk [vmem:[#allocation3 + $0x1c0] sm:$0xff] %vm1064_vm3, %v5340_v58  ;;  %6357 = vmatprep.mubr.bf16.mxu0 %v5880_v13 }
 0x6b5   : > { %5561 = vst.msk [vmem:[#allocation3 + $0xb0] sm:$0xff] %vm1064_vm3, %v5518_v19  ;;  %6463 = vmatmul.mubr.bf16.gmra.mrb[236].mxu1 %v5846_v39  ;;  %v5858_v13 = vld [vmem:[#allocation3 + $0xe8] sm:$0xff]  ;;  %v5863_v39 = vld [vmem:[#allocation3 + $0x110] sm:$0xff] }
 0x6b7   : > { %v5148_v63 = vpop.permute.xlu0 %5147  ;;  %v5879_v33 = vld [vmem:[#allocation3 + $0x190] sm:$0xff] }
 0x6b8   : > { %v5712_v25 = vpop.permute.xlu1 %5711  ;;  %v5852_v9 = vld [vmem:[#allocation3 + $0xb8] sm:$0xff]  ;;  %5184 = vst.msk [vmem:[#allocation3 + $0x1b8] sm:$0xff] %vm1064_vm3, %v5148_v63  ;;  %6358 = vmatmul.mubr.bf16.gmra.mrb[232].mxu0 %v5879_v33 }
 0x6b9   : > { %5754 = vst.msk [vmem:[#allocation3 + $0xe0] sm:$0xff] %vm1064_vm3, %v5712_v25  ;;  %6470 = vmatprep.mubr.bf16.mxu1 %v5852_v9  ;;  %v5868_v25 = vld [vmem:[#allocation3 + $0x138] sm:$0xff]  ;;  %v5873_v9 = vld [vmem:[#allocation3 + $0x160] sm:$0xff] }
 0x6bb   : > { %v5342_v5 = vpop.permute.xlu0 %5341  ;;  %v5885_v14 = vld [vmem:[#allocation3 + $0x1c0] sm:$0xff] }
 0x6bc   : > { %v5520_v54 = vpop.permute.xlu1 %5519  ;;  %v5851_v52 = vld [vmem:[#allocation3 + $0xb0] sm:$0xff]  ;;  %5377 = vst.msk [vmem:[#allocation3 + $0x1e8] sm:$0xff] %vm1064_vm3, %v5342_v5  ;;  %6365 = vmatprep.mubr.bf16.mxu0 %v5885_v14 }
 0x6bd   : > { %5562 = vst.msk [vmem:[#allocation3 + $0xd8] sm:$0xff] %vm1064_vm3, %v5520_v54  ;;  %6471 = vmatmul.mubr.bf16.gmra.mrb[240].mxu1 %v5851_v52  ;;  %v5878_v54 = vld [vmem:[#allocation3 + $0x188] sm:$0xff]  ;;  %v5883_v52 = vld [vmem:[#allocation3 + $0x1b0] sm:$0xff] }
 0x6bf   : > { %v5150_v36 = vpop.permute.xlu0 %5149  ;;  %v5884_v51 = vld [vmem:[#allocation3 + $0x1b8] sm:$0xff] }
 0x6c0   : > { %v5714_v23 = vpop.permute.xlu1 %5713  ;;  %v5857_v50 = vld [vmem:[#allocation3 + $0xe0] sm:$0xff]  ;;  %5185 = vst.msk [vmem:[#allocation3 + $0x1e0] sm:$0xff] %vm1064_vm3, %v5150_v36  ;;  %6366 = vmatmul.mubr.bf16.gmra.mrb[236].mxu0 %v5884_v51 }
 0x6c1   : > { %5755 = vst.msk [vmem:[#allocation3 + $0x108] sm:$0xff] %vm1064_vm3, %v5714_v23  ;;  %6478 = vmatprep.mubr.bf16.mxu1 %v5857_v50  ;;  %v5888_v23 = vld [vmem:[#allocation3 + $0x1d8] sm:$0xff]  ;;  %v5893_v50 = vld [vmem:[#allocation3 + $0x200] sm:$0xff] }
 0x6c3   : > { %v5344_v38 = vpop.permute.xlu0 %5343  ;;  %v5890_v29 = vld [vmem:[#allocation3 + $0x1e8] sm:$0xff] }
 0x6c4   : > { %v5522_v20 = vpop.permute.xlu1 %5521  ;;  %v5856_v27 = vld [vmem:[#allocation3 + $0xd8] sm:$0xff]  ;;  %5378 = vst.msk [vmem:[#allocation3 + $0x210] sm:$0xff] %vm1064_vm3, %v5344_v38  ;;  %6373 = vmatprep.mubr.bf16.mxu0 %v5890_v29 }
 0x6c5   : > { %5563 = vst.msk [vmem:[#allocation3 + $0x100] sm:$0xff] %vm1064_vm3, %v5522_v20  ;;  %6479 = vmatmul.mubr.bf16.gmra.mrb[244].mxu1 %v5856_v27  ;;  %v5898_v20 = vld [vmem:[#allocation3 + $0x228] sm:$0xff]  ;;  %v5903_v27 = vld [vmem:[#allocation3 + $0x250] sm:$0xff] }
 0x6c7   : > { %v5152_v53 = vpop.permute.xlu0 %5151  ;;  %v5889_v47 = vld [vmem:[#allocation3 + $0x1e0] sm:$0xff] }
 0x6c8   : > { %v5716_v48 = vpop.permute.xlu1 %5715  ;;  %v5862_v37 = vld [vmem:[#allocation3 + $0x108] sm:$0xff]  ;;  %5186 = vst.msk [vmem:[#allocation3 + $0x208] sm:$0xff] %vm1064_vm3, %v5152_v53  ;;  %6374 = vmatmul.mubr.bf16.gmra.mrb[240].mxu0 %v5889_v47  ;;  %v5908_v47 = vld [vmem:[#allocation3 + $0x278] sm:$0xff] }
 0x6c9   : > { %5756 = vst.msk [vmem:[#allocation3 + $0x130] sm:$0xff] %vm1064_vm3, %v5716_v48  ;;  %6486 = vmatprep.mubr.bf16.mxu1 %v5862_v37 }
 0x6cb   : > { %v5346_v8 = vpop.permute.xlu0 %5345  ;;  %v5895_v28 = vld [vmem:[#allocation3 + $0x210] sm:$0xff] }
 0x6cc   : > { %v5524_v61 = vpop.permute.xlu1 %5523  ;;  %v5861_v17 = vld [vmem:[#allocation3 + $0x100] sm:$0xff]  ;;  %5379 = vst.msk [vmem:[#allocation3 + $0x238] sm:$0xff] %vm1064_vm3, %v5346_v8  ;;  %6381 = vmatprep.mubr.bf16.mxu0 %v5895_v28 }
 0x6cd   : > { %5564 = vst.msk [vmem:[#allocation3 + $0x128] sm:$0xff] %vm1064_vm3, %v5524_v61  ;;  %6487 = vmatmul.mubr.bf16.gmra.mrb[248].mxu1 %v5861_v17 }
 0x6cf   : > { %v5154_v62 = vpop.permute.xlu0 %5153  ;;  %v5894_v26 = vld [vmem:[#allocation3 + $0x208] sm:$0xff] }
 0x6d0   : > { %v5867_v57 = vld [vmem:[#allocation3 + $0x130] sm:$0xff]  ;;  %v5526_v0 = vpop.permute.xlu1 %5525  ;;  %5187 = vst.msk [vmem:[#allocation3 + $0x230] sm:$0xff] %vm1064_vm3, %v5154_v62  ;;  %6382 = vmatmul.mubr.bf16.gmra.mrb[244].mxu0 %v5894_v26 }
 0x6d1   : > { %6494 = vmatprep.mubr.bf16.mxu1 %v5867_v57  ;;  %5565 = vst.msk [vmem:[#allocation3 + $0x150] sm:$0xff] %vm1064_vm3, %v5526_v0 }
 0x6d3   : > { %v5348_v3 = vpop.permute.xlu0 %5347  ;;  %v5900_v34 = vld [vmem:[#allocation3 + $0x238] sm:$0xff] }
 0x6d4   : > { %v5866_v35 = vld [vmem:[#allocation3 + $0x128] sm:$0xff]  ;;  %v5528_v44 = vpop.permute.xlu1 %5527  ;;  %5380 = vst.msk [vmem:[#allocation3 + $0x260] sm:$0xff] %vm1064_vm3, %v5348_v3  ;;  %6389 = vmatprep.mubr.bf16.mxu0 %v5900_v34 }
 0x6d5   : > { %6495 = vmatmul.mubr.bf16.gmra.mrb[252].mxu1 %v5866_v35  ;;  %5566 = vst.msk [vmem:[#allocation3 + $0x178] sm:$0xff] %vm1064_vm3, %v5528_v44 }
 0x6d7   : > { %v5156_v42 = vpop.permute.xlu0 %5155  ;;  %v5899_v4 = vld [vmem:[#allocation3 + $0x230] sm:$0xff] }
 0x6d8   : > { %5188 = vst.msk [vmem:[#allocation3 + $0x258] sm:$0xff] %vm1064_vm3, %v5156_v42  ;;  %6390 = vmatmul.mubr.bf16.gmra.mrb[248].mxu0 %v5899_v4  ;;  %v5530_v15 = vpop.permute.xlu1 %5529  ;;  %v5871_v43 = vld [vmem:[#allocation3 + $0x150] sm:$0xff] }
 0x6d9   : > { %5567 = vst.msk [vmem:[#allocation3 + $0x1a0] sm:$0xff] %vm1064_vm3, %v5530_v15 }
 0x6db   : > { %v5905_v21 = vld [vmem:[#allocation3 + $0x260] sm:$0xff]  ;;  %v5718_v46 = vpop.permute.xlu0 %5717 }
 0x6dc   : > { %6397 = vmatprep.mubr.bf16.mxu0 %v5905_v21  ;;  %5757 = vst.msk [vmem:[#allocation3 + $0x158] sm:$0xff] %vm1064_vm3, %v5718_v46  ;;  %v5532_v16 = vpop.permute.xlu1 %5531  ;;  %v5876_v1 = vld [vmem:[#allocation3 + $0x178] sm:$0xff] }
 0x6dd   : > { %5568 = vst.msk [vmem:[#allocation3 + $0x1c8] sm:$0xff] %vm1064_vm3, %v5532_v16 }
 0x6df   : > { %v5904_v12 = vld [vmem:[#allocation3 + $0x258] sm:$0xff]  ;;  %v5720_v49 = vpop.permute.xlu0 %5719 }
 0x6e0   : > { %6398 = vmatmul.mubr.bf16.gmra.mrb[252].mxu0 %v5904_v12  ;;  %5758 = vst.msk [vmem:[#allocation3 + $0x180] sm:$0xff] %vm1064_vm3, %v5720_v49  ;;  %v5534_v40 = vpop.permute.xlu1 %5533  ;;  %v5881_v6 = vld [vmem:[#allocation3 + $0x1a0] sm:$0xff] }
 0x6e1   : > { %9697 = vmatprep.mubr.msk.bf16.mxu0 %vm363_vm1, %v5833_v18  ;;  %5569 = vst.msk [vmem:[#allocation3 + $0x1f0] sm:$0xff] %vm1064_vm3, %v5534_v40 }
 0x6e3   : > { %v5872_v59 = vld [vmem:[#allocation3 + $0x158] sm:$0xff]  ;;  %v5722_v56 = vpop.permute.xlu0 %5721 }
 0x6e4   : > { %6502 = vmatprep.mubr.bf16.mxu1 %v5872_v59  ;;  %5759 = vst.msk [vmem:[#allocation3 + $0x1a8] sm:$0xff] %vm1064_vm3, %v5722_v56  ;;  %v5536_v11 = vpop.permute.xlu1 %5535  ;;  %v5886_v63 = vld [vmem:[#allocation3 + $0x1c8] sm:$0xff] }
 0x6e5   : > { %6503 = vmatmul.mubr.bf16.gmra.mrb[0].mxu1 %v5871_v43  ;;  %5570 = vst.msk [vmem:[#allocation3 + $0x218] sm:$0xff] %vm1064_vm3, %v5536_v11 }
 0x6e7   : > { %v5877_v30 = vld [vmem:[#allocation3 + $0x180] sm:$0xff]  ;;  %v5724_v32 = vpop.permute.xlu0 %5723 }
 0x6e8   : > { %9698 = vmatmul.mubr.msk.bf16.vlgmr.msra.gmra.mrb[0].mxu0 %vm363_vm1, %v5838_v24  ;;  %6510 = vmatprep.mubr.bf16.mxu1 %v5877_v30  ;;  %5760 = vst.msk [vmem:[#allocation3 + $0x1d0] sm:$0xff] %vm1064_vm3, %v5724_v32  ;;  %v5538_v7 = vpop.permute.xlu1 %5537  ;;  %v5891_v5 = vld [vmem:[#allocation3 + $0x1f0] sm:$0xff] }
 0x6e9   : > { %9701 = vmatprep.mubr.msk.bf16.mxu0 %vm363_vm1, %v5843_v41  ;;  %5571 = vst.msk [vmem:[#allocation3 + $0x240] sm:$0xff] %vm1064_vm3, %v5538_v7 }
 0x6eb   : > { %v5726_v2 = vpop.permute.xlu0 %5725  ;;  %v5882_v55 = vld [vmem:[#allocation3 + $0x1a8] sm:$0xff] }
 0x6ec   : > { %5761 = vst.msk [vmem:[#allocation3 + $0x1f8] sm:$0xff] %vm1064_vm3, %v5726_v2  ;;  %v5540_v60 = vpop.permute.xlu1 %5539  ;;  %v5896_v36 = vld [vmem:[#allocation3 + $0x218] sm:$0xff] }
 0x6ed   : > { %6511 = vmatmul.mubr.bf16.gmra.mrb[4].mxu1 %v5876_v1  ;;  %5572 = vst.msk [vmem:[#allocation3 + $0x268] sm:$0xff] %vm1064_vm3, %v5540_v60 }
 0x6ee   : > { %6518 = vmatprep.mubr.bf16.mxu1 %v5882_v55 }
 0x6ef   : > { %v5728_v31 = vpop.permute.xlu0 %5727  ;;  %v5887_v58 = vld [vmem:[#allocation3 + $0x1d0] sm:$0xff] }
 0x6f0   : > { %9702 = vmatmul.mubr.msk.bf16.gmra.mrb[4].mxu0 %vm363_vm1, %v5848_v10  ;;  %5762 = vst.msk [vmem:[#allocation3 + $0x220] sm:$0xff] %vm1064_vm3, %v5728_v31  ;;  %v5901_v29 = vld [vmem:[#allocation3 + $0x240] sm:$0xff] }
 0x6f1   : > { %9705 = vmatprep.mubr.msk.bf16.mxu0 %vm363_vm1, %v5853_v22 }
 0x6f3   : > { %v5730_v45 = vpop.permute.xlu0 %5729  ;;  %v5892_v33 = vld [vmem:[#allocation3 + $0x1f8] sm:$0xff] }
 0x6f4   : > { %5763 = vst.msk [vmem:[#allocation3 + $0x248] sm:$0xff] %vm1064_vm3, %v5730_v45  ;;  %v5906_v53 = vld [vmem:[#allocation3 + $0x268] sm:$0xff] }
 0x6f5   : > { %6519 = vmatmul.mubr.bf16.gmra.mrb[8].mxu1 %v5881_v6 }
 0x6f6   : > { %6526 = vmatprep.mubr.bf16.mxu1 %v5887_v58 }
 0x6f7   : > { %v5732_v19 = vpop.permute.xlu0 %5731  ;;  %v5897_v14 = vld [vmem:[#allocation3 + $0x220] sm:$0xff] }
 0x6f8   : > { %9706 = vmatmul.mubr.msk.bf16.gmra.mrb[8].mxu0 %vm363_vm1, %v5858_v13  ;;  %5764 = vst.msk [vmem:[#allocation3 + $0x270] sm:$0xff] %vm1064_vm3, %v5732_v19 }
 0x6f9   : > { %9709 = vmatprep.mubr.msk.bf16.mxu0 %vm363_vm1, %v5863_v39 }
 0x6fb   : > { %v5902_v51 = vld [vmem:[#allocation3 + $0x248] sm:$0xff] }
 0x6fd   : > { %6527 = vmatmul.mubr.bf16.gmra.mrb[12].mxu1 %v5886_v63 }
 0x6fe   : > { %6534 = vmatprep.mubr.bf16.mxu1 %v5892_v33 }
 0x6ff   : > { %v5907_v38 = vld [vmem:[#allocation3 + $0x270] sm:$0xff] }
 0x700   : > { %9710 = vmatmul.mubr.msk.bf16.gmra.mrb[12].mxu0 %vm363_vm1, %v5868_v25 }
 0x701   : > { %9713 = vmatprep.mubr.msk.bf16.mxu0 %vm363_vm1, %v5873_v9 }
 0x705   : > { %6535 = vmatmul.mubr.bf16.gmra.mrb[16].mxu1 %v5891_v5 }
 0x706   : > { %6542 = vmatprep.mubr.bf16.mxu1 %v5897_v14 }
 0x708   : > { %9714 = vmatmul.mubr.msk.bf16.gmra.mrb[16].mxu0 %vm363_vm1, %v5878_v54 }
 0x709   : > { %9717 = vmatprep.mubr.msk.bf16.mxu0 %vm363_vm1, %v5883_v52 }
 0x70d   : > { %6543 = vmatmul.mubr.bf16.gmra.mrb[20].mxu1 %v5896_v36 }
 0x70e   : > { %6550 = vmatprep.mubr.bf16.mxu1 %v5902_v51 }
 0x710   : > { %9718 = vmatmul.mubr.msk.bf16.gmra.mrb[20].mxu0 %vm363_vm1, %v5888_v23 }
 0x711   : > { %9721 = vmatprep.mubr.msk.bf16.mxu0 %vm363_vm1, %v5893_v50 }
 0x715   : > { %6551 = vmatmul.mubr.bf16.gmra.mrb[24].mxu1 %v5901_v29 }
 0x716   : > { %6558 = vmatprep.mubr.bf16.mxu1 %v5907_v38 }
 0x718   : > { %9722 = vmatmul.mubr.msk.bf16.gmra.mrb[24].mxu0 %vm363_vm1, %v5898_v20 }
 0x719   : > { %9725 = vmatprep.mubr.msk.bf16.mxu0 %vm363_vm1, %v5903_v27 }
 0x71d   : > { %6559 = vmatmul.mubr.bf16.gmra.mrb[28].mxu1 %v5906_v53 }
 0x720   : > { %9726 = vmatmul.mubr.msk.bf16.gmra.mrb[28].mxu0 %vm363_vm1, %v5908_v47 }
 0x739   : > { %v9347_v48 = vpop.f32.mrb[192].mxu0 }
 0x73a   : > { %v9348_v37 = vpop.f32.mrb[193].mxu0 }
 0x73b   : > { %v9349_v8 = vadd.f32 %v9348_v37, %v9347_v48  ;;  %v9350_v28 = vpop.f32.mrb[194].mxu0 }
 0x73c   : > { %v9351_v61 = vpop.f32.mrb[195].mxu0 }
 0x73d   : > { %v9352_v17 = vadd.f32 %v9351_v61, %v9350_v28 }
 0x741   : > { %v9353_v62 = vpop.f32.mrb[196].mxu0 }
 0x742   : > { %v9354_v26 = vpop.f32.mrb[197].mxu0 }
 0x743   : > { %v9355_v57 = vadd.f32 %v9354_v26, %v9353_v62  ;;  %v9356_v0 = vpop.f32.mrb[198].mxu0 }
 0x744   : > { %v9357_v3 = vpop.f32.mrb[199].mxu0 }
 0x745   : > { %v9358_v34 = vadd.f32 %v9357_v3, %v9356_v0 }
 0x749   : > { %v9359_v35 = vpop.f32.mrb[200].mxu0 }
 0x74a   : > { %v9360_v44 = vpop.f32.mrb[201].mxu0 }
 0x74b   : > { %v12397_v42 = vadd.f32 %v9360_v44, %v9359_v35  ;;  %v9362_v4 = vpop.f32.mrb[202].mxu0 }
 0x74c   : > { %v9363_v15 = vpop.f32.mrb[203].mxu0 }
 0x74d   : > { %v12399_v21 = vadd.f32 %v9363_v15, %v9362_v4 }
 0x751   : > { %v9365_v46 = vpop.f32.mrb[204].mxu0 }
 0x752   : > { %v9366_v16 = vpop.f32.mrb[205].mxu0 }
 0x753   : > { %v12401_v12 = vadd.f32 %v9366_v16, %v9365_v46  ;;  %v9368_v49 = vpop.f32.mrb[206].mxu0 }
 0x754   : > { %v9369_v18 = vpop.f32.mrb[207].mxu0 }
 0x755   : > { %v12403_v40 = vadd.f32 %v9369_v18, %v9368_v49 }
 0x759   : > { %v9371_v59 = vpop.f32.mrb[208].mxu0 }
 0x75a   : > { %v9372_v56 = vpop.f32.mrb[209].mxu0 }
 0x75b   : > { %v12405_v43 = vadd.f32 %v9372_v56, %v9371_v59  ;;  %v9374_v11 = vpop.f32.mrb[210].mxu0 }
 0x75c   : > { %v9375_v24 = vpop.f32.mrb[211].mxu0 }
 0x75d   : > { %v12407_v30 = vadd.f32 %v9375_v24, %v9374_v11 }
 0x761   : > { %v9377_v32 = vpop.f32.mrb[212].mxu0 }
 0x762   : > { %v9378_v41 = vpop.f32.mrb[213].mxu0 }
 0x763   : > { %v12409_v7 = vadd.f32 %v9378_v41, %v9377_v32  ;;  %v9380_v2 = vpop.f32.mrb[214].mxu0 }
 0x764   : > { %v9381_v1 = vpop.f32.mrb[215].mxu0 }
 0x765   : > { %v12411_v60 = vadd.f32 %v9381_v1, %v9380_v2 }
 0x769   : > { %v9383_v55 = vpop.f32.mrb[216].mxu0 }
 0x76a   : > { %v9384_v10 = vpop.f32.mrb[217].mxu0 }
 0x76b   : > { %v12413_v31 = vadd.f32 %v9384_v10, %v9383_v55  ;;  %v9386_v22 = vpop.f32.mrb[218].mxu0 }
 0x76c   : > { %v9387_v45 = vpop.f32.mrb[219].mxu0 }
 0x76d   : > { %v12415_v6 = vadd.f32 %v9387_v45, %v9386_v22 }
 0x770   : > { %v9459_v58 = vpop.f32.mrb[224].mxu1 }
 0x771   : > { %v9460_v13 = vpop.f32.mrb[225].mxu1  ;;  %v9389_v19 = vpop.f32.mrb[220].mxu0 }
 0x772   : > { %v9461_v39 = vadd.f32 %v9460_v13, %v9459_v58  ;;  %v9462_v63 = vpop.f32.mrb[226].mxu1  ;;  %v9390_v33 = vpop.f32.mrb[221].mxu0 }
 0x773   : > { %v9463_v25 = vpop.f32.mrb[227].mxu1  ;;  %v12417_v9 = vadd.f32 %v9390_v33, %v9389_v19  ;;  %v9392_v5 = vpop.f32.mrb[222].mxu0 }
 0x774   : > { %v9464_v14 = vadd.f32 %v9463_v25, %v9462_v63  ;;  %v9393_v54 = vpop.f32.mrb[223].mxu0  ;;  %v12419_v52 = vadd.f32 %v9461_v39, %v9349_v8 }
 0x775   : > { %v12421_v36 = vadd.f32 %v9393_v54, %v9392_v5 }
 0x776   : > { %v12423_v51 = vadd.f32 %v9464_v14, %v9352_v17 }
 0x778   : > { %v9465_v23 = vpop.f32.mrb[228].mxu1 }
 0x779   : > { %v9466_v50 = vpop.f32.mrb[229].mxu1 }
 0x77a   : > { %v9467_v38 = vadd.f32 %v9466_v50, %v9465_v23  ;;  %v9468_v29 = vpop.f32.mrb[230].mxu1 }
 0x77b   : > { %v9469_v20 = vpop.f32.mrb[231].mxu1  ;;  %v9395_v53 = vpop.f32.mrb[224].mxu0 }
 0x77c   : > { %v9470_v27 = vadd.f32 %v9469_v20, %v9468_v29  ;;  %v12425_v47 = vadd.f32 %v9467_v38, %v9355_v57  ;;  %v9396_v48 = vpop.f32.mrb[225].mxu0 }
 0x77d   : > { %v12427_v37 = vadd.f32 %v9396_v48, %v9395_v53  ;;  %v9398_v28 = vpop.f32.mrb[226].mxu0 }
 0x77e   : > { %v12429_v61 = vadd.f32 %v9470_v27, %v9358_v34  ;;  %v9399_v8 = vpop.f32.mrb[227].mxu0 }
 0x77f   : > { %v12431_v26 = vadd.f32 %v9399_v8, %v9398_v28 }
 0x780   : > { %v9471_v62 = vpop.f32.mrb[232].mxu1 }
 0x781   : > { %v9472_v17 = vpop.f32.mrb[233].mxu1 }
 0x782   : > { %v9473_v0 = vadd.f32 %v9472_v17, %v9471_v62  ;;  %v9474_v3 = vpop.f32.mrb[234].mxu1 }
 0x783   : > { %v9475_v35 = vpop.f32.mrb[235].mxu1  ;;  %v9401_v4 = vpop.f32.mrb[228].mxu0 }
 0x784   : > { %v9476_v44 = vadd.f32 %v9475_v35, %v9474_v3  ;;  %v12434_v15 = vadd.f32 %v9473_v0, %v12397_v42  ;;  %v9402_v57 = vpop.f32.mrb[229].mxu0 }
 0x785   : > { %v12436_v46 = vadd.f32 %v9402_v57, %v9401_v4  ;;  %v9404_v16 = vpop.f32.mrb[230].mxu0 }
 0x786   : > { %v12439_v34 = vadd.f32 %v9476_v44, %v12399_v21  ;;  %v9405_v49 = vpop.f32.mrb[231].mxu0 }
 0x787   : > { %v12441_v18 = vadd.f32 %v9405_v49, %v9404_v16 }
 0x788   : > { %v9477_v59 = vpop.f32.mrb[236].mxu1 }
 0x789   : > { %v9478_v56 = vpop.f32.mrb[237].mxu1 }
 0x78a   : > { %v9479_v11 = vadd.f32 %v9478_v56, %v9477_v59  ;;  %v9480_v24 = vpop.f32.mrb[238].mxu1 }
 0x78b   : > { %v9481_v32 = vpop.f32.mrb[239].mxu1  ;;  %v9407_v41 = vpop.f32.mrb[232].mxu0 }
 0x78c   : > { %v9482_v2 = vadd.f32 %v9481_v32, %v9480_v24  ;;  %v12444_v42 = vadd.f32 %v9479_v11, %v12401_v12  ;;  %v9408_v1 = vpop.f32.mrb[233].mxu0 }
 0x78d   : > { %v12446_v55 = vadd.f32 %v9408_v1, %v9407_v41  ;;  %v9410_v10 = vpop.f32.mrb[234].mxu0 }
 0x78e   : > { %v12449_v21 = vadd.f32 %v9482_v2, %v12403_v40  ;;  %v9411_v22 = vpop.f32.mrb[235].mxu0 }
 0x78f   : > { %v12451_v45 = vadd.f32 %v9411_v22, %v9410_v10 }
 0x790   : > { %v9483_v58 = vpop.f32.mrb[240].mxu1 }
 0x791   : > { %v9484_v13 = vpop.f32.mrb[241].mxu1 }
 0x792   : > { %v9485_v19 = vadd.f32 %v9484_v13, %v9483_v58  ;;  %v9486_v39 = vpop.f32.mrb[242].mxu1 }
 0x793   : > { %v9487_v63 = vpop.f32.mrb[243].mxu1  ;;  %v9413_v33 = vpop.f32.mrb[236].mxu0 }
 0x794   : > { %v9488_v25 = vadd.f32 %v9487_v63, %v9486_v39  ;;  %v12454_v12 = vadd.f32 %v9485_v19, %v12405_v43  ;;  %v9414_v5 = vpop.f32.mrb[237].mxu0 }
 0x795   : > { %v12456_v14 = vadd.f32 %v9414_v5, %v9413_v33  ;;  %v9416_v54 = vpop.f32.mrb[238].mxu0 }
 0x796   : > { %v12459_v40 = vadd.f32 %v9488_v25, %v12407_v30  ;;  %v9417_v23 = vpop.f32.mrb[239].mxu0 }
 0x797   : > { %v12461_v50 = vadd.f32 %v9417_v23, %v9416_v54 }
 0x798   : > { %v9489_v38 = vpop.f32.mrb[244].mxu1 }
 0x799   : > { %v9490_v29 = vpop.f32.mrb[245].mxu1 }
 0x79a   : > { %v9491_v20 = vadd.f32 %v9490_v29, %v9489_v38  ;;  %v9492_v27 = vpop.f32.mrb[246].mxu1 }
 0x79b   : > { %v9493_v53 = vpop.f32.mrb[247].mxu1  ;;  %v9419_v48 = vpop.f32.mrb[240].mxu0 }
 0x79c   : > { %v9494_v28 = vadd.f32 %v9493_v53, %v9492_v27  ;;  %v12464_v43 = vadd.f32 %v9491_v20, %v12409_v7  ;;  %v9420_v8 = vpop.f32.mrb[241].mxu0  ;;  %v6866_v27 = vld [vmem:[#allocation2] sm:$0xff]  ;;  %v6867_v53 = vld [vmem:[#allocation2 + $0x8] sm:$0xff] }
 0x79d   : > { %v12466_v62 = vadd.f32 %v9420_v8, %v9419_v48  ;;  %v9422_v17 = vpop.f32.mrb[242].mxu0  ;;  %v7016_v8 = vld [vmem:[#allocation2 + $0x9] sm:$0xff] }
 0x79e   : > { %v12469_v30 = vadd.f32 %v9494_v28, %v12411_v60  ;;  %v9423_v0 = vpop.f32.mrb[243].mxu0  ;;  %v7015_v28 = vld [vmem:[#allocation2 + $0x1] sm:$0xff] }
 0x79f   : > { %v12471_v3 = vadd.f32 %v9423_v0, %v9422_v17  ;;  %v6898_v0 = vpack.c.bf16 %v6867_v53, %v6866_v27 }
 0x7a0   : > { %v9495_v35 = vpop.f32.mrb[248].mxu1 }
 0x7a1   : > { %v9496_v44 = vpop.f32.mrb[249].mxu1 }
 0x7a2   : > { %v9497_v4 = vadd.f32 %v9496_v44, %v9495_v35  ;;  %v9498_v57 = vpop.f32.mrb[250].mxu1 }
 0x7a3   : > { %v9499_v16 = vpop.f32.mrb[251].mxu1  ;;  %v9425_v49 = vpop.f32.mrb[244].mxu0 }
 0x7a4   : > { %v9500_v59 = vadd.f32 %v9499_v16, %v9498_v57  ;;  %v12474_v7 = vadd.f32 %v9497_v4, %v12413_v31  ;;  %v9426_v56 = vpop.f32.mrb[245].mxu0  ;;  %v12500_v4 = vld [vmem:[%s13752_s7 + $0x3] ss:$0 sm:$0xff]  ;;  %v7047_v16 = vpack.c.bf16 %v7016_v8, %v7015_v28 }
 0x7a5   : > { %v12476_v11 = vadd.f32 %v9426_v56, %v9425_v49  ;;  %v9428_v24 = vpop.f32.mrb[246].mxu0  ;;  %v7164_v49 = vld [vmem:[#allocation2 + $0x2] sm:$0xff] }
 0x7a6   : > { %v12479_v60 = vadd.f32 %v9500_v59, %v12415_v6  ;;  %v9429_v32 = vpop.f32.mrb[247].mxu0  ;;  %v7165_v59 = vld [vmem:[#allocation2 + $0xa] sm:$0xff] }
 0x7a7   : > { %v12481_v41 = vadd.f32 %v9429_v32, %v9428_v24 }
 0x7a8   : > { %v9501_v2 = vpop.f32.mrb[252].mxu1 }
 0x7a9   : > { %v9502_v1 = vpop.f32.mrb[253].mxu1 }
 0x7aa   : > { %v9503_v10 = vadd.f32 %v9502_v1, %v9501_v2  ;;  %v9504_v22 = vpop.f32.mrb[254].mxu1  ;;  %v12509_v1 = vld [vmem:[%s13753_s8 + $0x3] ss:$0 sm:$0xff] }
 0x7ab   : > { %v9505_v58 = vpop.f32.mrb[255].mxu1  ;;  %v9431_v13 = vpop.f32.mrb[248].mxu0 }
 0x7ac   : > { %v9506_v19 = vadd.f32 %v9505_v58, %v9504_v22  ;;  %v12484_v31 = vadd.f32 %v9503_v10, %v12417_v9  ;;  %v9432_v39 = vpop.f32.mrb[249].mxu0  ;;  %v6915_v58 = vunpack.c.h.bf16 %v6898_v0 }
 0x7ad   : > { %v12486_v63 = vadd.f32 %v9432_v39, %v9431_v13  ;;  %v9434_v33 = vpop.f32.mrb[250].mxu0 }
 0x7ae   : > { %v12489_v6 = vadd.f32 %v9506_v19, %v12421_v36  ;;  %v9435_v25 = vpop.f32.mrb[251].mxu0 }
 0x7af   : > { %13760 = vst [vmem:[#allocation5_spill] sm:$0xff] %v12486_v63  ;;  %v12491_v5 = vadd.f32 %v9435_v25, %v9434_v33  ;;  %v7196_v33 = vpack.c.bf16 %v7165_v59, %v7164_v49 }
 0x7b1   : > { %13761 = vst [vmem:[#allocation6_spill] sm:$0xff] %v12491_v5 }
 0x7b3   : > { %v9437_v54 = vpop.f32.mrb[252].mxu0 }
 0x7b4   : > { %v9438_v23 = vpop.f32.mrb[253].mxu0 }
 0x7b5   : > { %v12493_v38 = vadd.f32 %v9438_v23, %v9437_v54  ;;  %v9440_v29 = vpop.f32.mrb[254].mxu0  ;;  %v7064_v54 = vunpack.c.h.bf16 %v7047_v16  ;;  %v6914_v23 = vunpack.c.l.bf16 %v6898_v0 }
 0x7b6   : > { %v9441_v20 = vpop.f32.mrb[255].mxu0 }
 0x7b7   : > { %13762 = vst [vmem:[#allocation7_spill] sm:$0xff] %v12493_v38  ;;  %v12495_v9 = vadd.f32 %v9441_v20, %v9440_v29 }
 0x7b8   : > { %v9507_v48 = vpop.f32.mrb[0].mxu1 }
 0x7b9   : > { %13763 = vst [vmem:[#allocation8_spill] sm:$0xff] %v12495_v9  ;;  %v9508_v17 = vpop.f32.mrb[1].mxu1 }
 0x7ba   : > { %v9509_v36 = vadd.f32 %v9508_v17, %v9507_v48  ;;  %v9510_v35 = vpop.f32.mrb[2].mxu1 }
 0x7bb   : > { %v9699_v44 = vpop.f32.mrb[0].mxu0  ;;  %v9511_v57 = vpop.f32.mrb[3].mxu1 }
 0x7bc   : > { %v6610_v56 = vadd.f32 %v9699_v44, %v12425_v47  ;;  %v6601_v24 = vpop.f32.mrb[1].mxu0  ;;  %v9512_v32 = vadd.f32 %v9511_v57, %v9510_v35  ;;  %v12504_v2 = vadd.f32 %v9509_v36, %v12427_v37  ;;  %v12520_v37 = vld [vmem:[%s13750_s5] ss:$0 sm:$0xff]  ;;  %v7213_v35 = vunpack.c.h.bf16 %v7196_v33 }
 0x7bd   : > { %v6602_v10 = vadd.f32 %v6601_v24, %v12419_v52  ;;  %v9700_v22 = vpop.f32.mrb[2].mxu0  ;;  %v6952_v28 = vmul.f32 %v12520_v37, %v6915_v58  ;;  %v6951_v24 = vmul.f32 %v12520_v37, %v6914_v23 }
 0x7be   : > { %v6735_v13 = vmul.f32 %v12500_v4, %v6610_v56  ;;  %v6613_v19 = vadd.f32 %v9700_v22, %v12429_v61  ;;  %v6604_v39 = vpop.f32.mrb[3].mxu0  ;;  %v12515_v47 = vadd.f32 %v9512_v32, %v12431_v26  ;;  %v12529_v26 = vld [vmem:[%s13750_s5 + $0x1] ss:$0 sm:$0xff] }
 0x7bf   : > { %v6733_v25 = vmul.f32 %v12500_v4, %v6602_v10  ;;  %v6605_v52 = vadd.f32 %v6604_v39, %v12423_v51  ;;  %v7063_v51 = vunpack.c.l.bf16 %v7047_v16  ;;  %v7101_v56 = vmul.f32 %v12529_v26, %v7064_v54 }
 0x7c0   : > { %v6772_v29 = vadd.f32 %v12509_v1, %v6735_v13  ;;  %v6736_v61 = vmul.f32 %v12500_v4, %v6613_v19  ;;  %v9513_v20 = vpop.f32.mrb[4].mxu1  ;;  %v7212_v54 = vunpack.c.l.bf16 %v7196_v33 }
 0x7c1   : > { %v6770_v27 = vadd.f32 %v12509_v1, %v6733_v25  ;;  %v6734_v53 = vmul.f32 %v12500_v4, %v6605_v52  ;;  %v9514_v48 = vpop.f32.mrb[5].mxu1  ;;  %v12548_v25 = vld [vmem:[%s13750_s5 + $0x2] ss:$0 sm:$0xff]  ;;  %v7100_v52 = vmul.f32 %v12529_v26, %v7063_v51 }
 0x7c2   : > { %v6804_v8 = vmax.f32 %v6772_v29, 0.0  ;;  %v6773_v17 = vadd.f32 %v12509_v1, %v6736_v61  ;;  %v9515_v0 = vadd.f32 %v9514_v48, %v9513_v20  ;;  %v9516_v36 = vpop.f32.mrb[6].mxu1  ;;  %v7250_v48 = vmul.f32 %v12548_v25, %v7213_v35 }
 0x7c3   : > { %v6802_v44 = vmax.f32 %v6770_v27, 0.0  ;;  %v6771_v57 = vadd.f32 %v12509_v1, %v6734_v53  ;;  %v9703_v49 = vpop.f32.mrb[4].mxu0  ;;  %v9517_v59 = vpop.f32.mrb[7].mxu1  ;;  %v7133_v53 = vadd.f32 %v7101_v56, %v6952_v28 }
 0x7c4   : > { %6836 = vst.msk [vmem:[#allocation2 + $0x31] sm:$0xff] %vm363_vm1, %v6804_v8  ;;  %v6805_v32 = vmax.f32 %v6773_v17, 0.0  ;;  %v6626_v16 = vadd.f32 %v9703_v49, %v12444_v42  ;;  %v6617_v10 = vpop.f32.mrb[5].mxu0  ;;  %v9518_v22 = vadd.f32 %v9517_v59, %v9516_v36  ;;  %v12541_v58 = vadd.f32 %v9515_v0, %v12436_v46 }
 0x7c5   : > { %6834 = vst.msk [vmem:[#allocation2 + $0x19] sm:$0xff] %vm363_vm1, %v6802_v44  ;;  %v6803_v13 = vmax.f32 %v6771_v57, 0.0  ;;  %v6618_v19 = vadd.f32 %v6617_v10, %v12434_v15  ;;  %v9704_v39 = vpop.f32.mrb[6].mxu0  ;;  %v7132_v8 = vadd.f32 %v7100_v52, %v6951_v24  ;;  %v7249_v17 = vmul.f32 %v12548_v25, %v7212_v54 }
 0x7c6   : > { %6837 = vst.msk [vmem:[#allocation2 + $0x39] sm:$0xff] %vm363_vm1, %v6805_v32  ;;  %v6739_v42 = vmul.f32 %v12500_v4, %v6626_v16  ;;  %v6629_v46 = vadd.f32 %v9704_v39, %v12449_v21  ;;  %v6620_v23 = vpop.f32.mrb[7].mxu0  ;;  %v12555_v29 = vadd.f32 %v9518_v22, %v12441_v18  ;;  %v7282_v54 = vadd.f32 %v7250_v48, %v7133_v53 }
 0x7c7   : > { %6835 = vst.msk [vmem:[#allocation2 + $0x21] sm:$0xff] %vm363_vm1, %v6803_v13  ;;  %v6737_v15 = vmul.f32 %v12500_v4, %v6618_v19  ;;  %v6621_v61 = vadd.f32 %v6620_v23, %v12439_v34 }
 0x7c8   : > { %v6776_v20 = vadd.f32 %v12509_v1, %v6739_v42  ;;  %v6740_v33 = vmul.f32 %v12500_v4, %v6629_v46  ;;  %v9519_v27 = vpop.f32.mrb[8].mxu1 }
 0x7c9   : > { %v6774_v21 = vadd.f32 %v12509_v1, %v6737_v15  ;;  %v6738_v51 = vmul.f32 %v12500_v4, %v6621_v61  ;;  %v9520_v18 = vpop.f32.mrb[9].mxu1 }
 0x7ca   : > { %v6808_v0 = vmax.f32 %v6776_v20, 0.0  ;;  %v6777_v36 = vadd.f32 %v12509_v1, %v6740_v33  ;;  %v9521_v34 = vadd.f32 %v9520_v18, %v9519_v27  ;;  %v9522_v44 = vpop.f32.mrb[10].mxu1 }
 0x7cb   : > { %v6806_v57 = vmax.f32 %v6774_v21, 0.0  ;;  %v6775_v49 = vadd.f32 %v12509_v1, %v6738_v51  ;;  %v9707_v59 = vpop.f32.mrb[8].mxu0  ;;  %v9523_v28 = vpop.f32.mrb[11].mxu1  ;;  %v7760_v10 = vld [vmem:[#allocation2 + $0x30] sm:$0xff] }
 0x7cc   : > { %6840 = vst.msk [vmem:[#allocation2 + $0x61] sm:$0xff] %vm363_vm1, %v6808_v0  ;;  %v6809_v35 = vmax.f32 %v6777_v36, 0.0  ;;  %v6642_v56 = vadd.f32 %v9707_v59, %v12464_v43  ;;  %v6633_v32 = vpop.f32.mrb[9].mxu0  ;;  %v12570_v16 = vadd.f32 %v9523_v28, %v9522_v44  ;;  %v7313_v24 = vld [vmem:[#allocation2 + $0x18] sm:$0xff]  ;;  %v12573_v13 = vadd.f32 %v9521_v34, %v12446_v55  ;;  %v12598_v36 = vld [vmem:[%s13750_s5 + $0x3] ss:$0 sm:$0xff] }
 0x7cd   : > { %v7909_v22 = vld [vmem:[#allocation2 + $0x31] sm:$0xff]  ;;  %6838 = vst.msk [vmem:[#allocation2 + $0x49] sm:$0xff] %vm363_vm1, %v6806_v57  ;;  %v6807_v19 = vmax.f32 %v6775_v49, 0.0  ;;  %v6634_v39 = vadd.f32 %v6633_v32, %v12454_v12  ;;  %v9708_v52 = vpop.f32.mrb[10].mxu0  ;;  %v7462_v42 = vld [vmem:[#allocation2 + $0x19] sm:$0xff]  ;;  %v12577_v43 = vadd.f32 %v7249_v17, %v7132_v8 }
 0x7ce   : > { %v7761_v46 = vld [vmem:[#allocation2 + $0x38] sm:$0xff]  ;;  %6841 = vst.msk [vmem:[#allocation2 + $0x69] sm:$0xff] %vm363_vm1, %v6809_v35  ;;  %v6743_v15 = vmul.f32 %v12500_v4, %v6642_v56  ;;  %v6645_v61 = vadd.f32 %v9708_v52, %v12469_v30  ;;  %v6636_v55 = vpop.f32.mrb[11].mxu0  ;;  %v7314_v20 = vld [vmem:[#allocation2 + $0x20] sm:$0xff] }
 0x7cf   : > { %v7910_v23 = vld [vmem:[#allocation2 + $0x39] sm:$0xff]  ;;  %v7463_v33 = vld [vmem:[#allocation2 + $0x21] sm:$0xff]  ;;  %v12582_v21 = vpack.c.bf16 %v7761_v46, %v7760_v10  ;;  %6839 = vst.msk [vmem:[#allocation2 + $0x51] sm:$0xff] %vm363_vm1, %v6807_v19  ;;  %v6741_v53 = vmul.f32 %v12500_v4, %v6634_v39  ;;  %v6637_v48 = vadd.f32 %v6636_v55, %v12459_v40  ;;  %v12589_v51 = vpack.c.bf16 %v7314_v20, %v7313_v24 }
 0x7d0   : > { %v7611_v27 = vld [vmem:[#allocation2 + $0x1a] sm:$0xff]  ;;  %v12584_v12 = vpack.c.bf16 %v7910_v23, %v7909_v22  ;;  %v12591_v18 = vpack.c.bf16 %v7463_v33, %v7462_v42  ;;  %v7612_v8 = vld [vmem:[#allocation2 + $0x22] sm:$0xff]  ;;  %v6780_v30 = vadd.f32 %v12509_v1, %v6743_v15  ;;  %v6744_v17 = vmul.f32 %v12500_v4, %v6645_v61  ;;  %v9525_v0 = vpop.f32.mrb[12].mxu1  ;;  %v8058_v55 = vld [vmem:[#allocation2 + $0x32] sm:$0xff] }
 0x7d1   : > { %v12603_v34 = vld [vmem:[%s13750_s5 + $0x4] ss:$0 sm:$0xff]  ;;  %v12605_v40 = vpack.c.bf16 %v7612_v8, %v7611_v27  ;;  %v12608_v44 = vunpack.c.h.bf16 %v12582_v21  ;;  %v6778_v57 = vadd.f32 %v12509_v1, %v6741_v53  ;;  %v6742_v49 = vmul.f32 %v12500_v4, %v6637_v48  ;;  %v9526_v59 = vpop.f32.mrb[13].mxu1  ;;  %v12617_v56 = vld [vmem:[%s13750_s5 + $0x5] ss:$0 sm:$0xff]  ;;  %v8059_v20 = vld [vmem:[#allocation2 + $0x3a] sm:$0xff] }
 0x7d2   : > { %v13758_v28 = vunpack.c.h.bf16 %v12589_v51  ;;  %v13757_v35 = vunpack.c.h.bf16 %v12591_v18  ;;  %v6812_v32 = vmax.f32 %v6780_v30, 0.0  ;;  %v6781_v24 = vadd.f32 %v12509_v1, %v6744_v17  ;;  %v9528_v22 = vpop.f32.mrb[14].mxu1  ;;  %v12626_v39 = vld [vmem:[%s13750_s5 + $0x6] ss:$0 sm:$0xff] }
 0x7d3   : > { %v12620_v10 = vadd.f32 %v9526_v59, %v9525_v0  ;;  %v13756_v19 = vunpack.c.h.bf16 %v12605_v40  ;;  %v6810_v52 = vmax.f32 %v6778_v57, 0.0  ;;  %v6779_v42 = vadd.f32 %v12509_v1, %v6742_v49  ;;  %v9711_v46 = vpop.f32.mrb[12].mxu0  ;;  %v9529_v23 = vpop.f32.mrb[15].mxu1  ;;  %v7764_v5 = vld [vmem:[#allocation2 + $0x60] sm:$0xff] }
 0x7d4   : > { %v7399_v15 = vmul.f32 %v12598_v36, %v13758_v28  ;;  %v7548_v61 = vmul.f32 %v12603_v34, %v13757_v35  ;;  %6844 = vst.msk [vmem:[#allocation2 + $0x91] sm:$0xff] %vm363_vm1, %v6812_v32  ;;  %v6813_v33 = vmax.f32 %v6781_v24, 0.0  ;;  %v6658_v27 = vadd.f32 %v9711_v46, %v12484_v31  ;;  %v6649_v53 = vpop.f32.mrb[13].mxu0  ;;  %v12649_v31 = vld [vmem:[%s13750_s5 + $0x7] ss:$0 sm:$0xff] }
 0x7d5   : > { %v12637_v48 = vadd.f32 %v9529_v23, %v9528_v22  ;;  %v7697_v8 = vmul.f32 %v12617_v56, %v13756_v19  ;;  %6842 = vst.msk [vmem:[#allocation2 + $0x79] sm:$0xff] %vm363_vm1, %v6810_v52  ;;  %v6811_v30 = vmax.f32 %v6779_v42, 0.0  ;;  %v6650_v17 = vadd.f32 %v6649_v53, %v12474_v7  ;;  %v9712_v0 = vpop.f32.mrb[14].mxu0  ;;  %v12663_v46 = vld [vmem:[%s13750_s5 + $0x8] ss:$0 sm:$0xff] }
 0x7d6   : > { %v7431_v57 = vadd.f32 %v7399_v15, %v7282_v54  ;;  %v7846_v49 = vmul.f32 %v12626_v39, %v12608_v44  ;;  %6845 = vst.msk [vmem:[#allocation2 + $0x99] sm:$0xff] %vm363_vm1, %v6813_v33  ;;  %v6747_v59 = vmul.f32 %v12500_v4, %v6658_v27  ;;  %v6661_v32 = vadd.f32 %v9712_v0, %v12489_v6  ;;  %v6652_v24 = vpop.f32.mrb[15].mxu0 }
 0x7d7   : > { %v12655_v22 = vunpack.c.h.bf16 %v12584_v12  ;;  %v8090_v7 = vpack.c.bf16 %v8059_v20, %v8058_v55  ;;  %6843 = vst.msk [vmem:[#allocation2 + $0x81] sm:$0xff] %vm363_vm1, %v6811_v30  ;;  %v6745_v54 = vmul.f32 %v12500_v4, %v6650_v17  ;;  %v6653_v52 = vadd.f32 %v6652_v24, %v12479_v60 }
 0x7d8   : > { %v7580_v42 = vadd.f32 %v7548_v61, %v7431_v57  ;;  %v13759_v23 = vunpack.c.l.bf16 %v12589_v51  ;;  %v6784_v6 = vadd.f32 %v12509_v1, %v6747_v59  ;;  %v6748_v15 = vmul.f32 %v12500_v4, %v6661_v32  ;;  %v9531_v33 = vpop.f32.mrb[16].mxu1 }
 0x7d9   : > { %v7995_v55 = vmul.f32 %v12649_v31, %v12655_v22  ;;  %v12670_v20 = vunpack.c.h.bf16 %v8090_v7  ;;  %v6782_v60 = vadd.f32 %v12509_v1, %v6745_v54  ;;  %v6746_v61 = vmul.f32 %v12500_v4, %v6653_v52  ;;  %v9532_v30 = vpop.f32.mrb[17].mxu1 }
 0x7da   : > { %v7729_v27 = vadd.f32 %v7697_v8, %v7580_v42  ;;  %v7398_v53 = vmul.f32 %v12598_v36, %v13759_v23  ;;  %v6816_v17 = vmax.f32 %v6784_v6, 0.0  ;;  %v6785_v0 = vadd.f32 %v12509_v1, %v6748_v15  ;;  %v9534_v32 = vpop.f32.mrb[18].mxu1 }
 0x7db   : > { %v8144_v57 = vmul.f32 %v12663_v46, %v12670_v20  ;;  %v7510_v59 = vunpack.c.l.bf16 %v12591_v18  ;;  %v6814_v24 = vmax.f32 %v6782_v60, 0.0  ;;  %v6783_v54 = vadd.f32 %v12509_v1, %v6746_v61  ;;  %v9715_v19 = vpop.f32.mrb[16].mxu0  ;;  %v9535_v42 = vpop.f32.mrb[19].mxu1 }
 0x7dc   : > { %v7878_v52 = vadd.f32 %v7846_v49, %v7729_v27  ;;  %v7430_v8 = vadd.f32 %v7398_v53, %v12577_v43  ;;  %6848 = vst.msk [vmem:[#allocation2 + $0xc1] sm:$0xff] %vm363_vm1, %v6816_v17  ;;  %v6817_v35 = vmax.f32 %v6785_v0, 0.0  ;;  %v6674_v6 = vadd.f32 %v9715_v19, %v12541_v58  ;;  %v6665_v15 = vpop.f32.mrb[17].mxu0 }
 0x7dd   : > { %v7547_v28 = vmul.f32 %v12603_v34, %v7510_v59  ;;  %v7659_v23 = vunpack.c.l.bf16 %v12605_v40  ;;  %6846 = vst.msk [vmem:[#allocation2 + $0xa9] sm:$0xff] %vm363_vm1, %v6814_v24  ;;  %v6815_v60 = vmax.f32 %v6783_v54, 0.0  ;;  %v6666_v49 = vadd.f32 %v6665_v15, %v12504_v2  ;;  %v9716_v61 = vpop.f32.mrb[18].mxu0 }
 0x7de   : > { %v8027_v43 = vadd.f32 %v7995_v55, %v7878_v52  ;;  %v12692_v27 = vunpack.c.l.bf16 %v12582_v21  ;;  %6849 = vst.msk [vmem:[#allocation2 + $0xc9] sm:$0xff] %vm363_vm1, %v6817_v35  ;;  %v6751_v58 = vmul.f32 %v12500_v4, %v6674_v6  ;;  %v6677_v19 = vadd.f32 %v9716_v61, %v12555_v29  ;;  %v6668_v53 = vpop.f32.mrb[19].mxu0 }
 0x7df   : > { %v7579_v17 = vadd.f32 %v7547_v28, %v7430_v8  ;;  %v7696_v0 = vmul.f32 %v12617_v56, %v7659_v23  ;;  %6847 = vst.msk [vmem:[#allocation2 + $0xb1] sm:$0xff] %vm363_vm1, %v6815_v60  ;;  %v6749_v24 = vmul.f32 %v12500_v4, %v6666_v49  ;;  %v6669_v2 = vadd.f32 %v6668_v53, %v12515_v47 }
 0x7e0   : > { %v8176_v55 = vadd.f32 %v8144_v57, %v8027_v43  ;;  %v7845_v21 = vmul.f32 %v12626_v39, %v12692_v27  ;;  %v6788_v35 = vadd.f32 %v12509_v1, %v6751_v58  ;;  %v6752_v54 = vmul.f32 %v12500_v4, %v6677_v19  ;;  %v12708_v28 = vpop.f32.mrb[20].mxu1 }
 0x7e1   : > { %v7728_v52 = vadd.f32 %v7696_v0, %v7579_v17  ;;  %v12706_v29 = vunpack.c.l.bf16 %v12584_v12  ;;  %v6786_v8 = vadd.f32 %v12509_v1, %v6749_v24  ;;  %v6750_v6 = vmul.f32 %v12500_v4, %v6669_v2  ;;  %v12715_v15 = vpop.f32.mrb[21].mxu1 }
 0x7e2   : > { %v8210_v47 = vsel %vm363_vm1, %v8176_v55, 0.0  ;;  %v12713_v57 = vunpack.c.l.bf16 %v8090_v7  ;;  %v6820_v60 = vmax.f32 %v6788_v35, 0.0  ;;  %v6789_v49 = vadd.f32 %v12509_v1, %v6752_v54  ;;  %v12720_v43 = vpop.f32.mrb[22].mxu1 }
 0x7e3   : > { %8211 = vadd.xlane.f32.xlu1 %v8210_v47  ;;  %v7877_v61 = vadd.f32 %v7845_v21, %v7728_v52  ;;  %v7994_v12 = vmul.f32 %v12649_v31, %v12706_v29  ;;  %v6818_v58 = vmax.f32 %v6786_v8, 0.0  ;;  %v6787_v19 = vadd.f32 %v12509_v1, %v6750_v6  ;;  %v9719_v17 = vpop.f32.mrb[20].mxu0  ;;  %v12727_v0 = vpop.f32.mrb[23].mxu1 }
 0x7e4   : > { %v8143_v53 = vmul.f32 %v12663_v46, %v12713_v57  ;;  %v12725_v7 = vadd.f32 %v9532_v30, %v9531_v33  ;;  %6852 = vst.msk [vmem:[#allocation2 + $0xf1] sm:$0xff] %vm363_vm1, %v6820_v60  ;;  %v6821_v24 = vmax.f32 %v6789_v49, 0.0  ;;  %v6529_v55 = vadd.f32 %v12620_v10, %v12456_v14  ;;  %v6681_v21 = vpop.f32.mrb[21].mxu0 }
 0x7e5   : > { %v8026_v2 = vadd.f32 %v7994_v12, %v7877_v61  ;;  %v12732_v35 = vadd.f32 %v9535_v42, %v9534_v32  ;;  %6850 = vst.msk [vmem:[#allocation2 + $0xd9] sm:$0xff] %vm363_vm1, %v6818_v58  ;;  %v6819_v54 = vmax.f32 %v6787_v19, 0.0  ;;  %v6682_v52 = vadd.f32 %v6681_v21, %v12573_v13  ;;  %v9720_v30 = vpop.f32.mrb[22].mxu0  ;;  %v7912_v58 = vld [vmem:[#allocation2 + $0x51] sm:$0xff] }
 0x7e6   : > { %v6532_v33 = vadd.f32 %v12637_v48, %v12461_v50  ;;  %v6524_v8 = vadd.f32 %v12570_v16, %v12451_v45  ;;  %6853 = vst.msk [vmem:[#allocation2 + $0xf9] sm:$0xff] %vm363_vm1, %v6821_v24  ;;  %v6690_v47 = vadd.f32 %v9719_v17, %v6529_v55  ;;  %v6684_v14 = vpop.f32.mrb[23].mxu0  ;;  %v13764_v10 = vunpack.c.l.bf16 %v12589_v51  ;;  %v7763_v16 = vld [vmem:[#allocation2 + $0x50] sm:$0xff]  ;;  %v7762_v24 = vld [vmem:[#allocation2 + $0x48] sm:$0xff] }
 0x7e7   : > { %v8175_v6 = vadd.f32 %v8143_v53, %v8026_v2  ;;  %v7102_v13 = vmul.f32 %v12529_v26, %v7510_v59  ;;  %6851 = vst.msk [vmem:[#allocation2 + $0xe1] sm:$0xff] %vm363_vm1, %v6819_v54  ;;  %v6753_v50 = vmul.f32 %v12500_v4, %v6682_v52  ;;  %v7251_v45 = vmul.f32 %v12548_v25, %v7659_v23  ;;  %v8060_v2 = vld [vmem:[#allocation2 + $0x4a] sm:$0xff]  ;;  %v8061_v55 = vld [vmem:[#allocation2 + $0x52] sm:$0xff] }
 0x7e8   : > { %v6953_v32 = vmul.f32 %v12520_v37, %v13764_v10  ;;  %v6693_v48 = vadd.f32 %v9720_v30, %v6532_v33  ;;  %v6685_v42 = vadd.f32 %v6684_v14, %v6524_v8  ;;  %v6755_v49 = vmul.f32 %v12500_v4, %v6690_v47  ;;  %v12754_v19 = vpop.f32.mrb[24].mxu1  ;;  %v7911_v8 = vld [vmem:[#allocation2 + $0x49] sm:$0xff] }
 0x7e9   : > { %v8207_v60 = vsel %vm363_vm1, %v8175_v6, 0.0  ;;  %v7400_v12 = vmul.f32 %v12598_v36, %v12692_v27  ;;  %v6790_v59 = vadd.f32 %v12509_v1, %v6753_v50  ;;  %v7549_v23 = vmul.f32 %v12603_v34, %v12706_v29  ;;  %v12761_v21 = vpop.f32.mrb[25].mxu1 }
 0x7ea   : > { %v7134_v61 = vadd.f32 %v7102_v13, %v6953_v32  ;;  %8208 = vadd.xlane.f32.xlu0 %v8207_v60  ;;  %v6756_v53 = vmul.f32 %v12500_v4, %v6693_v48  ;;  %v6754_v17 = vmul.f32 %v12500_v4, %v6685_v42  ;;  %13765 = vst [vmem:[#allocation9_spill] sm:$0xff] %v12761_v21  ;;  %v12766_v6 = vpop.f32.mrb[26].mxu1 }
 0x7eb   : > { %v6792_v54 = vadd.f32 %v12509_v1, %v6755_v49  ;;  %v7698_v33 = vmul.f32 %v12617_v56, %v12713_v57  ;;  %v7793_v30 = vpack.c.bf16 %v7763_v16, %v7762_v24  ;;  %13766 = vst [vmem:[#allocation10_spill] sm:$0xff] %v12766_v6  ;;  %v6822_v47 = vmax.f32 %v6790_v59, 0.0  ;;  %v12770_v13 = vpop.f32.mrb[24].mxu0  ;;  %v12772_v50 = vpop.f32.mrb[27].mxu1 }
 0x7ec   : > { %v7283_v52 = vadd.f32 %v7251_v45, %v7134_v61  ;;  %v6793_v14 = vadd.f32 %v12509_v1, %v6756_v53  ;;  %v6791_v10 = vadd.f32 %v12509_v1, %v6754_v17  ;;  %v7942_v32 = vpack.c.bf16 %v7912_v58, %v7911_v8  ;;  %13767 = vst [vmem:[#allocation11_spill] sm:$0xff] %v12772_v50  ;;  %v12776_v49 = vpop.f32.mrb[25].mxu0 }
 0x7ed   : > { %v6824_v48 = vmax.f32 %v6792_v54, 0.0  ;;  %v12774_v45 = vunpack.c.l.bf16 %v7793_v30  ;;  %v8091_v60 = vpack.c.bf16 %v8061_v55, %v8060_v2  ;;  %6854 = vst.msk [vmem:[#allocation2 + $0x109] sm:$0xff] %vm363_vm1, %v6822_v47  ;;  %v9539_v58 = vadd.f32 %v12715_v15, %v12708_v28  ;;  %v12783_v53 = vpop.f32.mrb[26].mxu0 }
 0x7ee   : > { %v7432_v42 = vadd.f32 %v7400_v12, %v7283_v52  ;;  %v6825_v16 = vmax.f32 %v6793_v14, 0.0  ;;  %v6823_v61 = vmax.f32 %v6791_v10, 0.0  ;;  %v12779_v59 = vunpack.c.l.bf16 %v7942_v32  ;;  %v12794_v55 = vpop.f32.mrb[27].mxu0 }
 0x7ef   : > { %6856 = vst.msk [vmem:[#allocation2 + $0x121] sm:$0xff] %vm363_vm1, %v6824_v48  ;;  %v7847_v12 = vmul.f32 %v12626_v39, %v12774_v45  ;;  %v12788_v24 = vunpack.c.l.bf16 %v8091_v60  ;;  %v12792_v2 = vadd.f32 %v12727_v0, %v12720_v43  ;;  %v13768_v15 = vunpack.c.h.bf16 %v12589_v51 }
 0x7f0   : > { %v7581_v17 = vadd.f32 %v7549_v23, %v7432_v42  ;;  %6857 = vst.msk [vmem:[#allocation2 + $0x129] sm:$0xff] %vm363_vm1, %v6825_v16  ;;  %6855 = vst.msk [vmem:[#allocation2 + $0x111] sm:$0xff] %vm363_vm1, %v6823_v61  ;;  %v7996_v28 = vmul.f32 %v12649_v31, %v12779_v59  ;;  %v13769_v54 = vunpack.c.h.bf16 %v12591_v18  ;;  %v13770_v43 = vunpack.c.h.bf16 %v12605_v40  ;;  %v12815_v10 = vpop.f32.mrb[28].mxu1 }
 0x7f1   : > { %v6954_v23 = vmul.f32 %v12520_v37, %v13768_v15  ;;  %v8145_v47 = vmul.f32 %v12663_v46, %v12788_v24  ;;  %v7401_v14 = vmul.f32 %v12598_v36, %v12608_v44  ;;  %v7550_v51 = vmul.f32 %v12603_v34, %v12655_v22  ;;  %13771 = vst [vmem:[#allocation12_spill] sm:$0xff] %v12815_v10 }
 0x7f2   : > { %v7103_v52 = vmul.f32 %v12529_v26, %v13769_v54  ;;  %v7252_v0 = vmul.f32 %v12548_v25, %v13770_v43  ;;  %v7730_v8 = vadd.f32 %v7698_v33, %v7581_v17  ;;  %v7699_v18 = vmul.f32 %v12617_v56, %v12670_v20  ;;  %v12823_v33 = vpop.f32.mrb[29].mxu1  ;;  %v7765_v54 = vld [vmem:[#allocation2 + $0x68] sm:$0xff] }
 0x7f3   : > { %v12819_v42 = vunpack.c.h.bf16 %v7793_v30  ;;  %v12821_v40 = vunpack.c.h.bf16 %v7942_v32  ;;  %13772 = vst [vmem:[#allocation13_spill] sm:$0xff] %v12823_v33  ;;  %v12825_v61 = vunpack.c.h.bf16 %v8091_v60  ;;  %v6955_v17 = vmul.f32 %v12520_v37, %v12692_v27  ;;  %v8062_v43 = vld [vmem:[#allocation2 + $0x62] sm:$0xff]  ;;  %v12839_v27 = vpop.f32.mrb[28].mxu0 }
 0x7f4   : > { %v7135_v48 = vadd.f32 %v7103_v52, %v6954_v23  ;;  %v7879_v16 = vadd.f32 %v7847_v12, %v7730_v8  ;;  %v7104_v15 = vmul.f32 %v12529_v26, %v12706_v29  ;;  %v12831_v23 = vpop.f32.mrb[30].mxu1  ;;  %v7253_v60 = vmul.f32 %v12548_v25, %v12713_v57  ;;  %v7914_v12 = vld [vmem:[#allocation2 + $0x69] sm:$0xff]  ;;  %13774 = vst [vmem:[#allocation15_spill] sm:$0xff] %v12839_v27  ;;  %v12847_v38 = vpop.f32.mrb[29].mxu0 }
 0x7f5   : > { %13773 = vst [vmem:[#allocation14_spill] sm:$0xff] %v12831_v23  ;;  %v7848_v30 = vmul.f32 %v12626_v39, %v12819_v42  ;;  %v7997_v32 = vmul.f32 %v12649_v31, %v12821_v40  ;;  %v8063_v8 = vld [vmem:[#allocation2 + $0x6a] sm:$0xff]  ;;  %v12841_v9 = vpop.f32.mrb[31].mxu1  ;;  %v7402_v23 = vmul.f32 %v12598_v36, %v12774_v45  ;;  %13776 = vst [vmem:[#allocation17_spill] sm:$0xff] %v12847_v38 }
 0x7f6   : > { %v7284_v52 = vadd.f32 %v7252_v0, %v7135_v48  ;;  %13775 = vst [vmem:[#allocation16_spill] sm:$0xff] %v12841_v9  ;;  %v8028_v29 = vadd.f32 %v7996_v28, %v7879_v16  ;;  %v8146_v0 = vmul.f32 %v12663_v46, %v12825_v61  ;;  %v7136_v48 = vadd.f32 %v7104_v15, %v6955_v17  ;;  %v7913_v9 = vld [vmem:[#allocation2 + $0x61] sm:$0xff]  ;;  %v12853_v28 = vpop.f32.mrb[30].mxu0 }
 0x7f7   : > { %v7551_v57 = vmul.f32 %v12603_v34, %v12779_v59  ;;  %v7700_v27 = vmul.f32 %v12617_v56, %v12788_v24  ;;  %v7794_v10 = vpack.c.bf16 %v7765_v54, %v7764_v5  ;;  %13777 = vst [vmem:[#allocation18_spill] sm:$0xff] %v12853_v28  ;;  %v7943_v17 = vpack.c.bf16 %v7914_v12, %v7913_v9  ;;  %v12855_v50 = vpop.f32.mrb[31].mxu0 }
 0x7f8   : > { %v7433_v33 = vadd.f32 %v7401_v14, %v7284_v52  ;;  %v8177_v16 = vadd.f32 %v8145_v47, %v8028_v29  ;;  %v7285_v63 = vadd.f32 %v7253_v60, %v7136_v48  ;;  %v8092_v15 = vpack.c.bf16 %v8063_v8, %v8062_v43 }
 0x7f9   : > { %v12857_v21 = vunpack.c.l.bf16 %v7794_v10  ;;  %v6545_v14 = vadd.f32 %v9539_v58, %v12476_v11  ;;  %v6537_v52 = vadd.f32 %v12725_v7, %v12466_v62  ;;  %v12863_v54 = vunpack.c.l.bf16 %v7943_v17 }
 0x7fa   : > { %v7582_v6 = vadd.f32 %v7550_v51, %v7433_v33  ;;  %v8213_v38 = vsel %vm363_vm1, %v8177_v16, 0.0  ;;  %v7434_v5 = vadd.f32 %v7402_v23, %v7285_v63  ;;  %v12865_v28 = vunpack.c.l.bf16 %v8092_v15 }
 0x7fb   : > { %8214 = vadd.xlane.f32.xlu0 %v8213_v38  ;;  %v7849_v47 = vmul.f32 %v12626_v39, %v12857_v21  ;;  %v6706_v51 = vadd.f32 %v12770_v13, %v6545_v14  ;;  %v6698_v33 = vadd.f32 %v12776_v49, %v6537_v52  ;;  %v7998_v62 = vmul.f32 %v12649_v31, %v12863_v54 }
 0x7fc   : > { %v7731_v9 = vadd.f32 %v7699_v18, %v7582_v6  ;;  %v7583_v11 = vadd.f32 %v7551_v57, %v7434_v5  ;;  %v8147_v63 = vmul.f32 %v12663_v46, %v12865_v28  ;;  %v6548_v7 = vadd.f32 %v12792_v2, %v12481_v41 }
 0x7fd   : > { %v6759_v38 = vmul.f32 %v12500_v4, %v6706_v51  ;;  %v6757_v6 = vmul.f32 %v12500_v4, %v6698_v33  ;;  %v6540_v13 = vadd.f32 %v12732_v35, %v12471_v3  ;;  %v6956_v23 = vmul.f32 %v12520_v37, %v12608_v44 }
 0x7fe   : > { %v7880_v58 = vadd.f32 %v7848_v30, %v7731_v9  ;;  %v7732_v18 = vadd.f32 %v7700_v27, %v7583_v11  ;;  %v6709_v49 = vadd.f32 %v12783_v53, %v6548_v7  ;;  %v7105_v60 = vmul.f32 %v12529_v26, %v12655_v22  ;;  %v7767_v11 = vld [vmem:[#allocation2 + $0x80] sm:$0xff] }
 0x7ff   : > { %v6796_v41 = vadd.f32 %v12509_v1, %v6759_v38  ;;  %v6794_v2 = vadd.f32 %v12509_v1, %v6757_v6  ;;  %v6701_v30 = vadd.f32 %v12794_v55, %v6540_v13  ;;  %v7254_v35 = vmul.f32 %v12548_v25, %v12670_v20  ;;  %v8065_v38 = vld [vmem:[#allocation2 + $0x82] sm:$0xff] }
 0x800   : > { %v8029_v12 = vadd.f32 %v7997_v32, %v7880_v58  ;;  %v7881_v43 = vadd.f32 %v7849_v47, %v7732_v18  ;;  %v6760_v8 = vmul.f32 %v12500_v4, %v6709_v49  ;;  %v7137_v3 = vadd.f32 %v7105_v60, %v6956_v23  ;;  %v7916_v58 = vld [vmem:[#allocation2 + $0x81] sm:$0xff]  ;;  %v7766_v23 = vld [vmem:[#allocation2 + $0x78] sm:$0xff] }
 0x801   : > { %v6828_v27 = vmax.f32 %v6796_v41, 0.0  ;;  %v6826_v44 = vmax.f32 %v6794_v2, 0.0  ;;  %v6758_v29 = vmul.f32 %v12500_v4, %v6701_v30  ;;  %v7403_v57 = vmul.f32 %v12598_v36, %v12819_v42  ;;  %v7915_v60 = vld [vmem:[#allocation2 + $0x79] sm:$0xff]  ;;  %v13778_v30 = vld [vmem:[#allocation9_spill] sm:$0xff] }
 0x802   : > { %v8178_v53 = vadd.f32 %v8146_v0, %v8029_v12  ;;  %v8030_v22 = vadd.f32 %v7998_v62, %v7881_v43  ;;  %v6797_v32 = vadd.f32 %v12509_v1, %v6760_v8  ;;  %v7286_v48 = vadd.f32 %v7254_v35, %v7137_v3  ;;  %v13779_v35 = vld [vmem:[#allocation10_spill] sm:$0xff] }
 0x803   : > { %6860 = vst.msk [vmem:[#allocation2 + $0x151] sm:$0xff] %vm363_vm1, %v6828_v27  ;;  %6858 = vst.msk [vmem:[#allocation2 + $0x139] sm:$0xff] %vm363_vm1, %v6826_v44  ;;  %v6795_v20 = vadd.f32 %v12509_v1, %v6758_v29  ;;  %v7552_v0 = vmul.f32 %v12603_v34, %v12821_v40  ;;  %v12902_v5 = vunpack.c.h.bf16 %v7794_v10  ;;  %v12904_v47 = vunpack.c.h.bf16 %v7943_v17  ;;  %v8064_v17 = vld [vmem:[#allocation2 + $0x7a] sm:$0xff] }
 0x804   : > { %v8216_v55 = vsel %vm363_vm1, %v8178_v53, 0.0  ;;  %v8179_v16 = vadd.f32 %v8147_v63, %v8030_v22  ;;  %v6829_v14 = vmax.f32 %v6797_v32, 0.0  ;;  %v7435_v52 = vadd.f32 %v7403_v57, %v7286_v48  ;;  %v13780_v53 = vld [vmem:[#allocation11_spill] sm:$0xff] }
 0x805   : > { %8217 = vadd.xlane.f32.xlu0 %v8216_v55  ;;  %v6827_v9 = vmax.f32 %v6795_v20, 0.0  ;;  %v12906_v51 = vunpack.c.h.bf16 %v8092_v15  ;;  %v6957_v33 = vmul.f32 %v12520_v37, %v12774_v45  ;;  %v7701_v63 = vmul.f32 %v12617_v56, %v12825_v61 }
 0x806   : > { %v8219_v62 = vsel %vm363_vm1, %v8179_v16, 0.0  ;;  %6861 = vst.msk [vmem:[#allocation2 + $0x159] sm:$0xff] %vm363_vm1, %v6829_v14  ;;  %v7584_v7 = vadd.f32 %v7552_v0, %v7435_v52  ;;  %v7106_v10 = vmul.f32 %v12529_v26, %v12779_v59  ;;  %v7850_v45 = vmul.f32 %v12626_v39, %v12902_v5 }
 0x807   : > { %8220 = vadd.xlane.f32.xlu1 %v8219_v62  ;;  %6859 = vst.msk [vmem:[#allocation2 + $0x141] sm:$0xff] %vm363_vm1, %v6827_v9  ;;  %v7999_v15 = vmul.f32 %v12649_v31, %v12904_v47  ;;  %v8148_v6 = vmul.f32 %v12663_v46, %v12906_v51  ;;  %v7255_v59 = vmul.f32 %v12548_v25, %v12788_v24 }
 0x808   : > { %v7733_v13 = vadd.f32 %v7701_v63, %v7584_v7  ;;  %v7138_v18 = vadd.f32 %v7106_v10, %v6957_v33  ;;  %v7404_v49 = vmul.f32 %v12598_v36, %v12857_v21  ;;  %v7795_v12 = vpack.c.bf16 %v7767_v11, %v7766_v23 }
 0x809   : > { %v7944_v41 = vpack.c.bf16 %v7916_v58, %v7915_v60  ;;  %v8093_v2 = vpack.c.bf16 %v8065_v38, %v8064_v17  ;;  %v9545_v43 = vadd.f32 %v13778_v30, %v12754_v19  ;;  %v12931_v27 = vadd.f32 %v13780_v53, %v13779_v35  ;;  %v7769_v17 = vld [vmem:[#allocation2 + $0x98] sm:$0xff]  ;;  %v7768_v60 = vld [vmem:[#allocation2 + $0x90] sm:$0xff] }
 0x80a   : > { %v7882_v8 = vadd.f32 %v7850_v45, %v7733_v13  ;;  %v7287_v3 = vadd.f32 %v7255_v59, %v7138_v18  ;;  %v6958_v24 = vmul.f32 %v12520_v37, %v12819_v42  ;;  %v12935_v44 = vunpack.c.l.bf16 %v7795_v12  ;;  %v7918_v13 = vld [vmem:[#allocation2 + $0x99] sm:$0xff] }
 0x80b   : > { %v12937_v29 = vunpack.c.l.bf16 %v7944_v41  ;;  %v12939_v22 = vunpack.c.l.bf16 %v8093_v2  ;;  %v7107_v32 = vmul.f32 %v12529_v26, %v12821_v40  ;;  %v7553_v57 = vmul.f32 %v12603_v34, %v12863_v54  ;;  %v8066_v18 = vld [vmem:[#allocation2 + $0x92] sm:$0xff]  ;;  %v8067_v59 = vld [vmem:[#allocation2 + $0x9a] sm:$0xff] }
 0x80c   : > { %v8031_v48 = vadd.f32 %v7999_v15, %v7882_v8  ;;  %v7436_v19 = vadd.f32 %v7404_v49, %v7287_v3  ;;  %v7702_v55 = vmul.f32 %v12617_v56, %v12865_v28  ;;  %v7851_v42 = vmul.f32 %v12626_v39, %v12935_v44  ;;  %v7917_v8 = vld [vmem:[#allocation2 + $0x91] sm:$0xff] }
 0x80d   : > { %v7139_v20 = vadd.f32 %v7107_v32, %v6958_v24  ;;  %v7256_v0 = vmul.f32 %v12548_v25, %v12825_v61  ;;  %v7405_v16 = vmul.f32 %v12598_v36, %v12902_v5  ;;  %v8000_v52 = vmul.f32 %v12649_v31, %v12937_v29 }
 0x80e   : > { %v8180_v14 = vadd.f32 %v8148_v6, %v8031_v48  ;;  %v7585_v40 = vadd.f32 %v7553_v57, %v7436_v19  ;;  %v8149_v9 = vmul.f32 %v12663_v46, %v12939_v22  ;;  %v12957_v11 = vunpack.c.h.bf16 %v7795_v12  ;;  %v13782_v57 = vld [vmem:[#allocation12_spill] sm:$0xff] }
 0x80f   : > { %v7288_v33 = vadd.f32 %v7256_v0, %v7139_v20  ;;  %v12959_v62 = vunpack.c.h.bf16 %v7944_v41  ;;  %v12961_v7 = vunpack.c.h.bf16 %v8093_v2  ;;  %v6959_v10 = vmul.f32 %v12520_v37, %v12857_v21 }
 0x810   : > { %v8222_v61 = vsel %vm363_vm1, %v8180_v14, 0.0  ;;  %v7734_v63 = vadd.f32 %v7702_v55, %v7585_v40  ;;  %v7108_v58 = vmul.f32 %v12529_v26, %v12863_v54  ;;  %v7554_v45 = vmul.f32 %v12603_v34, %v12904_v47  ;;  %v13783_v55 = vld [vmem:[#allocation13_spill] sm:$0xff] }
 0x811   : > { %8223 = vadd.xlane.f32.xlu0 %v8222_v61  ;;  %v7437_v38 = vadd.f32 %v7405_v16, %v7288_v33  ;;  %v7703_v15 = vmul.f32 %v12617_v56, %v12906_v51  ;;  %v7852_v6 = vmul.f32 %v12626_v39, %v12957_v11  ;;  %v7257_v54 = vmul.f32 %v12548_v25, %v12865_v28  ;;  %v13781_v28 = vld [vmem:[#allocation5_spill] sm:$0xff] }
 0x812   : > { %v7883_v49 = vadd.f32 %v7851_v42, %v7734_v63  ;;  %v7140_v21 = vadd.f32 %v7108_v58, %v6959_v10  ;;  %v7406_v23 = vmul.f32 %v12598_v36, %v12935_v44  ;;  %v8001_v41 = vmul.f32 %v12649_v31, %v12959_v62  ;;  %v13784_v33 = vld [vmem:[#allocation17_spill] sm:$0xff]  ;;  %v13785_v63 = vld [vmem:[#allocation7_spill] sm:$0xff] }
 0x813   : > { %v7586_v12 = vadd.f32 %v7554_v45, %v7437_v38  ;;  %v8150_v2 = vmul.f32 %v12663_v46, %v12961_v7  ;;  %v7796_v30 = vpack.c.bf16 %v7769_v17, %v7768_v60  ;;  %v7945_v53 = vpack.c.bf16 %v7918_v13, %v7917_v8  ;;  %v13787_v13 = vld [vmem:[#allocation6_spill] sm:$0xff] }
 0x814   : > { %v8032_v3 = vadd.f32 %v8000_v52, %v7883_v49  ;;  %v7289_v35 = vadd.f32 %v7257_v54, %v7140_v21  ;;  %v8094_v24 = vpack.c.bf16 %v8067_v59, %v8066_v18  ;;  %v6553_v19 = vadd.f32 %v9545_v43, %v13781_v28 }
 0x815   : > { %v7735_v32 = vadd.f32 %v7703_v15, %v7586_v12  ;;  %v12982_v48 = vunpack.c.l.bf16 %v7796_v30  ;;  %v9551_v42 = vadd.f32 %v13783_v55, %v13782_v57  ;;  %v7555_v16 = vmul.f32 %v12603_v34, %v12937_v29  ;;  %v13786_v15 = vld [vmem:[#allocation15_spill] sm:$0xff] }
 0x816   : > { %v8181_v20 = vadd.f32 %v8149_v9, %v8032_v3  ;;  %v7438_v0 = vadd.f32 %v7406_v23, %v7289_v35  ;;  %v12989_v14 = vunpack.c.l.bf16 %v7945_v53  ;;  %v7704_v52 = vmul.f32 %v12617_v56, %v12939_v22 }
 0x817   : > { %v7884_v40 = vadd.f32 %v7852_v6, %v7735_v32  ;;  %v6714_v61 = vadd.f32 %v13784_v33, %v6553_v19  ;;  %v6561_v10 = vadd.f32 %v9551_v42, %v13785_v63  ;;  %v7853_v9 = vmul.f32 %v12626_v39, %v12982_v48  ;;  %v7920_v63 = vld [vmem:[#allocation2 + $0xb1] sm:$0xff] }
 0x818   : > { %v8225_v43 = vsel %vm363_vm1, %v8181_v20, 0.0  ;;  %v7587_v58 = vadd.f32 %v7555_v16, %v7438_v0  ;;  %v12998_v17 = vunpack.c.l.bf16 %v8094_v24  ;;  %v6556_v18 = vadd.f32 %v12931_v27, %v13787_v13  ;;  %v13045_v16 = vld [vmem:[%s13750_s5] ss:$0 sm:$0xff]  ;;  %v7919_v13 = vld [vmem:[#allocation2 + $0xa9] sm:$0xff] }
 0x819   : > { %8226 = vadd.xlane.f32.xlu1 %v8225_v43  ;;  %v8033_v38 = vadd.f32 %v8001_v41, %v7884_v40  ;;  %v6761_v45 = vmul.f32 %v12500_v4, %v6714_v61  ;;  %v6722_v6 = vadd.f32 %v13786_v15, %v6561_v10  ;;  %v8002_v49 = vmul.f32 %v12649_v31, %v12989_v14  ;;  %v8068_v10 = vld [vmem:[#allocation2 + $0xaa] sm:$0xff]  ;;  %v8069_v43 = vld [vmem:[#allocation2 + $0xb2] sm:$0xff] }
 0x81a   : > { %v7736_v59 = vadd.f32 %v7704_v52, %v7587_v58  ;;  %v6960_v21 = vmul.f32 %v12520_v37, %v12902_v5  ;;  %v7109_v54 = vmul.f32 %v12529_v26, %v12904_v47  ;;  %v6717_v41 = vadd.f32 %v12855_v50, %v6556_v18  ;;  %v7771_v52 = vld [vmem:[#allocation2 + $0xb0] sm:$0xff] }
 0x81b   : > { %v8182_v23 = vadd.f32 %v8150_v2, %v8033_v38  ;;  %v6798_v60 = vadd.f32 %v12509_v1, %v6761_v45  ;;  %v6763_v12 = vmul.f32 %v12500_v4, %v6722_v6  ;;  %v7258_v27 = vmul.f32 %v12548_v25, %v12906_v51  ;;  %v13022_v2 = vld [vmem:[%s13752_s7 + $0x3] ss:$0 sm:$0xff]  ;;  %v7770_v45 = vld [vmem:[#allocation2 + $0xa8] sm:$0xff] }
 0x81c   : > { %v7885_v8 = vadd.f32 %v7853_v9, %v7736_v59  ;;  %v7141_v3 = vadd.f32 %v7109_v54, %v6960_v21  ;;  %v7407_v35 = vmul.f32 %v12598_v36, %v12957_v11  ;;  %v6762_v4 = vmul.f32 %v13022_v2, %v6717_v41  ;;  %v13788_v21 = vld [vmem:[#allocation14_spill] sm:$0xff]  ;;  %v13789_v54 = vld [vmem:[#allocation16_spill] sm:$0xff] }
 0x81d   : > { %v8228_v37 = vsel %vm363_vm1, %v8182_v23, 0.0  ;;  %v6830_v5 = vmax.f32 %v6798_v60, 0.0  ;;  %v6800_v47 = vadd.f32 %v12509_v1, %v6763_v12  ;;  %v8151_v51 = vmul.f32 %v12663_v46, %v12998_v17  ;;  %v13033_v1 = vld [vmem:[%s13753_s8 + $0x3] ss:$0 sm:$0xff] }
 0x81e   : > { %8229 = vadd.xlane.f32.xlu0 %v8228_v37  ;;  %v8034_v50 = vadd.f32 %v8002_v49, %v7885_v8  ;;  %v7290_v32 = vadd.f32 %v7258_v27, %v7141_v3  ;;  %v13027_v28 = vunpack.c.h.bf16 %v7796_v30  ;;  %v6799_v57 = vadd.f32 %v13033_v1, %v6762_v4  ;;  %v13089_v4 = vld [vmem:[%s13750_s5 + $0x2] ss:$0 sm:$0xff] }
 0x81f   : > { %6862 = vst.msk [vmem:[#allocation2 + $0x169] sm:$0xff] %vm363_vm1, %v6830_v5  ;;  %v6832_v19 = vmax.f32 %v6800_v47, 0.0  ;;  %v13036_v55 = vunpack.c.h.bf16 %v7945_v53  ;;  %v13038_v42 = vunpack.c.h.bf16 %v8094_v24  ;;  %v7556_v30 = vmul.f32 %v12603_v34, %v12959_v62 }
 0x820   : > { %v8183_v20 = vadd.f32 %v8151_v51, %v8034_v50  ;;  %v7439_v0 = vadd.f32 %v7407_v35, %v7290_v32  ;;  %v6961_v40 = vmul.f32 %v13045_v16, %v12935_v44  ;;  %v6831_v53 = vmax.f32 %v6799_v57, 0.0  ;;  %v13790_v35 = vld [vmem:[#allocation8_spill] sm:$0xff] }
 0x821   : > { %6864 = vst.msk [vmem:[#allocation2 + $0x181] sm:$0xff] %vm363_vm1, %v6832_v19  ;;  %v7705_v24 = vmul.f32 %v12617_v56, %v12961_v7  ;;  %v7854_v33 = vmul.f32 %v12626_v39, %v13027_v28  ;;  %v7110_v61 = vmul.f32 %v12529_v26, %v12937_v29  ;;  %v8003_v44 = vmul.f32 %v12649_v31, %v13036_v55  ;;  %v13791_v19 = vld [vmem:[#allocation18_spill] sm:$0xff] }
 0x822   : > { %v8231_v58 = vsel %vm363_vm1, %v8183_v20, 0.0  ;;  %v7588_v9 = vadd.f32 %v7556_v30, %v7439_v0  ;;  %v8152_v38 = vmul.f32 %v12663_v46, %v13038_v42  ;;  %6863 = vst.msk [vmem:[#allocation2 + $0x171] sm:$0xff] %vm363_vm1, %v6831_v53  ;;  %v7259_v26 = vmul.f32 %v12548_v25, %v12939_v22  ;;  %v13075_v25 = vld [vmem:[%s13750_s5 + $0x1] ss:$0 sm:$0xff] }
 0x823   : > { %8232 = vadd.xlane.f32.xlu1 %v8231_v58  ;;  %v7142_v15 = vadd.f32 %v7110_v61, %v6961_v40  ;;  %v7408_v29 = vmul.f32 %v12598_v36, %v12982_v48  ;;  %v7797_v6 = vpack.c.bf16 %v7771_v52, %v7770_v45  ;;  %v7946_v59 = vpack.c.bf16 %v7920_v63, %v7919_v13  ;;  %v8071_v13 = vld [vmem:[#allocation2 + $0xca] sm:$0xff] }
 0x824   : > { %v7737_v18 = vadd.f32 %v7705_v24, %v7588_v9  ;;  %v8095_v49 = vpack.c.bf16 %v8069_v43, %v8068_v10  ;;  %v9554_v23 = vadd.f32 %v13789_v54, %v13788_v21  ;;  %v6962_v41 = vmul.f32 %v13045_v16, %v12957_v11 }
 0x825   : > { %v7291_v60 = vadd.f32 %v7259_v26, %v7142_v15  ;;  %v13068_v12 = vunpack.c.l.bf16 %v7797_v6  ;;  %v7111_v22 = vmul.f32 %v13075_v25, %v12959_v62  ;;  %v7557_v3 = vmul.f32 %v12603_v34, %v12989_v14 }
 0x826   : > { %v7886_v8 = vadd.f32 %v7854_v33, %v7737_v18  ;;  %v13081_v27 = vunpack.c.l.bf16 %v7946_v59  ;;  %v6564_v37 = vadd.f32 %v9554_v23, %v13790_v35  ;;  %v7706_v11 = vmul.f32 %v12617_v56, %v12998_v17 }
 0x827   : > { %v7440_v5 = vadd.f32 %v7408_v29, %v7291_v60  ;;  %v7143_v47 = vadd.f32 %v7111_v22, %v6962_v41  ;;  %v7260_v62 = vmul.f32 %v13089_v4, %v12961_v7  ;;  %v7855_v51 = vmul.f32 %v12626_v39, %v13068_v12  ;;  %v7922_v29 = vld [vmem:[#allocation2 + $0xc9] sm:$0xff]  ;;  %v7772_v60 = vld [vmem:[#allocation2 + $0xc0] sm:$0xff] }
 0x828   : > { %v8035_v50 = vadd.f32 %v8003_v44, %v7886_v8  ;;  %v13095_v32 = vunpack.c.l.bf16 %v8095_v49  ;;  %v6725_v57 = vadd.f32 %v13791_v19, %v6564_v37  ;;  %v8004_v0 = vmul.f32 %v12649_v31, %v13081_v27  ;;  %v7773_v44 = vld [vmem:[#allocation2 + $0xc8] sm:$0xff] }
 0x829   : > { %v7589_v20 = vadd.f32 %v7557_v3, %v7440_v5  ;;  %v7292_v30 = vadd.f32 %v7260_v62, %v7143_v47  ;;  %v7409_v40 = vmul.f32 %v12598_v36, %v13027_v28  ;;  %v7558_v7 = vmul.f32 %v12603_v34, %v13036_v55  ;;  %v7921_v41 = vld [vmem:[#allocation2 + $0xc1] sm:$0xff] }
 0x82a   : > { %v8184_v52 = vadd.f32 %v8152_v38, %v8035_v50  ;;  %v6764_v53 = vmul.f32 %v13022_v2, %v6725_v57  ;;  %v13105_v24 = vunpack.c.h.bf16 %v7797_v6  ;;  %v13107_v63 = vunpack.c.h.bf16 %v7946_v59  ;;  %v8070_v6 = vld [vmem:[#allocation2 + $0xc2] sm:$0xff] }
 0x82b   : > { %v7738_v33 = vadd.f32 %v7706_v11, %v7589_v20  ;;  %v7441_v61 = vadd.f32 %v7409_v40, %v7292_v30  ;;  %v13109_v10 = vunpack.c.h.bf16 %v8095_v49  ;;  %v8153_v58 = vmul.f32 %v12663_v46, %v13095_v32 }
 0x82c   : > { %v8234_v43 = vsel %vm363_vm1, %v8184_v52, 0.0  ;;  %v6801_v9 = vadd.f32 %v13033_v1, %v6764_v53  ;;  %v6963_v2 = vmul.f32 %v13045_v16, %v12982_v48  ;;  %v7707_v15 = vmul.f32 %v12617_v56, %v13038_v42  ;;  %v13156_v52 = vld [vmem:[%s13750_s5 + $0x3] ss:$0 sm:$0xff] }
 0x82d   : > { %8235 = vadd.xlane.f32.xlu0 %v8234_v43  ;;  %v7887_v38 = vadd.f32 %v7855_v51, %v7738_v33  ;;  %v7590_v45 = vadd.f32 %v7558_v7, %v7441_v61  ;;  %v7856_v26 = vmul.f32 %v12626_v39, %v13105_v24  ;;  %v8005_v1 = vmul.f32 %v12649_v31, %v13107_v63 }
 0x82e   : > { %v6833_v18 = vmax.f32 %v6801_v9, 0.0  ;;  %v8154_v48 = vmul.f32 %v12663_v46, %v13109_v10  ;;  %v7112_v59 = vmul.f32 %v13075_v25, %v12989_v14  ;;  %v7261_v54 = vmul.f32 %v13089_v4, %v12998_v17 }
 0x82f   : > { %v8036_v49 = vadd.f32 %v8004_v0, %v7887_v38  ;;  %v7739_v21 = vadd.f32 %v7707_v15, %v7590_v45  ;;  %v7410_v23 = vmul.f32 %v12598_v36, %v13068_v12  ;;  %v7798_v8 = vpack.c.bf16 %v7773_v44, %v7772_v60  ;;  %v13181_v45 = vld [vmem:[%s13750_s5 + $0x5] ss:$0 sm:$0xff]  ;;  %v7923_v60 = vld [vmem:[#allocation2 + $0xd9] sm:$0xff] }
 0x830   : > { %6865 = vst.msk [vmem:[#allocation2 + $0x189] sm:$0xff] %vm363_vm1, %v6833_v18  ;;  %v7144_v22 = vadd.f32 %v7112_v59, %v6963_v2  ;;  %v7947_v3 = vpack.c.bf16 %v7922_v29, %v7921_v41  ;;  %v8096_v35 = vpack.c.bf16 %v8071_v13, %v8070_v6  ;;  %v6964_v14 = vmul.f32 %v13045_v16, %v13027_v28  ;;  %v7775_v2 = vld [vmem:[#allocation2 + $0xe0] sm:$0xff] }
 0x831   : > { %v8185_v37 = vadd.f32 %v8153_v58, %v8036_v49  ;;  %v7888_v5 = vadd.f32 %v7856_v26, %v7739_v21  ;;  %v7113_v11 = vmul.f32 %v13075_v25, %v13036_v55  ;;  %v7559_v36 = vmul.f32 %v12603_v34, %v13081_v27  ;;  %v7924_v29 = vld [vmem:[#allocation2 + $0xe1] sm:$0xff] }
 0x832   : > { %v7293_v17 = vadd.f32 %v7261_v54, %v7144_v22  ;;  %v13138_v47 = vunpack.c.l.bf16 %v7798_v8  ;;  %v13140_v62 = vunpack.c.l.bf16 %v7947_v3  ;;  %v7262_v57 = vmul.f32 %v13089_v4, %v13038_v42  ;;  %v8072_v6 = vld [vmem:[#allocation2 + $0xda] sm:$0xff]  ;;  %v13190_v18 = vld [vmem:[%s13750_s5 + $0x6] ss:$0 sm:$0xff] }
 0x833   : > { %v8237_v50 = vsel %vm363_vm1, %v8185_v37, 0.0  ;;  %v8037_v51 = vadd.f32 %v8005_v1, %v7888_v5  ;;  %v7145_v19 = vadd.f32 %v7113_v11, %v6964_v14  ;;  %v7708_v55 = vmul.f32 %v12617_v56, %v13095_v32  ;;  %v13163_v56 = vld [vmem:[%s13750_s5 + $0x4] ss:$0 sm:$0xff] }
 0x834   : > { %8238 = vadd.xlane.f32.xlu1 %v8237_v50  ;;  %v7442_v28 = vadd.f32 %v7410_v23, %v7293_v17  ;;  %v7857_v20 = vmul.f32 %v12626_v39, %v13138_v47  ;;  %v13149_v34 = vunpack.c.l.bf16 %v8096_v35  ;;  %v8006_v30 = vmul.f32 %v12649_v31, %v13140_v62  ;;  %v7774_v23 = vld [vmem:[#allocation2 + $0xd8] sm:$0xff] }
 0x835   : > { %v8186_v0 = vadd.f32 %v8154_v48, %v8037_v51  ;;  %v7294_v40 = vadd.f32 %v7262_v57, %v7145_v19  ;;  %v7411_v42 = vmul.f32 %v13156_v52, %v13105_v24  ;;  %v7560_v39 = vmul.f32 %v13163_v56, %v13107_v63 }
 0x836   : > { %v7591_v53 = vadd.f32 %v7559_v36, %v7442_v28  ;;  %v13167_v7 = vunpack.c.h.bf16 %v7798_v8  ;;  %v13169_v33 = vunpack.c.h.bf16 %v7947_v3  ;;  %v13172_v58 = vunpack.c.h.bf16 %v8096_v35 }
 0x837   : > { %v8240_v61 = vsel %vm363_vm1, %v8186_v0, 0.0  ;;  %v7443_v43 = vadd.f32 %v7411_v42, %v7294_v40  ;;  %v6965_v9 = vmul.f32 %v13045_v16, %v13068_v12  ;;  %v8155_v38 = vmul.f32 %v12663_v46, %v13149_v34  ;;  %v8073_v12 = vld [vmem:[#allocation2 + $0xe2] sm:$0xff] }
 0x838   : > { %8241 = vadd.xlane.f32.xlu0 %v8240_v61  ;;  %v7740_v44 = vadd.f32 %v7708_v55, %v7591_v53  ;;  %v7709_v15 = vmul.f32 %v13181_v45, %v13109_v10  ;;  %v7114_v26 = vmul.f32 %v13075_v25, %v13081_v27  ;;  %v7858_v1 = vmul.f32 %v13190_v18, %v13167_v7 }
 0x839   : > { %v7592_v13 = vadd.f32 %v7560_v39, %v7443_v43  ;;  %v8007_v48 = vmul.f32 %v12649_v31, %v13169_v33  ;;  %v8156_v59 = vmul.f32 %v12663_v46, %v13172_v58  ;;  %v7263_v21 = vmul.f32 %v13089_v4, %v13095_v32 }
 0x83a   : > { %v7889_v49 = vadd.f32 %v7857_v20, %v7740_v44  ;;  %v7146_v27 = vadd.f32 %v7114_v26, %v6965_v9  ;;  %v7412_v54 = vmul.f32 %v13156_v52, %v13138_v47  ;;  %v7799_v22 = vpack.c.bf16 %v7775_v2, %v7774_v23  ;;  %v13242_v44 = vld [vmem:[%s13750_s5 + $0x8] ss:$0 sm:$0xff] }
 0x83b   : > { %v7741_v41 = vadd.f32 %v7709_v15, %v7592_v13  ;;  %v7948_v8 = vpack.c.bf16 %v7924_v29, %v7923_v60  ;;  %v8097_v3 = vpack.c.bf16 %v8073_v12, %v8072_v6  ;;  %v6966_v31 = vmul.f32 %v13045_v16, %v13105_v24  ;;  %v7777_v29 = vld [vmem:[#allocation2 + $0xf8] sm:$0xff] }
 0x83c   : > { %v8038_v35 = vadd.f32 %v8006_v30, %v7889_v49  ;;  %v7295_v37 = vadd.f32 %v7263_v21, %v7146_v27  ;;  %v7115_v46 = vmul.f32 %v13075_v25, %v13107_v63  ;;  %v7561_v32 = vmul.f32 %v13163_v56, %v13140_v62  ;;  %v8075_v49 = vld [vmem:[#allocation2 + $0xfa] sm:$0xff] }
 0x83d   : > { %v7890_v5 = vadd.f32 %v7858_v1, %v7741_v41  ;;  %v13208_v14 = vunpack.c.l.bf16 %v7799_v22  ;;  %v13210_v11 = vunpack.c.l.bf16 %v7948_v8  ;;  %v7264_v51 = vmul.f32 %v13089_v4, %v13109_v10  ;;  %v13226_v10 = vld [vmem:[%s13750_s5 + $0x7] ss:$0 sm:$0xff] }
 0x83e   : > { %v8187_v17 = vadd.f32 %v8155_v38, %v8038_v35  ;;  %v7444_v36 = vadd.f32 %v7412_v54, %v7295_v37  ;;  %v7147_v50 = vadd.f32 %v7115_v46, %v6966_v31  ;;  %v7710_v24 = vmul.f32 %v13181_v45, %v13149_v34  ;;  %v7776_v54 = vld [vmem:[#allocation2 + $0xf0] sm:$0xff] }
 0x83f   : > { %v8039_v19 = vadd.f32 %v8007_v48, %v7890_v5  ;;  %v7859_v63 = vmul.f32 %v13190_v18, %v13208_v14  ;;  %v13218_v57 = vunpack.c.l.bf16 %v8097_v3  ;;  %v7413_v0 = vmul.f32 %v13156_v52, %v13167_v7  ;;  %v7926_v48 = vld [vmem:[#allocation2 + $0xf9] sm:$0xff] }
 0x840   : > { %v8243_v28 = vsel %vm363_vm1, %v8187_v17, 0.0  ;;  %v7593_v55 = vadd.f32 %v7561_v32, %v7444_v36  ;;  %v7296_v20 = vadd.f32 %v7264_v51, %v7147_v50  ;;  %v8008_v40 = vmul.f32 %v13226_v10, %v13210_v11 }
 0x841   : > { %8244 = vadd.xlane.f32.xlu1 %v8243_v28  ;;  %v8188_v30 = vadd.f32 %v8156_v59, %v8039_v19  ;;  %v7562_v42 = vmul.f32 %v13163_v56, %v13169_v33  ;;  %v13232_v53 = vunpack.c.h.bf16 %v7799_v22  ;;  %v13234_v43 = vunpack.c.h.bf16 %v7948_v8  ;;  %v8074_v59 = vld [vmem:[#allocation2 + $0xf2] sm:$0xff] }
 0x842   : > { %v7742_v39 = vadd.f32 %v7710_v24, %v7593_v55  ;;  %v7445_v61 = vadd.f32 %v7413_v0, %v7296_v20  ;;  %v13236_v9 = vunpack.c.h.bf16 %v8097_v3  ;;  %v8157_v38 = vmul.f32 %v13242_v44, %v13218_v57  ;;  %v7925_v8 = vld [vmem:[#allocation2 + $0xf1] sm:$0xff] }
 0x843   : > { %v8246_v2 = vsel %vm363_vm1, %v8188_v30, 0.0  ;;  %v6967_v15 = vmul.f32 %v13045_v16, %v13138_v47  ;;  %v7116_v26 = vmul.f32 %v13075_v25, %v13140_v62  ;;  %v7711_v13 = vmul.f32 %v13181_v45, %v13172_v58 }
 0x844   : > { %8247 = vadd.xlane.f32.xlu0 %v8246_v2  ;;  %v7891_v6 = vadd.f32 %v7859_v63, %v7742_v39  ;;  %v7594_v12 = vadd.f32 %v7562_v42, %v7445_v61  ;;  %v7860_v1 = vmul.f32 %v13190_v18, %v13232_v53  ;;  %v8009_v27 = vmul.f32 %v13226_v10, %v13234_v43 }
 0x845   : > { %v7148_v47 = vadd.f32 %v7116_v26, %v6967_v15  ;;  %v7265_v62 = vmul.f32 %v13089_v4, %v13149_v34  ;;  %v7414_v21 = vmul.f32 %v13156_v52, %v13208_v14  ;;  %v8158_v41 = vmul.f32 %v13242_v44, %v13236_v9 }
 0x846   : > { %v8040_v23 = vadd.f32 %v8008_v40, %v7891_v6  ;;  %v7743_v60 = vadd.f32 %v7711_v13, %v7594_v12  ;;  %v7800_v22 = vpack.c.bf16 %v7777_v29, %v7776_v54  ;;  %v7949_v35 = vpack.c.bf16 %v7926_v48, %v7925_v8  ;;  %v7779_v6 = vld [vmem:[#allocation2 + $0x110] sm:$0xff] }
 0x847   : > { %v7297_v3 = vadd.f32 %v7265_v62, %v7148_v47  ;;  %v8098_v37 = vpack.c.bf16 %v8075_v49, %v8074_v59  ;;  %v6968_v31 = vmul.f32 %v13045_v16, %v13167_v7  ;;  %v7117_v32 = vmul.f32 %v13075_v25, %v13169_v33  ;;  %v7928_v59 = vld [vmem:[#allocation2 + $0x111] sm:$0xff] }
 0x848   : > { %v8189_v46 = vadd.f32 %v8157_v38, %v8040_v23  ;;  %v7892_v5 = vadd.f32 %v7860_v1, %v7743_v60  ;;  %v13264_v34 = vunpack.c.l.bf16 %v7800_v22  ;;  %v7563_v36 = vmul.f32 %v13163_v56, %v13210_v11  ;;  %v8076_v49 = vld [vmem:[#allocation2 + $0x10a] sm:$0xff] }
 0x849   : > { %v7446_v17 = vadd.f32 %v7414_v21, %v7297_v3  ;;  %v13270_v50 = vunpack.c.l.bf16 %v7949_v35  ;;  %v13272_v51 = vunpack.c.l.bf16 %v8098_v37  ;;  %v7149_v63 = vadd.f32 %v7117_v32, %v6968_v31  ;;  %v7778_v21 = vld [vmem:[#allocation2 + $0x108] sm:$0xff] }
 0x84a   : > { %v8249_v19 = vsel %vm363_vm1, %v8189_v46, 0.0  ;;  %v8041_v24 = vadd.f32 %v8009_v27, %v7892_v5  ;;  %v7266_v7 = vmul.f32 %v13089_v4, %v13172_v58  ;;  %v7712_v33 = vmul.f32 %v13181_v45, %v13218_v57  ;;  %v8077_v27 = vld [vmem:[#allocation2 + $0x112] sm:$0xff] }
 0x84b   : > { %8250 = vadd.xlane.f32.xlu1 %v8249_v19  ;;  %v7595_v28 = vadd.f32 %v7563_v36, %v7446_v17  ;;  %v7861_v55 = vmul.f32 %v13190_v18, %v13264_v34  ;;  %v7415_v20 = vmul.f32 %v13156_v52, %v13232_v53  ;;  %v8010_v30 = vmul.f32 %v13226_v10, %v13270_v50 }
 0x84c   : > { %v8190_v0 = vadd.f32 %v8158_v41, %v8041_v24  ;;  %v8159_v40 = vmul.f32 %v13242_v44, %v13272_v51  ;;  %v7298_v42 = vadd.f32 %v7266_v7, %v7149_v63  ;;  %v7564_v39 = vmul.f32 %v13163_v56, %v13234_v43 }
 0x84d   : > { %v7744_v58 = vadd.f32 %v7712_v33, %v7595_v28  ;;  %v13289_v61 = vunpack.c.h.bf16 %v7800_v22  ;;  %v13291_v2 = vunpack.c.h.bf16 %v7949_v35  ;;  %v6969_v26 = vmul.f32 %v13045_v16, %v13208_v14  ;;  %v7927_v22 = vld [vmem:[#allocation2 + $0x109] sm:$0xff] }
 0x84e   : > { %v8252_v38 = vsel %vm363_vm1, %v8190_v0, 0.0  ;;  %v7447_v15 = vadd.f32 %v7415_v20, %v7298_v42  ;;  %v7118_v29 = vmul.f32 %v13075_v25, %v13210_v11  ;;  %v7713_v13 = vmul.f32 %v13181_v45, %v13236_v9 }
 0x84f   : > { %8253 = vadd.xlane.f32.xlu0 %v8252_v38  ;;  %v7893_v12 = vadd.f32 %v7861_v55, %v7744_v58  ;;  %v7862_v1 = vmul.f32 %v13190_v18, %v13289_v61  ;;  %v13302_v48 = vunpack.c.h.bf16 %v8098_v37  ;;  %v8011_v14 = vmul.f32 %v13226_v10, %v13291_v2 }
 0x850   : > { %v7596_v47 = vadd.f32 %v7564_v39, %v7447_v15  ;;  %v7150_v62 = vadd.f32 %v7118_v29, %v6969_v26  ;;  %v7267_v11 = vmul.f32 %v13089_v4, %v13218_v57  ;;  %v7416_v23 = vmul.f32 %v13156_v52, %v13264_v34 }
 0x851   : > { %v8042_v54 = vadd.f32 %v8010_v30, %v7893_v12  ;;  %v7565_v60 = vmul.f32 %v13163_v56, %v13270_v50  ;;  %v7801_v41 = vpack.c.bf16 %v7779_v6, %v7778_v21  ;;  %v7950_v35 = vpack.c.bf16 %v7928_v59, %v7927_v22  ;;  %v7781_v59 = vld [vmem:[#allocation2 + $0x128] sm:$0xff] }
 0x852   : > { %v7745_v8 = vadd.f32 %v7713_v13, %v7596_v47  ;;  %v7299_v3 = vadd.f32 %v7267_v11, %v7150_v62  ;;  %v8099_v37 = vpack.c.bf16 %v8077_v27, %v8076_v49  ;;  %v6970_v57 = vmul.f32 %v13045_v16, %v13232_v53  ;;  %v7930_v49 = vld [vmem:[#allocation2 + $0x129] sm:$0xff] }
 0x853   : > { %v8191_v31 = vadd.f32 %v8159_v40, %v8042_v54  ;;  %v13312_v46 = vunpack.c.l.bf16 %v7801_v41  ;;  %v7119_v5 = vmul.f32 %v13075_v25, %v13234_v43  ;;  %v13318_v36 = vunpack.c.l.bf16 %v7950_v35  ;;  %v8079_v62 = vld [vmem:[#allocation2 + $0x12a] sm:$0xff] }
 0x854   : > { %v7894_v32 = vadd.f32 %v7862_v1, %v7745_v8  ;;  %v7448_v17 = vadd.f32 %v7416_v23, %v7299_v3  ;;  %v13320_v19 = vunpack.c.l.bf16 %v8099_v37  ;;  %v8160_v63 = vmul.f32 %v13242_v44, %v13302_v48 }
 0x855   : > { %v8255_v24 = vsel %vm363_vm1, %v8191_v31, 0.0  ;;  %v7151_v7 = vadd.f32 %v7119_v5, %v6970_v57  ;;  %v7268_v28 = vmul.f32 %v13089_v4, %v13236_v9  ;;  %v7714_v43 = vmul.f32 %v13181_v45, %v13272_v51 }
 0x856   : > { %8256 = vadd.xlane.f32.xlu1 %v8255_v24  ;;  %v8043_v53 = vadd.f32 %v8011_v14, %v7894_v32  ;;  %v7597_v33 = vadd.f32 %v7565_v60, %v7448_v17  ;;  %v7863_v55 = vmul.f32 %v13190_v18, %v13312_v46  ;;  %v8012_v20 = vmul.f32 %v13226_v10, %v13318_v36  ;;  %v7780_v60 = vld [vmem:[#allocation2 + $0x120] sm:$0xff] }
 0x857   : > { %v8161_v0 = vmul.f32 %v13242_v44, %v13320_v19  ;;  %v7300_v30 = vadd.f32 %v7268_v28, %v7151_v7  ;;  %v7417_v40 = vmul.f32 %v13156_v52, %v13289_v61  ;;  %v13337_v58 = vunpack.c.h.bf16 %v7801_v41  ;;  %v7929_v41 = vld [vmem:[#allocation2 + $0x121] sm:$0xff] }
 0x858   : > { %v8192_v9 = vadd.f32 %v8160_v63, %v8043_v53  ;;  %v7746_v42 = vadd.f32 %v7714_v43, %v7597_v33  ;;  %v13339_v39 = vunpack.c.h.bf16 %v7950_v35  ;;  %v7566_v15 = vmul.f32 %v13163_v56, %v13291_v2 }
 0x859   : > { %v7449_v38 = vadd.f32 %v7417_v40, %v7300_v30  ;;  %v6971_v26 = vmul.f32 %v13045_v16, %v13264_v34  ;;  %v7120_v29 = vmul.f32 %v13075_v25, %v13270_v50  ;;  %v7715_v13 = vmul.f32 %v13181_v45, %v13302_v48  ;;  %v8078_v50 = vld [vmem:[#allocation2 + $0x122] sm:$0xff] }
 0x85a   : > { %v8258_v6 = vsel %vm363_vm1, %v8192_v9, 0.0  ;;  %v7895_v12 = vadd.f32 %v7863_v55, %v7746_v42  ;;  %v13350_v1 = vunpack.c.h.bf16 %v8099_v37  ;;  %v7864_v47 = vmul.f32 %v13190_v18, %v13337_v58 }
 0x85b   : > { %8259 = vadd.xlane.f32.xlu0 %v8258_v6  ;;  %v7598_v27 = vadd.f32 %v7566_v15, %v7449_v38  ;;  %v7152_v14 = vadd.f32 %v7120_v29, %v6971_v26  ;;  %v7269_v34 = vmul.f32 %v13089_v4, %v13272_v51  ;;  %v8013_v21 = vmul.f32 %v13226_v10, %v13339_v39 }
 0x85c   : > { %v8044_v11 = vadd.f32 %v8012_v20, %v7895_v12  ;;  %v7418_v54 = vmul.f32 %v13156_v52, %v13312_v46  ;;  %v7567_v23 = vmul.f32 %v13163_v56, %v13318_v36  ;;  %v7802_v3 = vpack.c.bf16 %v7781_v59, %v7780_v60  ;;  %v7931_v60 = vld [vmem:[#allocation2 + $0x139] sm:$0xff] }
 0x85d   : > { %v7747_v22 = vadd.f32 %v7715_v13, %v7598_v27  ;;  %v7301_v8 = vadd.f32 %v7269_v34, %v7152_v14  ;;  %v7951_v35 = vpack.c.bf16 %v7930_v49, %v7929_v41  ;;  %v8100_v51 = vpack.c.bf16 %v8079_v62, %v8078_v50  ;;  %v7783_v49 = vld [vmem:[#allocation2 + $0x140] sm:$0xff] }
 0x85e   : > { %v8193_v37 = vadd.f32 %v8161_v0, %v8044_v11  ;;  %v6972_v31 = vmul.f32 %v13045_v16, %v13289_v61  ;;  %v7121_v57 = vmul.f32 %v13075_v25, %v13291_v2  ;;  %v13366_v17 = vunpack.c.l.bf16 %v7802_v3  ;;  %v7932_v27 = vld [vmem:[#allocation2 + $0x141] sm:$0xff] }
 0x85f   : > { %v7896_v5 = vadd.f32 %v7864_v47, %v7747_v22  ;;  %v7450_v32 = vadd.f32 %v7418_v54, %v7301_v8  ;;  %v13368_v24 = vunpack.c.l.bf16 %v7951_v35  ;;  %v8162_v7 = vmul.f32 %v13242_v44, %v13350_v1  ;;  %v8080_v50 = vld [vmem:[#allocation2 + $0x13a] sm:$0xff]  ;;  %v8081_v62 = vld [vmem:[#allocation2 + $0x142] sm:$0xff] }
 0x860   : > { %v8261_v63 = vsel %vm363_vm1, %v8193_v37, 0.0  ;;  %v7153_v28 = vadd.f32 %v7121_v57, %v6972_v31  ;;  %v7270_v53 = vmul.f32 %v13089_v4, %v13302_v48  ;;  %v7716_v2 = vmul.f32 %v13181_v45, %v13320_v19 }
 0x861   : > { %8262 = vadd.xlane.f32.xlu1 %v8261_v63  ;;  %v8045_v61 = vadd.f32 %v8013_v21, %v7896_v5  ;;  %v7599_v33 = vadd.f32 %v7567_v23, %v7450_v32  ;;  %v13377_v43 = vunpack.c.l.bf16 %v8100_v51  ;;  %v7865_v55 = vmul.f32 %v13190_v18, %v13366_v17  ;;  %v7782_v23 = vld [vmem:[#allocation2 + $0x138] sm:$0xff] }
 0x862   : > { %v8014_v20 = vmul.f32 %v13226_v10, %v13368_v24  ;;  %v7302_v0 = vadd.f32 %v7270_v53, %v7153_v28  ;;  %v7419_v30 = vmul.f32 %v13156_v52, %v13337_v58  ;;  %v7568_v9 = vmul.f32 %v13163_v56, %v13339_v39 }
 0x863   : > { %v8194_v40 = vadd.f32 %v8162_v7, %v8045_v61  ;;  %v7748_v48 = vadd.f32 %v7716_v2, %v7599_v33  ;;  %v13387_v42 = vunpack.c.h.bf16 %v7802_v3  ;;  %v13389_v15 = vunpack.c.h.bf16 %v7951_v35 }
 0x864   : > { %v7451_v38 = vadd.f32 %v7419_v30, %v7302_v0  ;;  %v13391_v26 = vunpack.c.h.bf16 %v8100_v51  ;;  %v6973_v29 = vmul.f32 %v13045_v16, %v13312_v46  ;;  %v8163_v13 = vmul.f32 %v13242_v44, %v13377_v43 }
 0x865   : > { %v8264_v6 = vsel %vm363_vm1, %v8194_v40, 0.0  ;;  %v7897_v12 = vadd.f32 %v7865_v55, %v7748_v48  ;;  %v7122_v59 = vmul.f32 %v13075_v25, %v13318_v36  ;;  %v7717_v14 = vmul.f32 %v13181_v45, %v13350_v1 }
 0x866   : > { %8265 = vadd.xlane.f32.xlu0 %v8264_v6  ;;  %v7600_v47 = vadd.f32 %v7568_v9, %v7451_v38  ;;  %v7866_v34 = vmul.f32 %v13190_v18, %v13387_v42  ;;  %v8015_v46 = vmul.f32 %v13226_v10, %v13389_v15  ;;  %v8164_v21 = vmul.f32 %v13242_v44, %v13391_v26 }
 0x867   : > { %v8046_v11 = vadd.f32 %v8014_v20, %v7897_v12  ;;  %v7154_v36 = vadd.f32 %v7122_v59, %v6973_v29  ;;  %v7271_v54 = vmul.f32 %v13089_v4, %v13320_v19  ;;  %v7420_v22 = vmul.f32 %v13156_v52, %v13366_v17 }
 0x868   : > { %v7749_v41 = vadd.f32 %v7717_v14, %v7600_v47  ;;  %v7803_v8 = vpack.c.bf16 %v7783_v49, %v7782_v23  ;;  %v7952_v3 = vpack.c.bf16 %v7932_v27, %v7931_v60  ;;  %v8101_v51 = vpack.c.bf16 %v8081_v62, %v8080_v50  ;;  %v7785_v27 = vld [vmem:[#allocation2 + $0x158] sm:$0xff] }
 0x869   : > { %v8195_v35 = vadd.f32 %v8163_v13, %v8046_v11  ;;  %v7303_v37 = vadd.f32 %v7271_v54, %v7154_v36  ;;  %v6974_v31 = vmul.f32 %v13045_v16, %v13337_v58  ;;  %v7123_v19 = vmul.f32 %v13075_v25, %v13339_v39  ;;  %v7934_v47 = vld [vmem:[#allocation2 + $0x159] sm:$0xff]  ;;  %v7784_v54 = vld [vmem:[#allocation2 + $0x150] sm:$0xff] }
 0x86a   : > { %v7898_v57 = vadd.f32 %v7866_v34, %v7749_v41  ;;  %v13414_v5 = vunpack.c.l.bf16 %v7803_v8  ;;  %v13416_v32 = vunpack.c.l.bf16 %v7952_v3  ;;  %v7569_v28 = vmul.f32 %v13163_v56, %v13368_v24  ;;  %v8082_v50 = vld [vmem:[#allocation2 + $0x152] sm:$0xff]  ;;  %v8083_v62 = vld [vmem:[#allocation2 + $0x15a] sm:$0xff] }
 0x86b   : > { %v8267_v63 = vsel %vm363_vm1, %v8195_v35, 0.0  ;;  %v7452_v7 = vadd.f32 %v7420_v22, %v7303_v37  ;;  %v13423_v53 = vunpack.c.l.bf16 %v8101_v51  ;;  %v7718_v58 = vmul.f32 %v13181_v45, %v13377_v43  ;;  %v7933_v23 = vld [vmem:[#allocation2 + $0x151] sm:$0xff] }
 0x86c   : > { %8268 = vadd.xlane.f32.xlu1 %v8267_v63  ;;  %v8047_v61 = vadd.f32 %v8015_v46, %v7898_v57  ;;  %v7155_v33 = vadd.f32 %v7123_v19, %v6974_v31  ;;  %v7272_v2 = vmul.f32 %v13089_v4, %v13350_v1  ;;  %v7867_v39 = vmul.f32 %v13190_v18, %v13414_v5 }
 0x86d   : > { %v7601_v55 = vadd.f32 %v7569_v28, %v7452_v7  ;;  %v8016_v20 = vmul.f32 %v13226_v10, %v13416_v32  ;;  %v8165_v0 = vmul.f32 %v13242_v44, %v13423_v53  ;;  %v7421_v48 = vmul.f32 %v13156_v52, %v13387_v42 }
 0x86e   : > { %v8196_v30 = vadd.f32 %v8164_v21, %v8047_v61  ;;  %v7304_v40 = vadd.f32 %v7272_v2, %v7155_v33  ;;  %v13437_v9 = vunpack.c.h.bf16 %v7803_v8  ;;  %v13439_v29 = vunpack.c.h.bf16 %v7952_v3 }
 0x86f   : > { %v7750_v38 = vadd.f32 %v7718_v58, %v7601_v55  ;;  %v13441_v1 = vunpack.c.h.bf16 %v8101_v51  ;;  %v6975_v6 = vmul.f32 %v13045_v16, %v13366_v17  ;;  %v7570_v59 = vmul.f32 %v13163_v56, %v13389_v15 }
 0x870   : > { %v8270_v12 = vsel %vm363_vm1, %v8196_v30, 0.0  ;;  %v7453_v13 = vadd.f32 %v7421_v48, %v7304_v40  ;;  %v7124_v49 = vmul.f32 %v13075_v25, %v13368_v24  ;;  %v7719_v34 = vmul.f32 %v13181_v45, %v13391_v26 }
 0x871   : > { %8271 = vadd.xlane.f32.xlu0 %v8270_v12  ;;  %v7899_v14 = vadd.f32 %v7867_v39, %v7750_v38  ;;  %v7868_v46 = vmul.f32 %v13190_v18, %v13437_v9  ;;  %v8017_v17 = vmul.f32 %v13226_v10, %v13439_v29  ;;  %v7273_v24 = vmul.f32 %v13089_v4, %v13377_v43 }
 0x872   : > { %v7602_v11 = vadd.f32 %v7570_v59, %v7453_v13  ;;  %v7156_v21 = vadd.f32 %v7124_v49, %v6975_v6  ;;  %v7422_v36 = vmul.f32 %v13156_v52, %v13414_v5  ;;  %v8166_v41 = vmul.f32 %v13242_v44, %v13441_v1 }
 0x873   : > { %v8048_v60 = vadd.f32 %v8016_v20, %v7899_v14  ;;  %v7804_v22 = vpack.c.bf16 %v7785_v27, %v7784_v54  ;;  %v7953_v8 = vpack.c.bf16 %v7934_v47, %v7933_v23  ;;  %v8102_v37 = vpack.c.bf16 %v8083_v62, %v8082_v50  ;;  %v7787_v47 = vld [vmem:[#allocation2 + $0x170] sm:$0xff] }
 0x874   : > { %v7751_v3 = vadd.f32 %v7719_v34, %v7602_v11  ;;  %v7305_v35 = vadd.f32 %v7273_v24, %v7156_v21  ;;  %v6976_v51 = vmul.f32 %v13045_v16, %v13387_v42  ;;  %v7125_v19 = vmul.f32 %v13075_v25, %v13389_v15  ;;  %v7936_v50 = vld [vmem:[#allocation2 + $0x171] sm:$0xff] }
 0x875   : > { %v8197_v31 = vadd.f32 %v8165_v0, %v8048_v60  ;;  %v13464_v57 = vunpack.c.l.bf16 %v7804_v22  ;;  %v13466_v43 = vunpack.c.l.bf16 %v7953_v8  ;;  %v7571_v28 = vmul.f32 %v13163_v56, %v13416_v32  ;;  %v8084_v62 = vld [vmem:[#allocation2 + $0x16a] sm:$0xff]  ;;  %v8085_v11 = vld [vmem:[#allocation2 + $0x172] sm:$0xff] }
 0x876   : > { %v7900_v63 = vadd.f32 %v7868_v46, %v7751_v3  ;;  %v7454_v7 = vadd.f32 %v7422_v36, %v7305_v35  ;;  %v13472_v61 = vunpack.c.l.bf16 %v8102_v37  ;;  %v7720_v42 = vmul.f32 %v13181_v45, %v13423_v53  ;;  %v7786_v36 = vld [vmem:[#allocation2 + $0x168] sm:$0xff] }
 0x877   : > { %v8273_v58 = vsel %vm363_vm1, %v8197_v31, 0.0  ;;  %v7157_v33 = vadd.f32 %v7125_v19, %v6976_v51  ;;  %v7274_v2 = vmul.f32 %v13089_v4, %v13391_v26  ;;  %v7869_v15 = vmul.f32 %v13190_v18, %v13464_v57 }
 0x878   : > { %8274 = vadd.xlane.f32.xlu1 %v8273_v58  ;;  %v8049_v55 = vadd.f32 %v8017_v17, %v7900_v63  ;;  %v7603_v39 = vadd.f32 %v7571_v28, %v7454_v7  ;;  %v7423_v20 = vmul.f32 %v13156_v52, %v13437_v9  ;;  %v8018_v0 = vmul.f32 %v13226_v10, %v13466_v43 }
 0x879   : > { %v8167_v30 = vmul.f32 %v13242_v44, %v13472_v61  ;;  %v7306_v40 = vadd.f32 %v7274_v2, %v7157_v33  ;;  %v13487_v48 = vunpack.c.h.bf16 %v7804_v22  ;;  %v7572_v6 = vmul.f32 %v13163_v56, %v13439_v29  ;;  %v7935_v22 = vld [vmem:[#allocation2 + $0x169] sm:$0xff] }
 0x87a   : > { %v8198_v38 = vadd.f32 %v8166_v41, %v8049_v55  ;;  %v7752_v26 = vadd.f32 %v7720_v42, %v7603_v39  ;;  %v13491_v12 = vunpack.c.h.bf16 %v7953_v8  ;;  %v7721_v59 = vmul.f32 %v13181_v45, %v13441_v1 }
 0x87b   : > { %v7455_v13 = vadd.f32 %v7423_v20, %v7306_v40  ;;  %v6977_v49 = vmul.f32 %v13045_v16, %v13414_v5  ;;  %v7126_v27 = vmul.f32 %v13075_v25, %v13416_v32  ;;  %v7870_v46 = vmul.f32 %v13190_v18, %v13487_v48 }
 0x87c   : > { %v8276_v14 = vsel %vm363_vm1, %v8198_v38, 0.0  ;;  %v7901_v34 = vadd.f32 %v7869_v15, %v7752_v26  ;;  %v13502_v17 = vunpack.c.h.bf16 %v8102_v37  ;;  %v8019_v5 = vmul.f32 %v13226_v10, %v13491_v12 }
 0x87d   : > { %8277 = vadd.xlane.f32.xlu0 %v8276_v14  ;;  %v7604_v21 = vadd.f32 %v7572_v6, %v7455_v13  ;;  %v7158_v24 = vadd.f32 %v7126_v27, %v6977_v49  ;;  %v7275_v32 = vmul.f32 %v13089_v4, %v13423_v53  ;;  %v7424_v23 = vmul.f32 %v13156_v52, %v13464_v57 }
 0x87e   : > { %v8050_v54 = vadd.f32 %v8018_v0, %v7901_v34  ;;  %v7573_v60 = vmul.f32 %v13163_v56, %v13466_v43  ;;  %v7805_v41 = vpack.c.bf16 %v7787_v47, %v7786_v36  ;;  %v7954_v35 = vpack.c.bf16 %v7936_v50, %v7935_v22  ;;  %v7789_v50 = vld [vmem:[#allocation2 + $0x188] sm:$0xff] }
 0x87f   : > { %v7753_v8 = vadd.f32 %v7721_v59, %v7604_v21  ;;  %v7307_v3 = vadd.f32 %v7275_v32, %v7158_v24  ;;  %v8103_v37 = vpack.c.bf16 %v8085_v11, %v8084_v62  ;;  %v6978_v53 = vmul.f32 %v13045_v16, %v13437_v9  ;;  %v7938_v62 = vld [vmem:[#allocation2 + $0x189] sm:$0xff] }
 0x880   : > { %v8199_v51 = vadd.f32 %v8167_v30, %v8050_v54  ;;  %v13512_v31 = vunpack.c.l.bf16 %v7805_v41  ;;  %v7127_v19 = vmul.f32 %v13075_v25, %v13439_v29  ;;  %v13518_v28 = vunpack.c.l.bf16 %v7954_v35  ;;  %v8086_v24 = vld [vmem:[#allocation2 + $0x182] sm:$0xff] }
 0x881   : > { %v7902_v63 = vadd.f32 %v7870_v46, %v7753_v8  ;;  %v7456_v7 = vadd.f32 %v7424_v23, %v7307_v3  ;;  %v13520_v58 = vunpack.c.l.bf16 %v8103_v37  ;;  %v8168_v33 = vmul.f32 %v13242_v44, %v13502_v17 }
 0x882   : > { %v8279_v42 = vsel %vm363_vm1, %v8199_v51, 0.0  ;;  %v7159_v2 = vadd.f32 %v7127_v19, %v6978_v53  ;;  %v7276_v55 = vmul.f32 %v13089_v4, %v13441_v1  ;;  %v7722_v29 = vmul.f32 %v13181_v45, %v13472_v61 }
 0x883   : > { %8280 = vadd.xlane.f32.xlu1 %v8279_v42  ;;  %v8051_v9 = vadd.f32 %v8019_v5, %v7902_v63  ;;  %v7605_v39 = vadd.f32 %v7573_v60, %v7456_v7  ;;  %v7871_v15 = vmul.f32 %v13190_v18, %v13512_v31  ;;  %v8020_v20 = vmul.f32 %v13226_v10, %v13518_v28  ;;  %v7788_v60 = vld [vmem:[#allocation2 + $0x180] sm:$0xff] }
 0x884   : > { %v8169_v0 = vmul.f32 %v13242_v44, %v13520_v58  ;;  %v7308_v30 = vadd.f32 %v7276_v55, %v7159_v2  ;;  %v7425_v40 = vmul.f32 %v13156_v52, %v13487_v48  ;;  %v7835_v26 = vunpack.c.h.bf16 %v7805_v41  ;;  %v7937_v41 = vld [vmem:[#allocation2 + $0x181] sm:$0xff] }
 0x885   : > { %v8200_v1 = vadd.f32 %v8168_v33, %v8051_v9  ;;  %v7754_v38 = vadd.f32 %v7722_v29, %v7605_v39  ;;  %v7984_v6 = vunpack.c.h.bf16 %v7954_v35  ;;  %v7574_v59 = vmul.f32 %v13163_v56, %v13491_v12  ;;  %v13568_v33 = vpop.xlane.xlu0 %8208 }
 0x886   : > { %v7457_v13 = vadd.f32 %v7425_v40, %v7308_v30  ;;  %v6979_v49 = vmul.f32 %v13045_v16, %v13464_v57  ;;  %v7128_v27 = vmul.f32 %v13075_v25, %v13466_v43  ;;  %v7723_v34 = vmul.f32 %v13181_v45, %v13502_v17  ;;  %v8087_v43 = vld [vmem:[#allocation2 + $0x18a] sm:$0xff] }
 0x887   : > { %v8282_v47 = vsel %vm363_vm1, %v8200_v1, 0.0  ;;  %v7903_v14 = vadd.f32 %v7871_v15, %v7754_v38  ;;  %v13546_v46 = vunpack.c.h.bf16 %v8103_v37  ;;  %v7872_v21 = vmul.f32 %v13190_v18, %v7835_v26 }
 0x888   : > { %8283 = vadd.xlane.f32.xlu0 %v8282_v47  ;;  %v7606_v11 = vadd.f32 %v7574_v59, %v7457_v13  ;;  %v7160_v5 = vadd.f32 %v7128_v27, %v6979_v49  ;;  %v7277_v57 = vmul.f32 %v13089_v4, %v13472_v61  ;;  %v8021_v36 = vmul.f32 %v13226_v10, %v7984_v6  ;;  %v9990_v59 = vld [vmem:[%s13750_s5] ss:$0 sm:$0xff]  ;;  %v7790_v27 = vld [vmem:[#allocation2 + $0x198] sm:$0xff] }
 0x889   : > { %v8052_v32 = vadd.f32 %v8020_v20, %v7903_v14  ;;  %v7426_v54 = vmul.f32 %v13156_v52, %v13512_v31  ;;  %v7575_v23 = vmul.f32 %v13163_v56, %v13518_v28  ;;  %v13556_v3 = vpack.c.bf16 %v7789_v50, %v7788_v60 }
 0x88a   : > { %v7755_v22 = vadd.f32 %v7723_v34, %v7606_v11  ;;  %v7309_v8 = vadd.f32 %v7277_v57, %v7160_v5  ;;  %v13558_v35 = vpack.c.bf16 %v7938_v62, %v7937_v41  ;;  %v13560_v37 = vpack.c.bf16 %v8087_v43, %v8086_v24  ;;  %v7791_v62 = vld [vmem:[#allocation2 + $0x1a0] sm:$0xff]  ;;  %v13596_v5 = vpop.xlane.xlu0 %8214 }
 0x88b   : > { %v8201_v61 = vadd.f32 %v8169_v0, %v8052_v32  ;;  %v6980_v51 = vmul.f32 %v13045_v16, %v13487_v48  ;;  %v7129_v53 = vmul.f32 %v13075_v25, %v13491_v12  ;;  %v7836_v7 = vunpack.c.l.bf16 %v13556_v3  ;;  %v7939_v11 = vld [vmem:[#allocation2 + $0x199] sm:$0xff] }
 0x88c   : > { %v7904_v19 = vadd.f32 %v7872_v21, %v7755_v22  ;;  %v7458_v63 = vadd.f32 %v7426_v54, %v7309_v8  ;;  %v7985_v42 = vunpack.c.l.bf16 %v13558_v35  ;;  %v8170_v55 = vmul.f32 %v13242_v44, %v13546_v46  ;;  %v7940_v21 = vld [vmem:[#allocation2 + $0x1a1] sm:$0xff] }
 0x88d   : > { %v8285_v2 = vsel %vm363_vm1, %v8201_v61, 0.0  ;;  %v7161_v9 = vadd.f32 %v7129_v53, %v6980_v51  ;;  %v7278_v16 = vmul.f32 %v13089_v4, %v13502_v17  ;;  %v7724_v39 = vmul.f32 %v13181_v45, %v13520_v58  ;;  %v8088_v32 = vld [vmem:[#allocation2 + $0x19a] sm:$0xff] }
 0x88e   : > { %8286 = vadd.xlane.f32.xlu1 %v8285_v2  ;;  %v8053_v48 = vadd.f32 %v8021_v36, %v7904_v19  ;;  %v7607_v12 = vadd.f32 %v7575_v23, %v7458_v63  ;;  %v8134_v29 = vunpack.c.l.bf16 %v13560_v37  ;;  %v7873_v15 = vmul.f32 %v13190_v18, %v7836_v7  ;;  %v8089_v36 = vld [vmem:[#allocation2 + $0x1a2] sm:$0xff] }
 0x88f   : > { %v7310_v20 = vadd.f32 %v7278_v16, %v7161_v9  ;;  %v7427_v0 = vmul.f32 %v13156_v52, %v7835_v26  ;;  %v8022_v4 = vmul.f32 %v13226_v10, %v7985_v42  ;;  %v7837_v17 = vunpack.c.h.bf16 %v13556_v3  ;;  %v9992_v16 = vld [vmem:[%s13750_s5 + $0x1] ss:$0 sm:$0xff] }
 0x890   : > { %v8202_v30 = vadd.f32 %v8170_v55, %v8053_v48  ;;  %v7756_v40 = vadd.f32 %v7724_v39, %v7607_v12  ;;  %v7576_v38 = vmul.f32 %v13163_v56, %v7984_v6  ;;  %v7986_v13 = vunpack.c.h.bf16 %v13558_v35 }
 0x891   : > { %v7459_v1 = vadd.f32 %v7427_v0, %v7310_v20  ;;  %v6982_v49 = vmul.f32 %v9990_v59, %v7835_v26  ;;  %v8171_v34 = vmul.f32 %v13242_v44, %v8134_v29  ;;  %v7131_v50 = vmul.f32 %v13075_v25, %v7984_v6  ;;  %v9991_v6 = vld [vmem:[%s13750_s5 + $0x2] ss:$0 sm:$0xff] }
 0x892   : > { %v8288_v47 = vsel %vm363_vm1, %v8202_v30, 0.0  ;;  %v7905_v14 = vadd.f32 %v7873_v15, %v7756_v40  ;;  %v7725_v26 = vmul.f32 %v13181_v45, %v13546_v46  ;;  %v7874_v24 = vmul.f32 %v13190_v18, %v7837_v17  ;;  %v8218_v20 = vpop.xlane.xlu0 %8217 }
 0x893   : > { %8289 = vadd.xlane.f32.xlu0 %v8288_v47  ;;  %v7608_v57 = vadd.f32 %v7576_v38, %v7459_v1  ;;  %v8135_v43 = vunpack.c.h.bf16 %v13560_v37  ;;  %v8023_v23 = vmul.f32 %v13226_v10, %v7986_v13  ;;  %v7163_v25 = vadd.f32 %v7131_v50, %v6982_v49 }
 0x894   : > { %v8054_v54 = vadd.f32 %v8022_v4, %v7905_v14  ;;  %v7280_v60 = vmul.f32 %v9991_v6, %v13546_v46  ;;  %v7429_v22 = vmul.f32 %v13156_v52, %v7837_v17  ;;  %v7807_v8 = vpack.c.bf16 %v7791_v62, %v7790_v27  ;;  %v8212_v4 = vpop.xlane.xlu1 %8211 }
 0x895   : > { %v7757_v41 = vadd.f32 %v7725_v26, %v7608_v57  ;;  %v7956_v61 = vpack.c.bf16 %v7940_v21, %v7939_v11  ;;  %v8105_v19 = vpack.c.bf16 %v8089_v36, %v8088_v32  ;;  %v6981_v63 = vmul.f32 %v9990_v59, %v13512_v31  ;;  %v13620_v59 = vld [vmem:[#allocation4] ss:$0 sm:$0xff] }
 0x896   : > { %v8203_v51 = vadd.f32 %v8171_v34, %v8054_v54  ;;  %v7312_v53 = vadd.f32 %v7280_v60, %v7163_v25  ;;  %v7839_v55 = vunpack.c.h.bf16 %v7807_v8  ;;  %v7130_v48 = vmul.f32 %v9992_v16, %v13518_v28 }
 0x897   : > { %v7906_v2 = vadd.f32 %v7874_v24, %v7757_v41  ;;  %v7988_v9 = vunpack.c.h.bf16 %v7956_v61  ;;  %v7578_v39 = vmul.f32 %v13163_v56, %v7986_v13  ;;  %v8137_v15 = vunpack.c.h.bf16 %v8105_v19 }
 0x898   : > { %v8291_v46 = vsel %vm363_vm1, %v8203_v51, 0.0  ;;  %v7461_v12 = vadd.f32 %v7429_v22, %v7312_v53  ;;  %v8172_v31 = vmul.f32 %v13242_v44, %v8135_v43  ;;  %v7162_v30 = vadd.f32 %v7130_v48, %v6981_v63  ;;  %v8221_v57 = vpop.xlane.xlu1 %8220 }
 0x899   : > { %8292 = vadd.xlane.f32.xlu1 %v8291_v46  ;;  %v8055_v0 = vadd.f32 %v8023_v23, %v7906_v2  ;;  %v7279_v40 = vmul.f32 %v9991_v6, %v13520_v58  ;;  %v7727_v1 = vmul.f32 %v13181_v45, %v8135_v43  ;;  %v7876_v28 = vmul.f32 %v13190_v18, %v7839_v55 }
 0x89a   : > { %v7610_v17 = vadd.f32 %v7578_v39, %v7461_v12  ;;  %v8025_v38 = vmul.f32 %v13226_v10, %v7988_v9  ;;  %v7428_v27 = vmul.f32 %v13156_v52, %v7836_v7  ;;  %v7838_v47 = vunpack.c.l.bf16 %v7807_v8 }
 0x89b   : > { %v8204_v13 = vadd.f32 %v8172_v31, %v8055_v0  ;;  %v7311_v49 = vadd.f32 %v7279_v40, %v7162_v30  ;;  %v8174_v58 = vmul.f32 %v13242_v44, %v8137_v15  ;;  %v7577_v34 = vmul.f32 %v13163_v56, %v7985_v42 }
 0x89c   : > { %v7759_v14 = vadd.f32 %v7727_v1, %v7610_v17  ;;  %v7726_v50 = vmul.f32 %v13181_v45, %v8134_v29  ;;  %v7987_v21 = vunpack.c.l.bf16 %v7956_v61  ;;  %v8311_v3 = vadd.f32 %v13620_v59, %v8212_v4 }
 0x89d   : > { %v8294_v62 = vsel %vm363_vm1, %v8204_v13, 0.0  ;;  %v7460_v11 = vadd.f32 %v7428_v27, %v7311_v49  ;;  %v7875_v7 = vmul.f32 %v13190_v18, %v7838_v47  ;;  %v8136_v26 = vunpack.c.l.bf16 %v8105_v19 }
 0x89e   : > { %8295 = vadd.xlane.f32.xlu0 %v8294_v62  ;;  %v7908_v52 = vadd.f32 %v7876_v28, %v7759_v14  ;;  %v8310_v35 = vadd.f32 %v13620_v59, %v13568_v33  ;;  %v8224_v56 = vpop.xlane.xlu0 %8223  ;;  %9912 = vtanh.f32 %v8311_v3  ;;  %v8312_v45 = vadd.f32 %v13620_v59, %v13596_v5 }
 0x89f   : > { %v7609_v42 = vadd.f32 %v7577_v34, %v7460_v11  ;;  %v8313_v37 = vadd.f32 %v13620_v59, %v8218_v20  ;;  %v8314_v24 = vadd.f32 %v13620_v59, %v8221_v57  ;;  %v8315_v43 = vadd.f32 %v13620_v59, %v8224_v56 }
 0x8a0   : > { %v8057_v29 = vadd.f32 %v8025_v38, %v7908_v52  ;;  %9914 = vtanh.f32 %v8310_v35  ;;  %v8024_v32 = vmul.f32 %v13226_v10, %v7987_v21  ;;  %v8173_v54 = vmul.f32 %v13242_v44, %v8136_v26 }
 0x8a1   : > { %v7758_v18 = vadd.f32 %v7726_v50, %v7609_v42  ;;  %9916 = vtanh.f32 %v8312_v45 }
 0x8a2   : > { %v8206_v33 = vadd.f32 %v8174_v58, %v8057_v29  ;;  %9918 = vtanh.f32 %v8313_v37 }
 0x8a3   : > { %v7907_v36 = vadd.f32 %v7875_v7, %v7758_v18  ;;  %9920 = vtanh.f32 %v8314_v24 }
 0x8a4   : > { %v8300_v5 = vsel %vm363_vm1, %v8206_v33, 0.0  ;;  %9922 = vtanh.f32 %v8315_v43 }
 0x8a5   : > { %8301 = vadd.xlane.f32.xlu0 %v8300_v5  ;;  %v8056_v23 = vadd.f32 %v8024_v32, %v7907_v36 }
 0x8a6   : > { %v8227_v25 = vpop.xlane.xlu1 %8226 }
 0x8a7   : > { %v8205_v6 = vadd.f32 %v8173_v54, %v8056_v23  ;;  %v8316_v10 = vadd.f32 %v13620_v59, %v8227_v25 }
 0x8a8   : > { %v9913_v44 = vpop.eup %9912 }
 0x8a9   : > { %v8297_v60 = vsel %vm363_vm1, %v8205_v6, 0.0  ;;  %9924 = vtanh.f32 %v8316_v10  ;;  %8376 = vst.msk [vmem:[%s13649_s25 + $0x8] sm:$0xff] %vm8374_vm4, %v9913_v44 }
 0x8aa   : > { %v9915_v41 = vpop.eup %9914  ;;  %8298 = vadd.xlane.f32.xlu1 %v8297_v60 }
 0x8ab   : > { %v9917_v22 = vpop.eup %9916  ;;  %8375 = vst.msk [vmem:[%s13649_s25] sm:$0xff] %vm8374_vm4, %v9915_v41  ;;  %v8230_v8 = vpop.xlane.xlu0 %8229 }
 0x8ac   : > { %v9919_v61 = vpop.eup %9918  ;;  %8377 = vst.msk [vmem:[%s13649_s25 + $0x10] sm:$0xff] %vm8374_vm4, %v9917_v22  ;;  %v8317_v51 = vadd.f32 %v13620_v59, %v8230_v8 }
 0x8ad   : > { %v9921_v53 = vpop.eup %9920  ;;  %8378 = vst.msk [vmem:[%s13649_s25 + $0x18] sm:$0xff] %vm8374_vm4, %v9919_v61 }
 0x8ae   : > { %v9923_v19 = vpop.eup %9922  ;;  %8379 = vst.msk [vmem:[%s13649_s25 + $0x20] sm:$0xff] %vm8374_vm4, %v9921_v53  ;;  %9926 = vtanh.f32 %v8317_v51 }
 0x8af   : > { %8380 = vst.msk [vmem:[%s13649_s25 + $0x28] sm:$0xff] %vm8374_vm4, %v9923_v19 }
 0x8b0   : > { %v8233_v63 = vpop.xlane.xlu1 %8232 }
 0x8b1   : > { %v8318_v2 = vadd.f32 %v13620_v59, %v8233_v63 }
 0x8b3   : > { %v9925_v55 = vpop.eup %9924  ;;  %9928 = vtanh.f32 %v8318_v2 }
 0x8b4   : > { %8381 = vst.msk [vmem:[%s13649_s25 + $0x30] sm:$0xff] %vm8374_vm4, %v9925_v55 }
 0x8b8   : > { %v9927_v9 = vpop.eup %9926 }
 0x8b9   : > { %8382 = vst.msk [vmem:[%s13649_s25 + $0x38] sm:$0xff] %vm8374_vm4, %v9927_v9 }
 0x8ba   : > { %v8236_v16 = vpop.xlane.xlu0 %8235 }
 0x8bb   : > { %v8319_v48 = vadd.f32 %v13620_v59, %v8236_v16 }
 0x8bd   : > { %v9929_v46 = vpop.eup %9928  ;;  %9930 = vtanh.f32 %v8319_v48 }
 0x8be   : > { %8383 = vst.msk [vmem:[%s13649_s25 + $0x40] sm:$0xff] %vm8374_vm4, %v9929_v46 }
 0x8c1   : > { %v8239_v12 = vpop.xlane.xlu1 %8238 }
 0x8c2   : > { %v8320_v39 = vadd.f32 %v13620_v59, %v8239_v12 }
 0x8c4   : > { %9932 = vtanh.f32 %v8320_v39 }
 0x8c5   : > { %v8242_v15 = vpop.xlane.xlu0 %8241 }
 0x8c6   : > { %v8321_v20 = vadd.f32 %v13620_v59, %v8242_v15 }
 0x8c7   : > { %v9931_v0 = vpop.eup %9930 }
 0x8c8   : > { %8384 = vst.msk [vmem:[%s13649_s25 + $0x48] sm:$0xff] %vm8374_vm4, %v9931_v0  ;;  %9934 = vtanh.f32 %v8321_v20 }
 0x8ce   : > { %v9933_v31 = vpop.eup %9932  ;;  %v8245_v30 = vpop.xlane.xlu1 %8244 }
 0x8cf   : > { %8385 = vst.msk [vmem:[%s13649_s25 + $0x50] sm:$0xff] %vm8374_vm4, %v9933_v31  ;;  %v8322_v40 = vadd.f32 %v13620_v59, %v8245_v30 }
 0x8d1   : > { %9936 = vtanh.f32 %v8322_v40  ;;  %v8248_v4 = vpop.xlane.xlu0 %8247 }
 0x8d2   : > { %v9935_v17 = vpop.eup %9934  ;;  %v8323_v1 = vadd.f32 %v13620_v59, %v8248_v4 }
 0x8d3   : > { %8386 = vst.msk [vmem:[%s13649_s25 + $0x58] sm:$0xff] %vm8374_vm4, %v9935_v17 }
 0x8d4   : > { %9938 = vtanh.f32 %v8323_v1 }
 0x8d8   : > { %v8251_v28 = vpop.xlane.xlu1 %8250 }
 0x8d9   : > { %v8324_v38 = vadd.f32 %v13620_v59, %v8251_v28 }
 0x8db   : > { %v9937_v13 = vpop.eup %9936  ;;  %9940 = vtanh.f32 %v8324_v38 }
 0x8dc   : > { %8387 = vst.msk [vmem:[%s13649_s25 + $0x60] sm:$0xff] %vm8374_vm4, %v9937_v13  ;;  %v8254_v49 = vpop.xlane.xlu0 %8253 }
 0x8dd   : > { %v8325_v27 = vadd.f32 %v13620_v59, %v8254_v49 }
 0x8de   : > { %v9939_v47 = vpop.eup %9938 }
 0x8df   : > { %8388 = vst.msk [vmem:[%s13649_s25 + $0x68] sm:$0xff] %vm8374_vm4, %v9939_v47  ;;  %9942 = vtanh.f32 %v8325_v27 }
 0x8e3   : > { %v8257_v14 = vpop.xlane.xlu1 %8256 }
 0x8e4   : > { %v8326_v58 = vadd.f32 %v13620_v59, %v8257_v14 }
 0x8e5   : > { %v9941_v34 = vpop.eup %9940 }
 0x8e6   : > { %8389 = vst.msk [vmem:[%s13649_s25 + $0x70] sm:$0xff] %vm8374_vm4, %v9941_v34  ;;  %9944 = vtanh.f32 %v8326_v58 }
 0x8e8   : > { %v8260_v50 = vpop.xlane.xlu0 %8259 }
 0x8e9   : > { %v9943_v62 = vpop.eup %9942  ;;  %v8327_v11 = vadd.f32 %v13620_v59, %v8260_v50 }
 0x8ea   : > { %8390 = vst.msk [vmem:[%s13649_s25 + $0x78] sm:$0xff] %vm8374_vm4, %v9943_v62 }
 0x8eb   : > { %9946 = vtanh.f32 %v8327_v11 }
 0x8ee   : > { %v8263_v21 = vpop.xlane.xlu1 %8262 }
 0x8ef   : > { %v8328_v3 = vadd.f32 %v13620_v59, %v8263_v21 }
 0x8f0   : > { %v9945_v57 = vpop.eup %9944 }
 0x8f1   : > { %8391 = vst.msk [vmem:[%s13649_s25 + $0x80] sm:$0xff] %vm8374_vm4, %v9945_v57  ;;  %9948 = vtanh.f32 %v8328_v3 }
 0x8f3   : > { %v8266_v52 = vpop.xlane.xlu0 %8265 }
 0x8f4   : > { %v8329_v7 = vadd.f32 %v13620_v59, %v8266_v52 }
 0x8f5   : > { %v9947_v26 = vpop.eup %9946 }
 0x8f6   : > { %8392 = vst.msk [vmem:[%s13649_s25 + $0x88] sm:$0xff] %vm8374_vm4, %v9947_v26  ;;  %9950 = vtanh.f32 %v8329_v7 }
 0x8f9   : > { %v8269_v35 = vpop.xlane.xlu1 %8268 }
 0x8fa   : > { %v8330_v56 = vadd.f32 %v13620_v59, %v8269_v35 }
 0x8fb   : > { %v9949_v42 = vpop.eup %9948 }
 0x8fc   : > { %8393 = vst.msk [vmem:[%s13649_s25 + $0x90] sm:$0xff] %vm8374_vm4, %v9949_v42  ;;  %9952 = vtanh.f32 %v8330_v56 }
 0x8fe   : > { %v8272_v45 = vpop.xlane.xlu0 %8271 }
 0x8ff   : > { %v8331_v37 = vadd.f32 %v13620_v59, %v8272_v45 }
 0x900   : > { %v9951_v29 = vpop.eup %9950 }
 0x901   : > { %8394 = vst.msk [vmem:[%s13649_s25 + $0x98] sm:$0xff] %vm8374_vm4, %v9951_v29  ;;  %9954 = vtanh.f32 %v8331_v37 }
 0x905   : > { %v8275_v24 = vpop.xlane.xlu1 %8274 }
 0x906   : > { %v9953_v43 = vpop.eup %9952  ;;  %v8332_v18 = vadd.f32 %v13620_v59, %v8275_v24 }
 0x907   : > { %8395 = vst.msk [vmem:[%s13649_s25 + $0xa0] sm:$0xff] %vm8374_vm4, %v9953_v43 }
 0x908   : > { %9956 = vtanh.f32 %v8332_v18 }
 0x90a   : > { %v8278_v32 = vpop.xlane.xlu0 %8277 }
 0x90b   : > { %v9955_v33 = vpop.eup %9954  ;;  %v8333_v36 = vadd.f32 %v13620_v59, %v8278_v32 }
 0x90c   : > { %8396 = vst.msk [vmem:[%s13649_s25 + $0xa8] sm:$0xff] %vm8374_vm4, %v9955_v33 }
 0x90d   : > { %9958 = vtanh.f32 %v8333_v36 }
 0x910   : > { %v8281_v54 = vpop.xlane.xlu1 %8280 }
 0x911   : > { %v8334_v5 = vadd.f32 %v13620_v59, %v8281_v54 }
 0x912   : > { %v9957_v23 = vpop.eup %9956 }
 0x913   : > { %8397 = vst.msk [vmem:[%s13649_s25 + $0xb0] sm:$0xff] %vm8374_vm4, %v9957_v23  ;;  %9960 = vtanh.f32 %v8334_v5 }
 0x915   : > { %v8284_v25 = vpop.xlane.xlu0 %8283 }
 0x916   : > { %v8335_v6 = vadd.f32 %v13620_v59, %v8284_v25 }
 0x917   : > { %v9959_v10 = vpop.eup %9958 }
 0x918   : > { %8398 = vst.msk [vmem:[%s13649_s25 + $0xb8] sm:$0xff] %vm8374_vm4, %v9959_v10  ;;  %9962 = vtanh.f32 %v8335_v6 }
 0x91b   : > { %v8287_v44 = vpop.xlane.xlu1 %8286 }
 0x91c   : > { %v8336_v60 = vadd.f32 %v13620_v59, %v8287_v44 }
 0x91d   : > { %v9961_v41 = vpop.eup %9960 }
 0x91e   : > { %8399 = vst.msk [vmem:[%s13649_s25 + $0xc0] sm:$0xff] %vm8374_vm4, %v9961_v41  ;;  %9964 = vtanh.f32 %v8336_v60 }
 0x920   : > { %v8290_v22 = vpop.xlane.xlu0 %8289 }
 0x921   : > { %v8337_v8 = vadd.f32 %v13620_v59, %v8290_v22 }
 0x922   : > { %v9963_v61 = vpop.eup %9962 }
 0x923   : > { %8400 = vst.msk [vmem:[%s13649_s25 + $0xc8] sm:$0xff] %vm8374_vm4, %v9963_v61  ;;  %9966 = vtanh.f32 %v8337_v8 }
 0x926   : > { %v8293_v51 = vpop.xlane.xlu1 %8292 }
 0x927   : > { %v8338_v53 = vadd.f32 %v13620_v59, %v8293_v51 }
 0x928   : > { %v9965_v19 = vpop.eup %9964 }
 0x929   : > { %8401 = vst.msk [vmem:[%s13649_s25 + $0xd0] sm:$0xff] %vm8374_vm4, %v9965_v19  ;;  %9968 = vtanh.f32 %v8338_v53 }
 0x92b   : > { %v8296_v63 = vpop.xlane.xlu0 %8295 }
 0x92c   : > { %v8339_v2 = vadd.f32 %v13620_v59, %v8296_v63 }
 0x92d   : > { %v9967_v55 = vpop.eup %9966 }
 0x92e   : > { %8402 = vst.msk [vmem:[%s13649_s25 + $0xd8] sm:$0xff] %vm8374_vm4, %v9967_v55  ;;  %9970 = vtanh.f32 %v8339_v2 }
 0x932   : > { %v8302_v9 = vpop.xlane.xlu0 %8301 }
 0x933   : > { %v9969_v16 = vpop.eup %9968  ;;  %v8341_v48 = vadd.f32 %v13620_v59, %v8302_v9 }
 0x934   : > { %8403 = vst.msk [vmem:[%s13649_s25 + $0xe0] sm:$0xff] %vm8374_vm4, %v9969_v16 }
 0x935   : > { %9972 = vtanh.f32 %v8341_v48 }
 0x937   : > { %v8299_v46 = vpop.xlane.xlu1 %8298 }
 0x938   : > { %v9971_v12 = vpop.eup %9970  ;;  %v8340_v39 = vadd.f32 %v13620_v59, %v8299_v46 }
 0x939   : > { %8404 = vst.msk [vmem:[%s13649_s25 + $0xe8] sm:$0xff] %vm8374_vm4, %v9971_v12 }
 0x93a   : > { %9974 = vtanh.f32 %v8340_v39 }
 0x93f   : > { %v9973_v15 = vpop.eup %9972 }
 0x940   : > { %8406 = vst.msk [vmem:[%s13649_s25 + $0xf8] sm:$0xff] %vm8374_vm4, %v9973_v15 }
 0x944   : > { %v9975_v20 = vpop.eup %9974 }
 0x945   : > { %8405 = vst.msk [vmem:[%s13649_s25 + $0xf0] sm:$0xff] %vm8374_vm4, %v9975_v20 }
 0x946 PF: > { %s22_s15 = sadd.s32 1, %s9999_s15  }
 0x947   : > { %p19_p4 = scmp.ge.s32.totalorder %s22_s15, 4  }
 0x949   :  { %21 = sbr.rel (!%p19_p4) target bundleno = 3 (0x3), region = 92 }

</bundles_post_ra>
